<compile_context>
chip_gen: v7x
topology: tpu7x:2x2x1
jax: 0.10.0
libtpu: 0.0.40
codegen_flags: <defaults>
</compile_context>

<pallas_src>
import functools

import jax
import jax.numpy as jnp
from jax.experimental import pallas as pl
from jax.experimental.pallas import tpu as pltpu

# ----------------------------- problem sizes (demo) -----------------------------
B = 2
H = W = 16
BN_EPS = 1e-5


def _round_up(n, m):
    return ((n + m - 1) // m) * m


# ----------------------------- fused Pallas kernel -----------------------------
def make_basic_block_kernel(Bb, Hh, Ww, Cin, Cout, stride, has_downsample,
                            Hp1, Wp1, Hp2, Wp2):
    Ho = (Hh - 1) // stride + 1
    Wo = (Ww - 1) // stride + 1
    M = Bb * Ho * Wo

    def kernel(x_ref, w1_ref, b1_ref, w2_ref, b2_ref, *rest):
        if has_downsample:
            wds_ref, bds_ref, o_ref, xp1_ref, xp2_ref = rest
        else:
            o_ref, xp1_ref, xp2_ref = rest

        # ---- zero-pad the input into a VMEM scratch (done once: kernel is grid-free) ----
        xp1_ref[...] = jnp.zeros((Bb, Hp1, Wp1, Cin), jnp.float32)
        xp1_ref[:, 1:Hh + 1, 1:Ww + 1, :] = x_ref[...]
        xpad = xp1_ref[...]                                     # (B, Hp1, Wp1, Cin) f32

        # ---- per-tap slabs of conv1, already at OUTPUT resolution (Ho, Wo) ----
        if stride == 1:
            xpad_b = xpad.astype(jnp.bfloat16)

            def slab1(i, j):                                    # (B, Ho, Wo, Cin) bf16
                return xpad_b[:, i:i + Ho, j:j + Wo, :]

            x_ds = None
        else:
            # Strided columns first: three hoisted one-hot selection matmuls
            # (sel_j[o, w] = 1 iff w == stride*o + j), then strided rows via a cheap
            # leading-dim reshape.  conv1 then only runs on the Ho*Wo kept positions.
            w_ids = jax.lax.broadcasted_iota(jnp.int32, (Wo, Wp1), 1)
            o_ids = jax.lax.broadcasted_iota(jnp.int32, (Wo, Wp1), 0)
            xrows = xpad.reshape(Bb * Hp1, Wp1, Cin)
            csel = []
            for j in range(3):
                sel = (w_ids == stride * o_ids + j).astype(jnp.float32)
                sel = jnp.broadcast_to(sel[None], (Bb * Hp1, Wo, Wp1))
                cj = jnp.einsum('xow,xwc->xoc', sel, xrows,
                                preferred_element_type=jnp.float32)
                csel.append(cj.reshape(Bb, Hp1, Wo, Cin))

            def rowsel(a, i):                                   # keep rows i, i+stride, ...
                t = a[:, i:i + stride * Ho]
                return t.reshape(Bb, Ho, stride, Wo, Cin)[:, :, 0]

            def slab1(i, j):
                return rowsel(csel[j], i).astype(jnp.bfloat16)

            x_ds = rowsel(csel[1], 1)                           # == x[:, ::s, ::s, :]

        # ---- conv1 + folded BN1 + ReLU: im2col -> one fat-K (9*Cin) MXU matmul ----
        p1 = jnp.concatenate(
            [slab1(i, j).reshape(M, Cin) for i in range(3) for j in range(3)],
            axis=-1)                                            # (M, 9*Cin) bf16
        y1 = jnp.dot(p1, w1_ref[...], preferred_element_type=jnp.float32)
        y1 = jnp.maximum(y1 + b1_ref[...], 0.0)                 # (M, Cout) f32

        # ---- zero-pad conv1 output for conv2 (again: written exactly once) ----
        xp2_ref[...] = jnp.zeros((Bb, Hp2, Wp2, Cout), jnp.float32)
        xp2_ref[:, 1:Ho + 1, 1:Wo + 1, :] = y1.reshape(Bb, Ho, Wo, Cout)
        ypad_b = xp2_ref[...].astype(jnp.bfloat16)              # (B, Hp2, Wp2, Cout)

        # ---- conv2 (3x3 / stride 1) + folded BN2: one fat-K (9*Cout) MXU matmul ----
        p2 = jnp.concatenate(
            [ypad_b[:, i:i + Ho, j:j + Wo, :].reshape(M, Cout)
             for i in range(3) for j in range(3)],
            axis=-1)                                            # (M, 9*Cout) bf16
        y2 = jnp.dot(p2, w2_ref[...], preferred_element_type=jnp.float32) + b2_ref[...]

        # ---- residual path (optional 1x1-stride conv + folded BN) ----
        if has_downsample:
            res = jnp.dot(x_ds.reshape(M, Cin).astype(jnp.bfloat16), wds_ref[...],
                          preferred_element_type=jnp.float32) + bds_ref[...]
        else:
            res = x_ref[...].reshape(M, Cin)                    # Cin == Cout here

        # ---- add + ReLU; store transposed so the last (lane) dim is M >= 128 ----
        out = jnp.maximum(res + y2, 0.0)                        # (M, Cout) f32
        o_ref[...] = out.T                                      # (Cout, M), unmasked vst

    return kernel


# ----------------------------- host wrapper -----------------------------
def _fold_bn(gamma, beta, mean, var, eps=BN_EPS):
    scale = gamma * jax.lax.rsqrt(var + eps)
    return scale, beta - mean * scale


def basic_block_forward(x, params, *, stride):
    """x: (B, H, W, Cin) float32 NHWC. Returns (B, Ho, Wo, Cout) float32 NHWC."""
    Bb, Hh, Ww, Cin = x.shape
    Cout = params['conv1_w'].shape[0]
    Ho = (Hh - 1) // stride + 1
    Wo = (Ww - 1) // stride + 1
    M = Bb * Ho * Wo
    has_ds = stride != 1
    if not has_ds:
        assert Cin == Cout, "stride==1 requires in_planes == planes in BasicBlock"

    # Host-side parameter folding (tiny, once per call): BN scale folded into the conv
    # weights and cast to bf16 for the MXU; the per-channel bias stays f32.
    s1, b1 = _fold_bn(params['bn1_g'], params['bn1_b'], params['bn1_mean'], params['bn1_var'])
    s2, b2 = _fold_bn(params['bn2_g'], params['bn2_b'], params['bn2_mean'], params['bn2_var'])
    w1 = (jnp.transpose(params['conv1_w'], (2, 3, 1, 0)).reshape(9 * Cin, Cout)
          * s1).astype(jnp.bfloat16)
    w2 = (jnp.transpose(params['conv2_w'], (2, 3, 1, 0)).reshape(9 * Cout, Cout)
          * s2).astype(jnp.bfloat16)

    args = [x, w1, b1.reshape(1, Cout), w2, b2.reshape(1, Cout)]
    if has_ds:
        sd, bd = _fold_bn(params['ds_bn_g'], params['ds_bn_b'],
                          params['ds_bn_mean'], params['ds_bn_var'])
        wds = (params['ds_conv_w'][:, :, 0, 0].T * sd).astype(jnp.bfloat16)
        args += [wds, bd.reshape(1, Cout)]

    # Padded-scratch extents (W padded up to a multiple of 8 sublanes).
    Hp1 = max(Hh + 2, stride * Ho + 2)
    Wp1 = _round_up(max(Ww + 2, stride * (Wo - 1) + 3), 8)
    Hp2 = Ho + 2
    Wp2 = _round_up(Wo + 2, 8)

    kernel = make_basic_block_kernel(Bb, Hh, Ww, Cin, Cout, stride, has_ds,
                                     Hp1, Wp1, Hp2, Wp2)
    out_t = pl.pallas_call(
        kernel,
        out_shape=jax.ShapeDtypeStruct((Cout, M), jnp.float32),
        scratch_shapes=[pltpu.VMEM((Bb, Hp1, Wp1, Cin), jnp.float32),
                        pltpu.VMEM((Bb, Hp2, Wp2, Cout), jnp.float32)],
    )(*args)
    # Layout plumbing only: back to NHWC.
    return jnp.transpose(out_t).reshape(Bb, Ho, Wo, Cout)


# ----------------------------- plain-JAX reference (for verification) -----------------------------
def basic_block_reference(x, params, *, stride):
    def conv(x, w, s, pad):
        return jax.lax.conv_general_dilated(
            x, jnp.transpose(w, (2, 3, 1, 0)), (s, s), pad,
            dimension_numbers=('NHWC', 'HWIO', 'NHWC'))

    def bn(y, g, b, m, v):
        return (y - m) * jax.lax.rsqrt(v + BN_EPS) * g + b

    y = conv(x, params['conv1_w'], stride, ((1, 1), (1, 1)))
    y = jax.nn.relu(bn(y, params['bn1_g'], params['bn1_b'],
                       params['bn1_mean'], params['bn1_var']))
    y = conv(y, params['conv2_w'], 1, ((1, 1), (1, 1)))
    y = bn(y, params['bn2_g'], params['bn2_b'], params['bn2_mean'], params['bn2_var'])
    if stride != 1:
        xr = conv(x, params['ds_conv_w'], stride, ((0, 0), (0, 0)))
        xr = bn(xr, params['ds_bn_g'], params['ds_bn_b'],
                params['ds_bn_mean'], params['ds_bn_var'])
    else:
        xr = x
    return jax.nn.relu(xr + y)


# ----------------------------- params -----------------------------
def init_params(key, in_planes, planes, stride):
    ks = jax.random.split(key, 16)
    std = 0.05
    p = {
        'conv1_w': std * jax.random.normal(ks[0], (planes, in_planes, 3, 3), jnp.float32),
        'conv2_w': std * jax.random.normal(ks[1], (planes, planes, 3, 3), jnp.float32),
        'bn1_g': 1.0 + 0.1 * jax.random.normal(ks[2], (planes,), jnp.float32),
        'bn1_b': 0.1 * jax.random.normal(ks[3], (planes,), jnp.float32),
        'bn1_mean': 0.1 * jax.random.normal(ks[4], (planes,), jnp.float32),
        'bn1_var': 1.0 + 0.5 * jax.random.uniform(ks[5], (planes,), jnp.float32),
        'bn2_g': 1.0 + 0.1 * jax.random.normal(ks[6], (planes,), jnp.float32),
        'bn2_b': 0.1 * jax.random.normal(ks[7], (planes,), jnp.float32),
        'bn2_mean': 0.1 * jax.random.normal(ks[8], (planes,), jnp.float32),
        'bn2_var': 1.0 + 0.5 * jax.random.uniform(ks[9], (planes,), jnp.float32),
    }
    if stride != 1:
        p.update({
            'ds_conv_w': std * jax.random.normal(ks[10], (planes, in_planes, 1, 1), jnp.float32),
            'ds_bn_g': 1.0 + 0.1 * jax.random.normal(ks[11], (planes,), jnp.float32),
            'ds_bn_b': 0.1 * jax.random.normal(ks[12], (planes,), jnp.float32),
            'ds_bn_mean': 0.1 * jax.random.normal(ks[13], (planes,), jnp.float32),
            'ds_bn_var': 1.0 + 0.5 * jax.random.uniform(ks[14], (planes,), jnp.float32),
        })
    return p


if __name__ == "__main__":
    key = jax.random.PRNGKey(0)
    # (in_planes, planes, stride): identity-skip case and downsample case.
    for (cin, cout, stride) in [(32, 32, 1), (32, 64, 2)]:
        kp, kx, key = jax.random.split(key, 3)
        params = init_params(kp, cin, cout, stride)
        x = jax.random.normal(kx, (B, H, W, cin), jnp.float32)

        fwd = jax.jit(functools.partial(basic_block_forward, stride=stride))
        out = jax.block_until_ready(fwd(x, params))

        Ho = (H - 1) // stride + 1
        assert out.shape == (B, Ho, Ho, cout), out.shape

        ref = basic_block_reference(x, params, stride=stride)
        err = float(jnp.max(jnp.abs(out - ref)))
        # Tolerance loosened vs a pure-f32 kernel: the MXU inputs (activations and
        # BN-folded weights) are bf16, accumulation and element-wise math stay f32.
        assert err < 5e-2, f"mismatch vs reference (stride={stride}): max abs err = {err}"

    print("KERNEL_OK")
</pallas_src>

<mosaic_0001>
module attributes {stable_mosaic.version = 11 : i64} {
  func.func @kernel(%arg0: memref<2x16x16x32xf32, #tpu.memory_space<vmem>>, %arg1: memref<288x32xbf16, #tpu.memory_space<vmem>>, %arg2: memref<1x32xf32, #tpu.memory_space<vmem>>, %arg3: memref<288x32xbf16, #tpu.memory_space<vmem>>, %arg4: memref<1x32xf32, #tpu.memory_space<vmem>>, %arg5: memref<32x512xf32, #tpu.memory_space<vmem>>, %arg6: memref<2x18x24x32xf32, #tpu.memory_space<vmem>>, %arg7: memref<2x18x24x32xf32, #tpu.memory_space<vmem>>) attributes {dimension_semantics = [], scalar_prefetch = 0 : i64, scratch_operands = 2 : i64, tpu.core_type = #tpu.core_type<tc>} {
    %cst = arith.constant 0.000000e+00 : f32
    %0 = vector.broadcast %cst : f32 to vector<2x18x24x32xf32>
    %c0 = arith.constant 0 : index
    %c0_0 = arith.constant 0 : index
    %c0_1 = arith.constant 0 : index
    %c0_2 = arith.constant 0 : index
    %1 = vector.load %arg6[%c0, %c0_0, %c0_1, %c0_2] : memref<2x18x24x32xf32, #tpu.memory_space<vmem>>, vector<2x18x24x32xf32>
    tpu.vector_store %arg6[%c0, %c0_0, %c0_1, %c0_2], %0 {strides = array<i32>} : memref<2x18x24x32xf32, #tpu.memory_space<vmem>>, vector<2x18x24x32xf32>,
    %c0_3 = arith.constant 0 : index
    %c0_4 = arith.constant 0 : index
    %c0_5 = arith.constant 0 : index
    %c0_6 = arith.constant 0 : index
    %2 = vector.load %arg0[%c0_3, %c0_4, %c0_5, %c0_6] : memref<2x16x16x32xf32, #tpu.memory_space<vmem>>, vector<2x16x16x32xf32>
    %c0_7 = arith.constant 0 : index
    %c1 = arith.constant 1 : index
    %c1_8 = arith.constant 1 : index
    %c0_9 = arith.constant 0 : index
    %3 = vector.load %arg6[%c0_7, %c1, %c1_8, %c0_9] : memref<2x18x24x32xf32, #tpu.memory_space<vmem>>, vector<2x16x16x32xf32>
    tpu.vector_store %arg6[%c0_7, %c1, %c1_8, %c0_9], %2 {strides = array<i32>} : memref<2x18x24x32xf32, #tpu.memory_space<vmem>>, vector<2x16x16x32xf32>,
    %c0_10 = arith.constant 0 : index
    %c0_11 = arith.constant 0 : index
    %c0_12 = arith.constant 0 : index
    %c0_13 = arith.constant 0 : index
    %4 = vector.load %arg6[%c0_10, %c0_11, %c0_12, %c0_13] : memref<2x18x24x32xf32, #tpu.memory_space<vmem>>, vector<2x18x24x32xf32>
    %5 = arith.truncf %4 : vector<2x18x24x32xf32> to vector<2x18x24x32xbf16>
    %6 = vector.extract_strided_slice %5 {offsets = [0, 0, 0, 0], sizes = [2, 16, 16, 32], strides = [1, 1, 1, 1]} : vector<2x18x24x32xbf16> to vector<2x16x16x32xbf16>
    %7 = vector.shape_cast %6 : vector<2x16x16x32xbf16> to vector<512x32xbf16>
    %8 = vector.extract_strided_slice %5 {offsets = [0, 0, 1, 0], sizes = [2, 16, 16, 32], strides = [1, 1, 1, 1]} : vector<2x18x24x32xbf16> to vector<2x16x16x32xbf16>
    %9 = vector.shape_cast %8 : vector<2x16x16x32xbf16> to vector<512x32xbf16>
    %10 = vector.extract_strided_slice %5 {offsets = [0, 0, 2, 0], sizes = [2, 16, 16, 32], strides = [1, 1, 1, 1]} : vector<2x18x24x32xbf16> to vector<2x16x16x32xbf16>
    %11 = vector.shape_cast %10 : vector<2x16x16x32xbf16> to vector<512x32xbf16>
    %12 = vector.extract_strided_slice %5 {offsets = [0, 1, 0, 0], sizes = [2, 16, 16, 32], strides = [1, 1, 1, 1]} : vector<2x18x24x32xbf16> to vector<2x16x16x32xbf16>
    %13 = vector.shape_cast %12 : vector<2x16x16x32xbf16> to vector<512x32xbf16>
    %14 = vector.extract_strided_slice %5 {offsets = [0, 1, 1, 0], sizes = [2, 16, 16, 32], strides = [1, 1, 1, 1]} : vector<2x18x24x32xbf16> to vector<2x16x16x32xbf16>
    %15 = vector.shape_cast %14 : vector<2x16x16x32xbf16> to vector<512x32xbf16>
    %16 = vector.extract_strided_slice %5 {offsets = [0, 1, 2, 0], sizes = [2, 16, 16, 32], strides = [1, 1, 1, 1]} : vector<2x18x24x32xbf16> to vector<2x16x16x32xbf16>
    %17 = vector.shape_cast %16 : vector<2x16x16x32xbf16> to vector<512x32xbf16>
    %18 = vector.extract_strided_slice %5 {offsets = [0, 2, 0, 0], sizes = [2, 16, 16, 32], strides = [1, 1, 1, 1]} : vector<2x18x24x32xbf16> to vector<2x16x16x32xbf16>
    %19 = vector.shape_cast %18 : vector<2x16x16x32xbf16> to vector<512x32xbf16>
    %20 = vector.extract_strided_slice %5 {offsets = [0, 2, 1, 0], sizes = [2, 16, 16, 32], strides = [1, 1, 1, 1]} : vector<2x18x24x32xbf16> to vector<2x16x16x32xbf16>
    %21 = vector.shape_cast %20 : vector<2x16x16x32xbf16> to vector<512x32xbf16>
    %22 = vector.extract_strided_slice %5 {offsets = [0, 2, 2, 0], sizes = [2, 16, 16, 32], strides = [1, 1, 1, 1]} : vector<2x18x24x32xbf16> to vector<2x16x16x32xbf16>
    %23 = vector.shape_cast %22 : vector<2x16x16x32xbf16> to vector<512x32xbf16>
    %24 = tpu.concatenate %7, %9, %11, %13, %15, %17, %19, %21, %23 in 1 : vector<512x32xbf16>, vector<512x32xbf16>, vector<512x32xbf16>, vector<512x32xbf16>, vector<512x32xbf16>, vector<512x32xbf16>, vector<512x32xbf16>, vector<512x32xbf16>, vector<512x32xbf16> -> vector<512x288xbf16>
    %c0_14 = arith.constant 0 : index
    %c0_15 = arith.constant 0 : index
    %25 = vector.load %arg1[%c0_14, %c0_15] : memref<288x32xbf16, #tpu.memory_space<vmem>>, vector<288x32xbf16>
    %cst_16 = arith.constant dense<0.000000e+00> : vector<512x32xf32>
    %26 = tpu.matmul %24, %25, %cst_16 {dimension_numbers = #tpu.dot_dimension_numbers<[1], [0], [0], [1], [0, 0, 1, 1], [], []>} : vector<512x288xbf16>, vector<288x32xbf16>, vector<512x32xf32> -> vector<512x32xf32>
    %c0_17 = arith.constant 0 : index
    %c0_18 = arith.constant 0 : index
    %27 = vector.load %arg2[%c0_17, %c0_18] : memref<1x32xf32, #tpu.memory_space<vmem>>, vector<1x32xf32>
    %28 = vector.broadcast %27 : vector<1x32xf32> to vector<512x32xf32>
    %29 = arith.addf %26, %28 : vector<512x32xf32>
    %cst_19 = arith.constant 0.000000e+00 : f32
    %30 = vector.broadcast %cst_19 : f32 to vector<512x32xf32>
    %31 = arith.maximumf %29, %30 : vector<512x32xf32>
    %cst_20 = arith.constant 0.000000e+00 : f32
    %32 = vector.broadcast %cst_20 : f32 to vector<2x18x24x32xf32>
    %c0_21 = arith.constant 0 : index
    %c0_22 = arith.constant 0 : index
    %c0_23 = arith.constant 0 : index
    %c0_24 = arith.constant 0 : index
    %33 = vector.load %arg7[%c0_21, %c0_22, %c0_23, %c0_24] : memref<2x18x24x32xf32, #tpu.memory_space<vmem>>, vector<2x18x24x32xf32>
    tpu.vector_store %arg7[%c0_21, %c0_22, %c0_23, %c0_24], %32 {strides = array<i32>} : memref<2x18x24x32xf32, #tpu.memory_space<vmem>>, vector<2x18x24x32xf32>,
    %34 = vector.shape_cast %31 : vector<512x32xf32> to vector<2x16x16x32xf32>
    %c0_25 = arith.constant 0 : index
    %c1_26 = arith.constant 1 : index
    %c1_27 = arith.constant 1 : index
    %c0_28 = arith.constant 0 : index
    %35 = vector.load %arg7[%c0_25, %c1_26, %c1_27, %c0_28] : memref<2x18x24x32xf32, #tpu.memory_space<vmem>>, vector<2x16x16x32xf32>
    tpu.vector_store %arg7[%c0_25, %c1_26, %c1_27, %c0_28], %34 {strides = array<i32>} : memref<2x18x24x32xf32, #tpu.memory_space<vmem>>, vector<2x16x16x32xf32>,
    %c0_29 = arith.constant 0 : index
    %c0_30 = arith.constant 0 : index
    %c0_31 = arith.constant 0 : index
    %c0_32 = arith.constant 0 : index
    %36 = vector.load %arg7[%c0_29, %c0_30, %c0_31, %c0_32] : memref<2x18x24x32xf32, #tpu.memory_space<vmem>>, vector<2x18x24x32xf32>
    %37 = arith.truncf %36 : vector<2x18x24x32xf32> to vector<2x18x24x32xbf16>
    %38 = vector.extract_strided_slice %37 {offsets = [0, 0, 0, 0], sizes = [2, 16, 16, 32], strides = [1, 1, 1, 1]} : vector<2x18x24x32xbf16> to vector<2x16x16x32xbf16>
    %39 = vector.shape_cast %38 : vector<2x16x16x32xbf16> to vector<512x32xbf16>
    %40 = vector.extract_strided_slice %37 {offsets = [0, 0, 1, 0], sizes = [2, 16, 16, 32], strides = [1, 1, 1, 1]} : vector<2x18x24x32xbf16> to vector<2x16x16x32xbf16>
    %41 = vector.shape_cast %40 : vector<2x16x16x32xbf16> to vector<512x32xbf16>
    %42 = vector.extract_strided_slice %37 {offsets = [0, 0, 2, 0], sizes = [2, 16, 16, 32], strides = [1, 1, 1, 1]} : vector<2x18x24x32xbf16> to vector<2x16x16x32xbf16>
    %43 = vector.shape_cast %42 : vector<2x16x16x32xbf16> to vector<512x32xbf16>
    %44 = vector.extract_strided_slice %37 {offsets = [0, 1, 0, 0], sizes = [2, 16, 16, 32], strides = [1, 1, 1, 1]} : vector<2x18x24x32xbf16> to vector<2x16x16x32xbf16>
    %45 = vector.shape_cast %44 : vector<2x16x16x32xbf16> to vector<512x32xbf16>
    %46 = vector.extract_strided_slice %37 {offsets = [0, 1, 1, 0], sizes = [2, 16, 16, 32], strides = [1, 1, 1, 1]} : vector<2x18x24x32xbf16> to vector<2x16x16x32xbf16>
    %47 = vector.shape_cast %46 : vector<2x16x16x32xbf16> to vector<512x32xbf16>
    %48 = vector.extract_strided_slice %37 {offsets = [0, 1, 2, 0], sizes = [2, 16, 16, 32], strides = [1, 1, 1, 1]} : vector<2x18x24x32xbf16> to vector<2x16x16x32xbf16>
    %49 = vector.shape_cast %48 : vector<2x16x16x32xbf16> to vector<512x32xbf16>
    %50 = vector.extract_strided_slice %37 {offsets = [0, 2, 0, 0], sizes = [2, 16, 16, 32], strides = [1, 1, 1, 1]} : vector<2x18x24x32xbf16> to vector<2x16x16x32xbf16>
    %51 = vector.shape_cast %50 : vector<2x16x16x32xbf16> to vector<512x32xbf16>
    %52 = vector.extract_strided_slice %37 {offsets = [0, 2, 1, 0], sizes = [2, 16, 16, 32], strides = [1, 1, 1, 1]} : vector<2x18x24x32xbf16> to vector<2x16x16x32xbf16>
    %53 = vector.shape_cast %52 : vector<2x16x16x32xbf16> to vector<512x32xbf16>
    %54 = vector.extract_strided_slice %37 {offsets = [0, 2, 2, 0], sizes = [2, 16, 16, 32], strides = [1, 1, 1, 1]} : vector<2x18x24x32xbf16> to vector<2x16x16x32xbf16>
    %55 = vector.shape_cast %54 : vector<2x16x16x32xbf16> to vector<512x32xbf16>
    %56 = tpu.concatenate %39, %41, %43, %45, %47, %49, %51, %53, %55 in 1 : vector<512x32xbf16>, vector<512x32xbf16>, vector<512x32xbf16>, vector<512x32xbf16>, vector<512x32xbf16>, vector<512x32xbf16>, vector<512x32xbf16>, vector<512x32xbf16>, vector<512x32xbf16> -> vector<512x288xbf16>
    %c0_33 = arith.constant 0 : index
    %c0_34 = arith.constant 0 : index
    %57 = vector.load %arg3[%c0_33, %c0_34] : memref<288x32xbf16, #tpu.memory_space<vmem>>, vector<288x32xbf16>
    %cst_35 = arith.constant dense<0.000000e+00> : vector<512x32xf32>
    %58 = tpu.matmul %56, %57, %cst_35 {dimension_numbers = #tpu.dot_dimension_numbers<[1], [0], [0], [1], [0, 0, 1, 1], [], []>} : vector<512x288xbf16>, vector<288x32xbf16>, vector<512x32xf32> -> vector<512x32xf32>
    %c0_36 = arith.constant 0 : index
    %c0_37 = arith.constant 0 : index
    %59 = vector.load %arg4[%c0_36, %c0_37] : memref<1x32xf32, #tpu.memory_space<vmem>>, vector<1x32xf32>
    %60 = vector.broadcast %59 : vector<1x32xf32> to vector<512x32xf32>
    %61 = arith.addf %58, %60 : vector<512x32xf32>
    %c0_38 = arith.constant 0 : index
    %c0_39 = arith.constant 0 : index
    %c0_40 = arith.constant 0 : index
    %c0_41 = arith.constant 0 : index
    %62 = vector.load %arg0[%c0_38, %c0_39, %c0_40, %c0_41] : memref<2x16x16x32xf32, #tpu.memory_space<vmem>>, vector<2x16x16x32xf32>
    %63 = vector.shape_cast %62 : vector<2x16x16x32xf32> to vector<512x32xf32>
    %64 = arith.addf %63, %61 : vector<512x32xf32>
    %cst_42 = arith.constant 0.000000e+00 : f32
    %65 = vector.broadcast %cst_42 : f32 to vector<512x32xf32>
    %66 = arith.maximumf %64, %65 : vector<512x32xf32>
    %67 = tpu.transpose %66, [1, 0] : vector<512x32xf32> -> vector<32x512xf32>
    %c0_43 = arith.constant 0 : index
    %c0_44 = arith.constant 0 : index
    %68 = vector.load %arg5[%c0_43, %c0_44] : memref<32x512xf32, #tpu.memory_space<vmem>>, vector<32x512xf32>
    tpu.vector_store %arg5[%c0_43, %c0_44], %67 {strides = array<i32>} : memref<32x512xf32, #tpu.memory_space<vmem>>, vector<32x512xf32>,
    return
  }
}

</mosaic_0001>

<bundles_post_ra>
// kernel: basic_block_forward.1
= control target key start
LH: loop header
LB: loop body
LE: loop exit
PB: predicated region body
PF: predicated region fallthrough
CT: control target
= control target key end

     0   :  { %vm21_vm0 = vcmask 261120   ;;  %v6159_v0 = vmov 0.0   ;;  %v10237_v4 = vmov 0   ;;  %s6161_s27 = smov 64   ;;  %vm888_vm1 = vcmask 1046528   ;;  %s6162_s28 = smov 96   ;;  %s10231_s0 = inlined_call_operand.vmem [shape: f32[2,16,16,32], index: 0, kind: input, shape index: {}]   ;;  %s10232_s1 = inlined_call_operand.vmem [shape: bf16[288,32], index: 1, kind: input, shape index: {}]   ;;  %s10233_s3 = inlined_call_operand.vmem [shape: bf16[288,32], index: 3, kind: input, shape index: {}]   ;;  %s10234_s2 = inlined_call_operand.vmem [shape: f32[1,32], index: 2, kind: input, shape index: {}]   ;;  %s10235_s4 = inlined_call_operand.vmem [shape: f32[1,32], index: 4, kind: input, shape index: {}]   ;;  %s10236_s5 = inlined_call_operand.vmem [shape: f32[32,512], index: 5, kind: output, shape index: {}]  }
   0x1   :  { %28 = vst.msk [vmem:[#allocation2 + $0x30] sm:$0xff] %vm21_vm0, %v6159_v0  ;;  %29 = vst.msk [vmem:[#allocation2 + $0x38] sm:$0xff] %vm21_vm0, %v6159_v0  ;;  %v6203_v1 = vld [vmem:[%s10231_s0 + $0x10] sm:$0xff]  ;;  %v6208_v2 = vld [vmem:[%s10231_s0 + $0x18] sm:$0xff]  ;;  %2166 = vmatprep.subr.bf16.mxu0 %v10237_v4  ;;  %s6163_s6 = smov 32   ;;  %vm1501_vm3 = vcmask 523264  }
   0x2   :  { %30 = vst.msk [vmem:[#allocation2 + $0x40] sm:$0xff] %vm21_vm0, %v6159_v0  ;;  %22 = vst.msk [vmem:[#allocation2] sm:$0xff] %vm21_vm0, %v6159_v0  ;;  %v130_v3 = vld [vmem:[%s10231_s0] sm:$0xff]  ;;  %v131_v5 = vld [vmem:[%s10231_s0 + $0x8] sm:$0xff]  ;;  %vm439_vm2 = vsmask.f32 7424 }
   0x3   :  { %23 = vst.msk [vmem:[#allocation2 + $0x8] sm:$0xff] %vm21_vm0, %v6159_v0  ;;  %24 = vst.msk [vmem:[#allocation2 + $0x10] sm:$0xff] %vm21_vm0, %v6159_v0  ;;  %v134_v6 = vld [vmem:[%s10231_s0 + $0x20] sm:$0xff]  ;;  %v135_v7 = vld [vmem:[%s10231_s0 + $0x28] sm:$0xff]  ;;  %vm1566_vm4 = vcmask 785408  }
   0x4   :  { %25 = vst.msk [vmem:[#allocation2 + $0x18] sm:$0xff] %vm21_vm0, %v6159_v0  ;;  %26 = vst.msk [vmem:[#allocation2 + $0x20] sm:$0xff] %vm21_vm0, %v6159_v0  ;;  %v136_v8 = vld [vmem:[%s10231_s0 + $0x30] sm:$0xff]  ;;  %v137_v9 = vld [vmem:[%s10231_s0 + $0x38] sm:$0xff] }
   0x5   :  { %27 = vst.msk [vmem:[#allocation2 + $0x28] sm:$0xff] %vm21_vm0, %v6159_v0  ;;  %31 = vst.msk [vmem:[#allocation2 + $0x48] sm:$0xff] %vm21_vm0, %v6159_v0  ;;  %v138_v10 = vld [vmem:[%s10231_s0 + $0x40] sm:$0xff]  ;;  %v139_v11 = vld [vmem:[%s10231_s0 + $0x48] sm:$0xff] }
   0x6   :  { %32 = vst.msk [vmem:[#allocation2 + $0x50] sm:$0xff] %vm21_vm0, %v6159_v0  ;;  %33 = vst.msk [vmem:[#allocation2 + $0x58] sm:$0xff] %vm21_vm0, %v6159_v0  ;;  %v140_v12 = vld [vmem:[%s10231_s0 + $0x50] sm:$0xff]  ;;  %v141_v13 = vld [vmem:[%s10231_s0 + $0x58] sm:$0xff] }
   0x7   :  { %34 = vst.msk [vmem:[#allocation2 + $0x60] sm:$0xff] %vm21_vm0, %v6159_v0  ;;  %35 = vst.msk [vmem:[#allocation2 + $0x68] sm:$0xff] %vm21_vm0, %v6159_v0  ;;  %v142_v14 = vld [vmem:[%s10231_s0 + $0x60] sm:$0xff]  ;;  %v143_v15 = vld [vmem:[%s10231_s0 + $0x68] sm:$0xff] }
   0x8   :  { %36 = vst.msk [vmem:[#allocation2 + $0x70] sm:$0xff] %vm21_vm0, %v6159_v0  ;;  %37 = vst.msk [vmem:[#allocation2 + $0x78] sm:$0xff] %vm21_vm0, %v6159_v0  ;;  %v6117_v16 = vld [vmem:[%s10232_s1] sm:$0xff]   ;;  %v6118_v17 = vld [vmem:[%s10232_s1 + $0x8] sm:$0xff]  }
   0x9   :  { %38 = vst.msk [vmem:[#allocation2 + $0x80] sm:$0xff] %vm21_vm0, %v6159_v0  ;;  %39 = vst.msk [vmem:[#allocation2 + $0x88] sm:$0xff] %vm21_vm0, %v6159_v0  ;;  %v144_v18 = vld [vmem:[%s10231_s0 + $0x70] sm:$0xff]  ;;  %v259_v19 = vld [vmem:[#allocation2] sm:$0xff]  ;;  %2167 = vmatpush1.bf16.msra.mxu0 %v6117_v16 }
   0xa   :  { %40 = vst.msk [vmem:[#allocation2 + $0x90] sm:$0xff] %vm21_vm0, %v6159_v0  ;;  %41 = vst.msk [vmem:[#allocation2 + $0x98] sm:$0xff] %vm21_vm0, %v6159_v0  ;;  %v260_v20 = vld [vmem:[#allocation2 + $0x8] sm:$0xff]  ;;  %v261_v21 = vld [vmem:[#allocation2 + $0x10] sm:$0xff]  ;;  %2168 = vmatprep.subr.bf16.mxu0 %v10237_v4 }
   0xb   :  { %42 = vst.msk [vmem:[#allocation2 + $0xa0] sm:$0xff] %vm21_vm0, %v6159_v0  ;;  %43 = vst.msk [vmem:[#allocation2 + $0xa8] sm:$0xff] %vm21_vm0, %v6159_v0  ;;  %v6699_v25 = vpack.c.bf16 %v260_v20, %v259_v19  ;;  %v368_v26 = vpack.c.bf16 %v261_v21, %v261_v21  ;;  %v145_v55 = vld [vmem:[%s10231_s0 + $0x78] sm:$0xff]  ;;  %v6119_v60 = vld [vmem:[%s10232_s1 + $0x10] sm:$0xff]  }
   0xc   :  { %44 = vst.msk [vmem:[#allocation2 + $0xb0] sm:$0xff] %vm21_vm0, %v6159_v0  ;;  %45 = vst.msk [vmem:[#allocation2 + $0xb8] sm:$0xff] %vm21_vm0, %v6159_v0 }
   0xd   :  { %46 = vst.msk [vmem:[#allocation2 + $0xc0] sm:$0xff] %vm21_vm0, %v6159_v0  ;;  %47 = vst.msk [vmem:[#allocation2 + $0xc8] sm:$0xff] %vm21_vm0, %v6159_v0  ;;  %v889_v33 = vrot.slane %v6699_v25, 1  ;;  %v890_v34 = vrot.slane %v368_v26, 1  ;;  %2169 = vmatpush1.bf16.msra.mxu0 %v6118_v17  ;;  %v443_v41 = vshll.u32 %v6699_v25, 16  ;;  %v448_v42 = vshll.u32 %v368_v26, 16 }
   0xe   :  { %48 = vst.msk [vmem:[#allocation2 + $0xd0] sm:$0xff] %vm21_vm0, %v6159_v0  ;;  %49 = vst.msk [vmem:[#allocation2 + $0xd8] sm:$0xff] %vm21_vm0, %v6159_v0  ;;  %2170 = vmatprep.subr.bf16.mxu0 %v10237_v4  ;;  %v441_v45 = vshrl.u32 %v6699_v25, 16 }
   0xf   :  { %50 = vst.msk [vmem:[#allocation2 + $0xe0] sm:$0xff] %vm21_vm0, %v6159_v0  ;;  %51 = vst.msk [vmem:[#allocation2 + $0xe8] sm:$0xff] %vm21_vm0, %v6159_v0  ;;  %v891_v48 = vsel %vm888_vm1, %v889_v33, %v890_v34  ;;  %v445_v49 = vrot.slane %v443_v41, 1  ;;  %v450_v52 = vrot.slane %v448_v42, 1  ;;  %v6123_v33 = vld [vmem:[%s10232_s1 + $0x30] sm:$0xff]  }
  0x10   :  { %52 = vst.msk [vmem:[#allocation2 + $0xf0] sm:$0xff] %vm21_vm0, %v6159_v0  ;;  %53 = vst.msk [vmem:[#allocation2 + $0xf8] sm:$0xff] %vm21_vm0, %v6159_v0 }
  0x11   :  { %54 = vst.msk [vmem:[#allocation2 + $0x100] sm:$0xff] %vm21_vm0, %v6159_v0  ;;  %55 = vst.msk [vmem:[#allocation2 + $0x108] sm:$0xff] %vm21_vm0, %v6159_v0  ;;  %v446_v61 = vor.u32 %v445_v49, %v441_v45  ;;  %2171 = vmatpush1.bf16.msra.mxu0 %v6119_v60  ;;  %v152_v49 = vld [vmem:[%s10231_s0 + $0xb0] sm:$0xff] }
  0x12   :  { %56 = vst.msk [vmem:[#allocation2 + $0x110] sm:$0xff] %vm21_vm0, %v6159_v0  ;;  %57 = vst.msk [vmem:[#allocation2 + $0x118] sm:$0xff] %vm21_vm0, %v6159_v0  ;;  %2172 = vmatprep.subr.bf16.mxu0 %v10237_v4 }
  0x13   :  { %58 = vst.msk [vmem:[#allocation2 + $0x120] sm:$0xff] %vm21_vm0, %v6159_v0  ;;  %59 = vst.msk [vmem:[#allocation2 + $0x128] sm:$0xff] %vm21_vm0, %v6159_v0 }
  0x14   :  { %60 = vst.msk [vmem:[#allocation2 + $0x130] sm:$0xff] %vm21_vm0, %v6159_v0  ;;  %61 = vst.msk [vmem:[#allocation2 + $0x138] sm:$0xff] %vm21_vm0, %v6159_v0 }
  0x15   :  { %62 = vst.msk [vmem:[#allocation2 + $0x140] sm:$0xff] %vm21_vm0, %v6159_v0  ;;  %63 = vst.msk [vmem:[#allocation2 + $0x148] sm:$0xff] %vm21_vm0, %v6159_v0 }
  0x16   :  { %64 = vst.msk [vmem:[#allocation2 + $0x150] sm:$0xff] %vm21_vm0, %v6159_v0  ;;  %65 = vst.msk [vmem:[#allocation2 + $0x158] sm:$0xff] %vm21_vm0, %v6159_v0 }
  0x17   :  { %66 = vst.msk [vmem:[#allocation2 + $0x160] sm:$0xff] %vm21_vm0, %v6159_v0  ;;  %67 = vst.msk [vmem:[#allocation2 + $0x168] sm:$0xff] %vm21_vm0, %v6159_v0 }
  0x18   :  { %68 = vst.msk [vmem:[#allocation2 + $0x170] sm:$0xff] %vm21_vm0, %v6159_v0  ;;  %69 = vst.msk [vmem:[#allocation2 + $0x178] sm:$0xff] %vm21_vm0, %v6159_v0 }
  0x19   :  { %70 = vst.msk [vmem:[#allocation2 + $0x180] sm:$0xff] %vm21_vm0, %v6159_v0  ;;  %71 = vst.msk [vmem:[#allocation2 + $0x188] sm:$0xff] %vm21_vm0, %v6159_v0 }
  0x1a   :  { %72 = vst.msk [vmem:[#allocation2 + $0x190] sm:$0xff] %vm21_vm0, %v6159_v0  ;;  %73 = vst.msk [vmem:[#allocation2 + $0x198] sm:$0xff] %vm21_vm0, %v6159_v0 }
  0x1b   :  { %74 = vst.msk [vmem:[#allocation2 + $0x1a0] sm:$0xff] %vm21_vm0, %v6159_v0  ;;  %75 = vst.msk [vmem:[#allocation2 + $0x1a8] sm:$0xff] %vm21_vm0, %v6159_v0 }
  0x1c   :  { %76 = vst.msk [vmem:[#allocation2 + $0x1b0] sm:$0xff] %vm21_vm0, %v6159_v0  ;;  %77 = vst.msk [vmem:[#allocation2 + $0x1b8] sm:$0xff] %vm21_vm0, %v6159_v0 }
  0x1d   :  { %78 = vst.msk [vmem:[#allocation2 + $0x1c0] sm:$0xff] %vm21_vm0, %v6159_v0  ;;  %79 = vst.msk [vmem:[#allocation2 + $0x1c8] sm:$0xff] %vm21_vm0, %v6159_v0 }
  0x1e   :  { %80 = vst.msk [vmem:[#allocation2 + $0x1d0] sm:$0xff] %vm21_vm0, %v6159_v0  ;;  %81 = vst.msk [vmem:[#allocation2 + $0x1d8] sm:$0xff] %vm21_vm0, %v6159_v0 }
  0x1f   :  { %82 = vst.msk [vmem:[#allocation2 + $0x1e0] sm:$0xff] %vm21_vm0, %v6159_v0  ;;  %83 = vst.msk [vmem:[#allocation2 + $0x1e8] sm:$0xff] %vm21_vm0, %v6159_v0 }
  0x20   :  { %84 = vst.msk [vmem:[#allocation2 + $0x1f0] sm:$0xff] %vm21_vm0, %v6159_v0  ;;  %85 = vst.msk [vmem:[#allocation2 + $0x1f8] sm:$0xff] %vm21_vm0, %v6159_v0 }
  0x21   :  { %86 = vst.msk [vmem:[#allocation2 + $0x200] sm:$0xff] %vm21_vm0, %v6159_v0  ;;  %87 = vst.msk [vmem:[#allocation2 + $0x208] sm:$0xff] %vm21_vm0, %v6159_v0 }
  0x22   :  { %88 = vst.msk [vmem:[#allocation2 + $0x210] sm:$0xff] %vm21_vm0, %v6159_v0  ;;  %89 = vst.msk [vmem:[#allocation2 + $0x218] sm:$0xff] %vm21_vm0, %v6159_v0 }
  0x23   :  { %90 = vst.msk [vmem:[#allocation2 + $0x220] sm:$0xff] %vm21_vm0, %v6159_v0  ;;  %91 = vst.msk [vmem:[#allocation2 + $0x228] sm:$0xff] %vm21_vm0, %v6159_v0 }
  0x24   :  { %92 = vst.msk [vmem:[#allocation2 + $0x230] sm:$0xff] %vm21_vm0, %v6159_v0  ;;  %93 = vst.msk [vmem:[#allocation2 + $0x238] sm:$0xff] %vm21_vm0, %v6159_v0 }
  0x25   :  { %94 = vst.msk [vmem:[#allocation2 + $0x240] sm:$0xff] %vm21_vm0, %v6159_v0  ;;  %95 = vst.msk [vmem:[#allocation2 + $0x248] sm:$0xff] %vm21_vm0, %v6159_v0 }
  0x26   :  { %96 = vst.msk [vmem:[#allocation2 + $0x250] sm:$0xff] %vm21_vm0, %v6159_v0  ;;  %97 = vst.msk [vmem:[#allocation2 + $0x258] sm:$0xff] %vm21_vm0, %v6159_v0 }
  0x27   :  { %98 = vst.msk [vmem:[#allocation2 + $0x260] sm:$0xff] %vm21_vm0, %v6159_v0  ;;  %99 = vst.msk [vmem:[#allocation2 + $0x268] sm:$0xff] %vm21_vm0, %v6159_v0 }
  0x28   :  { %100 = vst.msk [vmem:[#allocation2 + $0x270] sm:$0xff] %vm21_vm0, %v6159_v0  ;;  %101 = vst.msk [vmem:[#allocation2 + $0x278] sm:$0xff] %vm21_vm0, %v6159_v0 }
  0x29   :  { %102 = vst.msk [vmem:[#allocation2 + $0x280] sm:$0xff] %vm21_vm0, %v6159_v0  ;;  %103 = vst.msk [vmem:[#allocation2 + $0x288] sm:$0xff] %vm21_vm0, %v6159_v0 }
  0x2a   :  { %104 = vst.msk [vmem:[#allocation2 + $0x290] sm:$0xff] %vm21_vm0, %v6159_v0  ;;  %105 = vst.msk [vmem:[#allocation2 + $0x298] sm:$0xff] %vm21_vm0, %v6159_v0 }
  0x2b   :  { %106 = vst.msk [vmem:[#allocation2 + $0x2a0] sm:$0xff] %vm21_vm0, %v6159_v0  ;;  %107 = vst.msk [vmem:[#allocation2 + $0x2a8] sm:$0xff] %vm21_vm0, %v6159_v0 }
  0x2c   :  { %108 = vst.msk [vmem:[#allocation2 + $0x2b0] sm:$0xff] %vm21_vm0, %v6159_v0  ;;  %109 = vst.msk [vmem:[#allocation2 + $0x2b8] sm:$0xff] %vm21_vm0, %v6159_v0 }
  0x2d   :  { %110 = vst.msk [vmem:[#allocation2 + $0x2c0] sm:$0xff] %vm21_vm0, %v6159_v0  ;;  %111 = vst.msk [vmem:[#allocation2 + $0x2c8] sm:$0xff] %vm21_vm0, %v6159_v0 }
  0x2e   :  { %112 = vst.msk [vmem:[#allocation2 + $0x2d0] sm:$0xff] %vm21_vm0, %v6159_v0  ;;  %113 = vst.msk [vmem:[#allocation2 + $0x2d8] sm:$0xff] %vm21_vm0, %v6159_v0 }
  0x2f   :  { %114 = vst.msk [vmem:[#allocation2 + $0x2e0] sm:$0xff] %vm21_vm0, %v6159_v0  ;;  %115 = vst.msk [vmem:[#allocation2 + $0x2e8] sm:$0xff] %vm21_vm0, %v6159_v0 }
  0x30   :  { %116 = vst.msk [vmem:[#allocation2 + $0x2f0] sm:$0xff] %vm21_vm0, %v6159_v0  ;;  %117 = vst.msk [vmem:[#allocation2 + $0x2f8] sm:$0xff] %vm21_vm0, %v6159_v0 }
  0x31   :  { %118 = vst.msk [vmem:[#allocation2 + $0x300] sm:$0xff] %vm21_vm0, %v6159_v0  ;;  %119 = vst.msk [vmem:[#allocation2 + $0x308] sm:$0xff] %vm21_vm0, %v6159_v0 }
  0x32   :  { %120 = vst.msk [vmem:[#allocation2 + $0x310] sm:$0xff] %vm21_vm0, %v6159_v0  ;;  %121 = vst.msk [vmem:[#allocation2 + $0x318] sm:$0xff] %vm21_vm0, %v6159_v0 }
  0x33   :  { %122 = vst.msk [vmem:[#allocation2 + $0x320] sm:$0xff] %vm21_vm0, %v6159_v0  ;;  %123 = vst.msk [vmem:[#allocation2 + $0x328] sm:$0xff] %vm21_vm0, %v6159_v0 }
  0x34   :  { %124 = vst.msk [vmem:[#allocation2 + $0x330] sm:$0xff] %vm21_vm0, %v6159_v0  ;;  %125 = vst.msk [vmem:[#allocation2 + $0x338] sm:$0xff] %vm21_vm0, %v6159_v0 }
  0x35   :  { %126 = vst.msk [vmem:[#allocation2 + $0x340] sm:$0xff] %vm21_vm0, %v6159_v0  ;;  %127 = vst.msk [vmem:[#allocation2 + $0x348] sm:$0xff] %vm21_vm0, %v6159_v0 }
  0x36   :  { %128 = vst.msk [vmem:[#allocation2 + $0x350] sm:$0xff] %vm21_vm0, %v6159_v0  ;;  %129 = vst.msk [vmem:[#allocation2 + $0x358] sm:$0xff] %vm21_vm0, %v6159_v0 }
  0x37   :  { %2808 = vst.msk [vmem:[#allocation3] sm:$0xff] %vm21_vm0, %v6159_v0  ;;  %2809 = vst.msk [vmem:[#allocation3 + $0x8] sm:$0xff] %vm21_vm0, %v6159_v0 }
  0x38   :  { %2810 = vst.msk [vmem:[#allocation3 + $0x10] sm:$0xff] %vm21_vm0, %v6159_v0  ;;  %2811 = vst.msk [vmem:[#allocation3 + $0x18] sm:$0xff] %vm21_vm0, %v6159_v0 }
  0x39   :  { %2812 = vst.msk [vmem:[#allocation3 + $0x20] sm:$0xff] %vm21_vm0, %v6159_v0  ;;  %2813 = vst.msk [vmem:[#allocation3 + $0x28] sm:$0xff] %vm21_vm0, %v6159_v0 }
  0x3a   :  { %2814 = vst.msk [vmem:[#allocation3 + $0x30] sm:$0xff] %vm21_vm0, %v6159_v0  ;;  %2815 = vst.msk [vmem:[#allocation3 + $0x38] sm:$0xff] %vm21_vm0, %v6159_v0 }
  0x3b   :  { %2816 = vst.msk [vmem:[#allocation3 + $0x40] sm:$0xff] %vm21_vm0, %v6159_v0  ;;  %2817 = vst.msk [vmem:[#allocation3 + $0x48] sm:$0xff] %vm21_vm0, %v6159_v0 }
  0x3c   :  { %2818 = vst.msk [vmem:[#allocation3 + $0x50] sm:$0xff] %vm21_vm0, %v6159_v0  ;;  %2819 = vst.msk [vmem:[#allocation3 + $0x58] sm:$0xff] %vm21_vm0, %v6159_v0 }
  0x3d   :  { %2820 = vst.msk [vmem:[#allocation3 + $0x60] sm:$0xff] %vm21_vm0, %v6159_v0  ;;  %2821 = vst.msk [vmem:[#allocation3 + $0x68] sm:$0xff] %vm21_vm0, %v6159_v0 }
  0x3e   :  { %2822 = vst.msk [vmem:[#allocation3 + $0x70] sm:$0xff] %vm21_vm0, %v6159_v0  ;;  %2823 = vst.msk [vmem:[#allocation3 + $0x78] sm:$0xff] %vm21_vm0, %v6159_v0 }
  0x3f   :  { %2824 = vst.msk [vmem:[#allocation3 + $0x80] sm:$0xff] %vm21_vm0, %v6159_v0  ;;  %2825 = vst.msk [vmem:[#allocation3 + $0x88] sm:$0xff] %vm21_vm0, %v6159_v0 }
  0x40   :  { %2826 = vst.msk [vmem:[#allocation3 + $0x90] sm:$0xff] %vm21_vm0, %v6159_v0  ;;  %2827 = vst.msk [vmem:[#allocation3 + $0x98] sm:$0xff] %vm21_vm0, %v6159_v0 }
  0x41   :  { %2828 = vst.msk [vmem:[#allocation3 + $0xa0] sm:$0xff] %vm21_vm0, %v6159_v0  ;;  %2829 = vst.msk [vmem:[#allocation3 + $0xa8] sm:$0xff] %vm21_vm0, %v6159_v0 }
  0x42   :  { %2830 = vst.msk [vmem:[#allocation3 + $0xb0] sm:$0xff] %vm21_vm0, %v6159_v0  ;;  %2831 = vst.msk [vmem:[#allocation3 + $0xb8] sm:$0xff] %vm21_vm0, %v6159_v0 }
  0x43   :  { %2832 = vst.msk [vmem:[#allocation3 + $0xc0] sm:$0xff] %vm21_vm0, %v6159_v0  ;;  %2833 = vst.msk [vmem:[#allocation3 + $0xc8] sm:$0xff] %vm21_vm0, %v6159_v0 }
  0x44   :  { %2834 = vst.msk [vmem:[#allocation3 + $0xd0] sm:$0xff] %vm21_vm0, %v6159_v0  ;;  %2835 = vst.msk [vmem:[#allocation3 + $0xd8] sm:$0xff] %vm21_vm0, %v6159_v0 }
  0x45   :  { %2836 = vst.msk [vmem:[#allocation3 + $0xe0] sm:$0xff] %vm21_vm0, %v6159_v0  ;;  %2837 = vst.msk [vmem:[#allocation3 + $0xe8] sm:$0xff] %vm21_vm0, %v6159_v0 }
  0x46   :  { %2838 = vst.msk [vmem:[#allocation3 + $0xf0] sm:$0xff] %vm21_vm0, %v6159_v0  ;;  %2839 = vst.msk [vmem:[#allocation3 + $0xf8] sm:$0xff] %vm21_vm0, %v6159_v0 }
  0x47   :  { %2840 = vst.msk [vmem:[#allocation3 + $0x100] sm:$0xff] %vm21_vm0, %v6159_v0  ;;  %2841 = vst.msk [vmem:[#allocation3 + $0x108] sm:$0xff] %vm21_vm0, %v6159_v0 }
  0x48   :  { %2842 = vst.msk [vmem:[#allocation3 + $0x110] sm:$0xff] %vm21_vm0, %v6159_v0  ;;  %2843 = vst.msk [vmem:[#allocation3 + $0x118] sm:$0xff] %vm21_vm0, %v6159_v0 }
  0x49   :  { %2844 = vst.msk [vmem:[#allocation3 + $0x120] sm:$0xff] %vm21_vm0, %v6159_v0  ;;  %2845 = vst.msk [vmem:[#allocation3 + $0x128] sm:$0xff] %vm21_vm0, %v6159_v0 }
  0x4a   :  { %2846 = vst.msk [vmem:[#allocation3 + $0x130] sm:$0xff] %vm21_vm0, %v6159_v0  ;;  %2847 = vst.msk [vmem:[#allocation3 + $0x138] sm:$0xff] %vm21_vm0, %v6159_v0 }
  0x4b   :  { %2848 = vst.msk [vmem:[#allocation3 + $0x140] sm:$0xff] %vm21_vm0, %v6159_v0  ;;  %2849 = vst.msk [vmem:[#allocation3 + $0x148] sm:$0xff] %vm21_vm0, %v6159_v0 }
  0x4c   :  { %2850 = vst.msk [vmem:[#allocation3 + $0x150] sm:$0xff] %vm21_vm0, %v6159_v0  ;;  %2851 = vst.msk [vmem:[#allocation3 + $0x158] sm:$0xff] %vm21_vm0, %v6159_v0 }
  0x4d   :  { %2852 = vst.msk [vmem:[#allocation3 + $0x160] sm:$0xff] %vm21_vm0, %v6159_v0  ;;  %2853 = vst.msk [vmem:[#allocation3 + $0x168] sm:$0xff] %vm21_vm0, %v6159_v0 }
  0x4e   :  { %2854 = vst.msk [vmem:[#allocation3 + $0x170] sm:$0xff] %vm21_vm0, %v6159_v0  ;;  %2855 = vst.msk [vmem:[#allocation3 + $0x178] sm:$0xff] %vm21_vm0, %v6159_v0 }
  0x4f   :  { %2856 = vst.msk [vmem:[#allocation3 + $0x180] sm:$0xff] %vm21_vm0, %v6159_v0  ;;  %2857 = vst.msk [vmem:[#allocation3 + $0x188] sm:$0xff] %vm21_vm0, %v6159_v0 }
  0x50   :  { %2858 = vst.msk [vmem:[#allocation3 + $0x190] sm:$0xff] %vm21_vm0, %v6159_v0  ;;  %2859 = vst.msk [vmem:[#allocation3 + $0x198] sm:$0xff] %vm21_vm0, %v6159_v0 }
  0x51   :  { %2860 = vst.msk [vmem:[#allocation3 + $0x1a0] sm:$0xff] %vm21_vm0, %v6159_v0  ;;  %2861 = vst.msk [vmem:[#allocation3 + $0x1a8] sm:$0xff] %vm21_vm0, %v6159_v0 }
  0x52   :  { %2862 = vst.msk [vmem:[#allocation3 + $0x1b0] sm:$0xff] %vm21_vm0, %v6159_v0  ;;  %2863 = vst.msk [vmem:[#allocation3 + $0x1b8] sm:$0xff] %vm21_vm0, %v6159_v0 }
  0x53   :  { %2864 = vst.msk [vmem:[#allocation3 + $0x1c0] sm:$0xff] %vm21_vm0, %v6159_v0  ;;  %2865 = vst.msk [vmem:[#allocation3 + $0x1c8] sm:$0xff] %vm21_vm0, %v6159_v0 }
  0x54   :  { %2866 = vst.msk [vmem:[#allocation3 + $0x1d0] sm:$0xff] %vm21_vm0, %v6159_v0  ;;  %2867 = vst.msk [vmem:[#allocation3 + $0x1d8] sm:$0xff] %vm21_vm0, %v6159_v0 }
  0x55   :  { %2868 = vst.msk [vmem:[#allocation3 + $0x1e0] sm:$0xff] %vm21_vm0, %v6159_v0  ;;  %2869 = vst.msk [vmem:[#allocation3 + $0x1e8] sm:$0xff] %vm21_vm0, %v6159_v0 }
  0x56   :  { %2870 = vst.msk [vmem:[#allocation3 + $0x1f0] sm:$0xff] %vm21_vm0, %v6159_v0  ;;  %2871 = vst.msk [vmem:[#allocation3 + $0x1f8] sm:$0xff] %vm21_vm0, %v6159_v0 }
  0x57   :  { %2872 = vst.msk [vmem:[#allocation3 + $0x200] sm:$0xff] %vm21_vm0, %v6159_v0  ;;  %2873 = vst.msk [vmem:[#allocation3 + $0x208] sm:$0xff] %vm21_vm0, %v6159_v0 }
  0x58   :  { %2874 = vst.msk [vmem:[#allocation3 + $0x210] sm:$0xff] %vm21_vm0, %v6159_v0  ;;  %2875 = vst.msk [vmem:[#allocation3 + $0x218] sm:$0xff] %vm21_vm0, %v6159_v0 }
  0x59   :  { %2876 = vst.msk [vmem:[#allocation3 + $0x220] sm:$0xff] %vm21_vm0, %v6159_v0  ;;  %2877 = vst.msk [vmem:[#allocation3 + $0x228] sm:$0xff] %vm21_vm0, %v6159_v0 }
  0x5a   :  { %2878 = vst.msk [vmem:[#allocation3 + $0x230] sm:$0xff] %vm21_vm0, %v6159_v0  ;;  %2879 = vst.msk [vmem:[#allocation3 + $0x238] sm:$0xff] %vm21_vm0, %v6159_v0 }
  0x5b   :  { %2880 = vst.msk [vmem:[#allocation3 + $0x240] sm:$0xff] %vm21_vm0, %v6159_v0  ;;  %2881 = vst.msk [vmem:[#allocation3 + $0x248] sm:$0xff] %vm21_vm0, %v6159_v0 }
  0x5c   :  { %2882 = vst.msk [vmem:[#allocation3 + $0x250] sm:$0xff] %vm21_vm0, %v6159_v0  ;;  %2883 = vst.msk [vmem:[#allocation3 + $0x258] sm:$0xff] %vm21_vm0, %v6159_v0 }
  0x5d   :  { %2884 = vst.msk [vmem:[#allocation3 + $0x260] sm:$0xff] %vm21_vm0, %v6159_v0  ;;  %2885 = vst.msk [vmem:[#allocation3 + $0x268] sm:$0xff] %vm21_vm0, %v6159_v0 }
  0x5e   :  { %2886 = vst.msk [vmem:[#allocation3 + $0x270] sm:$0xff] %vm21_vm0, %v6159_v0  ;;  %2887 = vst.msk [vmem:[#allocation3 + $0x278] sm:$0xff] %vm21_vm0, %v6159_v0 }
  0x5f   :  { %2888 = vst.msk [vmem:[#allocation3 + $0x280] sm:$0xff] %vm21_vm0, %v6159_v0  ;;  %2889 = vst.msk [vmem:[#allocation3 + $0x288] sm:$0xff] %vm21_vm0, %v6159_v0 }
  0x60   :  { %2890 = vst.msk [vmem:[#allocation3 + $0x290] sm:$0xff] %vm21_vm0, %v6159_v0  ;;  %2891 = vst.msk [vmem:[#allocation3 + $0x298] sm:$0xff] %vm21_vm0, %v6159_v0 }
  0x61   :  { %2892 = vst.msk [vmem:[#allocation3 + $0x2a0] sm:$0xff] %vm21_vm0, %v6159_v0  ;;  %2893 = vst.msk [vmem:[#allocation3 + $0x2a8] sm:$0xff] %vm21_vm0, %v6159_v0 }
  0x62   :  { %2894 = vst.msk [vmem:[#allocation3 + $0x2b0] sm:$0xff] %vm21_vm0, %v6159_v0  ;;  %2895 = vst.msk [vmem:[#allocation3 + $0x2b8] sm:$0xff] %vm21_vm0, %v6159_v0 }
  0x63   :  { %2896 = vst.msk [vmem:[#allocation3 + $0x2c0] sm:$0xff] %vm21_vm0, %v6159_v0  ;;  %2897 = vst.msk [vmem:[#allocation3 + $0x2c8] sm:$0xff] %vm21_vm0, %v6159_v0 }
  0x64   :  { %2898 = vst.msk [vmem:[#allocation3 + $0x2d0] sm:$0xff] %vm21_vm0, %v6159_v0  ;;  %2899 = vst.msk [vmem:[#allocation3 + $0x2d8] sm:$0xff] %vm21_vm0, %v6159_v0 }
  0x65   :  { %2900 = vst.msk [vmem:[#allocation3 + $0x2e0] sm:$0xff] %vm21_vm0, %v6159_v0  ;;  %2901 = vst.msk [vmem:[#allocation3 + $0x2e8] sm:$0xff] %vm21_vm0, %v6159_v0 }
  0x66   :  { %2902 = vst.msk [vmem:[#allocation3 + $0x2f0] sm:$0xff] %vm21_vm0, %v6159_v0  ;;  %2903 = vst.msk [vmem:[#allocation3 + $0x2f8] sm:$0xff] %vm21_vm0, %v6159_v0 }
  0x67   :  { %2904 = vst.msk [vmem:[#allocation3 + $0x300] sm:$0xff] %vm21_vm0, %v6159_v0  ;;  %2905 = vst.msk [vmem:[#allocation3 + $0x308] sm:$0xff] %vm21_vm0, %v6159_v0 }
  0x68   :  { %2906 = vst.msk [vmem:[#allocation3 + $0x310] sm:$0xff] %vm21_vm0, %v6159_v0  ;;  %2907 = vst.msk [vmem:[#allocation3 + $0x318] sm:$0xff] %vm21_vm0, %v6159_v0 }
  0x69   :  { %2908 = vst.msk [vmem:[#allocation3 + $0x320] sm:$0xff] %vm21_vm0, %v6159_v0  ;;  %2909 = vst.msk [vmem:[#allocation3 + $0x328] sm:$0xff] %vm21_vm0, %v6159_v0 }
  0x6a   :  { %2910 = vst.msk [vmem:[#allocation3 + $0x330] sm:$0xff] %vm21_vm0, %v6159_v0  ;;  %2911 = vst.msk [vmem:[#allocation3 + $0x338] sm:$0xff] %vm21_vm0, %v6159_v0 }
  0x6b   :  { %2912 = vst.msk [vmem:[#allocation3 + $0x340] sm:$0xff] %vm21_vm0, %v6159_v0  ;;  %2913 = vst.msk [vmem:[#allocation3 + $0x348] sm:$0xff] %vm21_vm0, %v6159_v0 }
  0x6c   :  { %2914 = vst.msk [vmem:[#allocation3 + $0x350] sm:$0xff] %vm21_vm0, %v6159_v0  ;;  %2915 = vst.msk [vmem:[#allocation3 + $0x358] sm:$0xff] %vm21_vm0, %v6159_v0 }
  0x6d   :  { %197 = vst.msk [vmem:[#allocation2 + $0x31] sm:$0xff] %vm21_vm0, %v6203_v1  ;;  %198 = vst.msk [vmem:[#allocation2 + $0x39] sm:$0xff] %vm21_vm0, %v6208_v2  ;;  %v6120_v1 = vld [vmem:[%s10232_s1 + $0x18] sm:$0xff]  }
  0x6e   :  { %195 = vst.msk [vmem:[#allocation2 + $0x19] sm:$0xff] %vm21_vm0, %v130_v3  ;;  %196 = vst.msk [vmem:[#allocation2 + $0x21] sm:$0xff] %vm21_vm0, %v131_v5  ;;  %2173 = vmatpush1.bf16.msra.mxu0 %v6120_v1  ;;  %v155_v1 = vld [vmem:[%s10231_s0 + $0xc8] sm:$0xff] }
  0x6f   :  { %199 = vst.msk [vmem:[#allocation2 + $0x49] sm:$0xff] %vm21_vm0, %v134_v6  ;;  %200 = vst.msk [vmem:[#allocation2 + $0x51] sm:$0xff] %vm21_vm0, %v135_v7  ;;  %2174 = vmatprep.subr.bf16.mxu0 %v10237_v4 }
  0x70   :  { %201 = vst.msk [vmem:[#allocation2 + $0x61] sm:$0xff] %vm21_vm0, %v136_v8  ;;  %202 = vst.msk [vmem:[#allocation2 + $0x69] sm:$0xff] %vm21_vm0, %v137_v9  ;;  %v146_v8 = vld [vmem:[%s10231_s0 + $0x80] sm:$0xff]  ;;  %v451_v9 = vsel %vm439_vm2, %v446_v61, %v450_v52 }
  0x71   :  { %203 = vst.msk [vmem:[#allocation2 + $0x79] sm:$0xff] %vm21_vm0, %v138_v10  ;;  %204 = vst.msk [vmem:[#allocation2 + $0x81] sm:$0xff] %vm21_vm0, %v139_v11 }
  0x72   :  { %205 = vst.msk [vmem:[#allocation2 + $0x91] sm:$0xff] %vm21_vm0, %v140_v12  ;;  %206 = vst.msk [vmem:[#allocation2 + $0x99] sm:$0xff] %vm21_vm0, %v141_v13  ;;  %v147_v12 = vld [vmem:[%s10231_s0 + $0x88] sm:$0xff] }
  0x73   :  { %207 = vst.msk [vmem:[#allocation2 + $0xa9] sm:$0xff] %vm21_vm0, %v142_v14  ;;  %208 = vst.msk [vmem:[#allocation2 + $0xb1] sm:$0xff] %vm21_vm0, %v143_v15  ;;  %v6121_v15 = vld [vmem:[%s10232_s1 + $0x20] sm:$0xff]  }
  0x74   :  { %209 = vst.msk [vmem:[#allocation2 + $0xc1] sm:$0xff] %vm21_vm0, %v144_v18  ;;  %v265_v22 = vld [vmem:[#allocation2 + $0x30] sm:$0xff]  ;;  %v266_v23 = vld [vmem:[#allocation2 + $0x38] sm:$0xff]  ;;  %v267_v35 = vld [vmem:[#allocation2 + $0x40] sm:$0xff]  ;;  %2175 = vmatpush1.bf16.msra.mxu0 %v6121_v15 }
  0x75   :  { %v262_v24 = vld [vmem:[#allocation2 + $0x18] sm:$0xff]  ;;  %v6702_v27 = vpack.c.bf16 %v266_v23, %v265_v22  ;;  %v263_v28 = vld [vmem:[#allocation2 + $0x20] sm:$0xff]  ;;  %v264_v32 = vld [vmem:[#allocation2 + $0x28] sm:$0xff]  ;;  %v372_v38 = vpack.c.bf16 %v267_v35, %v267_v35  ;;  %210 = vst.msk [vmem:[#allocation2 + $0xc9] sm:$0xff] %vm21_vm0, %v145_v55  ;;  %2176 = vmatprep.subr.bf16.mxu0 %v10237_v4 }
  0x76   :  { %v268_v29 = vld [vmem:[#allocation2 + $0x48] sm:$0xff]  ;;  %v269_v30 = vld [vmem:[#allocation2 + $0x50] sm:$0xff]  ;;  %v6704_v31 = vpack.c.bf16 %v263_v28, %v262_v24  ;;  %v370_v37 = vpack.c.bf16 %v264_v32, %v264_v32  ;;  %v270_v47 = vld [vmem:[#allocation2 + $0x58] sm:$0xff]  ;;  %211 = vst.msk [vmem:[#allocation2 + $0xd9] sm:$0xff] %vm21_vm0, %v146_v8 }
  0x77   :  { %1309 = vrot.lane.b32.xlu1 %v6702_v27, %s6161_s27  ;;  %v6709_v36 = vpack.c.bf16 %v269_v30, %v268_v29  ;;  %v895_v40 = vrot.slane %v6702_v27, 1  ;;  %v896_v44 = vrot.slane %v372_v38, 1  ;;  %v467_v46 = vshll.u32 %v6702_v27, 16  ;;  %v271_v13 = vld [vmem:[#allocation2 + $0x60] sm:$0xff]  ;;  %v272_v14 = vld [vmem:[#allocation2 + $0x68] sm:$0xff]  ;;  %212 = vst.msk [vmem:[#allocation2 + $0xe1] sm:$0xff] %vm21_vm0, %v147_v12 }
  0x78   :  { %1181 = vrot.lane.b32.xlu0 %v6704_v31, %s6162_s28  ;;  %v892_v39 = vrot.slane %v6704_v31, 1  ;;  %v893_v43 = vrot.slane %v370_v37, 1  ;;  %v465_v50 = vshrl.u32 %v6702_v27, 16  ;;  %v472_v53 = vshll.u32 %v372_v38, 16  ;;  %v273_v17 = vld [vmem:[#allocation2 + $0x70] sm:$0xff]  ;;  %v6122_v22 = vld [vmem:[%s10232_s1 + $0x28] sm:$0xff]  }
  0x79   :  { %v455_v54 = vshll.u32 %v6704_v31, 16  ;;  %v6730_v56 = vsel %vm888_vm1, %v895_v40, %v896_v44  ;;  %v469_v57 = vrot.slane %v467_v46, 1  ;;  %v460_v58 = vshll.u32 %v370_v37, 16  ;;  %v148_v23 = vld [vmem:[%s10231_s0 + $0x90] sm:$0xff]  ;;  %v149_v24 = vld [vmem:[%s10231_s0 + $0x98] sm:$0xff]  ;;  %2177 = vmatpush1.bf16.msra.mxu0 %v6122_v22  ;;  %v150_v35 = vld [vmem:[%s10231_s0 + $0xa0] sm:$0xff] }
  0x7a   :  { %v894_v51 = vsel %vm888_vm1, %v892_v39, %v893_v43  ;;  %v6732_v59 = vpack.c.bf16 %v270_v47, %v270_v47  ;;  %v453_v62 = vshrl.u32 %v6704_v31, 16  ;;  %v479_v0 = vshll.u32 %v6709_v36, 16  ;;  %5976 = vmatprep.mubr.msk.bf16.mxu1 %vm21_vm0, %v6730_v56  ;;  %213 = vst.msk [vmem:[#allocation2 + $0xf1] sm:$0xff] %vm21_vm0, %v148_v23  ;;  %214 = vst.msk [vmem:[#allocation2 + $0xf9] sm:$0xff] %vm21_vm0, %v149_v24  ;;  %v151_v37 = vld [vmem:[%s10231_s0 + $0xa8] sm:$0xff]  ;;  %v274_v41 = vld [vmem:[#allocation2 + $0x78] sm:$0xff] }
  0x7b   :  { %1245 = vrot.lane.b32.xlu1 %v894_v51, %s6163_s6  ;;  %v457_v63 = vrot.slane %v455_v54, 1  ;;  %v474_v2 = vrot.slane %v472_v53, 1  ;;  %v470_v3 = vor.u32 %v469_v57, %v465_v50  ;;  %v462_v5 = vrot.slane %v460_v58, 1  ;;  %2178 = vmatprep.subr.bf16.mxu0 %v10237_v4  ;;  %215 = vst.msk [vmem:[#allocation2 + $0x109] sm:$0xff] %vm21_vm0, %v150_v35  ;;  %216 = vst.msk [vmem:[#allocation2 + $0x111] sm:$0xff] %vm21_vm0, %v151_v37  ;;  %v275_v42 = vld [vmem:[#allocation2 + $0x80] sm:$0xff] }
  0x7c   :  { %1311 = vrot.lane.b32.xlu0 %v6709_v36, %s6161_s27  ;;  %v477_v6 = vshrl.u32 %v6709_v36, 16  ;;  %v484_v7 = vshll.u32 %v6732_v59, 16  ;;  %v481_v11 = vrot.slane %v479_v0, 1  ;;  %v6772_v21 = vpack.c.bf16 %v272_v14, %v271_v13  ;;  %v6124_v43 = vld [vmem:[%s10232_s1 + $0x38] sm:$0xff]   ;;  %v276_v44 = vld [vmem:[#allocation2 + $0x88] sm:$0xff]  ;;  %217 = vst.msk [vmem:[#allocation2 + $0x121] sm:$0xff] %vm21_vm0, %v152_v49 }
  0x7d   :  { %v458_v10 = vor.u32 %v457_v63, %v453_v62  ;;  %v6767_v16 = vsel %vm439_vm2, %v470_v3, %v474_v2  ;;  %v898_v26 = vrot.slane %v6709_v36, 1  ;;  %v899_v29 = vrot.slane %v6732_v59, 1  ;;  %2179 = vmatpush1.bf16.msra.mxu0 %v6123_v33  ;;  %v153_v50 = vld [vmem:[%s10231_s0 + $0xb8] sm:$0xff]  ;;  %v6126_v57 = vld [vmem:[%s10232_s1 + $0x48] sm:$0xff]   ;;  %v277_v63 = vld [vmem:[#allocation2 + $0x90] sm:$0xff]  ;;  %220 = vst.msk [vmem:[#allocation2 + $0x141] sm:$0xff] %vm21_vm0, %v155_v1 }
  0x7e   :  { %v482_v19 = vor.u32 %v481_v11, %v477_v6  ;;  %v486_v20 = vrot.slane %v484_v7, 1  ;;  %v376_v30 = vpack.c.bf16 %v273_v17, %v273_v17  ;;  %v491_v32 = vshll.u32 %v6772_v21, 16  ;;  %2180 = vmatprep.subr.bf16.mxu0 %v10237_v4  ;;  %218 = vst.msk [vmem:[#allocation2 + $0x129] sm:$0xff] %vm21_vm0, %v153_v50  ;;  %v6134_v58 = vld [vmem:[%s10232_s1 + $0x88] sm:$0xff]   ;;  %v154_v0 = vld [vmem:[%s10231_s0 + $0xc0] sm:$0xff]  ;;  %v278_v2 = vld [vmem:[#allocation2 + $0x98] sm:$0xff] }
  0x7f   :  { %1247 = vrot.lane.b32.xlu1 %v6730_v56, %s6163_s6  ;;  %v6770_v18 = vsel %vm439_vm2, %v458_v10, %v462_v5  ;;  %v489_v34 = vshrl.u32 %v6772_v21, 16  ;;  %v6812_v38 = vsel %vm888_vm1, %v898_v26, %v899_v29  ;;  %v6824_v47 = vpack.c.bf16 %v275_v42, %v274_v41  ;;  %v6127_v3 = vld [vmem:[%s10232_s1 + $0x50] sm:$0xff]   ;;  %219 = vst.msk [vmem:[#allocation2 + $0x139] sm:$0xff] %vm21_vm0, %v154_v0  ;;  %v157_v6 = vld [vmem:[%s10231_s0 + $0xd8] sm:$0xff]  ;;  %v158_v7 = vld [vmem:[%s10231_s0 + $0xe0] sm:$0xff] }
  0x80   :  { %1117 = vrot.lane.b32.xlu0 %v891_v48, %s6161_s27  ;;  %v6792_v28 = vsel %vm439_vm2, %v482_v19, %v486_v20  ;;  %v493_v39 = vrot.slane %v491_v32, 1  ;;  %v496_v40 = vshll.u32 %v376_v30, 16  ;;  %v6125_v48 = vld [vmem:[%s10232_s1 + $0x40] sm:$0xff]   ;;  %v902_v53 = vrot.slane %v376_v30, 1  ;;  %v156_v5 = vld [vmem:[%s10231_s0 + $0xd0] sm:$0xff]  ;;  %v159_v8 = vld [vmem:[%s10231_s0 + $0xe8] sm:$0xff] }
  0x81   :  { %2181 = vmatpush1.bf16.msra.mxu0 %v6124_v43  ;;  %v6846_v54 = vpack.c.bf16 %v276_v44, %v276_v44  ;;  %v503_v55 = vshll.u32 %v6824_v47, 16  ;;  %v501_v60 = vshrl.u32 %v6824_v47, 16  ;;  %221 = vst.msk [vmem:[#allocation2 + $0x151] sm:$0xff] %vm21_vm0, %v156_v5  ;;  %222 = vst.msk [vmem:[#allocation2 + $0x159] sm:$0xff] %vm21_vm0, %v157_v6  ;;  %v161_v10 = vld [vmem:[%s10231_s0 + $0xf8] sm:$0xff]  ;;  %v6906_v13 = vpack.c.bf16 %v278_v2, %v277_v63  ;;  %v279_v14 = vld [vmem:[#allocation2 + $0xa0] sm:$0xff] }
  0x82   :  { %v494_v45 = vor.u32 %v493_v39, %v489_v34  ;;  %v498_v46 = vrot.slane %v496_v40, 1  ;;  %2182 = vmatprep.subr.bf16.mxu0 %v10237_v4  ;;  %223 = vst.msk [vmem:[#allocation2 + $0x169] sm:$0xff] %vm21_vm0, %v158_v7  ;;  %224 = vst.msk [vmem:[#allocation2 + $0x171] sm:$0xff] %vm21_vm0, %v159_v8  ;;  %v6128_v15 = vld [vmem:[%s10232_s1 + $0x58] sm:$0xff]   ;;  %v904_v17 = vrot.slane %v6824_v47, 1  ;;  %v380_v22 = vpack.c.bf16 %v279_v14, %v279_v14  ;;  %v6129_v24 = vld [vmem:[%s10232_s1 + $0x60] sm:$0xff]  }
  0x83   :  { %1119 = vrot.lane.b32.xlu1 %v894_v51, %s6161_s27  ;;  %v901_v51 = vrot.slane %v6772_v21, 1  ;;  %v505_v61 = vrot.slane %v503_v55, 1  ;;  %v508_v62 = vshll.u32 %v6846_v54, 16  ;;  %226 = vst.msk [vmem:[#allocation2 + $0x189] sm:$0xff] %vm21_vm0, %v161_v10  ;;  %v905_v19 = vrot.slane %v6846_v54, 1  ;;  %v280_v35 = vld [vmem:[#allocation2 + $0xa8] sm:$0xff] }
  0x84   :  { %1053 = vrot.lane.b32.xlu0 %v451_v9, %s6163_s6  ;;  %v6844_v52 = vsel %vm439_vm2, %v494_v45, %v498_v46  ;;  %v160_v9 = vld [vmem:[%s10231_s0 + $0xf0] sm:$0xff]  ;;  %v515_v23 = vshll.u32 %v6906_v13, 16  ;;  %v513_v29 = vshrl.u32 %v6906_v13, 16  ;;  %v520_v32 = vshll.u32 %v380_v22, 16  ;;  %v282_v39 = vld [vmem:[#allocation2 + $0xb8] sm:$0xff]  ;;  %v283_v40 = vld [vmem:[#allocation2 + $0xc0] sm:$0xff] }
  0x85   :  { %2183 = vmatpush1.bf16.msra.mxu0 %v6125_v48  ;;  %v6864_v59 = vsel %vm888_vm1, %v901_v51, %v902_v53  ;;  %v506_v11 = vor.u32 %v505_v61, %v501_v60  ;;  %v510_v12 = vrot.slane %v508_v62, 1  ;;  %225 = vst.msk [vmem:[#allocation2 + $0x181] sm:$0xff] %vm21_vm0, %v160_v9  ;;  %v6938_v26 = vsel %vm888_vm1, %v904_v17, %v905_v19  ;;  %v281_v37 = vld [vmem:[#allocation2 + $0xb0] sm:$0xff]  ;;  %v284_v41 = vld [vmem:[#allocation2 + $0xc8] sm:$0xff]  ;;  %v162_v53 = vld [vmem:[%s10231_s0 + $0x100] sm:$0xff] }
  0x86   :  { %2184 = vmatprep.subr.bf16.mxu0 %v10237_v4  ;;  %v517_v30 = vrot.slane %v515_v23, 1  ;;  %v907_v33 = vrot.slane %v6906_v13, 1  ;;  %v908_v34 = vrot.slane %v380_v22, 1  ;;  %v285_v42 = vld [vmem:[#allocation2 + $0xd0] sm:$0xff]  ;;  %v522_v44 = vrot.slane %v520_v32, 1  ;;  %227 = vst.msk [vmem:[#allocation2 + $0x1c9] sm:$0xff] %vm21_vm0, %v162_v53 }
  0x87   :  { %1373 = vrot.lane.b32.xlu1 %v6767_v16, %s6162_s28  ;;  %v6922_v20 = vsel %vm439_vm2, %v506_v11, %v510_v12  ;;  %v6953_v46 = vpack.c.bf16 %v281_v37, %v280_v35  ;;  %v382_v48 = vpack.c.bf16 %v282_v39, %v282_v39  ;;  %v6131_v49 = vld [vmem:[%s10232_s1 + $0x70] sm:$0xff]   ;;  %v6962_v50 = vpack.c.bf16 %v284_v41, %v283_v40  ;;  %v286_v61 = vld [vmem:[#allocation2 + $0xd8] sm:$0xff]  ;;  %v287_v62 = vld [vmem:[#allocation2 + $0xe0] sm:$0xff] }
  0x88   :  { %1055 = vrot.lane.b32.xlu0 %v6770_v18, %s6163_s6  ;;  %v518_v43 = vor.u32 %v517_v30, %v513_v29  ;;  %v6951_v45 = vsel %vm888_vm1, %v907_v33, %v908_v34  ;;  %v6964_v51 = vpack.c.bf16 %v285_v42, %v285_v42  ;;  %v6133_v63 = vld [vmem:[%s10232_s1 + $0x78] sm:$0xff]   ;;  %v288_v0 = vld [vmem:[#allocation2 + $0xe8] sm:$0xff]  ;;  %v289_v1 = vld [vmem:[#allocation2 + $0xf0] sm:$0xff]  ;;  %v7011_v12 = vpack.c.bf16 %v287_v62, %v286_v61 }
  0x89   :  { %2185 = vmatpush1.bf16.msra.mxu0 %v6126_v57  ;;  %v910_v54 = vrot.slane %v6953_v46, 1  ;;  %v911_v55 = vrot.slane %v382_v48, 1  ;;  %v163_v57 = vld [vmem:[%s10231_s0 + $0x108] sm:$0xff]  ;;  %v913_v60 = vrot.slane %v6962_v50, 1  ;;  %v164_v2 = vld [vmem:[%s10231_s0 + $0x110] sm:$0xff]  ;;  %v290_v5 = vld [vmem:[#allocation2 + $0xf8] sm:$0xff]  ;;  %v7013_v14 = vpack.c.bf16 %v288_v0, %v288_v0 }
  0x8a   :  { %2186 = vmatprep.subr.bf16.mxu0 %v10237_v4  ;;  %228 = vst.msk [vmem:[#allocation2 + $0x1d1] sm:$0xff] %vm21_vm0, %v163_v57  ;;  %v291_v6 = vld [vmem:[#allocation2 + $0x100] sm:$0xff]  ;;  %v165_v7 = vld [vmem:[%s10231_s0 + $0x118] sm:$0xff]  ;;  %229 = vst.msk [vmem:[#allocation2 + $0x1e1] sm:$0xff] %vm21_vm0, %v164_v2  ;;  %v525_v8 = vshrl.u32 %v6953_v46, 16  ;;  %v532_v10 = vshll.u32 %v382_v48, 16 }
  0x8b   :  { %1183 = vrot.lane.b32.xlu1 %v6702_v27, %s6162_s28  ;;  %230 = vst.msk [vmem:[#allocation2 + $0x1e9] sm:$0xff] %vm21_vm0, %v165_v7  ;;  %v7019_v17 = vpack.c.bf16 %v291_v6, %v291_v6  ;;  %v916_v19 = vrot.slane %v7011_v12, 1  ;;  %v917_v22 = vrot.slane %v7013_v14, 1  ;;  %v292_v32 = vld [vmem:[#allocation2 + $0x108] sm:$0xff]  ;;  %v293_v33 = vld [vmem:[#allocation2 + $0x110] sm:$0xff]  ;;  %v294_v34 = vld [vmem:[#allocation2 + $0x118] sm:$0xff] }
  0x8c   :  { %1375 = vrot.lane.b32.xlu0 %v6792_v28, %s6162_s28  ;;  %v295_v37 = vld [vmem:[#allocation2 + $0x120] sm:$0xff]  ;;  %v297_v39 = vld [vmem:[#allocation2 + $0x130] sm:$0xff]  ;;  %v539_v41 = vshll.u32 %v6962_v50, 16  ;;  %v167_v53 = vld [vmem:[%s10231_s0 + $0x128] sm:$0xff] }
  0x8d   :  { %2187 = vmatpush1.bf16.msra.mxu0 %v6127_v3  ;;  %v6998_v3 = vsel %vm888_vm1, %v910_v54, %v911_v55  ;;  %v920_v30 = vrot.slane %v7019_v17, 1  ;;  %v7034_v35 = vsel %vm888_vm1, %v916_v19, %v917_v22  ;;  %v7053_v48 = vpack.c.bf16 %v297_v39, %v297_v39  ;;  %232 = vst.msk [vmem:[#allocation2 + $0x201] sm:$0xff] %vm21_vm0, %v167_v53  ;;  %v298_v62 = vld [vmem:[#allocation2 + $0x138] sm:$0xff]  ;;  %v300_v0 = vld [vmem:[#allocation2 + $0x148] sm:$0xff]  ;;  %v301_v2 = vld [vmem:[#allocation2 + $0x150] sm:$0xff] }
  0x8e   :  { %2188 = vmatprep.subr.bf16.mxu0 %v10237_v4  ;;  %v537_v54 = vshrl.u32 %v6962_v50, 16  ;;  %v303_v6 = vld [vmem:[#allocation2 + $0x160] sm:$0xff]  ;;  %v169_v39 = vld [vmem:[%s10231_s0 + $0x138] sm:$0xff]  ;;  %v308_v53 = vld [vmem:[#allocation2 + $0x188] sm:$0xff] }
  0x8f   :  { %1057 = vrot.lane.b32.xlu1 %v6767_v16, %s6163_s6  ;;  %v926_v61 = vrot.slane %v7053_v48, 1  ;;  %v7093_v22 = vpack.c.bf16 %v303_v6, %v303_v6  ;;  %234 = vst.msk [vmem:[#allocation2 + $0x219] sm:$0xff] %vm21_vm0, %v169_v39 }
  0x90   :  { %1249 = vrot.lane.b32.xlu0 %v6812_v38, %s6163_s6 }
  0x91   :  { %2189 = vmatpush1.bf16.msra.mxu0 %v6128_v15  ;;  %v7017_v15 = vpack.c.bf16 %v290_v5, %v289_v1  ;;  %v302_v5 = vld [vmem:[#allocation2 + $0x158] sm:$0xff] }
  0x92   :  { %2190 = vmatprep.subr.bf16.mxu0 %v10237_v4  ;;  %v7091_v19 = vpack.c.bf16 %v302_v5, %v301_v2 }
  0x93   :  { %1121 = vrot.lane.b32.xlu1 %v6730_v56, %s6161_s27  ;;  %v6132_v56 = vld [vmem:[%s10232_s1 + $0x80] sm:$0xff]   ;;  %v919_v29 = vrot.slane %v7017_v15, 1 }
  0x94   :  { %1313 = vrot.lane.b32.xlu0 %v6772_v21, %s6161_s27  ;;  %5972 = vmatprep.subr.bf16.mxu1 %v6132_v56  ;;  %10267 = vst [vmem:[#allocation6_spill] sm:$0xff] %v7091_v19 }
  0x95   :  { %5973 = vmatpush3.bf16.msra.mxu1 %v6132_v56  ;;  %2191 = vmatpush1.bf16.msra.mxu0 %v6129_v24  ;;  %v6980_v56 = vsel %vm439_vm2, %v518_v43, %v522_v44  ;;  %v534_v24 = vrot.slane %v532_v10, 1  ;;  %v7041_v42 = vsel %vm888_vm1, %v919_v29, %v920_v30  ;;  %v7047_v43 = vpack.c.bf16 %v294_v34, %v294_v34  ;;  %v304_v34 = vld [vmem:[#allocation2 + $0x168] sm:$0xff] }
  0x96   :  { %5974 = vmatprep.subr.bf16.mxu1 %v6134_v58  ;;  %2192 = vmatprep.subr.bf16.mxu0 %v10237_v4  ;;  %v7087_v10 = vpack.c.bf16 %v300_v0, %v300_v0  ;;  %v551_v30 = vshll.u32 %v7011_v12, 16 }
  0x97   :  { %1185 = vrot.lane.b32.xlu1 %v6709_v36, %s6162_s28  ;;  %v923_v57 = vrot.slane %v7047_v43, 1 }
  0x98   :  { %1377 = vrot.lane.b32.xlu0 %v6844_v52, %s6162_s28 }
  0x99   :  { %5975 = vmatpush3.bf16.msra.mxu1 %v6134_v58  ;;  %v527_v58 = vshll.u32 %v6953_v46, 16 }
  0x9a   :  { %4884 = vmatprep.subr.bf16.mxu1 %v10237_v4 }
  0x9b   :  { %1059 = vrot.lane.b32.xlu1 %v6792_v28, %s6163_s6  ;;  %v529_v9 = vrot.slane %v527_v58, 1  ;;  %v541_v58 = vrot.slane %v539_v41, 1 }
  0x9c   :  { %1251 = vrot.lane.b32.xlu0 %v6864_v59, %s6163_s6  ;;  %5977 = vmatmul.mubr.msk.bf16.vlgmr.msra.gmra.mrb[0].mxu1 %vm21_vm0, %v6812_v38 }
  0x9d   :  { %5980 = vmatprep.mubr.msk.bf16.mxu1 %vm21_vm0, %v6864_v59  ;;  %v530_v23 = vor.u32 %v529_v9, %v525_v8 }
  0x9f   :  { %1123 = vrot.lane.b32.xlu1 %v6812_v38, %s6161_s27  ;;  %v6130_v38 = vld [vmem:[%s10232_s1 + $0x68] sm:$0xff]   ;;  %v7037_v40 = vsel %vm439_vm2, %v530_v23, %v534_v24  ;;  %v929_v24 = vrot.slane %v7087_v10, 1 }
  0xa0   :  { %1315 = vrot.lane.b32.xlu0 %v6824_v47, %s6161_s27  ;;  %2193 = vmatpush1.bf16.msra.mxu0 %v6130_v38  ;;  %v296_v38 = vld [vmem:[#allocation2 + $0x128] sm:$0xff] }
  0xa1   :  { %2194 = vmatprep.subr.bf16.mxu0 %v10237_v4  ;;  %v7051_v44 = vpack.c.bf16 %v296_v38, %v295_v37  ;;  %v305_v37 = vld [vmem:[#allocation2 + $0x170] sm:$0xff]  ;;  %v306_v38 = vld [vmem:[#allocation2 + $0x178] sm:$0xff] }
  0xa3   :  { %1187 = vrot.lane.b32.xlu1 %v6772_v21, %s6162_s28  ;;  %10265 = vst [vmem:[#allocation4_spill] sm:$0xff] %v7051_v44 }
  0xa4   :  { %1379 = vrot.lane.b32.xlu0 %v6922_v20, %s6162_s28  ;;  %5981 = vmatmul.mubr.msk.bf16.gmra.mrb[4].mxu1 %vm21_vm0, %v6938_v26 }
  0xa5   :  { %5984 = vmatprep.mubr.msk.bf16.mxu1 %vm21_vm0, %v6951_v45  ;;  %2195 = vmatpush1.bf16.msra.mxu0 %v6131_v49  ;;  %v166_v49 = vld [vmem:[%s10231_s0 + $0x120] sm:$0xff] }
  0xa6   :  { %2196 = vmatprep.subr.bf16.mxu0 %v10237_v4  ;;  %231 = vst.msk [vmem:[#allocation2 + $0x1f9] sm:$0xff] %vm21_vm0, %v166_v49  ;;  %v307_v49 = vld [vmem:[#allocation2 + $0x180] sm:$0xff] }
  0xa7   :  { %1061 = vrot.lane.b32.xlu1 %v6844_v52, %s6163_s6 }
  0xa8   :  { %1253 = vrot.lane.b32.xlu0 %v6938_v26, %s6163_s6 }
  0xa9   :  { %2197 = vmatpush1.bf16.msra.mxu0 %v6133_v63  ;;  %v299_v63 = vld [vmem:[#allocation2 + $0x140] sm:$0xff] }
  0xaa   :  { %v7085_v9 = vpack.c.bf16 %v299_v63, %v298_v62  ;;  %v7135_v62 = vpack.c.bf16 %v308_v53, %v307_v49  ;;  %v173_v53 = vld [vmem:[%s10231_s0 + $0x158] sm:$0xff] }
  0xab   :  { %1125 = vrot.lane.b32.xlu1 %v6864_v59, %s6161_s27  ;;  %v914_v59 = vrot.slane %v6964_v51, 1  ;;  %238 = vst.msk [vmem:[#allocation2 + $0x249] sm:$0xff] %vm21_vm0, %v173_v53 }
  0xac   :  { %1317 = vrot.lane.b32.xlu0 %v6906_v13, %s6161_s27  ;;  %5985 = vmatmul.mubr.msk.bf16.gmra.mrb[8].mxu1 %vm21_vm0, %v6998_v3  ;;  %10266 = vst [vmem:[#allocation5_spill] sm:$0xff] %v7085_v9  ;;  %v928_v23 = vrot.slane %v7085_v9, 1  ;;  %v1013_v6 = vrot.slane %v7135_v62, 1 }
  0xad   :  { %v7006_v11 = vsel %vm888_vm1, %v913_v60, %v914_v59  ;;  %v544_v60 = vshll.u32 %v6964_v51, 16  ;;  %v925_v59 = vrot.slane %v7051_v44, 1  ;;  %v542_v51 = vor.u32 %v541_v58, %v537_v54  ;;  %v309_v54 = vld [vmem:[#allocation2 + $0x190] sm:$0xff] }
  0xae   :  { %5988 = vmatprep.mubr.msk.bf16.mxu1 %vm21_vm0, %v7006_v11  ;;  %v7118_v41 = vsel %vm888_vm1, %v928_v23, %v929_v24  ;;  %v556_v58 = vshll.u32 %v7013_v14, 16  ;;  %v7137_v63 = vpack.c.bf16 %v309_v54, %v309_v54  ;;  %v563_v24 = vshll.u32 %v7017_v15, 16 }
  0xaf   :  { %1189 = vrot.lane.b32.xlu1 %v6824_v47, %s6162_s28  ;;  %v546_v7 = vrot.slane %v544_v60, 1  ;;  %v7081_v8 = vsel %vm888_vm1, %v925_v59, %v926_v61  ;;  %v7129_v59 = vpack.c.bf16 %v305_v37, %v304_v34  ;;  %v7131_v61 = vpack.c.bf16 %v306_v38, %v306_v38 }
  0xb0   :  { %1381 = vrot.lane.b32.xlu0 %v6980_v56, %s6162_s28  ;;  %v558_v5 = vrot.slane %v556_v58, 1  ;;  %v565_v34 = vrot.slane %v563_v24, 1  ;;  %v568_v37 = vshll.u32 %v7019_v17, 16  ;;  %v172_v17 = vld [vmem:[%s10231_s0 + $0x150] sm:$0xff]  ;;  %v592_v24 = vshll.u32 %v7053_v48, 16 }
  0xb1   :  { %v7102_v29 = vsel %vm439_vm2, %v542_v51, %v546_v7  ;;  %10268 = vst [vmem:[#allocation7_spill] sm:$0xff] %v7129_v59  ;;  %v934_v14 = vrot.slane %v7129_v59, 1  ;;  %v935_v0 = vrot.slane %v7131_v61, 1  ;;  %v1014_v51 = vrot.slane %v7137_v63, 1  ;;  %237 = vst.msk [vmem:[#allocation2 + $0x241] sm:$0xff] %vm21_vm0, %v172_v17 }
  0xb3   :  { %1063 = vrot.lane.b32.xlu1 %v6922_v20, %s6163_s6  ;;  %v7152_v7 = vsel %vm888_vm1, %v934_v14, %v935_v0 }
  0xb4   :  { %1255 = vrot.lane.b32.xlu0 %v6951_v45, %s6163_s6  ;;  %5989 = vmatmul.mubr.msk.bf16.gmra.mrb[12].mxu1 %vm21_vm0, %v7034_v35 }
  0xb5   :  { %5992 = vmatprep.mubr.msk.bf16.mxu1 %vm21_vm0, %v7041_v42 }
  0xb7   :  { %1127 = vrot.lane.b32.xlu1 %v6938_v26, %s6161_s27  ;;  %v7045_v26 = vpack.c.bf16 %v293_v33, %v292_v32  ;;  %v931_v32 = vrot.slane %v7091_v19, 1  ;;  %v932_v33 = vrot.slane %v7093_v22, 1 }
  0xb8   :  { %1319 = vrot.lane.b32.xlu0 %v6953_v46, %s6161_s27 }
  0xb9   :  { %v922_v55 = vrot.slane %v7045_v26, 1  ;;  %v7125_v60 = vsel %vm888_vm1, %v931_v32, %v932_v33  ;;  %v171_v32 = vld [vmem:[%s10231_s0 + $0x148] sm:$0xff]  ;;  %v561_v33 = vshrl.u32 %v7017_v15, 16  ;;  %v575_v49 = vshll.u32 %v7045_v26, 16 }
  0xba   :  { %236 = vst.msk [vmem:[#allocation2 + $0x231] sm:$0xff] %vm21_vm0, %v171_v32 }
  0xbb   :  { %1191 = vrot.lane.b32.xlu1 %v6906_v13, %s6162_s28  ;;  %v7078_v1 = vsel %vm888_vm1, %v922_v55, %v923_v57  ;;  %v549_v55 = vshrl.u32 %v7011_v12, 16  ;;  %v553_v57 = vrot.slane %v551_v30, 1  ;;  %v7159_v30 = vsel %vm888_vm1, %v1013_v6, %v1014_v51  ;;  %v175_v6 = vld [vmem:[%s10231_s0 + $0x168] sm:$0xff] }
  0xbc   :  { %1383 = vrot.lane.b32.xlu0 %v7037_v40, %s6162_s28  ;;  %5993 = vmatmul.mubr.msk.bf16.gmra.mrb[16].mxu1 %vm21_vm0, %v7078_v1  ;;  %v566_v38 = vor.u32 %v565_v34, %v561_v33  ;;  %v577_v54 = vrot.slane %v575_v49, 1  ;;  %240 = vst.msk [vmem:[#allocation2 + $0x261] sm:$0xff] %vm21_vm0, %v175_v6  ;;  %v594_v34 = vrot.slane %v592_v24, 1 }
  0xbd   :  { %5996 = vmatprep.mubr.msk.bf16.mxu1 %vm21_vm0, %v7081_v8  ;;  %v554_v2 = vor.u32 %v553_v57, %v549_v55  ;;  %v580_v55 = vshll.u32 %v7047_v43, 16  ;;  %v587_v43 = vshll.u32 %v7051_v44, 16 }
  0xbf   :  { %1065 = vrot.lane.b32.xlu1 %v6980_v56, %s6163_s6  ;;  %v7155_v23 = vsel %vm439_vm2, %v554_v2, %v558_v5  ;;  %v582_v58 = vrot.slane %v580_v55, 1  ;;  %v174_v5 = vld [vmem:[%s10231_s0 + $0x160] sm:$0xff]  ;;  %v589_v51 = vrot.slane %v587_v43, 1  ;;  %v604_v55 = vshll.u32 %v7087_v10, 16 }
  0xc0   :  { %1257 = vrot.lane.b32.xlu0 %v6998_v3, %s6163_s6  ;;  %239 = vst.msk [vmem:[#allocation2 + $0x259] sm:$0xff] %vm21_vm0, %v174_v5 }
  0xc1   :  { %v606_v24 = vrot.slane %v604_v55, 1 }
  0xc3   :  { %1129 = vrot.lane.b32.xlu1 %v6951_v45, %s6161_s27  ;;  %v168_v45 = vld [vmem:[%s10231_s0 + $0x130] sm:$0xff]  ;;  %v336_v4 = vld [vmem:[#allocation2 + $0x268] sm:$0xff] }
  0xc4   :  { %1321 = vrot.lane.b32.xlu0 %v6962_v50, %s6161_s27  ;;  %233 = vst.msk [vmem:[#allocation2 + $0x211] sm:$0xff] %vm21_vm0, %v168_v45  ;;  %5997 = vmatmul.mubr.msk.bf16.gmra.mrb[20].mxu1 %vm21_vm0, %v7118_v41  ;;  %v570_v45 = vrot.slane %v568_v37, 1 }
  0xc5   :  { %6000 = vmatprep.mubr.msk.bf16.mxu1 %vm21_vm0, %v7125_v60 }
  0xc6   :  { %v7188_v39 = vsel %vm439_vm2, %v566_v38, %v570_v45  ;;  %v599_v45 = vshll.u32 %v7085_v9, 16 }
  0xc7   :  { %1193 = vrot.lane.b32.xlu1 %v6953_v46, %s6162_s28 }
  0xc8   :  { %1385 = vrot.lane.b32.xlu0 %v7102_v29, %s6162_s28 }
  0xcb   :  { %1067 = vrot.lane.b32.xlu1 %v7037_v40, %s6163_s6 }
  0xcc   :  { %1259 = vrot.lane.b32.xlu0 %v7006_v11, %s6163_s6  ;;  %6001 = vmatmul.mubr.msk.bf16.gmra.mrb[24].mxu1 %vm21_vm0, %v7152_v7 }
  0xcd   :  { %6004 = vmatprep.mubr.msk.bf16.mxu1 %vm21_vm0, %v7159_v30 }
  0xcf   :  { %1131 = vrot.lane.b32.xlu1 %v6998_v3, %s6161_s27  ;;  %v170_v3 = vld [vmem:[%s10231_s0 + $0x140] sm:$0xff] }
  0xd0   :  { %1323 = vrot.lane.b32.xlu0 %v7011_v12, %s6161_s27  ;;  %235 = vst.msk [vmem:[#allocation2 + $0x229] sm:$0xff] %vm21_vm0, %v170_v3 }
  0xd3   :  { %1195 = vrot.lane.b32.xlu1 %v6962_v50, %s6162_s28 }
  0xd4   :  { %1387 = vrot.lane.b32.xlu0 %v7155_v23, %s6162_s28 }
  0xd7   :  { %1069 = vrot.lane.b32.xlu1 %v7102_v29, %s6163_s6 }
  0xd8   :  { %1261 = vrot.lane.b32.xlu0 %v7034_v35, %s6163_s6 }
  0xdb   :  { %1133 = vrot.lane.b32.xlu1 %v7006_v11, %s6161_s27  ;;  %v573_v11 = vshrl.u32 %v7045_v26, 16 }
  0xdc   :  { %1325 = vrot.lane.b32.xlu0 %v7017_v15, %s6161_s27 }
  0xdd   :  { %v578_v57 = vor.u32 %v577_v54, %v573_v11  ;;  %v177_v54 = vld [vmem:[%s10231_s0 + $0x178] sm:$0xff] }
  0xde   :  { %242 = vst.msk [vmem:[#allocation2 + $0x279] sm:$0xff] %vm21_vm0, %v177_v54 }
  0xdf   :  { %1197 = vrot.lane.b32.xlu1 %v7011_v12, %s6162_s28  ;;  %v7214_v0 = vsel %vm439_vm2, %v578_v57, %v582_v58 }
  0xe0   :  { %1389 = vrot.lane.b32.xlu0 %v7188_v39, %s6162_s28 }
  0xe3   :  { %1071 = vrot.lane.b32.xlu1 %v7155_v23, %s6163_s6 }
  0xe4   :  { %1263 = vrot.lane.b32.xlu0 %v7041_v42, %s6163_s6 }
  0xe7   :  { %1135 = vrot.lane.b32.xlu1 %v7034_v35, %s6161_s27  ;;  %v585_v35 = vshrl.u32 %v7051_v44, 16 }
  0xe8   :  { %1327 = vrot.lane.b32.xlu0 %v7045_v26, %s6161_s27 }
  0xe9   :  { %v1310_v14 = vpop.permute.xlu1 %1309  ;;  %v590_v33 = vor.u32 %v589_v51, %v585_v35 }
  0xea   :  { %v1182_v2 = vpop.permute.xlu0 %1181 }
  0xeb   :  { %1199 = vrot.lane.b32.xlu1 %v7017_v15, %s6162_s28  ;;  %v7240_v48 = vsel %vm439_vm2, %v590_v33, %v594_v34 }
  0xec   :  { %1391 = vrot.lane.b32.xlu0 %v7214_v0, %s6162_s28 }
  0xed   :  { %v1246_v32 = vpop.permute.xlu1 %1245 }
  0xee   :  { %v1312_v3 = vpop.permute.xlu0 %1311  ;;  %v1665_v53 = vsel %vm21_vm0, %v6770_v18, %v1246_v32  ;;  %v601_v18 = vrot.slane %v599_v45, 1 }
  0xef   :  { %1073 = vrot.lane.b32.xlu1 %v7188_v39, %s6163_s6  ;;  %v1760_v43 = vsel %vm1501_vm3, %v1665_v53, %v1310_v14  ;;  %v609_v53 = vshrl.u32 %v7091_v19, 16 }
  0xf0   :  { %1265 = vrot.lane.b32.xlu0 %v7078_v1, %s6163_s6 }
  0xf1   :  { %v1248_v38 = vpop.permute.xlu1 %1247 }
  0xf2   :  { %v1118_v37 = vpop.permute.xlu0 %1117  ;;  %v1668_v6 = vsel %vm21_vm0, %v6767_v16, %v1248_v38 }
  0xf3   :  { %1137 = vrot.lane.b32.xlu1 %v7041_v42, %s6161_s27  ;;  %v176_v42 = vld [vmem:[%s10231_s0 + $0x170] sm:$0xff]  ;;  %v1762_v33 = vsel %vm1501_vm3, %v1668_v6, %v1312_v3  ;;  %v178_v3 = vld [vmem:[%s10231_s0 + $0x180] sm:$0xff] }
  0xf4   :  { %1329 = vrot.lane.b32.xlu0 %v7051_v44, %s6161_s27  ;;  %241 = vst.msk [vmem:[#allocation2 + $0x271] sm:$0xff] %vm21_vm0, %v176_v42  ;;  %243 = vst.msk [vmem:[#allocation2 + $0x289] sm:$0xff] %vm21_vm0, %v178_v3  ;;  %v616_v42 = vshll.u32 %v7093_v22, 16 }
  0xf5   :  { %v1120_v17 = vpop.permute.xlu1 %1119 }
  0xf6   :  { %v1054_v49 = vpop.permute.xlu0 %1053 }
  0xf7   :  { %v1438_v11 = vsel %vm21_vm0, %v6699_v25, %v1054_v49  ;;  %1201 = vrot.lane.b32.xlu1 %v7045_v26, %s6162_s28  ;;  %v597_v25 = vshrl.u32 %v7085_v9, 16 }
  0xf8   :  { %1393 = vrot.lane.b32.xlu0 %v7240_v48, %s6162_s28  ;;  %v1503_v5 = vsel %vm1501_vm3, %v1438_v11, %v1118_v37  ;;  %v611_v37 = vshll.u32 %v7091_v19, 16 }
  0xf9   :  { %v1374_v57 = vpop.permute.xlu1 %1373  ;;  %v1568_v10 = vsel %vm1566_vm4, %v1503_v5, %v1182_v2  ;;  %v602_v51 = vor.u32 %v601_v18, %v597_v25 }
  0xfa   :  { %v1056_v58 = vpop.permute.xlu0 %1055  ;;  %v1824_v35 = vsel %vm1566_vm4, %v1760_v43, %v1374_v57  ;;  %v613_v11 = vrot.slane %v611_v37, 1  ;;  %v618_v57 = vrot.slane %v616_v42, 1  ;;  %v320_v42 = vld [vmem:[#allocation2 + $0x1e8] sm:$0xff] }
  0xfb   :  { %1075 = vrot.lane.b32.xlu1 %v7214_v0, %s6163_s6  ;;  %2198 = vmatprep.mubr.bf16.mxu0 %v1824_v35  ;;  %v1440_v34 = vsel %vm21_vm0, %v6704_v31, %v1056_v58  ;;  %v7280_v2 = vsel %vm439_vm2, %v602_v51, %v606_v24  ;;  %v180_v24 = vld [vmem:[%s10231_s0 + $0x190] sm:$0xff] }
  0xfc   :  { %1267 = vrot.lane.b32.xlu0 %v7081_v8, %s6163_s6  ;;  %2199 = vmatmul.mubr.bf16.vlgmr.msra.gmra.mrb[0].mxu0 %v1568_v10  ;;  %10269 = vst [vmem:[#allocation8_spill] sm:$0xff] %v7280_v2  ;;  %v1505_v31 = vsel %vm1501_vm3, %v1440_v34, %v1120_v17  ;;  %v614_v55 = vor.u32 %v613_v11, %v609_v53  ;;  %245 = vst.msk [vmem:[#allocation2 + $0x2a1] sm:$0xff] %vm21_vm0, %v180_v24  ;;  %v310_v53 = vld [vmem:[#allocation2 + $0x198] sm:$0xff]  ;;  %v319_v11 = vld [vmem:[#allocation2 + $0x1e0] sm:$0xff] }
  0xfd   :  { %v1184_v14 = vpop.permute.xlu1 %1183  ;;  %v183_v24 = vld [vmem:[%s10231_s0 + $0x1a8] sm:$0xff] }
  0xfe   :  { %v1376_v32 = vpop.permute.xlu0 %1375  ;;  %v1571_v49 = vsel %vm1566_vm4, %v1505_v31, %v1184_v14  ;;  %v621_v14 = vshrl.u32 %v7129_v59, 16  ;;  %248 = vst.msk [vmem:[#allocation2 + $0x2c1] sm:$0xff] %vm21_vm0, %v183_v24 }
  0xff   :  { %v1827_v16 = vsel %vm1566_vm4, %v1762_v33, %v1376_v32  ;;  %1139 = vrot.lane.b32.xlu1 %v7078_v1, %s6161_s27  ;;  %v179_v1 = vld [vmem:[%s10231_s0 + $0x188] sm:$0xff]  ;;  %v628_v33 = vshll.u32 %v7131_v61, 16 }
 0x100   :  { %1331 = vrot.lane.b32.xlu0 %v7085_v9, %s6161_s27  ;;  %2206 = vmatprep.mubr.bf16.mxu0 %v1827_v16  ;;  %244 = vst.msk [vmem:[#allocation2 + $0x291] sm:$0xff] %vm21_vm0, %v179_v1 }
 0x101   :  { %v1058_v38 = vpop.permute.xlu1 %1057  ;;  %v630_v3 = vrot.slane %v628_v33, 1 }
 0x102   :  { %v1250_v45 = vpop.permute.xlu0 %1249  ;;  %v1442_v17 = vsel %vm21_vm0, %v6702_v27, %v1058_v38  ;;  %v7316_v27 = vsel %vm439_vm2, %v614_v55, %v618_v57  ;;  %v7353_v57 = vpack.c.bf16 %v320_v42, %v319_v11  ;;  %v313_v42 = vld [vmem:[#allocation2 + $0x1b0] sm:$0xff] }
 0x103   :  { %1203 = vrot.lane.b32.xlu1 %v7051_v44, %s6162_s28  ;;  %v1671_v18 = vsel %vm21_vm0, %v6792_v28, %v1250_v45  ;;  %10270 = vst [vmem:[#allocation9_spill] sm:$0xff] %v7316_v27  ;;  %v623_v28 = vshll.u32 %v7129_v59, 16 }
 0x104   :  { %1395 = vrot.lane.b32.xlu0 %v7280_v2, %s6162_s28  ;;  %2207 = vmatmul.mubr.bf16.gmra.mrb[4].mxu0 %v1571_v49 }
 0x105   :  { %v1122_v54 = vpop.permute.xlu1 %1121  ;;  %v625_v32 = vrot.slane %v623_v28, 1  ;;  %v993_v28 = vshll.u32 %v7137_v63, 16  ;;  %v323_v63 = vld [vmem:[#allocation2 + $0x200] sm:$0xff] }
 0x106   :  { %v1314_v25 = vpop.permute.xlu0 %1313  ;;  %v1507_v58 = vsel %vm1501_vm3, %v1442_v17, %v1122_v54  ;;  %v311_v17 = vld [vmem:[#allocation2 + $0x1a0] sm:$0xff] }
 0x107   :  { %1077 = vrot.lane.b32.xlu1 %v7240_v48, %s6163_s6  ;;  %v1764_v22 = vsel %vm1501_vm3, %v1671_v18, %v1314_v25  ;;  %v626_v45 = vor.u32 %v625_v32, %v621_v14  ;;  %v312_v18 = vld [vmem:[#allocation2 + $0x1a8] sm:$0xff]  ;;  %v322_v14 = vld [vmem:[#allocation2 + $0x1f8] sm:$0xff] }
 0x108   :  { %1269 = vrot.lane.b32.xlu0 %v7118_v41, %s6163_s6  ;;  %v324_v32 = vld [vmem:[#allocation2 + $0x208] sm:$0xff] }
 0x109   :  { %v1186_v43 = vpop.permute.xlu1 %1185  ;;  %v7351_v55 = vsel %vm439_vm2, %v626_v45, %v630_v3  ;;  %v7380_v45 = vpack.c.bf16 %v323_v63, %v322_v14  ;;  %v7382_v3 = vpack.c.bf16 %v324_v32, %v324_v32 }
 0x10a   :  { %v1378_v5 = vpop.permute.xlu0 %1377  ;;  %v1574_v35 = vsel %vm1566_vm4, %v1507_v58, %v1186_v43  ;;  %10271 = vst [vmem:[#allocation10_spill] sm:$0xff] %v7351_v55  ;;  %v7355_v43 = vpack.c.bf16 %v311_v17, %v310_v53  ;;  %v995_v53 = vrot.slane %v993_v28, 1 }
 0x10b   :  { %v1830_v6 = vsel %vm1566_vm4, %v1764_v22, %v1378_v5  ;;  %1141 = vrot.lane.b32.xlu1 %v7081_v8, %s6161_s27  ;;  %v181_v8 = vld [vmem:[%s10231_s0 + $0x198] sm:$0xff]  ;;  %v7357_v5 = vpack.c.bf16 %v312_v18, %v312_v18  ;;  %v946_v18 = vrot.slane %v7380_v45, 1 }
 0x10c   :  { %1333 = vrot.lane.b32.xlu0 %v7091_v19, %s6161_s27  ;;  %2214 = vmatprep.mubr.bf16.mxu0 %v1830_v6  ;;  %246 = vst.msk [vmem:[#allocation2 + $0x2a9] sm:$0xff] %vm21_vm0, %v181_v8  ;;  %v1047_v33 = vrot.slane %v7355_v43, 1  ;;  %v1022_v11 = vshll.u32 %v7355_v43, 16  ;;  %v1020_v32 = vshrl.u32 %v7355_v43, 16 }
 0x10d   :  { %2215 = vmatmul.mubr.bf16.gmra.mrb[8].mxu0 %v1574_v35  ;;  %v1060_v10 = vpop.permute.xlu1 %1059 }
 0x10e   :  { %v1252_v51 = vpop.permute.xlu0 %1251  ;;  %v1444_v37 = vsel %vm21_vm0, %v6709_v36, %v1060_v10  ;;  %v988_v36 = vshll.u32 %v7135_v62, 16  ;;  %v943_v10 = vrot.slane %v7353_v57, 1 }
 0x10f   :  { %1205 = vrot.lane.b32.xlu1 %v7085_v9, %s6162_s28  ;;  %v1674_v38 = vsel %vm21_vm0, %v6844_v52, %v1252_v51  ;;  %v321_v52 = vld [vmem:[#allocation2 + $0x1f0] sm:$0xff]  ;;  %v182_v51 = vld [vmem:[%s10231_s0 + $0x1a0] sm:$0xff] }
 0x110   :  { %1397 = vrot.lane.b32.xlu0 %v7316_v27, %s6162_s28  ;;  %v7359_v6 = vpack.c.bf16 %v321_v52, %v321_v52  ;;  %v990_v35 = vrot.slane %v988_v36, 1  ;;  %247 = vst.msk [vmem:[#allocation2 + $0x2b9] sm:$0xff] %vm21_vm0, %v182_v51  ;;  %v947_v52 = vrot.slane %v7382_v3, 1 }
 0x111   :  { %v1124_v16 = vpop.permute.xlu1 %1123 }
 0x112   :  { %v1316_v34 = vpop.permute.xlu0 %1315  ;;  %v1509_v1 = vsel %vm1501_vm3, %v1444_v37, %v1124_v16  ;;  %v944_v8 = vrot.slane %v7359_v6, 1  ;;  %v1048_v16 = vrot.slane %v7357_v5, 1 }
 0x113   :  { %1079 = vrot.lane.b32.xlu1 %v7280_v2, %s6163_s6  ;;  %v1766_v61 = vsel %vm1501_vm3, %v1674_v38, %v1316_v34  ;;  %v345_v44 = vld [vmem:[#allocation2 + $0x2b0] sm:$0xff] }
 0x114   :  { %1271 = vrot.lane.b32.xlu0 %v7125_v60, %s6163_s6  ;;  %v1049_v38 = vsel %vm888_vm1, %v1047_v33, %v1048_v16  ;;  %v1024_v33 = vrot.slane %v1022_v11, 1  ;;  %v1027_v16 = vshll.u32 %v7357_v5, 16  ;;  %v184_v5 = vld [vmem:[%s10231_s0 + $0x1b0] sm:$0xff]  ;;  %v185_v11 = vld [vmem:[%s10231_s0 + $0x1b8] sm:$0xff] }
 0x115   :  { %v1188_v31 = vpop.permute.xlu1 %1187  ;;  %6005 = vmatmul.mubr.msk.bf16.gmra.mrb[28].mxu1 %vm21_vm0, %v1049_v38  ;;  %249 = vst.msk [vmem:[#allocation2 + $0x2d1] sm:$0xff] %vm21_vm0, %v184_v5  ;;  %250 = vst.msk [vmem:[#allocation2 + $0x2d9] sm:$0xff] %vm21_vm0, %v185_v11  ;;  %v334_v5 = vld [vmem:[#allocation2 + $0x258] sm:$0xff]  ;;  %v335_v11 = vld [vmem:[#allocation2 + $0x260] sm:$0xff] }
 0x116   :  { %v1380_v49 = vpop.permute.xlu0 %1379  ;;  %v1577_v25 = vsel %vm1566_vm4, %v1509_v1, %v1188_v31  ;;  %v325_v1 = vld [vmem:[#allocation2 + $0x210] sm:$0xff]  ;;  %v327_v31 = vld [vmem:[#allocation2 + $0x220] sm:$0xff] }
 0x117   :  { %v1833_v54 = vsel %vm1566_vm4, %v1766_v61, %v1380_v49  ;;  %1143 = vrot.lane.b32.xlu1 %v7118_v41, %s6161_s27  ;;  %v986_v41 = vshrl.u32 %v7135_v62, 16  ;;  %v326_v61 = vld [vmem:[#allocation2 + $0x218] sm:$0xff]  ;;  %v7405_v24 = vpack.c.bf16 %v327_v31, %v327_v31  ;;  %v331_v31 = vld [vmem:[#allocation2 + $0x240] sm:$0xff] }
 0x118   :  { %1335 = vrot.lane.b32.xlu0 %v7129_v59, %s6161_s27  ;;  %2222 = vmatprep.mubr.bf16.mxu0 %v1833_v54  ;;  %v314_v54 = vld [vmem:[#allocation2 + $0x1b8] sm:$0xff]  ;;  %v7403_v51 = vpack.c.bf16 %v326_v61, %v325_v1  ;;  %v7423_v61 = vsel %vm888_vm1, %v946_v18, %v947_v52  ;;  %v1025_v52 = vor.u32 %v1024_v33, %v1020_v32 }
 0x119   :  { %2223 = vmatmul.mubr.bf16.gmra.mrb[12].mxu0 %v1577_v25  ;;  %v1062_v58 = vpop.permute.xlu1 %1061  ;;  %v991_v49 = vor.u32 %v990_v35, %v986_v41  ;;  %v7391_v25 = vsel %vm888_vm1, %v943_v10, %v944_v8  ;;  %v950_v14 = vrot.slane %v7405_v24, 1 }
 0x11a   :  { %v1254_v22 = vpop.permute.xlu0 %1253  ;;  %v1446_v36 = vsel %vm21_vm0, %v6772_v21, %v1062_v58  ;;  %6008 = vmatprep.mubr.msk.bf16.mxu1 %vm21_vm0, %v7391_v25  ;;  %v7409_v58 = vpack.c.bf16 %v314_v54, %v313_v42  ;;  %v949_v8 = vrot.slane %v7403_v51, 1  ;;  %v332_v42 = vld [vmem:[#allocation2 + $0x248] sm:$0xff] }
 0x11b   :  { %1207 = vrot.lane.b32.xlu1 %v7091_v19, %s6162_s28  ;;  %v1677_v17 = vsel %vm21_vm0, %v6922_v20, %v1254_v22  ;;  %v315_v22 = vld [vmem:[#allocation2 + $0x1c0] sm:$0xff]  ;;  %v7418_v63 = vsel %vm439_vm2, %v991_v49, %v995_v53  ;;  %v333_v53 = vld [vmem:[#allocation2 + $0x250] sm:$0xff] }
 0x11c   :  { %1399 = vrot.lane.b32.xlu0 %v7351_v55, %s6162_s28  ;;  %10272 = vst [vmem:[#allocation11_spill] sm:$0xff] %v7409_v58  ;;  %10273 = vst [vmem:[#allocation12_spill] sm:$0xff] %v7418_v63  ;;  %v7425_v54 = vpack.c.bf16 %v315_v22, %v315_v22  ;;  %v635_v49 = vshll.u32 %v7409_v58, 16 }
 0x11d   :  { %v1126_v34 = vpop.permute.xlu1 %1125  ;;  %6009 = vmatmul.mubr.msk.bf16.gmra.mrb[32].mxu1 %vm21_vm0, %v7423_v61 }
 0x11e   :  { %v1318_v37 = vpop.permute.xlu0 %1317  ;;  %v1511_v41 = vsel %vm1501_vm3, %v1446_v36, %v1126_v34  ;;  %v328_v34 = vld [vmem:[#allocation2 + $0x228] sm:$0xff]  ;;  %v7441_v36 = vsel %vm888_vm1, %v949_v8, %v950_v14  ;;  %v7453_v14 = vpack.c.bf16 %v332_v42, %v331_v31  ;;  %v637_v32 = vrot.slane %v635_v49, 1 }
 0x11f   :  { %1081 = vrot.lane.b32.xlu1 %v7316_v27, %s6163_s6  ;;  %v1768_v35 = vsel %vm1501_vm3, %v1677_v17, %v1318_v37  ;;  %v329_v37 = vld [vmem:[#allocation2 + $0x230] sm:$0xff]  ;;  %6012 = vmatprep.mubr.msk.bf16.mxu1 %vm21_vm0, %v7441_v36  ;;  %v640_v33 = vshll.u32 %v7425_v54, 16  ;;  %v339_v27 = vld [vmem:[#allocation2 + $0x280] sm:$0xff] }
 0x120   :  { %1273 = vrot.lane.b32.xlu0 %v7152_v7, %s6163_s6  ;;  %v7443_v17 = vpack.c.bf16 %v329_v37, %v328_v34  ;;  %10274 = vst [vmem:[#allocation13_spill] sm:$0xff] %v7453_v14  ;;  %v7455_v34 = vpack.c.bf16 %v333_v53, %v333_v53  ;;  %v633_v37 = vshrl.u32 %v7409_v58, 16 }
 0x121   :  { %v1190_v28 = vpop.permute.xlu1 %1189 }
 0x122   :  { %v1382_v10 = vpop.permute.xlu0 %1381  ;;  %v1580_v20 = vsel %vm1566_vm4, %v1511_v41, %v1190_v28  ;;  %v1029_v41 = vrot.slane %v1027_v16, 1  ;;  %v952_v22 = vrot.slane %v7443_v17, 1  ;;  %v955_v16 = vrot.slane %v7453_v14, 1 }
 0x123   :  { %v1836_v21 = vsel %vm1566_vm4, %v1768_v35, %v1382_v10  ;;  %1145 = vrot.lane.b32.xlu1 %v7125_v60, %s6161_s27  ;;  %v330_v60 = vld [vmem:[#allocation2 + $0x238] sm:$0xff]  ;;  %v316_v10 = vld [vmem:[#allocation2 + $0x1c8] sm:$0xff] }
 0x124   :  { %1337 = vrot.lane.b32.xlu0 %v7135_v62, %s6161_s27  ;;  %2230 = vmatprep.mubr.bf16.mxu0 %v1836_v21  ;;  %v7445_v18 = vpack.c.bf16 %v330_v60, %v330_v60  ;;  %v317_v21 = vld [vmem:[#allocation2 + $0x1d0] sm:$0xff]  ;;  %v956_v60 = vrot.slane %v7455_v34, 1  ;;  %v1030_v19 = vsel %vm439_vm2, %v1025_v52, %v1029_v41  ;;  %v642_v52 = vrot.slane %v640_v33, 1 }
 0x125   :  { %2231 = vmatmul.mubr.bf16.gmra.mrb[16].mxu0 %v1580_v20  ;;  %v1064_v38 = vpop.permute.xlu1 %1063  ;;  %v318_v20 = vld [vmem:[#allocation2 + $0x1d8] sm:$0xff]  ;;  %v7469_v53 = vpack.c.bf16 %v317_v21, %v316_v10  ;;  %v659_v10 = vshll.u32 %v7353_v57, 16  ;;  %v337_v21 = vld [vmem:[#allocation2 + $0x270] sm:$0xff]  ;;  %v657_v33 = vshrl.u32 %v7353_v57, 16 }
 0x126   :  { %v1256_v1 = vpop.permute.xlu0 %1255  ;;  %v953_v8 = vrot.slane %v7445_v18, 1  ;;  %v1448_v31 = vsel %vm21_vm0, %v6824_v47, %v1064_v38  ;;  %v7471_v49 = vpack.c.bf16 %v318_v20, %v318_v20  ;;  %v338_v20 = vld [vmem:[#allocation2 + $0x278] sm:$0xff] }
 0x127   :  { %1209 = vrot.lane.b32.xlu1 %v7129_v59, %s6162_s28  ;;  %v1680_v42 = vsel %vm21_vm0, %v6980_v56, %v1256_v1  ;;  %10275 = vst [vmem:[#allocation14_spill] sm:$0xff] %v7469_v53  ;;  %v638_v1 = vor.u32 %v637_v32, %v633_v37  ;;  %v940_v41 = vrot.slane %v7469_v53, 1  ;;  %v7503_v37 = vpack.c.bf16 %v338_v20, %v337_v21 }
 0x128   :  { %1401 = vrot.lane.b32.xlu0 %v7418_v63, %s6162_s28  ;;  %v7477_v47 = vsel %vm888_vm1, %v952_v22, %v953_v8  ;;  %v7505_v32 = vpack.c.bf16 %v339_v27, %v339_v27  ;;  %v647_v27 = vshll.u32 %v7469_v53, 16 }
 0x129   :  { %v1128_v35 = vpop.permute.xlu1 %1127  ;;  %6013 = vmatmul.mubr.msk.bf16.gmra.mrb[36].mxu1 %vm21_vm0, %v7477_v47 }
 0x12a   :  { %v1320_v28 = vpop.permute.xlu0 %1319 }
 0x12b   :  { %1083 = vrot.lane.b32.xlu1 %v7351_v55, %s6163_s6  ;;  %v1770_v63 = vsel %vm1501_vm3, %v1680_v42, %v1320_v28  ;;  %v937_v28 = vrot.slane %v7409_v58, 1  ;;  %v961_v42 = vrot.slane %v7503_v37, 1 }
 0x12c   :  { %1275 = vrot.lane.b32.xlu0 %v7159_v30, %s6163_s6  ;;  %v1513_v30 = vsel %vm1501_vm3, %v1448_v31, %v1128_v35  ;;  %v941_v35 = vrot.slane %v7471_v49, 1  ;;  %v187_v31 = vld [vmem:[%s10231_s0 + $0x1c8] sm:$0xff] }
 0x12d   :  { %v1192_v59 = vpop.permute.xlu1 %1191  ;;  %252 = vst.msk [vmem:[#allocation2 + $0x2f1] sm:$0xff] %vm21_vm0, %v187_v31  ;;  %v344_v31 = vld [vmem:[#allocation2 + $0x2a8] sm:$0xff] }
 0x12e   :  { %v1384_v55 = vpop.permute.xlu0 %1383  ;;  %v1583_v38 = vsel %vm1566_vm4, %v1513_v30, %v1192_v59  ;;  %v7491_v59 = vpack.c.bf16 %v335_v11, %v334_v5  ;;  %v962_v5 = vrot.slane %v7505_v32, 1  ;;  %v341_v11 = vld [vmem:[#allocation2 + $0x290] sm:$0xff]  ;;  %v342_v30 = vld [vmem:[#allocation2 + $0x298] sm:$0xff] }
 0x12f   :  { %v1839_v56 = vsel %vm1566_vm4, %v1770_v63, %v1384_v55  ;;  %1147 = vrot.lane.b32.xlu1 %v7152_v7, %s6161_s27  ;;  %v7489_v55 = vsel %vm888_vm1, %v955_v16, %v956_v60  ;;  %v7493_v63 = vpack.c.bf16 %v336_v4, %v336_v4  ;;  %v938_v7 = vrot.slane %v7425_v54, 1  ;;  %v186_v54 = vld [vmem:[%s10231_s0 + $0x1c0] sm:$0xff] }
 0x130   :  { %1339 = vrot.lane.b32.xlu0 %v7355_v43, %s6161_s27  ;;  %10276 = vst [vmem:[#allocation15_spill] sm:$0xff] %v7491_v59  ;;  %2238 = vmatprep.mubr.bf16.mxu0 %v1839_v56  ;;  %v958_v8 = vrot.slane %v7491_v59, 1  ;;  %v661_v16 = vrot.slane %v659_v10, 1  ;;  %v664_v60 = vshll.u32 %v7359_v6, 16  ;;  %v340_v6 = vld [vmem:[#allocation2 + $0x288] sm:$0xff]  ;;  %251 = vst.msk [vmem:[#allocation2 + $0x2e9] sm:$0xff] %vm21_vm0, %v186_v54  ;;  %v643_v56 = vsel %vm439_vm2, %v638_v1, %v642_v52 }
 0x131   :  { %6016 = vmatprep.mubr.msk.bf16.mxu1 %vm21_vm0, %v7489_v55  ;;  %2239 = vmatmul.mubr.bf16.gmra.mrb[20].mxu0 %v1583_v38  ;;  %v1066_v43 = vpop.permute.xlu1 %1065  ;;  %v959_v4 = vrot.slane %v7493_v63, 1  ;;  %v7525_v38 = vsel %vm888_vm1, %v940_v41, %v941_v35  ;;  %v939_v10 = vsel %vm888_vm1, %v937_v28, %v938_v7  ;;  %v7531_v9 = vpack.c.bf16 %v341_v11, %v340_v6  ;;  %v343_v54 = vld [vmem:[#allocation2 + $0x2a0] sm:$0xff] }
 0x132   :  { %v1258_v22 = vpop.permute.xlu0 %1257  ;;  %v662_v20 = vor.u32 %v661_v16, %v657_v33  ;;  %v666_v58 = vrot.slane %v664_v60, 1  ;;  %v7533_v2 = vpack.c.bf16 %v342_v30, %v342_v30  ;;  %v645_v1 = vshrl.u32 %v7469_v53, 16  ;;  %v346_v30 = vld [vmem:[#allocation2 + $0x2b8] sm:$0xff] }
 0x133   :  { %1211 = vrot.lane.b32.xlu1 %v7135_v62, %s6162_s28  ;;  %v7529_v21 = vsel %vm888_vm1, %v958_v8, %v959_v4  ;;  %v649_v52 = vrot.slane %v647_v27, 1  ;;  %v652_v41 = vshll.u32 %v7471_v49, 16  ;;  %v7543_v35 = vsel %vm888_vm1, %v961_v42, %v962_v5 }
 0x134   :  { %1403 = vrot.lane.b32.xlu0 %v1030_v19, %s6162_s28  ;;  %6017 = vmatmul.mubr.msk.bf16.gmra.mrb[40].mxu1 %vm21_vm0, %v7529_v21  ;;  %v1450_v28 = vsel %vm21_vm0, %v6906_v13, %v1066_v43  ;;  %v1683_v7 = vsel %vm21_vm0, %v7037_v40, %v1258_v22  ;;  %v964_v8 = vrot.slane %v7531_v9, 1  ;;  %v965_v4 = vrot.slane %v7533_v2, 1 }
 0x135   :  { %v1130_v62 = vpop.permute.xlu1 %1129  ;;  %6020 = vmatprep.mubr.msk.bf16.mxu1 %vm21_vm0, %v7543_v35  ;;  %v7555_v27 = vpack.c.bf16 %v344_v31, %v343_v54  ;;  %v7557_v42 = vpack.c.bf16 %v345_v44, %v345_v44  ;;  %v7567_v5 = vsel %vm439_vm2, %v662_v20, %v666_v58  ;;  %v650_v6 = vor.u32 %v649_v52, %v645_v1  ;;  %v349_v31 = vld [vmem:[#allocation2 + $0x2d0] sm:$0xff]  ;;  %v189_v20 = vld [vmem:[%s10231_s0 + $0x1d8] sm:$0xff] }
 0x136   :  { %v1322_v19 = vpop.permute.xlu0 %1321  ;;  %v1515_v33 = vsel %vm1501_vm3, %v1450_v28, %v1130_v62  ;;  %v654_v44 = vrot.slane %v652_v41, 1  ;;  %v671_v11 = vshll.u32 %v7380_v45, 16  ;;  %v348_v62 = vld [vmem:[#allocation2 + $0x2c8] sm:$0xff]  ;;  %v7571_v54 = vsel %vm888_vm1, %v964_v8, %v965_v4  ;;  %v350_v28 = vld [vmem:[#allocation2 + $0x2d8] sm:$0xff]  ;;  %v188_v58 = vld [vmem:[%s10231_s0 + $0x1d0] sm:$0xff]  ;;  %254 = vst.msk [vmem:[#allocation2 + $0x309] sm:$0xff] %vm21_vm0, %v189_v20 }
 0x137   :  { %1085 = vrot.lane.b32.xlu1 %v643_v56, %s6163_s6  ;;  %v1772_v49 = vsel %vm1501_vm3, %v1683_v7, %v1322_v19  ;;  %v967_v43 = vrot.slane %v7555_v27, 1  ;;  %v968_v22 = vrot.slane %v7557_v42, 1  ;;  %v347_v56 = vld [vmem:[#allocation2 + $0x2c0] sm:$0xff]  ;;  %v7590_v41 = vpack.c.bf16 %v348_v62, %v348_v62  ;;  %253 = vst.msk [vmem:[#allocation2 + $0x301] sm:$0xff] %vm21_vm0, %v188_v58  ;;  %v352_v62 = vld [vmem:[#allocation2 + $0x2e8] sm:$0xff] }
 0x138   :  { %1277 = vrot.lane.b32.xlu0 %v7525_v38, %s6163_s6  ;;  %v351_v7 = vld [vmem:[#allocation2 + $0x2e0] sm:$0xff]  ;;  %v7588_v52 = vpack.c.bf16 %v347_v56, %v346_v30  ;;  %v7595_v8 = vsel %vm439_vm2, %v650_v6, %v654_v44  ;;  %v669_v4 = vshrl.u32 %v7380_v45, 16 }
 0x139   :  { %v1194_v16 = vpop.permute.xlu1 %1193  ;;  %v7586_v1 = vsel %vm888_vm1, %v967_v43, %v968_v22  ;;  %10277 = vst [vmem:[#allocation16_spill] sm:$0xff] %v7595_v8  ;;  %v7603_v43 = vpack.c.bf16 %v350_v28, %v349_v31  ;;  %v7605_v22 = vpack.c.bf16 %v351_v7, %v351_v7  ;;  %v353_v31 = vld [vmem:[#allocation2 + $0x2f0] sm:$0xff]  ;;  %v354_v28 = vld [vmem:[#allocation2 + $0x2f8] sm:$0xff] }
 0x13a   :  { %v1386_v60 = vpop.permute.xlu0 %1385  ;;  %v1586_v40 = vsel %vm1566_vm4, %v1515_v33, %v1194_v16  ;;  %v673_v33 = vrot.slane %v671_v11, 1 }
 0x13b   :  { %v1842_v13 = vsel %vm1566_vm4, %v1772_v49, %v1386_v60  ;;  %1149 = vrot.lane.b32.xlu1 %v939_v10, %s6161_s27  ;;  %v676_v49 = vshll.u32 %v7382_v3, 16  ;;  %10278 = vst [vmem:[#allocation17_spill] sm:$0xff] %v7605_v22  ;;  %v973_v3 = vrot.slane %v7603_v43, 1  ;;  %v974_v6 = vrot.slane %v7605_v22, 1 }
 0x13c   :  { %1341 = vrot.lane.b32.xlu0 %v7353_v57, %s6161_s27  ;;  %2246 = vmatprep.mubr.bf16.mxu0 %v1842_v13  ;;  %v970_v13 = vrot.slane %v7588_v52, 1  ;;  %v674_v30 = vor.u32 %v673_v33, %v669_v4  ;;  %v683_v4 = vshll.u32 %v7403_v51, 16 }
 0x13d   :  { %2247 = vmatmul.mubr.bf16.gmra.mrb[24].mxu0 %v1586_v40  ;;  %v1068_v19 = vpop.permute.xlu1 %1067  ;;  %6021 = vmatmul.mubr.msk.bf16.gmra.mrb[44].mxu1 %vm21_vm0, %v7571_v54  ;;  %v971_v40 = vrot.slane %v7590_v41, 1  ;;  %v678_v56 = vrot.slane %v676_v49, 1 }
 0x13e   :  { %v1260_v10 = vpop.permute.xlu0 %1259  ;;  %6024 = vmatprep.mubr.msk.bf16.mxu1 %vm21_vm0, %v7586_v1  ;;  %v1452_v44 = vsel %vm21_vm0, %v6953_v46, %v1068_v19  ;;  %v7633_v19 = vpack.c.bf16 %v353_v31, %v352_v62 }
 0x13f   :  { %1213 = vrot.lane.b32.xlu1 %v7469_v53, %s6162_s28  ;;  %v1686_v11 = vsel %vm21_vm0, %v7102_v29, %v1260_v10  ;;  %v7631_v29 = vsel %vm888_vm1, %v973_v3, %v974_v6  ;;  %v7635_v10 = vpack.c.bf16 %v354_v28, %v354_v28  ;;  %v688_v3 = vshll.u32 %v7405_v24, 16  ;;  %v355_v6 = vld [vmem:[#allocation2 + $0x300] sm:$0xff] }
 0x140   :  { %1405 = vrot.lane.b32.xlu0 %v7567_v5, %s6162_s28  ;;  %v976_v49 = vrot.slane %v7633_v19, 1 }
 0x141   :  { %v1132_v16 = vpop.permute.xlu1 %1131 }
 0x142   :  { %v1324_v60 = vpop.permute.xlu0 %1323  ;;  %v1517_v7 = vsel %vm1501_vm3, %v1452_v44, %v1132_v16  ;;  %v977_v16 = vrot.slane %v7635_v10, 1  ;;  %v356_v44 = vld [vmem:[#allocation2 + $0x308] sm:$0xff] }
 0x143   :  { %1087 = vrot.lane.b32.xlu1 %v7595_v8, %s6163_s6  ;;  %v1774_v58 = vsel %vm1501_vm3, %v1686_v11, %v1324_v60  ;;  %v7620_v8 = vsel %vm888_vm1, %v970_v13, %v971_v40  ;;  %v190_v60 = vld [vmem:[%s10231_s0 + $0x1e0] sm:$0xff]  ;;  %v191_v13 = vld [vmem:[%s10231_s0 + $0x1e8] sm:$0xff]  ;;  %v681_v40 = vshrl.u32 %v7403_v51, 16  ;;  %v357_v11 = vld [vmem:[#allocation2 + $0x310] sm:$0xff]  ;;  %v7668_v31 = vpack.c.bf16 %v356_v44, %v355_v6 }
 0x144   :  { %1279 = vrot.lane.b32.xlu0 %v7391_v25, %s6163_s6  ;;  %255 = vst.msk [vmem:[#allocation2 + $0x319] sm:$0xff] %vm21_vm0, %v190_v60  ;;  %256 = vst.msk [vmem:[#allocation2 + $0x321] sm:$0xff] %vm21_vm0, %v191_v13  ;;  %v7660_v62 = vsel %vm888_vm1, %v976_v49, %v977_v16  ;;  %v7670_v24 = vpack.c.bf16 %v357_v11, %v357_v11 }
 0x145   :  { %v1196_v20 = vpop.permute.xlu1 %1195  ;;  %6025 = vmatmul.mubr.msk.bf16.gmra.mrb[48].mxu1 %vm21_vm0, %v7620_v8  ;;  %v979_v60 = vrot.slane %v7668_v31, 1 }
 0x146   :  { %v1388_v53 = vpop.permute.xlu0 %1387  ;;  %v1589_v46 = vsel %vm1566_vm4, %v1517_v7, %v1196_v20  ;;  %6028 = vmatprep.mubr.msk.bf16.mxu1 %vm21_vm0, %v7631_v29  ;;  %v690_v20 = vrot.slane %v688_v3, 1  ;;  %v980_v13 = vrot.slane %v7670_v24, 1  ;;  %v693_v3 = vshrl.u32 %v7443_v17, 16 }
 0x147   :  { %v1845_v22 = vsel %vm1566_vm4, %v1774_v58, %v1388_v53  ;;  %1151 = vrot.lane.b32.xlu1 %v7525_v38, %s6161_s27  ;;  %v7638_v53 = vsel %vm439_vm2, %v674_v30, %v678_v56 }
 0x148   :  { %1343 = vrot.lane.b32.xlu0 %v7380_v45, %s6161_s27  ;;  %2254 = vmatprep.mubr.bf16.mxu0 %v1845_v22  ;;  %v685_v22 = vrot.slane %v683_v4, 1 }
 0x149   :  { %2255 = vmatmul.mubr.bf16.gmra.mrb[28].mxu0 %v1589_v46  ;;  %v1070_v38 = vpop.permute.xlu1 %1069 }
 0x14a   :  { %v1262_v33 = vpop.permute.xlu0 %1261  ;;  %v1454_v28 = vsel %vm21_vm0, %v6962_v50, %v1070_v38  ;;  %v686_v58 = vor.u32 %v685_v22, %v681_v40  ;;  %v7687_v50 = vsel %vm888_vm1, %v979_v60, %v980_v13  ;;  %v695_v38 = vshll.u32 %v7443_v17, 16  ;;  %v193_v22 = vld [vmem:[%s10231_s0 + $0x1f8] sm:$0xff] }
 0x14b   :  { %1215 = vrot.lane.b32.xlu1 %v7353_v57, %s6162_s28  ;;  %v1689_v7 = vsel %vm21_vm0, %v7155_v23, %v1262_v33  ;;  %258 = vst.msk [vmem:[#allocation2 + $0x339] sm:$0xff] %vm21_vm0, %v193_v22 }
 0x14c   :  { %1407 = vrot.lane.b32.xlu0 %v7638_v53, %s6162_s28  ;;  %v7690_v23 = vsel %vm439_vm2, %v686_v58, %v690_v20  ;;  %v697_v11 = vrot.slane %v695_v38, 1 }
 0x14d   :  { %v1134_v30 = vpop.permute.xlu1 %1133  ;;  %6029 = vmatmul.mubr.msk.bf16.gmra.mrb[52].mxu1 %vm21_vm0, %v7660_v62 }
 0x14e   :  { %v1326_v56 = vpop.permute.xlu0 %1325  ;;  %v1519_v46 = vsel %vm1501_vm3, %v1454_v28, %v1134_v30  ;;  %6032 = vmatprep.mubr.msk.bf16.mxu1 %vm21_vm0, %v7687_v50  ;;  %v700_v30 = vshll.u32 %v7445_v18, 16  ;;  %v359_v28 = vld [vmem:[#allocation2 + $0x320] sm:$0xff] }
 0x14f   :  { %1089 = vrot.lane.b32.xlu1 %v7567_v5, %s6163_s6  ;;  %v1776_v4 = vsel %vm1501_vm3, %v1689_v7, %v1326_v56  ;;  %v358_v56 = vld [vmem:[#allocation2 + $0x318] sm:$0xff]  ;;  %v360_v7 = vld [vmem:[#allocation2 + $0x328] sm:$0xff] }
 0x150   :  { %1281 = vrot.lane.b32.xlu0 %v7423_v61, %s6163_s6  ;;  %v702_v60 = vrot.slane %v700_v30, 1  ;;  %v712_v30 = vshll.u32 %v7455_v34, 16 }
 0x151   :  { %v1198_v49 = vpop.permute.xlu1 %1197 }
 0x152   :  { %v1390_v16 = vpop.permute.xlu0 %1389  ;;  %v1592_v44 = vsel %vm1566_vm4, %v1519_v46, %v1198_v49  ;;  %v7713_v46 = vpack.c.bf16 %v359_v28, %v358_v56 }
 0x153   :  { %v1848_v6 = vsel %vm1566_vm4, %v1776_v4, %v1390_v16  ;;  %1153 = vrot.lane.b32.xlu1 %v7391_v25, %s6161_s27  ;;  %v192_v25 = vld [vmem:[%s10231_s0 + $0x1f0] sm:$0xff]  ;;  %v7715_v4 = vpack.c.bf16 %v360_v7, %v360_v7  ;;  %v698_v16 = vor.u32 %v697_v11, %v693_v3 }
 0x154   :  { %1345 = vrot.lane.b32.xlu0 %v7403_v51, %s6161_s27  ;;  %2262 = vmatprep.mubr.bf16.mxu0 %v1848_v6  ;;  %257 = vst.msk [vmem:[#allocation2 + $0x331] sm:$0xff] %vm21_vm0, %v192_v25  ;;  %v982_v25 = vrot.slane %v7713_v46, 1 }
 0x155   :  { %2263 = vmatmul.mubr.bf16.gmra.mrb[32].mxu0 %v1592_v44  ;;  %v1072_v33 = vpop.permute.xlu1 %1071  ;;  %v983_v22 = vrot.slane %v7715_v4, 1 }
 0x156   :  { %v1264_v40 = vpop.permute.xlu0 %1263  ;;  %v1456_v49 = vsel %vm21_vm0, %v7011_v12, %v1072_v33  ;;  %v707_v33 = vshll.u32 %v7453_v14, 16 }
 0x157   :  { %1217 = vrot.lane.b32.xlu1 %v7380_v45, %s6162_s28  ;;  %v1692_v18 = vsel %vm21_vm0, %v7188_v39, %v1264_v40  ;;  %v7732_v12 = vsel %vm888_vm1, %v982_v25, %v983_v22  ;;  %v7735_v39 = vsel %vm439_vm2, %v698_v16, %v702_v60 }
 0x158   :  { %1409 = vrot.lane.b32.xlu0 %v7690_v23, %s6162_s28  ;;  %6033 = vmatmul.mubr.msk.bf16.gmra.mrb[56].mxu1 %vm21_vm0, %v7732_v12  ;;  %v709_v11 = vrot.slane %v707_v33, 1 }
 0x159   :  { %v1136_v58 = vpop.permute.xlu1 %1135 }
 0x15a   :  { %v1328_v20 = vpop.permute.xlu0 %1327  ;;  %v1521_v13 = vsel %vm1501_vm3, %v1456_v49, %v1136_v58 }
 0x15b   :  { %1091 = vrot.lane.b32.xlu1 %v7638_v53, %s6163_s6  ;;  %v1778_v6 = vsel %vm1501_vm3, %v1692_v18, %v1328_v20  ;;  %v361_v7 = vld [vmem:[#allocation2 + $0x330] sm:$0xff]  ;;  %v362_v58 = vld [vmem:[#allocation2 + $0x338] sm:$0xff]  ;;  %v363_v20 = vld [vmem:[#allocation2 + $0x340] sm:$0xff] }
 0x15c   :  { %1283 = vrot.lane.b32.xlu0 %v7441_v36, %s6163_s6  ;;  %v7750_v16 = vpack.c.bf16 %v362_v58, %v361_v7  ;;  %v7752_v60 = vpack.c.bf16 %v363_v20, %v363_v20 }
 0x15d   :  { %v1200_v44 = vpop.permute.xlu1 %1199 }
 0x15e   :  { %v1392_v38 = vpop.permute.xlu0 %1391  ;;  %v1595_v28 = vsel %vm1566_vm4, %v1521_v13, %v1200_v44  ;;  %v714_v44 = vrot.slane %v712_v30, 1  ;;  %v1017_v33 = vrot.slane %v7752_v60, 1  ;;  %v724_v30 = vshll.u32 %v7493_v63, 16 }
 0x15f   :  { %v1851_v56 = vsel %vm1566_vm4, %v1778_v6, %v1392_v38  ;;  %1155 = vrot.lane.b32.xlu1 %v7423_v61, %s6161_s27  ;;  %v705_v61 = vshrl.u32 %v7453_v14, 16 }
 0x160   :  { %1347 = vrot.lane.b32.xlu0 %v7443_v17, %s6161_s27  ;;  %2270 = vmatprep.mubr.bf16.mxu0 %v1851_v56 }
 0x161   :  { %2271 = vmatmul.mubr.bf16.gmra.mrb[36].mxu0 %v1595_v28  ;;  %v1074_v40 = vpop.permute.xlu1 %1073  ;;  %v710_v6 = vor.u32 %v709_v11, %v705_v61  ;;  %v1016_v28 = vrot.slane %v7750_v16, 1 }
 0x162   :  { %v1266_v3 = vpop.permute.xlu0 %1265  ;;  %v1458_v13 = vsel %vm21_vm0, %v7017_v15, %v1074_v40  ;;  %v719_v40 = vshll.u32 %v7491_v59, 16 }
 0x163   :  { %1219 = vrot.lane.b32.xlu1 %v7403_v51, %s6162_s28  ;;  %v1695_v34 = vsel %vm21_vm0, %v7214_v0, %v1266_v3  ;;  %v7769_v15 = vsel %vm888_vm1, %v1016_v28, %v1017_v33  ;;  %v7772_v0 = vsel %vm439_vm2, %v710_v6, %v714_v44  ;;  %v726_v44 = vrot.slane %v724_v30, 1 }
 0x164   :  { %1411 = vrot.lane.b32.xlu0 %v7735_v39, %s6162_s28  ;;  %6036 = vmatprep.mubr.msk.bf16.mxu1 %vm21_vm0, %v7769_v15  ;;  %v721_v11 = vrot.slane %v719_v40, 1 }
 0x165   :  { %v1138_v49 = vpop.permute.xlu1 %1137 }
 0x166   :  { %v1330_v18 = vpop.permute.xlu0 %1329  ;;  %v1523_v38 = vsel %vm1501_vm3, %v1458_v13, %v1138_v49 }
 0x167   :  { %1093 = vrot.lane.b32.xlu1 %v7690_v23, %s6163_s6  ;;  %v1780_v25 = vsel %vm1501_vm3, %v1695_v34, %v1330_v18 }
 0x168   :  { %1285 = vrot.lane.b32.xlu0 %v7477_v47, %s6163_s6 }
 0x169   :  { %v1202_v22 = vpop.permute.xlu1 %1201 }
 0x16a   :  { %v1394_v56 = vpop.permute.xlu0 %1393  ;;  %v1598_v58 = vsel %vm1566_vm4, %v1523_v38, %v1202_v22 }
 0x16b   :  { %v1854_v7 = vsel %vm1566_vm4, %v1780_v25, %v1394_v56  ;;  %1157 = vrot.lane.b32.xlu1 %v7441_v36, %s6161_s27  ;;  %v717_v36 = vshrl.u32 %v7491_v59, 16 }
 0x16c   :  { %1349 = vrot.lane.b32.xlu0 %v7453_v14, %s6161_s27  ;;  %2278 = vmatprep.mubr.bf16.mxu0 %v1854_v7 }
 0x16d   :  { %2279 = vmatmul.mubr.bf16.gmra.mrb[40].mxu0 %v1598_v58  ;;  %v1076_v3 = vpop.permute.xlu1 %1075  ;;  %v722_v6 = vor.u32 %v721_v11, %v717_v36  ;;  %v731_v58 = vshll.u32 %v7503_v37, 16  ;;  %v736_v11 = vshll.u32 %v7505_v32, 16 }
 0x16e   :  { %v1268_v61 = vpop.permute.xlu0 %1267  ;;  %v1460_v13 = vsel %vm21_vm0, %v7045_v26, %v1076_v3 }
 0x16f   :  { %1221 = vrot.lane.b32.xlu1 %v7443_v17, %s6162_s28  ;;  %v7787_v18 = vpop.f32.mrb[0].mxu1  ;;  %v1698_v34 = vsel %vm21_vm0, %v7240_v48, %v1268_v61  ;;  %v7808_v48 = vsel %vm439_vm2, %v722_v6, %v726_v44  ;;  %v729_v61 = vshrl.u32 %v7503_v37, 16  ;;  %v733_v36 = vrot.slane %v731_v58, 1  ;;  %v10280_v6 = vld [vmem:[#allocation4_spill] sm:$0xff] }
 0x170   :  { %1413 = vrot.lane.b32.xlu0 %v7772_v0, %s6162_s28  ;;  %v7793_v38 = vpop.f32.mrb[1].mxu1 }
 0x171   :  { %v1140_v20 = vpop.permute.xlu1 %1139  ;;  %v7799_v7 = vpop.f32.mrb[2].mxu1 }
 0x172   :  { %v1332_v49 = vpop.permute.xlu0 %1331  ;;  %v1525_v63 = vsel %vm1501_vm3, %v1460_v13, %v1140_v20  ;;  %v7805_v26 = vpop.f32.mrb[3].mxu1 }
 0x173   :  { %1095 = vrot.lane.b32.xlu1 %v7735_v39, %s6163_s6  ;;  %v1782_v25 = vsel %vm1501_vm3, %v1698_v34, %v1332_v49 }
 0x174   :  { %1287 = vrot.lane.b32.xlu0 %v7489_v55, %s6163_s6 }
 0x175   :  { %v1204_v22 = vpop.permute.xlu1 %1203 }
 0x176   :  { %v1396_v56 = vpop.permute.xlu0 %1395  ;;  %v1601_v33 = vsel %vm1566_vm4, %v1525_v63, %v1204_v22  ;;  %v10281_v63 = vld [vmem:[#allocation8_spill] sm:$0xff]  ;;  %v738_v22 = vrot.slane %v736_v11, 1 }
 0x177   :  { %v1857_v28 = vsel %vm1566_vm4, %v1782_v25, %v1396_v56  ;;  %1159 = vrot.lane.b32.xlu1 %v7477_v47, %s6161_s27  ;;  %v7815_v47 = vpop.f32.mrb[4].mxu1  ;;  %v734_v25 = vor.u32 %v733_v36, %v729_v61  ;;  %v743_v61 = vshll.u32 %v7531_v9, 16 }
 0x178   :  { %1351 = vrot.lane.b32.xlu0 %v7491_v59, %s6161_s27  ;;  %2286 = vmatprep.mubr.bf16.mxu0 %v1857_v28  ;;  %v7819_v30 = vpop.f32.mrb[5].mxu1 }
 0x179   :  { %2287 = vmatmul.mubr.bf16.gmra.mrb[44].mxu0 %v1601_v33  ;;  %v1078_v40 = vpop.permute.xlu1 %1077  ;;  %v7821_v13 = vpop.f32.mrb[6].mxu1 }
 0x17a   :  { %v1270_v3 = vpop.permute.xlu0 %1269  ;;  %10279 = vst [vmem:[#allocation18_spill] sm:$0xff] %v7821_v13  ;;  %v7827_v34 = vpop.f32.mrb[7].mxu1  ;;  %v1462_v44 = vsel %vm21_vm0, %v10280_v6, %v1078_v40  ;;  %v745_v6 = vrot.slane %v743_v61, 1 }
 0x17b   :  { %1223 = vrot.lane.b32.xlu1 %v7453_v14, %s6162_s28  ;;  %v1701_v32 = vsel %vm21_vm0, %v10281_v63, %v1270_v3  ;;  %v7844_v3 = vsel %vm439_vm2, %v734_v25, %v738_v22  ;;  %v10285_v22 = vld [vmem:[#allocation9_spill] sm:$0xff] }
 0x17c   :  { %1415 = vrot.lane.b32.xlu0 %v7808_v48, %s6162_s28 }
 0x17d   :  { %v1142_v20 = vpop.permute.xlu1 %1141 }
 0x17e   :  { %v1334_v49 = vpop.permute.xlu0 %1333  ;;  %v1527_v56 = vsel %vm1501_vm3, %v1462_v44, %v1142_v20  ;;  %v748_v44 = vshll.u32 %v7533_v2, 16 }
 0x17f   :  { %1097 = vrot.lane.b32.xlu1 %v7772_v0, %s6163_s6  ;;  %v1784_v28 = vsel %vm1501_vm3, %v1701_v32, %v1334_v49  ;;  %v7841_v40 = vpop.f32.mrb[8].mxu1 }
 0x180   :  { %1289 = vrot.lane.b32.xlu0 %v7529_v21, %s6163_s6  ;;  %10282 = vst [vmem:[#allocation4_spill] sm:$0xff] %v7841_v40  ;;  %v7847_v36 = vpop.f32.mrb[9].mxu1 }
 0x181   :  { %v1206_v33 = vpop.permute.xlu1 %1205  ;;  %v7849_v49 = vpop.f32.mrb[10].mxu1 }
 0x182   :  { %v1398_v58 = vpop.permute.xlu0 %1397  ;;  %v1604_v13 = vsel %vm1566_vm4, %v1527_v56, %v1206_v33  ;;  %10283 = vst [vmem:[#allocation8_spill] sm:$0xff] %v7849_v49  ;;  %v750_v33 = vrot.slane %v748_v44, 1 }
 0x183   :  { %v1860_v14 = vsel %vm1566_vm4, %v1784_v28, %v1398_v58  ;;  %1161 = vrot.lane.b32.xlu1 %v7489_v55, %s6161_s27  ;;  %v7855_v55 = vpop.f32.mrb[11].mxu1 }
 0x184   :  { %1353 = vrot.lane.b32.xlu0 %v7503_v37, %s6161_s27  ;;  %2294 = vmatprep.mubr.bf16.mxu0 %v1860_v14  ;;  %v741_v14 = vshrl.u32 %v7531_v9, 16 }
 0x185   :  { %2295 = vmatmul.mubr.bf16.gmra.mrb[48].mxu0 %v1604_v13  ;;  %v1080_v11 = vpop.permute.xlu1 %1079  ;;  %v10284_v13 = vld [vmem:[#allocation5_spill] sm:$0xff] }
 0x186   :  { %v1272_v20 = vpop.permute.xlu0 %1271  ;;  %v1464_v25 = vsel %vm21_vm0, %v10284_v13, %v1080_v11  ;;  %v746_v28 = vor.u32 %v745_v6, %v741_v14 }
 0x187   :  { %1225 = vrot.lane.b32.xlu1 %v7491_v59, %s6162_s28  ;;  %v1704_v56 = vsel %vm21_vm0, %v10285_v22, %v1272_v20  ;;  %v755_v20 = vshll.u32 %v7555_v27, 16  ;;  %v7879_v44 = vpop.f32.mrb[12].mxu1  ;;  %v10289_v22 = vld [vmem:[#allocation6_spill] sm:$0xff] }
 0x188   :  { %1417 = vrot.lane.b32.xlu0 %v7844_v3, %s6162_s28  ;;  %v7876_v11 = vsel %vm439_vm2, %v746_v28, %v750_v33  ;;  %10286 = vst [vmem:[#allocation5_spill] sm:$0xff] %v7879_v44  ;;  %v10290_v28 = vld [vmem:[#allocation10_spill] sm:$0xff] }
 0x189   :  { %v1144_v63 = vpop.permute.xlu1 %1143 }
 0x18a   :  { %v1336_v32 = vpop.permute.xlu0 %1335  ;;  %v1529_v58 = vsel %vm1501_vm3, %v1464_v25, %v1144_v63  ;;  %v760_v63 = vshll.u32 %v7557_v42, 16 }
 0x18b   :  { %1099 = vrot.lane.b32.xlu1 %v7808_v48, %s6163_s6  ;;  %v1786_v2 = vsel %vm1501_vm3, %v1704_v56, %v1336_v32 }
 0x18c   :  { %1291 = vrot.lane.b32.xlu0 %v7543_v35, %s6163_s6  ;;  %v762_v42 = vrot.slane %v760_v63, 1 }
 0x18d   :  { %v1208_v61 = vpop.permute.xlu1 %1207 }
 0x18e   :  { %v1400_v49 = vpop.permute.xlu0 %1399  ;;  %v1607_v59 = vsel %vm1566_vm4, %v1529_v58, %v1208_v61 }
 0x18f   :  { %v1863_v40 = vsel %vm1566_vm4, %v1786_v2, %v1400_v49  ;;  %1163 = vrot.lane.b32.xlu1 %v7529_v21, %s6161_s27  ;;  %v7885_v21 = vpop.f32.mrb[13].mxu1  ;;  %v757_v49 = vrot.slane %v755_v20, 1 }
 0x190   :  { %1355 = vrot.lane.b32.xlu0 %v7531_v9, %s6161_s27  ;;  %2302 = vmatprep.mubr.bf16.mxu0 %v1863_v40  ;;  %v753_v40 = vshrl.u32 %v7555_v27, 16  ;;  %v7889_v32 = vpop.f32.mrb[14].mxu1 }
 0x191   :  { %2303 = vmatmul.mubr.bf16.gmra.mrb[52].mxu0 %v1607_v59  ;;  %v1082_v14 = vpop.permute.xlu1 %1081  ;;  %10287 = vst [vmem:[#allocation9_spill] sm:$0xff] %v7889_v32  ;;  %v7891_v25 = vpop.f32.mrb[15].mxu1 }
 0x192   :  { %v1274_v6 = vpop.permute.xlu0 %1273  ;;  %10288 = vst [vmem:[#allocation19_spill] sm:$0xff] %v7891_v25  ;;  %v1466_v56 = vsel %vm21_vm0, %v10289_v22, %v1082_v14  ;;  %v758_v58 = vor.u32 %v757_v49, %v753_v40  ;;  %v10292_v22 = vld [vmem:[#allocation12_spill] sm:$0xff] }
 0x193   :  { %1227 = vrot.lane.b32.xlu1 %v7503_v37, %s6162_s28  ;;  %v1707_v33 = vsel %vm21_vm0, %v10290_v28, %v1274_v6  ;;  %v767_v6 = vshll.u32 %v7588_v52, 16 }
 0x194   :  { %1419 = vrot.lane.b32.xlu0 %v7876_v11, %s6162_s28  ;;  %v7910_v14 = vsel %vm439_vm2, %v758_v58, %v762_v42 }
 0x195   :  { %v1146_v59 = vpop.permute.xlu1 %1145  ;;  %v769_v63 = vrot.slane %v767_v6, 1 }
 0x196   :  { %v1338_v13 = vpop.permute.xlu0 %1337  ;;  %v1531_v2 = vsel %vm1501_vm3, %v1466_v56, %v1146_v59 }
 0x197   :  { %1101 = vrot.lane.b32.xlu1 %v7844_v3, %s6163_s6  ;;  %v1788_v61 = vsel %vm1501_vm3, %v1707_v33, %v1338_v13  ;;  %v10291_v13 = vld [vmem:[#allocation7_spill] sm:$0xff] }
 0x198   :  { %1293 = vrot.lane.b32.xlu0 %v7571_v54, %s6163_s6 }
 0x199   :  { %v1210_v20 = vpop.permute.xlu1 %1209 }
 0x19a   :  { %v1402_v32 = vpop.permute.xlu0 %1401  ;;  %v1610_v25 = vsel %vm1566_vm4, %v1531_v2, %v1210_v20 }
 0x19b   :  { %v1866_v44 = vsel %vm1566_vm4, %v1788_v61, %v1402_v32  ;;  %1165 = vrot.lane.b32.xlu1 %v7543_v35, %s6161_s27  ;;  %v765_v35 = vshrl.u32 %v7588_v52, 16  ;;  %v772_v32 = vshll.u32 %v7590_v41, 16 }
 0x19c   :  { %1357 = vrot.lane.b32.xlu0 %v7555_v27, %s6161_s27  ;;  %2310 = vmatprep.mubr.bf16.mxu0 %v1866_v44 }
 0x19d   :  { %2311 = vmatmul.mubr.bf16.gmra.mrb[56].mxu0 %v1610_v25  ;;  %v1084_v40 = vpop.permute.xlu1 %1083  ;;  %v770_v28 = vor.u32 %v769_v63, %v765_v35  ;;  %v774_v33 = vrot.slane %v772_v32, 1  ;;  %v7939_v63 = vpop.f32.mrb[16].mxu1  ;;  %v777_v32 = vshrl.u32 %v7603_v43, 16 }
 0x19e   :  { %v1276_v49 = vpop.permute.xlu0 %1275  ;;  %v1468_v25 = vsel %vm21_vm0, %v10291_v13, %v1084_v40  ;;  %v779_v40 = vshll.u32 %v7603_v43, 16  ;;  %10293 = vst [vmem:[#allocation6_spill] sm:$0xff] %v7939_v63 }
 0x19f   :  { %1229 = vrot.lane.b32.xlu1 %v7531_v9, %s6162_s28  ;;  %v1710_v56 = vsel %vm21_vm0, %v10292_v22, %v1276_v49  ;;  %v7936_v6 = vsel %vm439_vm2, %v770_v28, %v774_v33  ;;  %v10297_v33 = vld [vmem:[#allocation11_spill] sm:$0xff] }
 0x1a0   :  { %1421 = vrot.lane.b32.xlu0 %v7910_v14, %s6162_s28 }
 0x1a1   :  { %v1148_v44 = vpop.permute.xlu1 %1147 }
 0x1a2   :  { %v1340_v59 = vpop.permute.xlu0 %1339  ;;  %v1533_v58 = vsel %vm1501_vm3, %v1468_v25, %v1148_v44  ;;  %v781_v44 = vrot.slane %v779_v40, 1 }
 0x1a3   :  { %1103 = vrot.lane.b32.xlu1 %v7876_v11, %s6163_s6  ;;  %v1790_v41 = vsel %vm1501_vm3, %v1710_v56, %v1340_v59  ;;  %v10294_v59 = vld [vmem:[#allocation17_spill] sm:$0xff] }
 0x1a4   :  { %1295 = vrot.lane.b32.xlu0 %v7586_v1, %s6163_s6  ;;  %v784_v13 = vshll.u32 %v10294_v59, 16 }
 0x1a5   :  { %v1212_v42 = vpop.permute.xlu1 %1211 }
 0x1a6   :  { %v1404_v2 = vpop.permute.xlu0 %1403  ;;  %v1613_v20 = vsel %vm1566_vm4, %v1533_v58, %v1212_v42 }
 0x1a7   :  { %v1869_v61 = vsel %vm1566_vm4, %v1790_v41, %v1404_v2  ;;  %1167 = vrot.lane.b32.xlu1 %v7571_v54, %s6161_s27  ;;  %v7945_v54 = vpop.f32.mrb[17].mxu1  ;;  %v10298_v41 = vld [vmem:[#allocation16_spill] sm:$0xff]  ;;  %v782_v2 = vor.u32 %v781_v44, %v777_v32 }
 0x1a8   :  { %1359 = vrot.lane.b32.xlu0 %v7588_v52, %s6161_s27  ;;  %2318 = vmatprep.mubr.bf16.mxu0 %v1869_v61  ;;  %v7949_v25 = vpop.f32.mrb[18].mxu1  ;;  %v786_v61 = vrot.slane %v784_v13, 1  ;;  %v789_v13 = vshrl.u32 %v7633_v19, 16 }
 0x1a9   :  { %2319 = vmatmul.mubr.bf16.gmra.mrb[60].mxu0 %v1613_v20  ;;  %v1086_v49 = vpop.permute.xlu1 %1085  ;;  %10295 = vst [vmem:[#allocation10_spill] sm:$0xff] %v7949_v25  ;;  %v7951_v28 = vpop.f32.mrb[19].mxu1 }
 0x1aa   :  { %v1278_v35 = vpop.permute.xlu0 %1277  ;;  %10296 = vst [vmem:[#allocation7_spill] sm:$0xff] %v7951_v28  ;;  %v1470_v58 = vsel %vm21_vm0, %v10297_v33, %v1086_v49  ;;  %v791_v49 = vshll.u32 %v7633_v19, 16  ;;  %v6136_v33 = vld [vmem:[%s10233_s3 + $0x8] sm:$0xff]  }
 0x1ab   :  { %1231 = vrot.lane.b32.xlu1 %v7555_v27, %s6162_s28  ;;  %v1713_v42 = vsel %vm21_vm0, %v10298_v41, %v1278_v35  ;;  %v7971_v35 = vsel %vm439_vm2, %v782_v2, %v786_v61  ;;  %v10300_v41 = vld [vmem:[#allocation14_spill] sm:$0xff] }
 0x1ac   :  { %1423 = vrot.lane.b32.xlu0 %v7936_v6, %s6162_s28 }
 0x1ad   :  { %v1150_v22 = vpop.permute.xlu1 %1149 }
 0x1ae   :  { %v1342_v56 = vpop.permute.xlu0 %1341  ;;  %v1535_v20 = vsel %vm1501_vm3, %v1470_v58, %v1150_v22 }
 0x1af   :  { %1105 = vrot.lane.b32.xlu1 %v7910_v14, %s6163_s6  ;;  %v1792_v40 = vsel %vm1501_vm3, %v1713_v42, %v1342_v56 }
 0x1b0   :  { %1297 = vrot.lane.b32.xlu0 %v7620_v8, %s6163_s6 }
 0x1b1   :  { %v1214_v59 = vpop.permute.xlu1 %1213 }
 0x1b2   :  { %v1406_v25 = vpop.permute.xlu0 %1405  ;;  %v1616_v28 = vsel %vm1566_vm4, %v1535_v20, %v1214_v59 }
 0x1b3   :  { %v1872_v63 = vsel %vm1566_vm4, %v1792_v40, %v1406_v25  ;;  %1169 = vrot.lane.b32.xlu1 %v7586_v1, %s6161_s27  ;;  %v6135_v25 = vld [vmem:[%s10233_s3] sm:$0xff]   ;;  %v793_v1 = vrot.slane %v791_v49, 1  ;;  %v6137_v49 = vld [vmem:[%s10233_s3 + $0x10] sm:$0xff]  }
 0x1b4   :  { %1361 = vrot.lane.b32.xlu0 %v7603_v43, %s6161_s27  ;;  %2326 = vmatprep.mubr.bf16.mxu0 %v1872_v63  ;;  %v796_v63 = vshll.u32 %v7635_v10, 16 }
 0x1b5   :  { %2327 = vmatmul.mubr.bf16.gmra.mrb[64].mxu0 %v1616_v28  ;;  %v1088_v32 = vpop.permute.xlu1 %1087  ;;  %4885 = vmatpush1.bf16.msra.mxu1 %v6135_v25  ;;  %v10299_v28 = vmov 0   ;;  %v794_v2 = vor.u32 %v793_v1, %v789_v13 }
 0x1b6   :  { %v1280_v44 = vpop.permute.xlu0 %1279  ;;  %4886 = vmatprep.subr.bf16.mxu1 %v10299_v28  ;;  %v798_v58 = vrot.slane %v796_v63, 1  ;;  %v1472_v42 = vsel %vm21_vm0, %v10300_v41, %v1088_v32  ;;  %v6138_v63 = vld [vmem:[%s10233_s3 + $0x18] sm:$0xff]  }
 0x1b7   :  { %1233 = vrot.lane.b32.xlu1 %v7588_v52, %s6162_s28  ;;  %v1716_v10 = vsel %vm21_vm0, %v7567_v5, %v1280_v44  ;;  %v803_v5 = vshll.u32 %v7668_v31, 16 }
 0x1b8   :  { %1425 = vrot.lane.b32.xlu0 %v7971_v35, %s6162_s28  ;;  %v8008_v44 = vsel %vm439_vm2, %v794_v2, %v798_v58  ;;  %v808_v58 = vshll.u32 %v7670_v24, 16  ;;  %v6139_v2 = vld [vmem:[%s10233_s3 + $0x20] sm:$0xff]  }
 0x1b9   :  { %v1152_v22 = vpop.permute.xlu1 %1151  ;;  %4887 = vmatpush1.bf16.msra.mxu1 %v6136_v33  ;;  %v805_v33 = vrot.slane %v803_v5, 1 }
 0x1ba   :  { %v1344_v56 = vpop.permute.xlu0 %1343  ;;  %v1537_v61 = vsel %vm1501_vm3, %v1472_v42, %v1152_v22  ;;  %4888 = vmatprep.subr.bf16.mxu1 %v10299_v28 }
 0x1bb   :  { %1107 = vrot.lane.b32.xlu1 %v7936_v6, %s6163_s6  ;;  %v1794_v20 = vsel %vm1501_vm3, %v1716_v10, %v1344_v56  ;;  %v801_v56 = vshrl.u32 %v7668_v31, 16 }
 0x1bc   :  { %1299 = vrot.lane.b32.xlu0 %v7631_v29, %s6163_s6 }
 0x1bd   :  { %v1216_v40 = vpop.permute.xlu1 %1215  ;;  %4889 = vmatpush1.bf16.msra.mxu1 %v6137_v49 }
 0x1be   :  { %v1408_v59 = vpop.permute.xlu0 %1407  ;;  %v1619_v32 = vsel %vm1566_vm4, %v1537_v61, %v1216_v40  ;;  %4890 = vmatprep.subr.bf16.mxu1 %v10299_v28  ;;  %v806_v40 = vor.u32 %v805_v33, %v801_v56 }
 0x1bf   :  { %v1875_v25 = vsel %vm1566_vm4, %v1794_v20, %v1408_v59  ;;  %1171 = vrot.lane.b32.xlu1 %v7620_v8, %s6161_s27  ;;  %v8014_v8 = vpop.f32.mrb[20].mxu1  ;;  %v810_v59 = vrot.slane %v808_v58, 1  ;;  %v6141_v58 = vld [vmem:[%s10233_s3 + $0x30] sm:$0xff]  }
 0x1c0   :  { %1363 = vrot.lane.b32.xlu0 %v7633_v19, %s6161_s27  ;;  %2334 = vmatprep.mubr.bf16.mxu0 %v1875_v25  ;;  %v8020_v22 = vpop.f32.mrb[21].mxu1 }
 0x1c1   :  { %2335 = vmatmul.mubr.bf16.gmra.mrb[68].mxu0 %v1619_v32  ;;  %v1090_v13 = vpop.permute.xlu1 %1089  ;;  %4891 = vmatpush1.bf16.msra.mxu1 %v6138_v63  ;;  %v8024_v41 = vpop.f32.mrb[22].mxu1  ;;  %v6140_v63 = vld [vmem:[%s10233_s3 + $0x28] sm:$0xff]  }
 0x1c2   :  { %v1282_v1 = vpop.permute.xlu0 %1281  ;;  %4892 = vmatprep.subr.bf16.mxu1 %v10299_v28  ;;  %v8030_v61 = vpop.f32.mrb[23].mxu1  ;;  %v1474_v24 = vsel %vm21_vm0, %v7353_v57, %v1090_v13 }
 0x1c3   :  { %1235 = vrot.lane.b32.xlu1 %v7603_v43, %s6162_s28  ;;  %v1719_v20 = vsel %vm21_vm0, %v7638_v53, %v1282_v1  ;;  %v8053_v53 = vsel %vm439_vm2, %v806_v40, %v810_v59  ;;  %v815_v1 = vshll.u32 %v7713_v46, 16 }
 0x1c4   :  { %1427 = vrot.lane.b32.xlu0 %v8008_v44, %s6162_s28 }
 0x1c5   :  { %v1154_v42 = vpop.permute.xlu1 %1153  ;;  %4893 = vmatpush1.bf16.msra.mxu1 %v6139_v2  ;;  %v817_v2 = vrot.slane %v815_v1, 1 }
 0x1c6   :  { %v1346_v10 = vpop.permute.xlu0 %1345  ;;  %v1539_v49 = vsel %vm1501_vm3, %v1474_v24, %v1154_v42  ;;  %4894 = vmatprep.subr.bf16.mxu1 %v10299_v28  ;;  %v820_v24 = vshll.u32 %v7715_v4, 16 }
 0x1c7   :  { %1109 = vrot.lane.b32.xlu1 %v7971_v35, %s6163_s6  ;;  %v1796_v25 = vsel %vm1501_vm3, %v1719_v20, %v1346_v10  ;;  %v813_v10 = vshrl.u32 %v7713_v46, 16 }
 0x1c8   :  { %1301 = vrot.lane.b32.xlu0 %v7660_v62, %s6163_s6  ;;  %v822_v1 = vrot.slane %v820_v24, 1  ;;  %v366_v24 = vld [vmem:[#allocation2 + $0x358] sm:$0xff] }
 0x1c9   :  { %v1218_v32 = vpop.permute.xlu1 %1217  ;;  %4895 = vmatpush1.bf16.msra.mxu1 %v6140_v63 }
 0x1ca   :  { %v1410_v5 = vpop.permute.xlu0 %1409  ;;  %v1622_v13 = vsel %vm1566_vm4, %v1539_v49, %v1218_v32  ;;  %4896 = vmatprep.subr.bf16.mxu1 %v10299_v28  ;;  %v6142_v49 = vld [vmem:[%s10233_s3 + $0x38] sm:$0xff]  }
 0x1cb   :  { %v1878_v57 = vsel %vm1566_vm4, %v1796_v25, %v1410_v5  ;;  %1173 = vrot.lane.b32.xlu1 %v7631_v29, %s6161_s27  ;;  %v8063_v29 = vld [vmem:[%s10234_s2] ss:$0 sm:$0xff] }
 0x1cc   :  { %1365 = vrot.lane.b32.xlu0 %v7668_v31, %s6161_s27  ;;  %2342 = vmatprep.mubr.bf16.mxu0 %v1878_v57 }
 0x1cd   :  { %2343 = vmatmul.mubr.bf16.gmra.mrb[72].mxu0 %v1622_v13  ;;  %v1092_v56 = vpop.permute.xlu1 %1091  ;;  %4897 = vmatpush1.bf16.msra.mxu1 %v6141_v58  ;;  %v818_v13 = vor.u32 %v817_v2, %v813_v10  ;;  %v365_v2 = vld [vmem:[#allocation2 + $0x350] sm:$0xff] }
 0x1ce   :  { %v1284_v33 = vpop.permute.xlu0 %1283  ;;  %4898 = vmatprep.subr.bf16.mxu1 %v10299_v28  ;;  %v1476_v4 = vsel %vm21_vm0, %v7380_v45, %v1092_v56 }
 0x1cf   :  { %1237 = vrot.lane.b32.xlu1 %v7633_v19, %s6162_s28  ;;  %v2200_v42 = vpop.f32.mrb[0].mxu0  ;;  %v1722_v58 = vsel %vm21_vm0, %v7690_v23, %v1284_v33  ;;  %v364_v33 = vld [vmem:[#allocation2 + $0x348] sm:$0xff] }
 0x1d0   :  { %1429 = vrot.lane.b32.xlu0 %v8053_v53, %s6162_s28  ;;  %v2201_v20 = vadd.f32 %v8063_v29, %v2200_v42  ;;  %v2202_v40 = vpop.f32.mrb[1].mxu0 }
 0x1d1   :  { %v1156_v59 = vpop.permute.xlu1 %1155  ;;  %v2203_v32 = vpop.f32.mrb[2].mxu0  ;;  %4899 = vmatpush1.bf16.msra.mxu1 %v6142_v49  ;;  %v8101_v49 = vsel %vm439_vm2, %v818_v13, %v822_v1  ;;  %v8110_v13 = vpack.c.bf16 %v365_v2, %v364_v33  ;;  %v8112_v1 = vpack.c.bf16 %v366_v24, %v366_v24 }
 0x1d2   :  { %v1348_v25 = vpop.permute.xlu0 %1347  ;;  %v2490_v5 = vadd.f32 %v7793_v38, %v2201_v20  ;;  %v2204_v63 = vadd.f32 %v8063_v29, %v2203_v32  ;;  %v2205_v57 = vpop.f32.mrb[3].mxu0  ;;  %v1541_v38 = vsel %vm1501_vm3, %v1476_v4, %v1156_v59  ;;  %4900 = vmatprep.subr.bf16.mxu1 %v10299_v28  ;;  %v6143_v32 = vld [vmem:[%s10233_s3 + $0x40] sm:$0xff]  }
 0x1d3   :  { %1111 = vrot.lane.b32.xlu1 %v8008_v44, %s6163_s6  ;;  %v1798_v45 = vsel %vm1501_vm3, %v1722_v58, %v1348_v25  ;;  %v1000_v25 = vshll.u32 %v7750_v16, 16  ;;  %v6144_v57 = vld [vmem:[%s10233_s3 + $0x48] sm:$0xff]  }
 0x1d4   :  { %1303 = vrot.lane.b32.xlu0 %v7687_v50, %s6163_s6  ;;  %v2744_v42 = vmax.f32 %v2490_v5, 0.0  ;;  %v2493_v20 = vadd.f32 %v7805_v26, %v2204_v63 }
 0x1d5   :  { %v1220_v40 = vpop.permute.xlu1 %1219  ;;  %4901 = vmatpush1.bf16.msra.mxu1 %v6143_v32  ;;  %v8121_v32 = vpop.f32.mrb[24].mxu1 }
 0x1d6   :  { %v1412_v56 = vpop.permute.xlu0 %1411  ;;  %v1625_v10 = vsel %vm1566_vm4, %v1541_v38, %v1220_v40  ;;  %2917 = vst.msk [vmem:[#allocation3 + $0x19] sm:$0xff] %vm21_vm0, %v2744_v42  ;;  %v2745_v23 = vmax.f32 %v2493_v20, 0.0  ;;  %4902 = vmatprep.subr.bf16.mxu1 %v10299_v28  ;;  %v998_v40 = vshrl.u32 %v7750_v16, 16  ;;  %10301 = vst [vmem:[#allocation12_spill] sm:$0xff] %v8121_v32 }
 0x1d7   :  { %1175 = vrot.lane.b32.xlu1 %v7660_v62, %s6161_s27  ;;  %v1881_v26 = vsel %vm1566_vm4, %v1798_v45, %v1412_v56  ;;  %v2208_v59 = vpop.f32.mrb[4].mxu0  ;;  %v1002_v45 = vrot.slane %v1000_v25, 1  ;;  %v1005_v56 = vshll.u32 %v7752_v60, 16 }
 0x1d8   :  { %1367 = vrot.lane.b32.xlu0 %v7713_v46, %s6161_s27  ;;  %2350 = vmatprep.mubr.bf16.mxu0 %v1881_v26  ;;  %2918 = vst.msk [vmem:[#allocation3 + $0x21] sm:$0xff] %vm21_vm0, %v2745_v23  ;;  %v2209_v62 = vadd.f32 %v8063_v29, %v2208_v59  ;;  %v2210_v5 = vpop.f32.mrb[5].mxu0  ;;  %v1051_v23 = vrot.slane %v8112_v1, 1  ;;  %v6145_v59 = vld [vmem:[%s10233_s3 + $0x50] sm:$0xff]  }
 0x1d9   :  { %2351 = vmatmul.mubr.bf16.gmra.mrb[76].mxu0 %v1625_v10  ;;  %v1094_v63 = vpop.permute.xlu1 %1093  ;;  %v2211_v58 = vpop.f32.mrb[6].mxu0  ;;  %4903 = vmatpush1.bf16.msra.mxu1 %v6144_v57 }
 0x1da   :  { %v1286_v4 = vpop.permute.xlu0 %1285  ;;  %v2498_v42 = vadd.f32 %v7787_v18, %v2209_v62  ;;  %v2212_v38 = vadd.f32 %v8063_v29, %v2211_v58  ;;  %v2213_v20 = vpop.f32.mrb[7].mxu0  ;;  %v1050_v18 = vrot.slane %v8110_v13, 1  ;;  %4904 = vmatprep.subr.bf16.mxu1 %v10299_v28  ;;  %v1003_v58 = vor.u32 %v1002_v45, %v998_v40 }
 0x1db   :  { %1239 = vrot.lane.b32.xlu1 %v7668_v31, %s6162_s28  ;;  %v8124_v10 = vpop.f32.mrb[25].mxu1 }
 0x1dc   :  { %1431 = vrot.lane.b32.xlu0 %v8101_v49, %s6162_s28  ;;  %v2746_v26 = vmax.f32 %v2498_v42, 0.0  ;;  %v2501_v33 = vadd.f32 %v7799_v7, %v2212_v38  ;;  %v8129_v24 = vpop.f32.mrb[26].mxu1  ;;  %v1052_v62 = vsel %vm888_vm1, %v1050_v18, %v1051_v23  ;;  %v1478_v7 = vsel %vm21_vm0, %v7403_v51, %v1094_v63  ;;  %v6146_v51 = vld [vmem:[%s10233_s3 + $0x58] sm:$0xff]  }
 0x1dd   :  { %v1158_v2 = vpop.permute.xlu1 %1157  ;;  %10302 = vst [vmem:[#allocation17_spill] sm:$0xff] %v8129_v24  ;;  %v8135_v25 = vpop.f32.mrb[27].mxu1  ;;  %v1007_v42 = vrot.slane %v1005_v56, 1  ;;  %6037 = vmatmul.mubr.msk.bf16.gmra.mrb[60].mxu1 %vm21_vm0, %v1052_v62  ;;  %v1725_v38 = vsel %vm21_vm0, %v7735_v39, %v1286_v4  ;;  %v2982_v24 = vld [vmem:[#allocation3 + $0x8] sm:$0xff] }
 0x1de   :  { %v1350_v60 = vpop.permute.xlu0 %1349  ;;  %2919 = vst.msk [vmem:[#allocation3 + $0x31] sm:$0xff] %vm21_vm0, %v2746_v26  ;;  %v2747_v5 = vmax.f32 %v2501_v33, 0.0  ;;  %v1543_v20 = vsel %vm1501_vm3, %v1478_v7, %v1158_v2  ;;  %v2981_v33 = vld [vmem:[#allocation3] sm:$0xff]  ;;  %4905 = vmatpush1.bf16.msra.mxu1 %v6145_v59 }
 0x1df   :  { %1113 = vrot.lane.b32.xlu1 %v8053_v53, %s6163_s6  ;;  %v1800_v63 = vsel %vm1501_vm3, %v1725_v38, %v1350_v60  ;;  %4906 = vmatprep.subr.bf16.mxu1 %v10299_v28  ;;  %v1034_v60 = vshll.u32 %v8110_v13, 16  ;;  %v8166_v62 = vsel %vm439_vm2, %v1003_v58, %v1007_v42  ;;  %v2983_v38 = vld [vmem:[#allocation3 + $0x10] sm:$0xff]  ;;  %v1039_v42 = vshll.u32 %v8112_v1, 16  ;;  %v2986_v1 = vld [vmem:[#allocation3 + $0x28] sm:$0xff] }
 0x1e0   :  { %1305 = vrot.lane.b32.xlu0 %v7732_v12, %s6163_s6  ;;  %v2216_v57 = vpop.f32.mrb[8].mxu0  ;;  %2920 = vst.msk [vmem:[#allocation3 + $0x39] sm:$0xff] %vm21_vm0, %v2747_v5  ;;  %v8168_v5 = vpack.c.bf16 %v2982_v24, %v2981_v33 }
 0x1e1   :  { %v2217_v18 = vadd.f32 %v8063_v29, %v2216_v57  ;;  %v2218_v23 = vpop.f32.mrb[9].mxu0  ;;  %v1222_v26 = vpop.permute.xlu1 %1221  ;;  %v1036_v24 = vrot.slane %v1034_v60, 1 }
 0x1e2   :  { %v1414_v40 = vpop.permute.xlu0 %1413  ;;  %v2219_v45 = vpop.f32.mrb[10].mxu0  ;;  %v1628_v39 = vsel %vm1566_vm4, %v1543_v20, %v1222_v26  ;;  %4907 = vmatpush1.bf16.msra.mxu1 %v6146_v51  ;;  %v3164_v23 = vshll.u32 %v8168_v5, 16  ;;  %v8188_v26 = vld [vmem:[%s10233_s3 + $0x80] sm:$0xff]  }
 0x1e3   :  { %v2506_v4 = vadd.f32 %v7819_v30, %v2217_v18  ;;  %v2220_v56 = vadd.f32 %v8063_v29, %v2219_v45  ;;  %v2221_v2 = vpop.f32.mrb[11].mxu0  ;;  %1177 = vrot.lane.b32.xlu1 %v7687_v50, %s6161_s27  ;;  %v1884_v59 = vsel %vm1566_vm4, %v1800_v63, %v1414_v40  ;;  %v6147_v50 = vld [vmem:[%s10233_s3 + $0x60] sm:$0xff]   ;;  %4908 = vmatprep.subr.bf16.mxu1 %v10299_v28  ;;  %v6149_v63 = vld [vmem:[%s10233_s3 + $0x68] sm:$0xff]  }
 0x1e4   :  { %1369 = vrot.lane.b32.xlu0 %v7750_v16, %s6161_s27  ;;  %2358 = vmatprep.mubr.bf16.mxu0 %v1884_v59  ;;  %v8182_v18 = vpack.c.bf16 %v2983_v38, %v2983_v38  ;;  %v2985_v51 = vld [vmem:[#allocation3 + $0x20] sm:$0xff] }
 0x1e5   :  { %v2748_v30 = vmax.f32 %v2506_v4, 0.0  ;;  %v2509_v7 = vadd.f32 %v7827_v34, %v2220_v56  ;;  %2359 = vmatmul.mubr.bf16.gmra.mrb[80].mxu0 %v1628_v39  ;;  %v1096_v57 = vpop.permute.xlu1 %1095  ;;  %v1032_v34 = vshrl.u32 %v8110_v13, 16  ;;  %6040 = vmatprep.subr.bf16.mxu0 %v8188_v26  ;;  %v1041_v39 = vrot.slane %v1039_v42, 1  ;;  %v2984_v56 = vld [vmem:[#allocation3 + $0x18] sm:$0xff]  ;;  %v2987_v42 = vld [vmem:[#allocation3 + $0x30] sm:$0xff] }
 0x1e6   :  { %v1288_v20 = vpop.permute.xlu0 %1287  ;;  %4909 = vmatpush1.bf16.msra.mxu1 %v6147_v50  ;;  %v3162_v4 = vshrl.u32 %v8168_v5, 16  ;;  %v1480_v59 = vsel %vm21_vm0, %v7443_v17, %v1096_v57  ;;  %v8204_v38 = vpack.c.bf16 %v2985_v51, %v2984_v56  ;;  %6041 = vmatpush3.bf16.msra.mxu0 %v8188_v26 }
 0x1e7   :  { %2921 = vst.msk [vmem:[#allocation3 + $0x49] sm:$0xff] %vm21_vm0, %v2748_v30  ;;  %v2749_v58 = vmax.f32 %v2509_v7, 0.0  ;;  %1241 = vrot.lane.b32.xlu1 %v7713_v46, %s6162_s28  ;;  %4910 = vmatprep.subr.bf16.mxu1 %v10299_v28  ;;  %v1037_v45 = vor.u32 %v1036_v24, %v1032_v34  ;;  %v2988_v2 = vld [vmem:[#allocation3 + $0x38] sm:$0xff]  ;;  %v3166_v30 = vrot.slane %v3164_v23, 1  ;;  %v3169_v7 = vshll.u32 %v8182_v18, 16  ;;  %v6151_v23 = vld [vmem:[%s10233_s3 + $0x70] sm:$0xff]  }
 0x1e8   :  { %1433 = vrot.lane.b32.xlu0 %v8166_v62, %s6162_s28  ;;  %v1728_v50 = vsel %vm21_vm0, %v7772_v0, %v1288_v20  ;;  %v8214_v24 = vpack.c.bf16 %v2986_v1, %v2986_v1  ;;  %v8221_v20 = vpack.c.bf16 %v2988_v2, %v2987_v42  ;;  %v3610_v42 = vrot.slane %v8182_v18, 1 }
 0x1e9   :  { %2922 = vst.msk [vmem:[#allocation3 + $0x51] sm:$0xff] %vm21_vm0, %v2749_v58  ;;  %v1160_v33 = vpop.permute.xlu1 %1159  ;;  %v1042_v2 = vsel %vm439_vm2, %v1037_v45, %v1041_v39 }
 0x1ea   :  { %v1352_v40 = vpop.permute.xlu0 %1351  ;;  %v1545_v58 = vsel %vm1501_vm3, %v1480_v59, %v1160_v33  ;;  %4911 = vmatpush1.bf16.msra.mxu1 %v6149_v63  ;;  %v3167_v59 = vor.u32 %v3166_v30, %v3162_v4  ;;  %v3613_v45 = vrot.slane %v8214_v24, 1  ;;  %v3188_v39 = vshll.u32 %v8221_v20, 16 }
 0x1eb   :  { %1115 = vrot.lane.b32.xlu1 %v8101_v49, %s6163_s6  ;;  %v1802_v51 = vsel %vm1501_vm3, %v1728_v50, %v1352_v40  ;;  %4912 = vmatprep.subr.bf16.mxu1 %v10299_v28 }
 0x1ec   :  { %1307 = vrot.lane.b32.xlu0 %v7769_v15, %s6163_s6  ;;  %v2224_v60 = vpop.f32.mrb[12].mxu0  ;;  %v6150_v15 = vld [vmem:[%s10233_s3 + $0x88] sm:$0xff]  }
 0x1ed   :  { %v2225_v34 = vadd.f32 %v8063_v29, %v2224_v60  ;;  %v2226_v17 = vpop.f32.mrb[13].mxu0  ;;  %v1224_v57 = vpop.permute.xlu1 %1223  ;;  %6042 = vmatprep.subr.bf16.mxu0 %v6150_v15  ;;  %v3171_v60 = vrot.slane %v3169_v7, 1 }
 0x1ee   :  { %v1416_v56 = vpop.permute.xlu0 %1415  ;;  %v2227_v32 = vpop.f32.mrb[14].mxu0  ;;  %v1631_v0 = vsel %vm1566_vm4, %v1545_v58, %v1224_v57  ;;  %6043 = vmatpush3.bf16.msra.mxu0 %v6150_v15  ;;  %v10303_v58 = vld [vmem:[#allocation18_spill] sm:$0xff]  ;;  %4913 = vmatpush1.bf16.msra.mxu1 %v6151_v23  ;;  %v3612_v57 = vrot.slane %v8204_v38, 1  ;;  %v3609_v15 = vrot.slane %v8168_v5, 1 }
 0x1ef   :  { %v2514_v33 = vadd.f32 %v7815_v47, %v2225_v34  ;;  %v2228_v1 = vadd.f32 %v8063_v29, %v2227_v32  ;;  %v2229_v63 = vpop.f32.mrb[15].mxu0  ;;  %1179 = vrot.lane.b32.xlu1 %v7732_v12, %s6161_s27  ;;  %v1887_v40 = vsel %vm1566_vm4, %v1802_v51, %v1416_v56  ;;  %v2989_v34 = vld [vmem:[#allocation3 + $0x40] sm:$0xff]  ;;  %v8233_v17 = vpop.f32.mrb[28].mxu1  ;;  %v6152_v12 = vld [vmem:[%s10233_s3 + $0x78] sm:$0xff]   ;;  %4914 = vmatprep.subr.bf16.mxu1 %v10299_v28  ;;  %v3176_v56 = vshll.u32 %v8204_v38, 16 }
 0x1f0   :  { %1371 = vrot.lane.b32.xlu0 %v8110_v13, %s6161_s27  ;;  %2366 = vmatprep.mubr.bf16.mxu0 %v1887_v40  ;;  %v8246_v30 = vpop.f32.mrb[29].mxu1  ;;  %v3172_v7 = vsel %vm439_vm2, %v3167_v59, %v3171_v60  ;;  %v8251_v23 = vpack.c.bf16 %v2989_v34, %v2989_v34  ;;  %v2991_v18 = vld [vmem:[#allocation3 + $0x50] sm:$0xff]  ;;  %v10304_v63 = vld [vmem:[#allocation13_spill] sm:$0xff]  ;;  %v3611_v59 = vsel %vm888_vm1, %v3609_v15, %v3610_v42  ;;  %v3186_v60 = vshrl.u32 %v8221_v20, 16 }
 0x1f1   :  { %v2750_v50 = vmax.f32 %v2514_v33, 0.0  ;;  %v2517_v47 = vadd.f32 %v10303_v58, %v2228_v1  ;;  %2367 = vmatmul.mubr.bf16.gmra.mrb[84].mxu0 %v1631_v0  ;;  %v1098_v32 = vpop.permute.xlu1 %1097  ;;  %v8253_v51 = vpop.f32.mrb[30].mxu1  ;;  %v8260_v33 = vsel %vm888_vm1, %v3612_v57, %v3613_v45  ;;  %v3190_v1 = vrot.slane %v3188_v39, 1  ;;  %v2990_v45 = vld [vmem:[#allocation3 + $0x48] sm:$0xff] }
 0x1f2   :  { %v1290_v13 = vpop.permute.xlu0 %1289  ;;  %4915 = vmatpush1.bf16.msra.mxu1 %v6152_v12  ;;  %v1482_v40 = vsel %vm21_vm0, %v10304_v63, %v1098_v32  ;;  %v3178_v57 = vrot.slane %v3176_v56, 1  ;;  %v8277_v42 = vpack.c.bf16 %v2991_v18, %v2990_v45  ;;  %v3174_v56 = vshrl.u32 %v8204_v38, 16 }
 0x1f3   :  { %2923 = vst.msk [vmem:[#allocation3 + $0x61] sm:$0xff] %vm21_vm0, %v2750_v50  ;;  %v2751_v4 = vmax.f32 %v2517_v47, 0.0  ;;  %1243 = vrot.lane.b32.xlu1 %v7750_v16, %s6162_s28  ;;  %v8257_v16 = vpop.f32.mrb[31].mxu1  ;;  %6108 = vmatprep.subr.bf16.mxu1 %v8188_v26  ;;  %v3193_v50 = vshll.u32 %v8251_v23, 16  ;;  %v1731_v58 = vsel %vm21_vm0, %v7808_v48, %v1290_v13  ;;  %v3191_v15 = vor.u32 %v3190_v1, %v3186_v60  ;;  %v2992_v60 = vld [vmem:[#allocation3 + $0x58] sm:$0xff] }
 0x1f4   :  { %1435 = vrot.lane.b32.xlu0 %v1042_v2, %s6162_s28  ;;  %v3181_v1 = vshll.u32 %v8214_v24, 16 }
 0x1f5   :  { %2924 = vst.msk [vmem:[#allocation3 + $0x69] sm:$0xff] %vm21_vm0, %v2751_v4  ;;  %v1162_v28 = vpop.permute.xlu1 %1161 }
 0x1f6   :  { %v1354_v0 = vpop.permute.xlu0 %1353  ;;  %v1547_v26 = vsel %vm1501_vm3, %v1482_v40, %v1162_v28 }
 0x1f7   :  { %3773 = vrot.lane.b32.xlu1 %v3172_v7, %s6163_s6  ;;  %v1804_v32 = vsel %vm1501_vm3, %v1731_v58, %v1354_v0  ;;  %v3195_v0 = vrot.slane %v3193_v50, 1  ;;  %v3096_v50 = vpack.c.bf16 %v2992_v60, %v2992_v60 }
 0x1f8   :  { %3965 = vrot.lane.b32.xlu0 %v8260_v33, %s6163_s6  ;;  %v2232_v2 = vpop.f32.mrb[16].mxu0 }
 0x1f9   :  { %v2233_v47 = vadd.f32 %v8063_v29, %v2232_v2  ;;  %v2234_v34 = vpop.f32.mrb[17].mxu0  ;;  %v1226_v12 = vpop.permute.xlu1 %1225  ;;  %v3179_v2 = vor.u32 %v3178_v57, %v3174_v56 }
 0x1fa   :  { %v1418_v39 = vpop.permute.xlu0 %1417  ;;  %v2235_v4 = vpop.f32.mrb[18].mxu0  ;;  %v1634_v7 = vsel %vm1566_vm4, %v1547_v26, %v1226_v12  ;;  %v3615_v26 = vrot.slane %v8221_v20, 1  ;;  %v3200_v34 = vshll.u32 %v8277_v42, 16 }
 0x1fb   :  { %v2522_v63 = vadd.f32 %v7847_v36, %v2233_v47  ;;  %v2236_v48 = vadd.f32 %v8063_v29, %v2235_v4  ;;  %v2237_v13 = vpop.f32.mrb[19].mxu0  ;;  %3837 = vrot.lane.b32.xlu1 %v3611_v59, %s6161_s27  ;;  %v1890_v28 = vsel %vm1566_vm4, %v1804_v32, %v1418_v39  ;;  %v8289_v59 = vsel %vm439_vm2, %v3191_v15, %v3195_v0  ;;  %v10305_v4 = vld [vmem:[#allocation15_spill] sm:$0xff] }
 0x1fc   :  { %4029 = vrot.lane.b32.xlu0 %v8221_v20, %s6161_s27  ;;  %2374 = vmatprep.mubr.bf16.mxu0 %v1890_v28  ;;  %v3616_v47 = vrot.slane %v8251_v23, 1  ;;  %v3202_v32 = vrot.slane %v3200_v34, 1  ;;  %v2994_v39 = vld [vmem:[#allocation3 + $0x68] sm:$0xff]  ;;  %v10306_v34 = vld [vmem:[#allocation4_spill] sm:$0xff] }
 0x1fd   :  { %v2752_v18 = vmax.f32 %v2522_v63, 0.0  ;;  %v2525_v40 = vadd.f32 %v7855_v55, %v2236_v48  ;;  %2375 = vmatmul.mubr.bf16.gmra.mrb[88].mxu0 %v1634_v7  ;;  %v1100_v36 = vpop.permute.xlu1 %1099  ;;  %v3183_v55 = vrot.slane %v3181_v1, 1  ;;  %v3198_v63 = vshrl.u32 %v8277_v42, 16 }
 0x1fe   :  { %v1292_v58 = vpop.permute.xlu0 %1291  ;;  %v8301_v45 = vsel %vm888_vm1, %v3615_v26, %v3616_v47  ;;  %v1484_v7 = vsel %vm21_vm0, %v10305_v4, %v1100_v36  ;;  %v3205_v48 = vshll.u32 %v3096_v50, 16  ;;  %v10307_v4 = vld [vmem:[#allocation8_spill] sm:$0xff] }
 0x1ff   :  { %2925 = vst.msk [vmem:[#allocation3 + $0x79] sm:$0xff] %vm21_vm0, %v2752_v18  ;;  %v2753_v24 = vmax.f32 %v2525_v40, 0.0  ;;  %3901 = vrot.lane.b32.xlu1 %v8204_v38, %s6162_s28  ;;  %v8304_v23 = vsel %vm439_vm2, %v3179_v2, %v3183_v55  ;;  %v1734_v13 = vsel %vm21_vm0, %v7844_v3, %v1292_v58  ;;  %v2993_v18 = vld [vmem:[#allocation3 + $0x60] sm:$0xff]  ;;  %v3203_v26 = vor.u32 %v3202_v32, %v3198_v63 }
 0x200   :  { %4093 = vrot.lane.b32.xlu0 %v8289_v59, %s6162_s28  ;;  %v8319_v47 = vpack.c.bf16 %v2994_v39, %v2993_v18 }
 0x201   :  { %2926 = vst.msk [vmem:[#allocation3 + $0x81] sm:$0xff] %vm21_vm0, %v2753_v24  ;;  %v1164_v12 = vpop.permute.xlu1 %1163 }
 0x202   :  { %v1356_v57 = vpop.permute.xlu0 %1355  ;;  %v1549_v28 = vsel %vm1501_vm3, %v1484_v7, %v1164_v12  ;;  %v3207_v12 = vrot.slane %v3205_v48, 1  ;;  %v2995_v7 = vld [vmem:[#allocation3 + $0x70] sm:$0xff] }
 0x203   :  { %3775 = vrot.lane.b32.xlu1 %v8304_v23, %s6163_s6  ;;  %v1806_v40 = vsel %vm1501_vm3, %v1734_v13, %v1356_v57 }
 0x204   :  { %3967 = vrot.lane.b32.xlu0 %v8301_v45, %s6163_s6  ;;  %v2240_v15 = vpop.f32.mrb[20].mxu0  ;;  %v8332_v13 = vsel %vm439_vm2, %v3203_v26, %v3207_v12 }
 0x205   :  { %v2241_v56 = vadd.f32 %v8063_v29, %v2240_v15  ;;  %v2242_v0 = vpop.f32.mrb[21].mxu0  ;;  %v1228_v1 = vpop.permute.xlu1 %1227 }
 0x206   :  { %v1420_v2 = vpop.permute.xlu0 %1419  ;;  %v2243_v60 = vpop.f32.mrb[22].mxu0  ;;  %v1637_v36 = vsel %vm1566_vm4, %v1549_v28, %v1228_v1  ;;  %v3618_v28 = vrot.slane %v8277_v42, 1  ;;  %v3212_v0 = vshll.u32 %v8319_v47, 16  ;;  %v3098_v1 = vpack.c.bf16 %v2995_v7, %v2995_v7  ;;  %v2996_v7 = vld [vmem:[#allocation3 + $0x78] sm:$0xff] }
 0x207   :  { %v2530_v24 = vadd.f32 %v10306_v34, %v2241_v56  ;;  %v2244_v3 = vadd.f32 %v8063_v29, %v2243_v60  ;;  %v2245_v58 = vpop.f32.mrb[23].mxu0  ;;  %v1893_v55 = vsel %vm1566_vm4, %v1806_v40, %v1420_v2  ;;  %3839 = vrot.lane.b32.xlu1 %v8260_v33, %s6161_s27  ;;  %v8329_v15 = vpop.f32.mrb[32].mxu1  ;;  %v3619_v56 = vrot.slane %v3096_v50, 1 }
 0x208   :  { %4031 = vrot.lane.b32.xlu0 %v8277_v42, %s6161_s27  ;;  %2382 = vmatprep.mubr.bf16.mxu0 %v1893_v55  ;;  %10308 = vst [vmem:[#allocation11_spill] sm:$0xff] %v8329_v15  ;;  %v8341_v48 = vpop.f32.mrb[33].mxu1  ;;  %v2997_v26 = vld [vmem:[#allocation3 + $0x80] sm:$0xff]  ;;  %v3217_v58 = vshll.u32 %v3098_v1, 16 }
 0x209   :  { %v2754_v57 = vmax.f32 %v2530_v24, 0.0  ;;  %v2533_v32 = vadd.f32 %v10307_v4, %v2244_v3  ;;  %2383 = vmatmul.mubr.bf16.gmra.mrb[92].mxu0 %v1637_v36  ;;  %v1102_v39 = vpop.permute.xlu1 %1101  ;;  %v8343_v18 = vpop.f32.mrb[34].mxu1  ;;  %v8349_v60 = vsel %vm888_vm1, %v3618_v28, %v3619_v56  ;;  %v3214_v36 = vrot.slane %v3212_v0, 1 }
 0x20a   :  { %v1294_v63 = vpop.permute.xlu0 %1293  ;;  %10309 = vst [vmem:[#allocation16_spill] sm:$0xff] %v8343_v18  ;;  %v8346_v50 = vpop.f32.mrb[35].mxu1  ;;  %v1486_v34 = vsel %vm21_vm0, %v7503_v37, %v1102_v39  ;;  %v3210_v3 = vshrl.u32 %v8319_v47, 16 }
 0x20b   :  { %2927 = vst.msk [vmem:[#allocation3 + $0x91] sm:$0xff] %vm21_vm0, %v2754_v57  ;;  %v2755_v33 = vmax.f32 %v2533_v32, 0.0  ;;  %3903 = vrot.lane.b32.xlu1 %v8221_v20, %s6162_s28  ;;  %v1737_v55 = vsel %vm21_vm0, %v7876_v11, %v1294_v63 }
 0x20c   :  { %4095 = vrot.lane.b32.xlu0 %v8332_v13, %s6162_s28  ;;  %v3215_v39 = vor.u32 %v3214_v36, %v3210_v3  ;;  %v2998_v3 = vld [vmem:[#allocation3 + $0x88] sm:$0xff] }
 0x20d   :  { %2928 = vst.msk [vmem:[#allocation3 + $0x99] sm:$0xff] %vm21_vm0, %v2755_v33  ;;  %v1166_v40 = vpop.permute.xlu1 %1165  ;;  %v8364_v33 = vpack.c.bf16 %v2997_v26, %v2996_v7 }
 0x20e   :  { %v1358_v2 = vpop.permute.xlu0 %1357  ;;  %v1551_v12 = vsel %vm1501_vm3, %v1486_v34, %v1166_v40 }
 0x20f   :  { %3777 = vrot.lane.b32.xlu1 %v8289_v59, %s6163_s6  ;;  %v1808_v28 = vsel %vm1501_vm3, %v1737_v55, %v1358_v2  ;;  %10310 = vst [vmem:[#allocation14_spill] sm:$0xff] %v8364_v33  ;;  %v3219_v2 = vrot.slane %v3217_v58, 1 }
 0x210   :  { %3969 = vrot.lane.b32.xlu0 %v8349_v60, %s6163_s6  ;;  %v2248_v24 = vpop.f32.mrb[24].mxu0 }
 0x211   :  { %v2249_v57 = vadd.f32 %v8063_v29, %v2248_v24  ;;  %v2250_v4 = vpop.f32.mrb[25].mxu0  ;;  %v1230_v32 = vpop.permute.xlu1 %1229  ;;  %v10311_v24 = vld [vmem:[#allocation19_spill] sm:$0xff]  ;;  %v8375_v55 = vsel %vm439_vm2, %v3215_v39, %v3219_v2  ;;  %v3222_v39 = vshrl.u32 %v8364_v33, 16 }
 0x212   :  { %v1422_v56 = vpop.permute.xlu0 %1421  ;;  %v2251_v0 = vpop.f32.mrb[26].mxu0  ;;  %v1640_v37 = vsel %vm1566_vm4, %v1551_v12, %v1230_v32  ;;  %v3621_v12 = vrot.slane %v8319_v47, 1  ;;  %v3224_v4 = vshll.u32 %v8364_v33, 16 }
 0x213   :  { %v2538_v18 = vadd.f32 %v7885_v21, %v2249_v57  ;;  %v2252_v11 = vadd.f32 %v8063_v29, %v2251_v0  ;;  %v2253_v63 = vpop.f32.mrb[27].mxu0  ;;  %v1896_v40 = vsel %vm1566_vm4, %v1808_v28, %v1422_v56  ;;  %3841 = vrot.lane.b32.xlu1 %v8301_v45, %s6161_s27  ;;  %v3622_v57 = vrot.slane %v3098_v1, 1 }
 0x214   :  { %4033 = vrot.lane.b32.xlu0 %v8319_v47, %s6161_s27  ;;  %2390 = vmatprep.mubr.bf16.mxu0 %v1896_v40  ;;  %v3226_v1 = vrot.slane %v3224_v4, 1  ;;  %v3000_v56 = vld [vmem:[#allocation3 + $0x98] sm:$0xff] }
 0x215   :  { %v2756_v34 = vmax.f32 %v2538_v18, 0.0  ;;  %v2541_v36 = vadd.f32 %v10311_v24, %v2252_v11  ;;  %2391 = vmatmul.mubr.bf16.gmra.mrb[96].mxu0 %v1640_v37  ;;  %v1104_v26 = vpop.permute.xlu1 %1103  ;;  %v3100_v18 = vpack.c.bf16 %v2998_v3, %v2998_v3  ;;  %v8386_v28 = vsel %vm888_vm1, %v3621_v12, %v3622_v57 }
 0x216   :  { %v1296_v21 = vpop.permute.xlu0 %1295  ;;  %v1488_v0 = vsel %vm21_vm0, %v7531_v9, %v1104_v26  ;;  %v3227_v26 = vor.u32 %v3226_v1, %v3222_v39  ;;  %v3001_v39 = vld [vmem:[#allocation3 + $0xa0] sm:$0xff] }
 0x217   :  { %2929 = vst.msk [vmem:[#allocation3 + $0xa9] sm:$0xff] %vm21_vm0, %v2756_v34  ;;  %v2757_v32 = vmax.f32 %v2541_v36, 0.0  ;;  %3905 = vrot.lane.b32.xlu1 %v8277_v42, %s6162_s28  ;;  %v3229_v11 = vshll.u32 %v3100_v18, 16  ;;  %v1740_v63 = vsel %vm21_vm0, %v7910_v14, %v1296_v21  ;;  %v2999_v36 = vld [vmem:[#allocation3 + $0x90] sm:$0xff] }
 0x218   :  { %4097 = vrot.lane.b32.xlu0 %v8375_v55, %s6162_s28  ;;  %v8401_v4 = vpack.c.bf16 %v3000_v56, %v2999_v36 }
 0x219   :  { %2930 = vst.msk [vmem:[#allocation3 + $0xb1] sm:$0xff] %vm21_vm0, %v2757_v32  ;;  %v1168_v58 = vpop.permute.xlu1 %1167  ;;  %v10312_v32 = vld [vmem:[#allocation5_spill] sm:$0xff] }
 0x21a   :  { %v1360_v7 = vpop.permute.xlu0 %1359  ;;  %v1553_v40 = vsel %vm1501_vm3, %v1488_v0, %v1168_v58  ;;  %v3236_v36 = vshll.u32 %v8401_v4, 16 }
 0x21b   :  { %3779 = vrot.lane.b32.xlu1 %v8332_v13, %s6163_s6  ;;  %v1810_v3 = vsel %vm1501_vm3, %v1740_v63, %v1360_v7  ;;  %v3231_v7 = vrot.slane %v3229_v11, 1  ;;  %v8411_v63 = vpop.f32.mrb[36].mxu1 }
 0x21c   :  { %3971 = vrot.lane.b32.xlu0 %v8386_v28, %s6163_s6  ;;  %v2256_v37 = vpop.f32.mrb[28].mxu0  ;;  %10314 = vst [vmem:[#allocation18_spill] sm:$0xff] %v8411_v63 }
 0x21d   :  { %v2257_v2 = vadd.f32 %v8063_v29, %v2256_v37  ;;  %v2258_v34 = vpop.f32.mrb[29].mxu0  ;;  %v1232_v24 = vpop.permute.xlu1 %1231  ;;  %v10313_v37 = vld [vmem:[#allocation9_spill] sm:$0xff] }
 0x21e   :  { %v1424_v12 = vpop.permute.xlu0 %1423  ;;  %v2259_v57 = vpop.f32.mrb[30].mxu0  ;;  %v1643_v9 = vsel %vm1566_vm4, %v1553_v40, %v1232_v24  ;;  %v3624_v34 = vrot.slane %v8364_v33, 1  ;;  %v3625_v24 = vrot.slane %v3100_v18, 1 }
 0x21f   :  { %v2546_v15 = vadd.f32 %v10312_v32, %v2257_v2  ;;  %v2260_v14 = vadd.f32 %v8063_v29, %v2259_v57  ;;  %v2261_v21 = vpop.f32.mrb[31].mxu0  ;;  %v1899_v58 = vsel %vm1566_vm4, %v1810_v3, %v1424_v12  ;;  %3843 = vrot.lane.b32.xlu1 %v8349_v60, %s6161_s27  ;;  %v8414_v2 = vsel %vm439_vm2, %v3227_v26, %v3231_v7 }
 0x220   :  { %4035 = vrot.lane.b32.xlu0 %v8364_v33, %s6161_s27  ;;  %2398 = vmatprep.mubr.bf16.mxu0 %v1899_v58  ;;  %v3102_v3 = vpack.c.bf16 %v3001_v39, %v3001_v39  ;;  %v8431_v26 = vsel %vm888_vm1, %v3624_v34, %v3625_v24  ;;  %v3238_v32 = vrot.slane %v3236_v36, 1  ;;  %v3234_v7 = vshrl.u32 %v8401_v4, 16  ;;  %v3002_v36 = vld [vmem:[#allocation3 + $0xa8] sm:$0xff] }
 0x221   :  { %v2758_v0 = vmax.f32 %v2546_v15, 0.0  ;;  %v2549_v1 = vadd.f32 %v10313_v37, %v2260_v14  ;;  %2399 = vmatmul.mubr.bf16.gmra.mrb[100].mxu0 %v1643_v9  ;;  %v1106_v56 = vpop.permute.xlu1 %1105  ;;  %v8423_v15 = vpop.f32.mrb[37].mxu1  ;;  %v3003_v14 = vld [vmem:[#allocation3 + $0xb0] sm:$0xff] }
 0x222   :  { %v1298_v40 = vpop.permute.xlu0 %1297  ;;  %10315 = vst [vmem:[#allocation13_spill] sm:$0xff] %v8423_v15  ;;  %v8425_v12 = vpop.f32.mrb[38].mxu1  ;;  %v1490_v21 = vsel %vm21_vm0, %v7555_v27, %v1106_v56  ;;  %v3239_v56 = vor.u32 %v3238_v32, %v3234_v7  ;;  %v3004_v7 = vld [vmem:[#allocation3 + $0xb8] sm:$0xff] }
 0x223   :  { %2931 = vst.msk [vmem:[#allocation3 + $0xc1] sm:$0xff] %vm21_vm0, %v2758_v0  ;;  %v2759_v11 = vmax.f32 %v2549_v1, 0.0  ;;  %3907 = vrot.lane.b32.xlu1 %v8319_v47, %s6162_s28  ;;  %10316 = vst [vmem:[#allocation15_spill] sm:$0xff] %v8425_v12  ;;  %v8428_v18 = vpop.f32.mrb[39].mxu1  ;;  %v3241_v0 = vshll.u32 %v3102_v3, 16  ;;  %v1743_v37 = vsel %vm21_vm0, %v7936_v6, %v1298_v40 }
 0x224   :  { %4099 = vrot.lane.b32.xlu0 %v8414_v2, %s6162_s28  ;;  %10317 = vst [vmem:[#allocation4_spill] sm:$0xff] %v8428_v18  ;;  %v8446_v18 = vpack.c.bf16 %v3003_v14, %v3002_v36 }
 0x225   :  { %2932 = vst.msk [vmem:[#allocation3 + $0xc9] sm:$0xff] %vm21_vm0, %v2759_v11  ;;  %v1170_v57 = vpop.permute.xlu1 %1169 }
 0x226   :  { %v1362_v9 = vpop.permute.xlu0 %1361  ;;  %v1555_v1 = vsel %vm1501_vm3, %v1490_v21, %v1170_v57 }
 0x227   :  { %3781 = vrot.lane.b32.xlu1 %v8375_v55, %s6163_s6  ;;  %v1812_v11 = vsel %vm1501_vm3, %v1743_v37, %v1362_v9  ;;  %v3243_v9 = vrot.slane %v3241_v0, 1  ;;  %v3628_v37 = vrot.slane %v3102_v3, 1 }
 0x228   :  { %3973 = vrot.lane.b32.xlu0 %v8431_v26, %s6163_s6  ;;  %v2264_v58 = vpop.f32.mrb[32].mxu0 }
 0x229   :  { %v2265_v39 = vadd.f32 %v8063_v29, %v2264_v58  ;;  %v2266_v34 = vpop.f32.mrb[33].mxu0  ;;  %v1234_v24 = vpop.permute.xlu1 %1233  ;;  %v10318_v58 = vld [vmem:[#allocation7_spill] sm:$0xff] }
 0x22a   :  { %v1426_v12 = vpop.permute.xlu0 %1425  ;;  %v2267_v63 = vpop.f32.mrb[34].mxu0  ;;  %v1646_v27 = vsel %vm1566_vm4, %v1555_v1, %v1234_v24  ;;  %v3248_v1 = vshll.u32 %v8446_v18, 16 }
 0x22b   :  { %v2554_v15 = vadd.f32 %v7945_v54, %v2265_v39  ;;  %v2268_v6 = vadd.f32 %v8063_v29, %v2267_v63  ;;  %v2269_v40 = vpop.f32.mrb[35].mxu0  ;;  %v1902_v57 = vsel %vm1566_vm4, %v1812_v11, %v1426_v12  ;;  %3845 = vrot.lane.b32.xlu1 %v8386_v28, %s6161_s27  ;;  %v8457_v63 = vsel %vm439_vm2, %v3239_v56, %v3243_v9 }
 0x22c   :  { %4037 = vrot.lane.b32.xlu0 %v8401_v4, %s6161_s27  ;;  %2406 = vmatprep.mubr.bf16.mxu0 %v1902_v57  ;;  %v3627_v12 = vrot.slane %v8401_v4, 1  ;;  %v3250_v3 = vrot.slane %v3248_v1, 1  ;;  %v3006_v36 = vld [vmem:[#allocation3 + $0xc8] sm:$0xff]  ;;  %v3246_v56 = vshrl.u32 %v8446_v18, 16 }
 0x22d   :  { %v2760_v21 = vmax.f32 %v2554_v15, 0.0  ;;  %v2557_v32 = vadd.f32 %v10318_v58, %v2268_v6  ;;  %2407 = vmatmul.mubr.bf16.gmra.mrb[104].mxu0 %v1646_v27  ;;  %v1108_v14 = vpop.permute.xlu1 %1107  ;;  %v3104_v15 = vpack.c.bf16 %v3004_v7, %v3004_v7 }
 0x22e   :  { %v1300_v54 = vpop.permute.xlu0 %1299  ;;  %v8468_v24 = vsel %vm888_vm1, %v3627_v12, %v3628_v37  ;;  %v1492_v11 = vsel %vm21_vm0, %v7588_v52, %v1108_v14  ;;  %v3251_v14 = vor.u32 %v3250_v3, %v3246_v56  ;;  %v3007_v56 = vld [vmem:[#allocation3 + $0xd0] sm:$0xff] }
 0x22f   :  { %2933 = vst.msk [vmem:[#allocation3 + $0xd9] sm:$0xff] %vm21_vm0, %v2760_v21  ;;  %v2761_v39 = vmax.f32 %v2557_v32, 0.0  ;;  %3909 = vrot.lane.b32.xlu1 %v8364_v33, %s6162_s28  ;;  %v3253_v6 = vshll.u32 %v3104_v15, 16  ;;  %v1746_v40 = vsel %vm21_vm0, %v7971_v35, %v1300_v54  ;;  %v3005_v32 = vld [vmem:[#allocation3 + $0xc0] sm:$0xff] }
 0x230   :  { %4101 = vrot.lane.b32.xlu0 %v8457_v63, %s6162_s28  ;;  %v8483_v1 = vpack.c.bf16 %v3006_v36, %v3005_v32  ;;  %v3106_v32 = vpack.c.bf16 %v3007_v56, %v3007_v56 }
 0x231   :  { %2934 = vst.msk [vmem:[#allocation3 + $0xe1] sm:$0xff] %vm21_vm0, %v2761_v39  ;;  %v1172_v0 = vpop.permute.xlu1 %1171  ;;  %v10319_v39 = vld [vmem:[#allocation6_spill] sm:$0xff] }
 0x232   :  { %v1364_v34 = vpop.permute.xlu0 %1363  ;;  %v1557_v57 = vsel %vm1501_vm3, %v1492_v11, %v1172_v0 }
 0x233   :  { %3783 = vrot.lane.b32.xlu1 %v8414_v2, %s6163_s6  ;;  %v1814_v7 = vsel %vm1501_vm3, %v1746_v40, %v1364_v34  ;;  %v3255_v34 = vrot.slane %v3253_v6, 1  ;;  %v8493_v40 = vpop.f32.mrb[40].mxu1 }
 0x234   :  { %3975 = vrot.lane.b32.xlu0 %v8468_v24, %s6163_s6  ;;  %v2272_v27 = vpop.f32.mrb[36].mxu0  ;;  %10321 = vst [vmem:[#allocation8_spill] sm:$0xff] %v8493_v40 }
 0x235   :  { %v2273_v9 = vadd.f32 %v8063_v29, %v2272_v27  ;;  %v2274_v21 = vpop.f32.mrb[37].mxu0  ;;  %v1236_v58 = vpop.permute.xlu1 %1235  ;;  %v10320_v27 = vld [vmem:[#allocation10_spill] sm:$0xff] }
 0x236   :  { %v1428_v12 = vpop.permute.xlu0 %1427  ;;  %v2275_v37 = vpop.f32.mrb[38].mxu0  ;;  %v1649_v52 = vsel %vm1566_vm4, %v1557_v57, %v1236_v58  ;;  %v8496_v57 = vsel %vm439_vm2, %v3251_v14, %v3255_v34  ;;  %v3631_v21 = vrot.slane %v3104_v15, 1  ;;  %v3260_v58 = vshll.u32 %v8483_v1, 16 }
 0x237   :  { %v2562_v33 = vadd.f32 %v10319_v39, %v2273_v9  ;;  %v2276_v35 = vadd.f32 %v8063_v29, %v2275_v37  ;;  %v2277_v54 = vpop.f32.mrb[39].mxu0  ;;  %v1905_v0 = vsel %vm1566_vm4, %v1814_v7, %v1428_v12  ;;  %3847 = vrot.lane.b32.xlu1 %v8431_v26, %s6161_s27  ;;  %v3630_v9 = vrot.slane %v8446_v18, 1 }
 0x238   :  { %4039 = vrot.lane.b32.xlu0 %v8446_v18, %s6161_s27  ;;  %2414 = vmatprep.mubr.bf16.mxu0 %v1905_v0  ;;  %v3262_v14 = vrot.slane %v3260_v58, 1  ;;  %v3009_v39 = vld [vmem:[#allocation3 + $0xe0] sm:$0xff]  ;;  %v3258_v0 = vshrl.u32 %v8483_v1, 16  ;;  %v3265_v34 = vshll.u32 %v3106_v32, 16  ;;  %v3008_v58 = vld [vmem:[#allocation3 + $0xd8] sm:$0xff] }
 0x239   :  { %v2762_v11 = vmax.f32 %v2562_v33, 0.0  ;;  %v2565_v3 = vadd.f32 %v10320_v27, %v2276_v35  ;;  %2415 = vmatmul.mubr.bf16.gmra.mrb[108].mxu0 %v1649_v52  ;;  %v1110_v36 = vpop.permute.xlu1 %1109  ;;  %v8505_v33 = vpop.f32.mrb[41].mxu1  ;;  %v8513_v52 = vsel %vm888_vm1, %v3630_v9, %v3631_v21 }
 0x23a   :  { %v1302_v29 = vpop.permute.xlu0 %1301  ;;  %v8507_v7 = vpop.f32.mrb[42].mxu1  ;;  %v1494_v35 = vsel %vm21_vm0, %v7603_v43, %v1110_v36  ;;  %v3263_v40 = vor.u32 %v3262_v14, %v3258_v0  ;;  %v3010_v0 = vld [vmem:[#allocation3 + $0xe8] sm:$0xff] }
 0x23b   :  { %2935 = vst.msk [vmem:[#allocation3 + $0xf1] sm:$0xff] %vm21_vm0, %v2762_v11  ;;  %v2763_v6 = vmax.f32 %v2565_v3, 0.0  ;;  %3911 = vrot.lane.b32.xlu1 %v8401_v4, %s6162_s28  ;;  %10322 = vst [vmem:[#allocation19_spill] sm:$0xff] %v8507_v7  ;;  %v8510_v15 = vpop.f32.mrb[43].mxu1  ;;  %v1749_v11 = vsel %vm21_vm0, %v8008_v44, %v1302_v29  ;;  %v8528_v3 = vld [vmem:[%s10234_s2] ss:$0 sm:$0xff]  ;;  %v8533_v44 = vpack.c.bf16 %v3009_v39, %v3008_v58 }
 0x23c   :  { %4103 = vrot.lane.b32.xlu0 %v8496_v57, %s6162_s28  ;;  %10323 = vst [vmem:[#allocation5_spill] sm:$0xff] %v8510_v15 }
 0x23d   :  { %2936 = vst.msk [vmem:[#allocation3 + $0xf9] sm:$0xff] %vm21_vm0, %v2763_v6  ;;  %v1174_v12 = vpop.permute.xlu1 %1173 }
 0x23e   :  { %v1366_v37 = vpop.permute.xlu0 %1365  ;;  %v1559_v27 = vsel %vm1501_vm3, %v1494_v35, %v1174_v12 }
 0x23f   :  { %3785 = vrot.lane.b32.xlu1 %v8457_v63, %s6163_s6  ;;  %v1816_v43 = vsel %vm1501_vm3, %v1749_v11, %v1366_v37  ;;  %v3267_v37 = vrot.slane %v3265_v34, 1 }
 0x240   :  { %3977 = vrot.lane.b32.xlu0 %v8513_v52, %s6163_s6  ;;  %v2280_v54 = vpop.f32.mrb[40].mxu0 }
 0x241   :  { %v2281_v56 = vadd.f32 %v8528_v3, %v2280_v54  ;;  %v2282_v9 = vpop.f32.mrb[41].mxu0  ;;  %v1238_v21 = vpop.permute.xlu1 %1237  ;;  %v8544_v11 = vsel %vm439_vm2, %v3263_v40, %v3267_v37 }
 0x242   :  { %v1430_v36 = vpop.permute.xlu0 %1429  ;;  %v2283_v6 = vpop.f32.mrb[42].mxu0  ;;  %v1652_v7 = vsel %vm1566_vm4, %v1559_v27, %v1238_v21  ;;  %v3633_v27 = vrot.slane %v8483_v1, 1  ;;  %v3272_v9 = vshll.u32 %v8533_v44, 16 }
 0x243   :  { %v2570_v29 = vadd.f32 %v8020_v22, %v2281_v56  ;;  %v2284_v12 = vadd.f32 %v8528_v3, %v2283_v6  ;;  %v2285_v35 = vpop.f32.mrb[43].mxu0  ;;  %v1908_v15 = vsel %vm1566_vm4, %v1816_v43, %v1430_v36  ;;  %3849 = vrot.lane.b32.xlu1 %v8468_v24, %s6161_s27  ;;  %v3634_v56 = vrot.slane %v3106_v32, 1 }
 0x244   :  { %4041 = vrot.lane.b32.xlu0 %v8483_v1, %s6161_s27  ;;  %2422 = vmatprep.mubr.bf16.mxu0 %v1908_v15  ;;  %v3274_v32 = vrot.slane %v3272_v9, 1  ;;  %v3012_v34 = vld [vmem:[#allocation3 + $0xf8] sm:$0xff]  ;;  %v3270_v36 = vshrl.u32 %v8533_v44, 16 }
 0x245   :  { %v2764_v54 = vmax.f32 %v2570_v29, 0.0  ;;  %v2573_v14 = vadd.f32 %v8030_v61, %v2284_v12  ;;  %2423 = vmatmul.mubr.bf16.gmra.mrb[112].mxu0 %v1652_v7  ;;  %v1112_v39 = vpop.permute.xlu1 %1111  ;;  %v3108_v61 = vpack.c.bf16 %v3010_v0, %v3010_v0  ;;  %v8555_v15 = vsel %vm888_vm1, %v3633_v27, %v3634_v56 }
 0x246   :  { %v1304_v22 = vpop.permute.xlu0 %1303  ;;  %v1496_v58 = vsel %vm21_vm0, %v7633_v19, %v1112_v39  ;;  %v3275_v39 = vor.u32 %v3274_v32, %v3270_v36 }
 0x247   :  { %2937 = vst.msk [vmem:[#allocation3 + $0x109] sm:$0xff] %vm21_vm0, %v2764_v54  ;;  %v2765_v21 = vmax.f32 %v2573_v14, 0.0  ;;  %3913 = vrot.lane.b32.xlu1 %v8446_v18, %s6162_s28  ;;  %v3277_v6 = vshll.u32 %v3108_v61, 16  ;;  %v1752_v29 = vsel %vm21_vm0, %v8053_v53, %v1304_v22  ;;  %v3011_v14 = vld [vmem:[#allocation3 + $0xf0] sm:$0xff] }
 0x248   :  { %4105 = vrot.lane.b32.xlu0 %v8544_v11, %s6162_s28  ;;  %v8570_v9 = vpack.c.bf16 %v3012_v34, %v3011_v14 }
 0x249   :  { %2938 = vst.msk [vmem:[#allocation3 + $0x111] sm:$0xff] %vm21_vm0, %v2765_v21  ;;  %v1176_v7 = vpop.permute.xlu1 %1175 }
 0x24a   :  { %v1368_v40 = vpop.permute.xlu0 %1367  ;;  %v1561_v12 = vsel %vm1501_vm3, %v1496_v58, %v1176_v7 }
 0x24b   :  { %3787 = vrot.lane.b32.xlu1 %v8496_v57, %s6163_s6  ;;  %v1818_v0 = vsel %vm1501_vm3, %v1752_v29, %v1368_v40  ;;  %v3279_v40 = vrot.slane %v3277_v6, 1 }
 0x24c   :  { %3979 = vrot.lane.b32.xlu0 %v8555_v15, %s6163_s6  ;;  %v2288_v43 = vpop.f32.mrb[44].mxu0 }
 0x24d   :  { %v2289_v35 = vadd.f32 %v8528_v3, %v2288_v43  ;;  %v2290_v37 = vpop.f32.mrb[45].mxu0  ;;  %v1240_v54 = vpop.permute.xlu1 %1239  ;;  %v3013_v43 = vld [vmem:[#allocation3 + $0x100] sm:$0xff]  ;;  %v8583_v29 = vsel %vm439_vm2, %v3275_v39, %v3279_v40 }
 0x24e   :  { %v1432_v27 = vpop.permute.xlu0 %1431  ;;  %v2291_v56 = vpop.f32.mrb[46].mxu0  ;;  %v1655_v19 = vsel %vm1566_vm4, %v1561_v12, %v1240_v54  ;;  %v3636_v12 = vrot.slane %v8533_v44, 1  ;;  %v3284_v37 = vshll.u32 %v8570_v9, 16  ;;  %v3110_v54 = vpack.c.bf16 %v3013_v43, %v3013_v43 }
 0x24f   :  { %v2578_v21 = vadd.f32 %v8014_v8, %v2289_v35  ;;  %v2292_v53 = vadd.f32 %v8528_v3, %v2291_v56  ;;  %v2293_v22 = vpop.f32.mrb[47].mxu0  ;;  %v1911_v7 = vsel %vm1566_vm4, %v1818_v0, %v1432_v27  ;;  %3851 = vrot.lane.b32.xlu1 %v8513_v52, %s6161_s27  ;;  %v8580_v8 = vpop.f32.mrb[44].mxu1  ;;  %v3637_v35 = vrot.slane %v3108_v61, 1 }
 0x250   :  { %4043 = vrot.lane.b32.xlu0 %v8533_v44, %s6161_s27  ;;  %2430 = vmatprep.mubr.bf16.mxu0 %v1911_v7  ;;  %10324 = vst [vmem:[#allocation9_spill] sm:$0xff] %v8580_v8  ;;  %v3015_v39 = vld [vmem:[#allocation3 + $0x110] sm:$0xff]  ;;  %v3282_v22 = vshrl.u32 %v8570_v9, 16  ;;  %v3289_v7 = vshll.u32 %v3110_v54, 16 }
 0x251   :  { %v2766_v58 = vmax.f32 %v2578_v21, 0.0  ;;  %v2581_v32 = vadd.f32 %v8024_v41, %v2292_v53  ;;  %2431 = vmatmul.mubr.bf16.gmra.mrb[116].mxu0 %v1655_v19  ;;  %v1114_v34 = vpop.permute.xlu1 %1113  ;;  %v8592_v41 = vpop.f32.mrb[45].mxu1  ;;  %v8600_v56 = vsel %vm888_vm1, %v3636_v12, %v3637_v35  ;;  %v3286_v19 = vrot.slane %v3284_v37, 1  ;;  %v3014_v35 = vld [vmem:[#allocation3 + $0x108] sm:$0xff] }
 0x252   :  { %v1306_v36 = vpop.permute.xlu0 %1305  ;;  %v8594_v14 = vpop.f32.mrb[46].mxu1  ;;  %v1498_v21 = vsel %vm21_vm0, %v7668_v31, %v1114_v34  ;;  %v8615_v8 = vpack.c.bf16 %v3015_v39, %v3014_v35 }
 0x253   :  { %2939 = vst.msk [vmem:[#allocation3 + $0x121] sm:$0xff] %vm21_vm0, %v2766_v58  ;;  %v2767_v6 = vmax.f32 %v2581_v32, 0.0  ;;  %3915 = vrot.lane.b32.xlu1 %v8483_v1, %s6162_s28  ;;  %10325 = vst [vmem:[#allocation7_spill] sm:$0xff] %v8594_v14  ;;  %v8597_v61 = vpop.f32.mrb[47].mxu1  ;;  %v1755_v40 = vsel %vm21_vm0, %v8101_v49, %v1306_v36  ;;  %v3287_v34 = vor.u32 %v3286_v19, %v3282_v22  ;;  %v3639_v22 = vrot.slane %v8570_v9, 1 }
 0x254   :  { %4107 = vrot.lane.b32.xlu0 %v8583_v29, %s6162_s28  ;;  %10326 = vst [vmem:[#allocation6_spill] sm:$0xff] %v8597_v61 }
 0x255   :  { %2940 = vst.msk [vmem:[#allocation3 + $0x129] sm:$0xff] %vm21_vm0, %v2767_v6  ;;  %v1178_v0 = vpop.permute.xlu1 %1177 }
 0x256   :  { %v1370_v27 = vpop.permute.xlu0 %1369  ;;  %v1563_v58 = vsel %vm1501_vm3, %v1498_v21, %v1178_v0 }
 0x257   :  { %3789 = vrot.lane.b32.xlu1 %v8544_v11, %s6163_s6  ;;  %v1820_v37 = vsel %vm1501_vm3, %v1755_v40, %v1370_v27  ;;  %v3291_v27 = vrot.slane %v3289_v7, 1  ;;  %v3640_v40 = vrot.slane %v3110_v54, 1 }
 0x258   :  { %3981 = vrot.lane.b32.xlu0 %v8600_v56, %s6163_s6  ;;  %v2296_v53 = vpop.f32.mrb[48].mxu0 }
 0x259   :  { %v2297_v32 = vadd.f32 %v8528_v3, %v2296_v53  ;;  %v2298_v43 = vpop.f32.mrb[49].mxu0  ;;  %v1242_v12 = vpop.permute.xlu1 %1241  ;;  %v3016_v53 = vld [vmem:[#allocation3 + $0x118] sm:$0xff] }
 0x25a   :  { %v1434_v6 = vpop.permute.xlu0 %1433  ;;  %v2299_v14 = vpop.f32.mrb[50].mxu0  ;;  %v1658_v31 = vsel %vm1566_vm4, %v1563_v58, %v1242_v12  ;;  %v3296_v58 = vshll.u32 %v8615_v8, 16  ;;  %v8637_v43 = vsel %vm888_vm1, %v3639_v22, %v3640_v40 }
 0x25b   :  { %v2586_v61 = vadd.f32 %v8124_v10, %v2297_v32  ;;  %v2300_v49 = vadd.f32 %v8528_v3, %v2299_v14  ;;  %v2301_v36 = vpop.f32.mrb[51].mxu0  ;;  %v1914_v0 = vsel %vm1566_vm4, %v1820_v37, %v1434_v6  ;;  %3853 = vrot.lane.b32.xlu1 %v8555_v15, %s6161_s27  ;;  %v8626_v14 = vsel %vm439_vm2, %v3287_v34, %v3291_v27 }
 0x25c   :  { %4045 = vrot.lane.b32.xlu0 %v8570_v9, %s6161_s27  ;;  %2438 = vmatprep.mubr.bf16.mxu0 %v1914_v0  ;;  %v3298_v54 = vrot.slane %v3296_v58, 1  ;;  %v3018_v12 = vld [vmem:[#allocation3 + $0x128] sm:$0xff]  ;;  %v3294_v6 = vshrl.u32 %v8615_v8, 16  ;;  %v10327_v58 = vld [vmem:[#allocation12_spill] sm:$0xff] }
 0x25d   :  { %v2768_v21 = vmax.f32 %v2586_v61, 0.0  ;;  %v2589_v19 = vadd.f32 %v8135_v25, %v2300_v49  ;;  %2439 = vmatmul.mubr.bf16.gmra.mrb[120].mxu0 %v1658_v31  ;;  %v1116_v39 = vpop.permute.xlu1 %1115  ;;  %v3112_v25 = vpack.c.bf16 %v3016_v53, %v3016_v53 }
 0x25e   :  { %v1308_v10 = vpop.permute.xlu0 %1307  ;;  %v1500_v35 = vsel %vm21_vm0, %v7713_v46, %v1116_v39  ;;  %v3299_v39 = vor.u32 %v3298_v54, %v3294_v6  ;;  %v3019_v6 = vld [vmem:[#allocation3 + $0x130] sm:$0xff] }
 0x25f   :  { %2941 = vst.msk [vmem:[#allocation3 + $0x139] sm:$0xff] %vm21_vm0, %v2768_v21  ;;  %v2769_v32 = vmax.f32 %v2589_v19, 0.0  ;;  %3917 = vrot.lane.b32.xlu1 %v8533_v44, %s6162_s28  ;;  %v3301_v31 = vshll.u32 %v3112_v25, 16  ;;  %v1758_v34 = vsel %vm21_vm0, %v8166_v62, %v1308_v10  ;;  %v3017_v21 = vld [vmem:[#allocation3 + $0x120] sm:$0xff] }
 0x260   :  { %4109 = vrot.lane.b32.xlu0 %v8626_v14, %s6162_s28  ;;  %v8652_v40 = vpack.c.bf16 %v3018_v12, %v3017_v21 }
 0x261   :  { %2942 = vst.msk [vmem:[#allocation3 + $0x141] sm:$0xff] %vm21_vm0, %v2769_v32  ;;  %v1180_v61 = vpop.permute.xlu1 %1179 }
 0x262   :  { %v1372_v7 = vpop.permute.xlu0 %1371  ;;  %v1565_v49 = vsel %vm1501_vm3, %v1500_v35, %v1180_v61 }
 0x263   :  { %3791 = vrot.lane.b32.xlu1 %v8583_v29, %s6163_s6  ;;  %v1822_v19 = vsel %vm1501_vm3, %v1758_v34, %v1372_v7  ;;  %v3303_v7 = vrot.slane %v3301_v31, 1  ;;  %v8662_v34 = vpop.f32.mrb[48].mxu1  ;;  %v3308_v31 = vshll.u32 %v8652_v40, 16 }
 0x264   :  { %3983 = vrot.lane.b32.xlu0 %v8637_v43, %s6163_s6  ;;  %v2304_v37 = vpop.f32.mrb[52].mxu0 }
 0x265   :  { %v2305_v36 = vadd.f32 %v8528_v3, %v2304_v37  ;;  %v2306_v0 = vpop.f32.mrb[53].mxu0  ;;  %v1244_v27 = vpop.permute.xlu1 %1243  ;;  %v10328_v37 = vld [vmem:[#allocation17_spill] sm:$0xff] }
 0x266   :  { %v1436_v53 = vpop.permute.xlu0 %1435  ;;  %v2307_v22 = vpop.f32.mrb[54].mxu0  ;;  %v1661_v46 = vsel %vm1566_vm4, %v1565_v49, %v1244_v27  ;;  %v3642_v0 = vrot.slane %v8615_v8, 1  ;;  %v3643_v27 = vrot.slane %v3112_v25, 1 }
 0x267   :  { %v2594_v32 = vadd.f32 %v10327_v58, %v2305_v36  ;;  %v2308_v62 = vadd.f32 %v8528_v3, %v2307_v22  ;;  %v2309_v10 = vpop.f32.mrb[55].mxu0  ;;  %v1917_v61 = vsel %vm1566_vm4, %v1822_v19, %v1436_v53  ;;  %3855 = vrot.lane.b32.xlu1 %v8600_v56, %s6161_s27  ;;  %v8667_v36 = vsel %vm439_vm2, %v3299_v39, %v3303_v7  ;;  %v8676_v19 = vpop.f32.mrb[49].mxu1 }
 0x268   :  { %4047 = vrot.lane.b32.xlu0 %v8615_v8, %s6161_s27  ;;  %2446 = vmatprep.mubr.bf16.mxu0 %v1917_v61  ;;  %v8680_v53 = vpop.f32.mrb[50].mxu1  ;;  %v8686_v39 = vsel %vm888_vm1, %v3642_v0, %v3643_v27  ;;  %v3310_v58 = vrot.slane %v3308_v31, 1  ;;  %v3306_v61 = vshrl.u32 %v8652_v40, 16  ;;  %v3020_v27 = vld [vmem:[#allocation3 + $0x138] sm:$0xff] }
 0x269   :  { %v2770_v35 = vmax.f32 %v2594_v32, 0.0  ;;  %v2597_v54 = vadd.f32 %v10328_v37, %v2308_v62  ;;  %2447 = vmatmul.mubr.bf16.gmra.mrb[124].mxu0 %v1661_v46  ;;  %v3774_v12 = vpop.permute.xlu1 %3773  ;;  %v8683_v22 = vpop.f32.mrb[51].mxu1  ;;  %v3021_v32 = vld [vmem:[#allocation3 + $0x140] sm:$0xff] }
 0x26a   :  { %6044 = vmatprep.mubr.msk.bf16.mxu0 %vm21_vm0, %v8301_v45  ;;  %v3966_v49 = vpop.permute.xlu0 %3965  ;;  %v8678_v45 = vpack.c.bf16 %v3019_v6, %v3019_v6  ;;  %v4158_v62 = vsel %vm21_vm0, %v8168_v5, %v3774_v12 }
 0x26b   :  { %2943 = vst.msk [vmem:[#allocation3 + $0x151] sm:$0xff] %vm21_vm0, %v2770_v35  ;;  %v2771_v21 = vmax.f32 %v2597_v54, 0.0  ;;  %3919 = vrot.lane.b32.xlu1 %v8570_v9, %s6162_s28  ;;  %v4383_v35 = vsel %vm21_vm0, %v8304_v23, %v3966_v49  ;;  %v3311_v23 = vor.u32 %v3310_v58, %v3306_v61  ;;  %v8706_v49 = vpack.c.bf16 %v3021_v32, %v3020_v27  ;;  %v3022_v61 = vld [vmem:[#allocation3 + $0x148] sm:$0xff] }
 0x26c   :  { %4111 = vrot.lane.b32.xlu0 %v8667_v36, %s6162_s28  ;;  %v3313_v7 = vshll.u32 %v8678_v45, 16 }
 0x26d   :  { %2944 = vst.msk [vmem:[#allocation3 + $0x159] sm:$0xff] %vm21_vm0, %v2771_v21  ;;  %v3838_v25 = vpop.permute.xlu1 %3837 }
 0x26e   :  { %v4030_v46 = vpop.permute.xlu0 %4029  ;;  %v4222_v37 = vsel %vm1501_vm3, %v4158_v62, %v3838_v25 }
 0x26f   :  { %3793 = vrot.lane.b32.xlu1 %v8626_v14, %s6163_s6  ;;  %v4478_v5 = vsel %vm1501_vm3, %v4383_v35, %v4030_v46 }
 0x270   :  { %3985 = vrot.lane.b32.xlu0 %v8686_v39, %s6163_s6  ;;  %v2312_v10 = vpop.f32.mrb[56].mxu0 }
 0x271   :  { %v2313_v54 = vadd.f32 %v8528_v3, %v2312_v10  ;;  %v2314_v6 = vpop.f32.mrb[57].mxu0  ;;  %6045 = vmatmul.mubr.msk.bf16.vlgmr.msra.gmra.mrb[128].mxu0 %vm21_vm0, %v8349_v60  ;;  %v3902_v0 = vpop.permute.xlu1 %3901 }
 0x272   :  { %v2315_v12 = vpop.f32.mrb[58].mxu0  ;;  %6048 = vmatprep.mubr.msk.bf16.mxu0 %vm21_vm0, %v8386_v28  ;;  %v4286_v31 = vsel %vm1566_vm4, %v4222_v37, %v3902_v0  ;;  %v4094_v21 = vpop.permute.xlu0 %4093  ;;  %v3315_v28 = vrot.slane %v3313_v7, 1  ;;  %v3645_v37 = vrot.slane %v8652_v40, 1  ;;  %v3320_v6 = vshll.u32 %v8706_v49, 16  ;;  %v6154_v7 = vld [vmem:[%s10233_s3 + $0x80] sm:$0xff]  }
 0x273   :  { %v2316_v25 = vadd.f32 %v8528_v3, %v2315_v12  ;;  %v2602_v62 = vadd.f32 %v8246_v30, %v2313_v54  ;;  %v2317_v10 = vpop.f32.mrb[59].mxu0  ;;  %3857 = vrot.lane.b32.xlu1 %v8637_v43, %s6161_s27  ;;  %v4542_v60 = vsel %vm1566_vm4, %v4478_v5, %v4094_v21  ;;  %v3646_v54 = vrot.slane %v8678_v45, 1  ;;  %v6155_v45 = vld [vmem:[%s10233_s3 + $0x88] sm:$0xff]  }
 0x274   :  { %4049 = vrot.lane.b32.xlu0 %v8652_v40, %s6161_s27  ;;  %4916 = vmatprep.mubr.bf16.mxu1 %v4542_v60  ;;  %v8717_v30 = vsel %vm439_vm2, %v3311_v23, %v3315_v28  ;;  %v8730_v0 = vpack.c.bf16 %v3022_v61, %v3022_v61  ;;  %v3024_v21 = vld [vmem:[#allocation3 + $0x158] sm:$0xff] }
 0x275   :  { %v2772_v46 = vmax.f32 %v2602_v62, 0.0  ;;  %v2605_v58 = vadd.f32 %v8257_v16, %v2316_v25  ;;  %4917 = vmatmul.mubr.bf16.vlgmr.msra.gmra.mrb[64].mxu1 %v4286_v31  ;;  %v3776_v32 = vpop.permute.xlu1 %3775  ;;  %v8741_v12 = vsel %vm888_vm1, %v3645_v37, %v3646_v54  ;;  %v3322_v31 = vrot.slane %v3320_v6, 1 }
 0x276   :  { %v3968_v35 = vpop.permute.xlu0 %3967  ;;  %6110 = vmatpush3.bf16.msra.mxu1 %v6154_v7  ;;  %v3318_v25 = vshrl.u32 %v8706_v49, 16 }
 0x277   :  { %2945 = vst.msk [vmem:[#allocation3 + $0x169] sm:$0xff] %vm21_vm0, %v2772_v46  ;;  %v2773_v16 = vmax.f32 %v2605_v58, 0.0  ;;  %3921 = vrot.lane.b32.xlu1 %v8615_v8, %s6162_s28  ;;  %6109 = vmatprep.subr.bf16.mxu1 %v6155_v45  ;;  %v4386_v62 = vsel %vm21_vm0, %v8289_v59, %v3968_v35  ;;  %v3023_v58 = vld [vmem:[#allocation3 + $0x150] sm:$0xff] }
 0x278   :  { %4113 = vrot.lane.b32.xlu0 %v8717_v30, %s6162_s28  ;;  %v8757_v6 = vpack.c.bf16 %v3024_v21, %v3023_v58  ;;  %v8769_v21 = vpop.f32.mrb[52].mxu1 }
 0x279   :  { %2946 = vst.msk [vmem:[#allocation3 + $0x171] sm:$0xff] %vm21_vm0, %v2773_v16  ;;  %6049 = vmatmul.mubr.msk.bf16.gmra.mrb[132].mxu0 %vm21_vm0, %v8431_v26  ;;  %v3840_v27 = vpop.permute.xlu1 %3839  ;;  %v4160_v26 = vsel %vm21_vm0, %v8204_v38, %v3776_v32  ;;  %v3323_v32 = vor.u32 %v3322_v31, %v3318_v25  ;;  %v3025_v31 = vld [vmem:[#allocation3 + $0x160] sm:$0xff]  ;;  %v3648_v25 = vrot.slane %v8706_v49, 1 }
 0x27a   :  { %6052 = vmatprep.mubr.msk.bf16.mxu0 %vm21_vm0, %v8468_v24  ;;  %v4032_v5 = vpop.permute.xlu0 %4031  ;;  %6111 = vmatpush3.bf16.msra.mxu1 %v6155_v45  ;;  %v3325_v24 = vshll.u32 %v8730_v0, 16  ;;  %v4224_v10 = vsel %vm1501_vm3, %v4160_v26, %v3840_v27 }
 0x27b   :  { %3795 = vrot.lane.b32.xlu1 %v8667_v36, %s6163_s6  ;;  %v4480_v61 = vsel %vm1501_vm3, %v4386_v62, %v4032_v5  ;;  %v3118_v62 = vpack.c.bf16 %v3025_v31, %v3025_v31 }
 0x27c   :  { %3987 = vrot.lane.b32.xlu0 %v8741_v12, %s6163_s6  ;;  %v2320_v23 = vpop.f32.mrb[60].mxu0  ;;  %v3327_v45 = vrot.slane %v3325_v24, 1  ;;  %v3649_v24 = vrot.slane %v8730_v0, 1 }
 0x27d   :  { %v2321_v60 = vadd.f32 %v8528_v3, %v2320_v23  ;;  %v2322_v28 = vpop.f32.mrb[61].mxu0  ;;  %v3904_v46 = vpop.permute.xlu1 %3903 }
 0x27e   :  { %v2323_v37 = vpop.f32.mrb[62].mxu0  ;;  %v4096_v54 = vpop.permute.xlu0 %4095  ;;  %v4289_v38 = vsel %vm1566_vm4, %v4224_v10, %v3904_v46  ;;  %v8774_v23 = vsel %vm439_vm2, %v3323_v32, %v3327_v45  ;;  %v8792_v46 = vsel %vm888_vm1, %v3648_v25, %v3649_v24  ;;  %v3337_v32 = vshll.u32 %v3118_v62, 16 }
 0x27f   :  { %v2610_v7 = vadd.f32 %v8233_v17, %v2321_v60  ;;  %v2324_v59 = vadd.f32 %v8528_v3, %v2323_v37  ;;  %v2325_v35 = vpop.f32.mrb[63].mxu0  ;;  %3859 = vrot.lane.b32.xlu1 %v8686_v39, %s6161_s27  ;;  %v4545_v16 = vsel %vm1566_vm4, %v4480_v61, %v4096_v54 }
 0x280   :  { %4051 = vrot.lane.b32.xlu0 %v8706_v49, %s6161_s27  ;;  %4924 = vmatprep.mubr.bf16.mxu1 %v4545_v16  ;;  %v3027_v61 = vld [vmem:[#allocation3 + $0x170] sm:$0xff] }
 0x281   :  { %v2774_v27 = vmax.f32 %v2610_v7, 0.0  ;;  %v2613_v5 = vadd.f32 %v8253_v51, %v2324_v59  ;;  %4925 = vmatmul.mubr.bf16.gmra.mrb[68].mxu1 %v4289_v38  ;;  %6053 = vmatmul.mubr.msk.bf16.gmra.mrb[136].mxu0 %vm21_vm0, %v8513_v52  ;;  %v3778_v17 = vpop.permute.xlu1 %3777  ;;  %v3332_v51 = vshll.u32 %v8757_v6, 16  ;;  %v3330_v38 = vshrl.u32 %v8757_v6, 16 }
 0x282   :  { %6056 = vmatprep.mubr.msk.bf16.mxu0 %vm21_vm0, %v8555_v15  ;;  %v3970_v26 = vpop.permute.xlu0 %3969  ;;  %v8784_v15 = vpop.f32.mrb[53].mxu1  ;;  %v4162_v37 = vsel %vm21_vm0, %v8221_v20, %v3778_v17 }
 0x283   :  { %2947 = vst.msk [vmem:[#allocation3 + $0x181] sm:$0xff] %vm21_vm0, %v2774_v27  ;;  %v2775_v52 = vmax.f32 %v2613_v5, 0.0  ;;  %3923 = vrot.lane.b32.xlu1 %v8652_v40, %s6162_s28  ;;  %v8786_v10 = vpop.f32.mrb[54].mxu1  ;;  %v3334_v58 = vrot.slane %v3332_v51, 1  ;;  %v4389_v7 = vsel %vm21_vm0, %v8332_v13, %v3970_v26  ;;  %v3026_v27 = vld [vmem:[#allocation3 + $0x168] sm:$0xff] }
 0x284   :  { %4115 = vrot.lane.b32.xlu0 %v8774_v23, %s6162_s28  ;;  %v8789_v0 = vpop.f32.mrb[55].mxu1  ;;  %v8811_v26 = vpack.c.bf16 %v3027_v61, %v3026_v27 }
 0x285   :  { %2948 = vst.msk [vmem:[#allocation3 + $0x189] sm:$0xff] %vm21_vm0, %v2775_v52  ;;  %v3842_v60 = vpop.permute.xlu1 %3841  ;;  %v3335_v13 = vor.u32 %v3334_v58, %v3330_v38  ;;  %v3028_v58 = vld [vmem:[#allocation3 + $0x178] sm:$0xff] }
 0x286   :  { %v4034_v28 = vpop.permute.xlu0 %4033  ;;  %v4226_v59 = vsel %vm1501_vm3, %v4162_v37, %v3842_v60  ;;  %10329 = vst [vmem:[#allocation10_spill] sm:$0xff] %v8811_v26  ;;  %v3651_v37 = vrot.slane %v8757_v6, 1  ;;  %v3344_v38 = vshll.u32 %v8811_v26, 16  ;;  %v3342_v27 = vshrl.u32 %v8811_v26, 16 }
 0x287   :  { %3797 = vrot.lane.b32.xlu1 %v8717_v30, %s6163_s6  ;;  %v4482_v5 = vsel %vm1501_vm3, %v4389_v7, %v4034_v28 }
 0x288   :  { %3989 = vrot.lane.b32.xlu0 %v8792_v46, %s6163_s6  ;;  %v2328_v54 = vpop.f32.mrb[64].mxu0 }
 0x289   :  { %v2329_v35 = vadd.f32 %v8528_v3, %v2328_v54  ;;  %v2330_v16 = vpop.f32.mrb[65].mxu0  ;;  %6057 = vmatmul.mubr.msk.bf16.gmra.mrb[140].mxu0 %vm21_vm0, %v8600_v56  ;;  %v3906_v45 = vpop.permute.xlu1 %3905  ;;  %v3652_v54 = vrot.slane %v3118_v62, 1 }
 0x28a   :  { %v2331_v20 = vpop.f32.mrb[66].mxu0  ;;  %6060 = vmatprep.mubr.msk.bf16.mxu0 %vm21_vm0, %v8637_v43  ;;  %v4098_v17 = vpop.permute.xlu0 %4097  ;;  %v4292_v31 = vsel %vm1566_vm4, %v4226_v59, %v3906_v45  ;;  %v3339_v43 = vrot.slane %v3337_v32, 1 }
 0x28b   :  { %v2332_v25 = vadd.f32 %v8528_v3, %v2331_v20  ;;  %v2618_v24 = vadd.f32 %v8341_v48, %v2329_v35  ;;  %v2333_v51 = vpop.f32.mrb[67].mxu0  ;;  %3861 = vrot.lane.b32.xlu1 %v8741_v12, %s6161_s27  ;;  %v4548_v56 = vsel %vm1566_vm4, %v4482_v5, %v4098_v17  ;;  %v8839_v59 = vsel %vm888_vm1, %v3651_v37, %v3652_v54 }
 0x28c   :  { %4053 = vrot.lane.b32.xlu0 %v8757_v6, %s6161_s27  ;;  %4932 = vmatprep.mubr.bf16.mxu1 %v4548_v56  ;;  %v8822_v48 = vsel %vm439_vm2, %v3335_v13, %v3339_v43  ;;  %v3346_v35 = vrot.slane %v3344_v38, 1  ;;  %v3030_v16 = vld [vmem:[#allocation3 + $0x188] sm:$0xff]  ;;  %v3032_v38 = vld [vmem:[#allocation3 + $0x198] sm:$0xff] }
 0x28d   :  { %v2776_v52 = vmax.f32 %v2618_v24, 0.0  ;;  %v2621_v60 = vadd.f32 %v8346_v50, %v2332_v25  ;;  %4933 = vmatmul.mubr.bf16.gmra.mrb[72].mxu1 %v4292_v31  ;;  %v3780_v28 = vpop.permute.xlu1 %3779  ;;  %v8831_v50 = vpack.c.bf16 %v3028_v58, %v3028_v58  ;;  %v3029_v25 = vld [vmem:[#allocation3 + $0x180] sm:$0xff] }
 0x28e   :  { %v3972_v61 = vpop.permute.xlu0 %3971  ;;  %v4164_v45 = vsel %vm21_vm0, %v8277_v42, %v3780_v28  ;;  %v3347_v43 = vor.u32 %v3346_v35, %v3342_v27  ;;  %v10330_v28 = vld [vmem:[#allocation11_spill] sm:$0xff]  ;;  %v8867_v27 = vpop.f32.mrb[56].mxu1 }
 0x28f   :  { %2949 = vst.msk [vmem:[#allocation3 + $0x1c9] sm:$0xff] %vm21_vm0, %v2776_v52  ;;  %v2777_v7 = vmax.f32 %v2621_v60, 0.0  ;;  %3925 = vrot.lane.b32.xlu1 %v8706_v49, %s6162_s28  ;;  %v4392_v5 = vsel %vm21_vm0, %v8375_v55, %v3972_v61  ;;  %v3031_v52 = vld [vmem:[#allocation3 + $0x190] sm:$0xff]  ;;  %v8855_v60 = vpack.c.bf16 %v3030_v16, %v3029_v25  ;;  %10332 = vst [vmem:[#allocation12_spill] sm:$0xff] %v8867_v27  ;;  %v8884_v25 = vpop.f32.mrb[57].mxu1  ;;  %v3037_v27 = vld [vmem:[#allocation3 + $0x1c0] sm:$0xff] }
 0x290   :  { %4117 = vrot.lane.b32.xlu0 %v8822_v48, %s6162_s28  ;;  %10333 = vst [vmem:[#allocation17_spill] sm:$0xff] %v8884_v25 }
 0x291   :  { %2950 = vst.msk [vmem:[#allocation3 + $0x1d1] sm:$0xff] %vm21_vm0, %v2777_v7  ;;  %6061 = vmatmul.mubr.msk.bf16.gmra.mrb[144].mxu0 %vm21_vm0, %v8686_v39  ;;  %v3844_v32 = vpop.permute.xlu1 %3843  ;;  %v3033_v7 = vld [vmem:[#allocation3 + $0x1a0] sm:$0xff] }
 0x292   :  { %6064 = vmatprep.mubr.msk.bf16.mxu0 %vm21_vm0, %v8741_v12  ;;  %v4036_v62 = vpop.permute.xlu0 %4035  ;;  %v3349_v12 = vshll.u32 %v8831_v50, 16  ;;  %v4228_v20 = vsel %vm1501_vm3, %v4164_v45, %v3844_v32  ;;  %v3122_v45 = vpack.c.bf16 %v3031_v52, %v3031_v52 }
 0x293   :  { %3799 = vrot.lane.b32.xlu1 %v8774_v23, %s6163_s6  ;;  %v4484_v24 = vsel %vm1501_vm3, %v4392_v5, %v4036_v62  ;;  %v10331_v62 = vld [vmem:[#allocation16_spill] sm:$0xff] }
 0x294   :  { %3991 = vrot.lane.b32.xlu0 %v8839_v59, %s6163_s6  ;;  %v2336_v39 = vpop.f32.mrb[68].mxu0  ;;  %v3351_v54 = vrot.slane %v3349_v12, 1 }
 0x295   :  { %v2337_v17 = vadd.f32 %v8528_v3, %v2336_v39  ;;  %v2338_v31 = vpop.f32.mrb[69].mxu0  ;;  %v3908_v13 = vpop.permute.xlu1 %3907  ;;  %v3034_v39 = vld [vmem:[#allocation3 + $0x1a8] sm:$0xff] }
 0x296   :  { %v2339_v51 = vpop.f32.mrb[70].mxu0  ;;  %v4100_v56 = vpop.permute.xlu0 %4099  ;;  %v4295_v42 = vsel %vm1566_vm4, %v4228_v20, %v3908_v13  ;;  %v8872_v12 = vsel %vm439_vm2, %v3347_v43, %v3351_v54  ;;  %v3654_v20 = vrot.slane %v8811_v26, 1  ;;  %v3708_v31 = vshll.u32 %v8855_v60, 16 }
 0x297   :  { %v2626_v58 = vadd.f32 %v10330_v28, %v2337_v17  ;;  %v2340_v55 = vadd.f32 %v8528_v3, %v2339_v51  ;;  %v2341_v61 = vpop.f32.mrb[71].mxu0  ;;  %3863 = vrot.lane.b32.xlu1 %v8792_v46, %s6161_s27  ;;  %v4551_v37 = vsel %vm1566_vm4, %v4484_v24, %v4100_v56  ;;  %v3655_v17 = vrot.slane %v8831_v50, 1  ;;  %v8888_v51 = vpop.f32.mrb[58].mxu1 }
 0x298   :  { %4055 = vrot.lane.b32.xlu0 %v8811_v26, %s6161_s27  ;;  %4940 = vmatprep.mubr.bf16.mxu1 %v4551_v37  ;;  %v8882_v13 = vpack.c.bf16 %v3033_v7, %v3032_v38  ;;  %v8886_v24 = vpack.c.bf16 %v3034_v39, %v3034_v39  ;;  %10334 = vst [vmem:[#allocation11_spill] sm:$0xff] %v8888_v51  ;;  %v3733_v56 = vrot.slane %v8855_v60, 1  ;;  %v8892_v43 = vpop.f32.mrb[59].mxu1  ;;  %v3706_v54 = vshrl.u32 %v8855_v60, 16 }
 0x299   :  { %v2778_v32 = vmax.f32 %v2626_v58, 0.0  ;;  %v2629_v35 = vadd.f32 %v10331_v62, %v2340_v55  ;;  %4941 = vmatmul.mubr.bf16.gmra.mrb[76].mxu1 %v4295_v42  ;;  %6065 = vmatmul.mubr.msk.bf16.gmra.mrb[148].mxu0 %vm21_vm0, %v8792_v46  ;;  %v3782_v16 = vpop.permute.xlu1 %3781  ;;  %v3734_v42 = vrot.slane %v3122_v45, 1  ;;  %10335 = vst [vmem:[#allocation16_spill] sm:$0xff] %v8892_v43  ;;  %v8895_v28 = vsel %vm888_vm1, %v3654_v20, %v3655_v17  ;;  %v3036_v17 = vld [vmem:[#allocation3 + $0x1b8] sm:$0xff]  ;;  %v10340_v43 = vld [vmem:[#allocation18_spill] sm:$0xff] }
 0x29a   :  { %6068 = vmatprep.mubr.msk.bf16.mxu0 %vm21_vm0, %v8839_v59  ;;  %v3974_v5 = vpop.permute.xlu0 %3973  ;;  %v3710_v58 = vrot.slane %v3708_v31, 1  ;;  %v3767_v55 = vrot.slane %v8882_v13, 1  ;;  %v4166_v61 = vsel %vm21_vm0, %v8319_v47, %v3782_v16  ;;  %v3713_v38 = vshll.u32 %v3122_v45, 16  ;;  %v3035_v16 = vld [vmem:[#allocation3 + $0x1b0] sm:$0xff] }
 0x29b   :  { %2951 = vst.msk [vmem:[#allocation3 + $0x1e1] sm:$0xff] %vm21_vm0, %v2778_v32  ;;  %v2779_v46 = vmax.f32 %v2629_v35, 0.0  ;;  %3927 = vrot.lane.b32.xlu1 %v8757_v6, %s6162_s28  ;;  %v3768_v7 = vrot.slane %v8886_v24, 1  ;;  %v4395_v32 = vsel %vm21_vm0, %v8414_v2, %v3974_v5  ;;  %v3735_v20 = vsel %vm888_vm1, %v3733_v56, %v3734_v42 }
 0x29c   :  { %4119 = vrot.lane.b32.xlu0 %v8872_v12, %s6162_s28  ;;  %v3711_v5 = vor.u32 %v3710_v58, %v3706_v54  ;;  %v3715_v42 = vrot.slane %v3713_v38, 1  ;;  %v8924_v54 = vpack.c.bf16 %v3036_v17, %v3035_v16 }
 0x29d   :  { %2952 = vst.msk [vmem:[#allocation3 + $0x1e9] sm:$0xff] %vm21_vm0, %v2779_v46  ;;  %v3846_v50 = vpop.permute.xlu1 %3845  ;;  %v3769_v38 = vsel %vm888_vm1, %v3767_v55, %v3768_v7 }
 0x29e   :  { %v4038_v52 = vpop.permute.xlu0 %4037  ;;  %v4230_v62 = vsel %vm1501_vm3, %v4166_v61, %v3846_v50  ;;  %v3742_v50 = vshll.u32 %v8882_v13, 16  ;;  %v3356_v55 = vshll.u32 %v8924_v54, 16 }
 0x29f   :  { %3801 = vrot.lane.b32.xlu1 %v8822_v48, %s6163_s6  ;;  %v4486_v45 = vsel %vm1501_vm3, %v4395_v32, %v4038_v52 }
 0x2a0   :  { %3993 = vrot.lane.b32.xlu0 %v8895_v28, %s6163_s6  ;;  %v2344_v37 = vpop.f32.mrb[72].mxu0  ;;  %v3744_v16 = vrot.slane %v3742_v50, 1 }
 0x2a1   :  { %v2345_v35 = vadd.f32 %v8528_v3, %v2344_v37  ;;  %v2346_v39 = vpop.f32.mrb[73].mxu0  ;;  %6069 = vmatmul.mubr.msk.bf16.gmra.mrb[152].mxu0 %vm21_vm0, %v8895_v28  ;;  %v3910_v47 = vpop.permute.xlu1 %3909  ;;  %v10336_v37 = vld [vmem:[#allocation13_spill] sm:$0xff] }
 0x2a2   :  { %v2347_v31 = vpop.f32.mrb[74].mxu0  ;;  %6072 = vmatprep.mubr.msk.bf16.mxu0 %vm21_vm0, %v3735_v20  ;;  %v4102_v46 = vpop.permute.xlu0 %4101  ;;  %v4298_v2 = vsel %vm1566_vm4, %v4230_v62, %v3910_v47  ;;  %v3041_v52 = vld [vmem:[#allocation3 + $0x1e0] sm:$0xff] }
 0x2a3   :  { %v2348_v61 = vadd.f32 %v8528_v3, %v2347_v31  ;;  %v2634_v39 = vadd.f32 %v10336_v37, %v2345_v35  ;;  %v2349_v51 = vpop.f32.mrb[75].mxu0  ;;  %3865 = vrot.lane.b32.xlu1 %v8839_v59, %s6161_s27  ;;  %v4554_v56 = vsel %vm1566_vm4, %v4486_v45, %v4102_v46  ;;  %v10337_v47 = vld [vmem:[#allocation4_spill] sm:$0xff]  ;;  %v8932_v45 = vsel %vm439_vm2, %v3711_v5, %v3715_v42  ;;  %v3039_v42 = vld [vmem:[#allocation3 + $0x1d0] sm:$0xff] }
 0x2a4   :  { %4057 = vrot.lane.b32.xlu0 %v8855_v60, %s6161_s27  ;;  %4948 = vmatprep.mubr.bf16.mxu1 %v4554_v56  ;;  %v3042_v32 = vld [vmem:[#allocation3 + $0x1e8] sm:$0xff]  ;;  %v3043_v58 = vld [vmem:[#allocation3 + $0x1f0] sm:$0xff]  ;;  %10338 = vst [vmem:[#allocation13_spill] sm:$0xff] %v8932_v45  ;;  %v3740_v46 = vshrl.u32 %v8882_v13, 16  ;;  %v3747_v5 = vshll.u32 %v8886_v24, 16 }
 0x2a5   :  { %v2780_v62 = vmax.f32 %v2634_v39, 0.0  ;;  %v2637_v31 = vadd.f32 %v10337_v47, %v2348_v61  ;;  %4949 = vmatmul.mubr.bf16.gmra.mrb[80].mxu1 %v4298_v2  ;;  %v3784_v51 = vpop.permute.xlu1 %3783  ;;  %v8927_v35 = vpack.c.bf16 %v3042_v32, %v3041_v52  ;;  %v8929_v37 = vpack.c.bf16 %v3043_v58, %v3043_v58  ;;  %v3040_v52 = vld [vmem:[#allocation3 + $0x1d8] sm:$0xff]  ;;  %v10339_v32 = vld [vmem:[#allocation14_spill] sm:$0xff] }
 0x2a6   :  { %v3976_v59 = vpop.permute.xlu0 %3975  ;;  %v8944_v39 = vpack.c.bf16 %v3037_v27, %v3037_v27  ;;  %v3745_v27 = vor.u32 %v3744_v16, %v3740_v46  ;;  %v3749_v24 = vrot.slane %v3747_v5, 1  ;;  %v4168_v58 = vsel %vm21_vm0, %v10339_v32, %v3784_v51 }
 0x2a7   :  { %2953 = vst.msk [vmem:[#allocation3 + $0x1f9] sm:$0xff] %vm21_vm0, %v2780_v62  ;;  %v2781_v17 = vmax.f32 %v2637_v31, 0.0  ;;  %3929 = vrot.lane.b32.xlu1 %v8811_v26, %s6162_s28  ;;  %v3663_v2 = vrot.slane %v8927_v35, 1  ;;  %v3664_v61 = vrot.slane %v8929_v37, 1  ;;  %v3354_v47 = vshrl.u32 %v8924_v54, 16 }
 0x2a8   :  { %4121 = vrot.lane.b32.xlu0 %v8932_v45, %s6162_s28  ;;  %v3358_v31 = vrot.slane %v3356_v55, 1  ;;  %v8969_v55 = vpack.c.bf16 %v3040_v52, %v3040_v52 }
 0x2a9   :  { %2954 = vst.msk [vmem:[#allocation3 + $0x201] sm:$0xff] %vm21_vm0, %v2781_v17  ;;  %6073 = vmatmul.mubr.msk.bf16.gmra.mrb[156].mxu0 %vm21_vm0, %v3769_v38  ;;  %v8950_v7 = vsel %vm888_vm1, %v3663_v2, %v3664_v61  ;;  %v3848_v50 = vpop.permute.xlu1 %3847  ;;  %v3361_v38 = vshll.u32 %v8944_v39, 16  ;;  %v4398_v17 = vsel %vm21_vm0, %v8457_v63, %v3976_v59  ;;  %v3038_v61 = vld [vmem:[#allocation3 + $0x1c8] sm:$0xff] }
 0x2aa   :  { %6076 = vmatprep.mubr.msk.bf16.mxu0 %vm21_vm0, %v8950_v7  ;;  %v4040_v56 = vpop.permute.xlu0 %4039  ;;  %v8967_v26 = vpack.c.bf16 %v3039_v42, %v3038_v61  ;;  %v3657_v61 = vrot.slane %v8924_v54, 1 }
 0x2ab   :  { %3803 = vrot.lane.b32.xlu1 %v8872_v12, %s6163_s6  ;;  %v4488_v5 = vsel %vm1501_vm3, %v4398_v17, %v4040_v56  ;;  %v3750_v56 = vsel %vm439_vm2, %v3745_v27, %v3749_v24  ;;  %v3363_v17 = vrot.slane %v3361_v38, 1  ;;  %v3380_v27 = vshll.u32 %v8927_v35, 16 }
 0x2ac   :  { %3995 = vrot.lane.b32.xlu0 %v3735_v20, %s6163_s6  ;;  %v2352_v62 = vpop.f32.mrb[76].mxu0  ;;  %v4232_v20 = vsel %vm1501_vm3, %v4168_v58, %v3848_v50 }
 0x2ad   :  { %v2353_v2 = vadd.f32 %v8528_v3, %v2352_v62  ;;  %v2354_v46 = vpop.f32.mrb[77].mxu0  ;;  %v3912_v16 = vpop.permute.xlu1 %3911  ;;  %v3359_v62 = vor.u32 %v3358_v31, %v3354_v47 }
 0x2ae   :  { %v2355_v45 = vpop.f32.mrb[78].mxu0  ;;  %v4104_v51 = vpop.permute.xlu0 %4103  ;;  %v4301_v32 = vsel %vm1566_vm4, %v4232_v20, %v3912_v16  ;;  %v3044_v42 = vld [vmem:[#allocation3 + $0x1f8] sm:$0xff]  ;;  %v3660_v46 = vrot.slane %v8967_v26, 1  ;;  %v3661_v16 = vrot.slane %v8969_v55, 1 }
 0x2af   :  { %v2642_v25 = vadd.f32 %v10340_v43, %v2353_v2  ;;  %v2356_v63 = vadd.f32 %v8528_v3, %v2355_v45  ;;  %v2357_v59 = vpop.f32.mrb[79].mxu0  ;;  %3867 = vrot.lane.b32.xlu1 %v8895_v28, %s6161_s27  ;;  %v4557_v50 = vsel %vm1566_vm4, %v4488_v5, %v4104_v51  ;;  %v10341_v20 = vld [vmem:[#allocation15_spill] sm:$0xff]  ;;  %v3364_v38 = vsel %vm439_vm2, %v3359_v62, %v3363_v17 }
 0x2b0   :  { %4059 = vrot.lane.b32.xlu0 %v8882_v13, %s6161_s27  ;;  %4956 = vmatprep.mubr.bf16.mxu1 %v4557_v50  ;;  %v3045_v58 = vld [vmem:[#allocation3 + $0x200] sm:$0xff]  ;;  %v3046_v52 = vld [vmem:[#allocation3 + $0x208] sm:$0xff]  ;;  %v8993_v31 = vpop.f32.mrb[60].mxu1  ;;  %v3658_v5 = vrot.slane %v8944_v39, 1  ;;  %v9009_v50 = vsel %vm888_vm1, %v3660_v46, %v3661_v16  ;;  %v3368_v39 = vshll.u32 %v8967_v26, 16  ;;  %v3378_v17 = vshrl.u32 %v8927_v35, 16 }
 0x2b1   :  { %v2782_v43 = vmax.f32 %v2642_v25, 0.0  ;;  %v2645_v3 = vadd.f32 %v10341_v20, %v2356_v63  ;;  %4957 = vmatmul.mubr.bf16.gmra.mrb[84].mxu1 %v4301_v32  ;;  %v3786_v45 = vpop.permute.xlu1 %3785  ;;  %v8980_v2 = vpack.c.bf16 %v3045_v58, %v3044_v42  ;;  %v8982_v13 = vpack.c.bf16 %v3046_v52, %v3046_v52  ;;  %v8998_v51 = vpop.f32.mrb[61].mxu1  ;;  %v9028_v46 = vld [vmem:[%s10234_s2] ss:$0 sm:$0xff] }
 0x2b2   :  { %v3978_v28 = vpop.permute.xlu0 %3977  ;;  %v9004_v63 = vpop.f32.mrb[62].mxu1  ;;  %v4170_v58 = vsel %vm21_vm0, %v8401_v4, %v3786_v45  ;;  %v3659_v62 = vsel %vm888_vm1, %v3657_v61, %v3658_v5 }
 0x2b3   :  { %2955 = vst.msk [vmem:[#allocation3 + $0x211] sm:$0xff] %vm21_vm0, %v2782_v43  ;;  %v2783_v24 = vmax.f32 %v2645_v3, 0.0  ;;  %3931 = vrot.lane.b32.xlu1 %v8855_v60, %s6162_s28  ;;  %v3666_v25 = vrot.slane %v8980_v2, 1  ;;  %v3667_v47 = vrot.slane %v8982_v13, 1  ;;  %v9012_v42 = vpop.f32.mrb[63].mxu1  ;;  %v3385_v43 = vshll.u32 %v8929_v37, 16 }
 0x2b4   :  { %4123 = vrot.lane.b32.xlu0 %v3750_v56, %s6162_s28  ;;  %v3382_v56 = vrot.slane %v3380_v27, 1  ;;  %v4401_v20 = vsel %vm21_vm0, %v8496_v57, %v3978_v28 }
 0x2b5   :  { %2956 = vst.msk [vmem:[#allocation3 + $0x219] sm:$0xff] %vm21_vm0, %v2783_v24  ;;  %v9002_v32 = vsel %vm888_vm1, %v3666_v25, %v3667_v47  ;;  %v3850_v60 = vpop.permute.xlu1 %3849 }
 0x2b6   :  { %6077 = vmatmul.mubr.msk.bf16.gmra.mrb[160].mxu0 %vm21_vm0, %v9002_v32  ;;  %v4042_v59 = vpop.permute.xlu0 %4041  ;;  %v4234_v3 = vsel %vm1501_vm3, %v4170_v58, %v3850_v60  ;;  %v3383_v47 = vor.u32 %v3382_v56, %v3378_v17  ;;  %v3387_v60 = vrot.slane %v3385_v43, 1  ;;  %v3366_v56 = vshrl.u32 %v8967_v26, 16 }
 0x2b7   :  { %3805 = vrot.lane.b32.xlu1 %v3364_v38, %s6163_s6  ;;  %v4490_v27 = vsel %vm1501_vm3, %v4401_v20, %v4042_v59  ;;  %v3370_v38 = vrot.slane %v3368_v39, 1  ;;  %v3373_v39 = vshll.u32 %v8969_v55, 16  ;;  %v10342_v20 = vld [vmem:[#allocation5_spill] sm:$0xff] }
 0x2b8   :  { %3997 = vrot.lane.b32.xlu0 %v9009_v50, %s6163_s6  ;;  %v2360_v52 = vpop.f32.mrb[80].mxu0 }
 0x2b9   :  { %v2361_v16 = vadd.f32 %v9028_v46, %v2360_v52  ;;  %v2362_v4 = vpop.f32.mrb[81].mxu0  ;;  %v3914_v45 = vpop.permute.xlu1 %3913  ;;  %v3371_v43 = vor.u32 %v3370_v38, %v3366_v56 }
 0x2ba   :  { %v2363_v24 = vpop.f32.mrb[82].mxu0  ;;  %v4106_v25 = vpop.permute.xlu0 %4105  ;;  %v4304_v37 = vsel %vm1566_vm4, %v4234_v3, %v3914_v45  ;;  %v3047_v59 = vld [vmem:[#allocation3 + $0x210] sm:$0xff]  ;;  %v9047_v45 = vsel %vm439_vm2, %v3383_v47, %v3387_v60 }
 0x2bb   :  { %v2364_v57 = vadd.f32 %v9028_v46, %v2363_v24  ;;  %v2650_v28 = vadd.f32 %v8505_v33, %v2361_v16  ;;  %v2365_v61 = vpop.f32.mrb[83].mxu0  ;;  %3869 = vrot.lane.b32.xlu1 %v3659_v62, %s6161_s27  ;;  %v4560_v5 = vsel %vm1566_vm4, %v4490_v27, %v4106_v25  ;;  %v3392_v27 = vshll.u32 %v8980_v2, 16 }
 0x2bc   :  { %4061 = vrot.lane.b32.xlu0 %v8927_v35, %s6161_s27  ;;  %4964 = vmatprep.mubr.bf16.mxu1 %v4560_v5  ;;  %v3048_v58 = vld [vmem:[#allocation3 + $0x218] sm:$0xff]  ;;  %v3049_v52 = vld [vmem:[#allocation3 + $0x220] sm:$0xff] }
 0x2bd   :  { %v2784_v17 = vmax.f32 %v2650_v28, 0.0  ;;  %v2653_v33 = vadd.f32 %v10342_v20, %v2364_v57  ;;  %4965 = vmatmul.mubr.bf16.gmra.mrb[88].mxu1 %v4304_v37  ;;  %v3788_v3 = vpop.permute.xlu1 %3787  ;;  %v9042_v16 = vpack.c.bf16 %v3048_v58, %v3047_v59  ;;  %v9044_v4 = vpack.c.bf16 %v3049_v52, %v3049_v52 }
 0x2be   :  { %v3980_v62 = vpop.permute.xlu0 %3979  ;;  %v3375_v37 = vrot.slane %v3373_v39, 1  ;;  %v3394_v61 = vrot.slane %v3392_v27, 1  ;;  %v4172_v5 = vsel %vm21_vm0, %v8446_v18, %v3788_v3  ;;  %v3390_v59 = vshrl.u32 %v8980_v2, 16 }
 0x2bf   :  { %2957 = vst.msk [vmem:[#allocation3 + $0x229] sm:$0xff] %vm21_vm0, %v2784_v17  ;;  %v2785_v24 = vmax.f32 %v2653_v33, 0.0  ;;  %3933 = vrot.lane.b32.xlu1 %v8967_v26, %s6162_s28  ;;  %v3669_v55 = vrot.slane %v9042_v16, 1  ;;  %v3670_v25 = vrot.slane %v9044_v4, 1  ;;  %v3397_v58 = vshll.u32 %v8982_v13, 16 }
 0x2c0   :  { %4125 = vrot.lane.b32.xlu0 %v9047_v45, %s6162_s28  ;;  %v9064_v28 = vsel %vm439_vm2, %v3371_v43, %v3375_v37  ;;  %v4404_v52 = vsel %vm21_vm0, %v8544_v11, %v3980_v62  ;;  %v3395_v3 = vor.u32 %v3394_v61, %v3390_v59  ;;  %v10344_v61 = vld [vmem:[#allocation19_spill] sm:$0xff] }
 0x2c1   :  { %2958 = vst.msk [vmem:[#allocation3 + $0x231] sm:$0xff] %vm21_vm0, %v2785_v24  ;;  %v9059_v47 = vsel %vm888_vm1, %v3669_v55, %v3670_v25  ;;  %v3852_v38 = vpop.permute.xlu1 %3851  ;;  %v10343_v24 = vld [vmem:[#allocation8_spill] sm:$0xff]  ;;  %v3399_v62 = vrot.slane %v3397_v58, 1 }
 0x2c2   :  { %6080 = vmatprep.mubr.msk.bf16.mxu0 %vm21_vm0, %v9059_v47  ;;  %v4044_v57 = vpop.permute.xlu0 %4043  ;;  %v4236_v56 = vsel %vm1501_vm3, %v4172_v5, %v3852_v38 }
 0x2c3   :  { %3807 = vrot.lane.b32.xlu1 %v9064_v28, %s6163_s6  ;;  %v4492_v33 = vsel %vm1501_vm3, %v4404_v52, %v4044_v57 }
 0x2c4   :  { %3999 = vrot.lane.b32.xlu0 %v8950_v7, %s6163_s6  ;;  %v2368_v60 = vpop.f32.mrb[84].mxu0 }
 0x2c5   :  { %v2369_v39 = vadd.f32 %v9028_v46, %v2368_v60  ;;  %v2370_v17 = vpop.f32.mrb[85].mxu0  ;;  %v3916_v20 = vpop.permute.xlu1 %3915 }
 0x2c6   :  { %v2371_v43 = vpop.f32.mrb[86].mxu0  ;;  %v4108_v27 = vpop.permute.xlu0 %4107  ;;  %v4307_v18 = vsel %vm1566_vm4, %v4236_v56, %v3916_v20  ;;  %v3050_v37 = vld [vmem:[#allocation3 + $0x228] sm:$0xff]  ;;  %v9093_v17 = vsel %vm439_vm2, %v3395_v3, %v3399_v62 }
 0x2c7   :  { %v2658_v55 = vadd.f32 %v10343_v24, %v2369_v39  ;;  %v2372_v13 = vadd.f32 %v9028_v46, %v2371_v43  ;;  %v2373_v25 = vpop.f32.mrb[87].mxu0  ;;  %3871 = vrot.lane.b32.xlu1 %v9009_v50, %s6161_s27  ;;  %v4563_v11 = vsel %vm1566_vm4, %v4492_v33, %v4108_v27  ;;  %v3404_v50 = vshll.u32 %v9042_v16, 16 }
 0x2c8   :  { %4063 = vrot.lane.b32.xlu0 %v8980_v2, %s6161_s27  ;;  %4972 = vmatprep.mubr.bf16.mxu1 %v4563_v11  ;;  %v3051_v38 = vld [vmem:[#allocation3 + $0x230] sm:$0xff]  ;;  %v3052_v57 = vld [vmem:[#allocation3 + $0x238] sm:$0xff]  ;;  %v3409_v25 = vshll.u32 %v9044_v4, 16 }
 0x2c9   :  { %v2786_v5 = vmax.f32 %v2658_v55, 0.0  ;;  %v2661_v60 = vadd.f32 %v10344_v61, %v2372_v13  ;;  %4973 = vmatmul.mubr.bf16.gmra.mrb[92].mxu1 %v4307_v18  ;;  %v3790_v59 = vpop.permute.xlu1 %3789  ;;  %v9088_v52 = vpack.c.bf16 %v3051_v38, %v3050_v37  ;;  %v9090_v56 = vpack.c.bf16 %v3052_v57, %v3052_v57 }
 0x2ca   :  { %v3982_v39 = vpop.permute.xlu0 %3981  ;;  %v3406_v3 = vrot.slane %v3404_v50, 1  ;;  %v4174_v24 = vsel %vm21_vm0, %v8483_v1, %v3790_v59  ;;  %v3402_v13 = vshrl.u32 %v9042_v16, 16 }
 0x2cb   :  { %2959 = vst.msk [vmem:[#allocation3 + $0x241] sm:$0xff] %vm21_vm0, %v2786_v5  ;;  %v2787_v58 = vmax.f32 %v2661_v60, 0.0  ;;  %3935 = vrot.lane.b32.xlu1 %v8927_v35, %s6162_s28  ;;  %v3672_v20 = vrot.slane %v9088_v52, 1  ;;  %v3673_v33 = vrot.slane %v9090_v56, 1  ;;  %v4407_v11 = vsel %vm21_vm0, %v8583_v29, %v3982_v39 }
 0x2cc   :  { %4127 = vrot.lane.b32.xlu0 %v9093_v17, %s6162_s28  ;;  %v3407_v59 = vor.u32 %v3406_v3, %v3402_v13  ;;  %v3411_v39 = vrot.slane %v3409_v25, 1  ;;  %v10345_v3 = vld [vmem:[#allocation6_spill] sm:$0xff] }
 0x2cd   :  { %2960 = vst.msk [vmem:[#allocation3 + $0x249] sm:$0xff] %vm21_vm0, %v2787_v58  ;;  %v9105_v43 = vsel %vm888_vm1, %v3672_v20, %v3673_v33  ;;  %v3854_v27 = vpop.permute.xlu1 %3853 }
 0x2ce   :  { %6081 = vmatmul.mubr.msk.bf16.gmra.mrb[164].mxu0 %vm21_vm0, %v9105_v43  ;;  %v4046_v18 = vpop.permute.xlu0 %4045  ;;  %v4238_v62 = vsel %vm1501_vm3, %v4174_v24, %v3854_v27 }
 0x2cf   :  { %3809 = vrot.lane.b32.xlu1 %v9047_v45, %s6163_s6  ;;  %v4494_v5 = vsel %vm1501_vm3, %v4407_v11, %v4046_v18 }
 0x2d0   :  { %4001 = vrot.lane.b32.xlu0 %v9002_v32, %s6163_s6  ;;  %v2376_v55 = vpop.f32.mrb[88].mxu0 }
 0x2d1   :  { %v2377_v37 = vadd.f32 %v9028_v46, %v2376_v55  ;;  %v2378_v38 = vpop.f32.mrb[89].mxu0  ;;  %v3918_v57 = vpop.permute.xlu1 %3917 }
 0x2d2   :  { %v2379_v61 = vpop.f32.mrb[90].mxu0  ;;  %v4110_v60 = vpop.permute.xlu0 %4109  ;;  %v4310_v1 = vsel %vm1566_vm4, %v4238_v62, %v3918_v57  ;;  %v3053_v20 = vld [vmem:[#allocation3 + $0x240] sm:$0xff]  ;;  %v9136_v62 = vsel %vm439_vm2, %v3407_v59, %v3411_v39 }
 0x2d3   :  { %v2380_v50 = vadd.f32 %v9028_v46, %v2379_v61  ;;  %v2666_v4 = vadd.f32 %v8592_v41, %v2377_v37  ;;  %v2381_v58 = vpop.f32.mrb[91].mxu0  ;;  %3873 = vrot.lane.b32.xlu1 %v8950_v7, %s6161_s27  ;;  %v4566_v29 = vsel %vm1566_vm4, %v4494_v5, %v4110_v60  ;;  %v3416_v7 = vshll.u32 %v9088_v52, 16 }
 0x2d4   :  { %4065 = vrot.lane.b32.xlu0 %v9042_v16, %s6161_s27  ;;  %4980 = vmatprep.mubr.bf16.mxu1 %v4566_v29  ;;  %v3054_v33 = vld [vmem:[#allocation3 + $0x248] sm:$0xff]  ;;  %v3055_v27 = vld [vmem:[#allocation3 + $0x250] sm:$0xff] }
 0x2d5   :  { %v2788_v18 = vmax.f32 %v2666_v4, 0.0  ;;  %v2669_v24 = vadd.f32 %v10345_v3, %v2380_v50  ;;  %4981 = vmatmul.mubr.bf16.gmra.mrb[96].mxu1 %v4310_v1  ;;  %v3792_v55 = vpop.permute.xlu1 %3791  ;;  %v9131_v41 = vpack.c.bf16 %v3054_v33, %v3053_v20  ;;  %v9133_v13 = vpack.c.bf16 %v3055_v27, %v3055_v27 }
 0x2d6   :  { %v3984_v11 = vpop.permute.xlu0 %3983  ;;  %v3418_v60 = vrot.slane %v3416_v7, 1  ;;  %v4176_v1 = vsel %vm21_vm0, %v8533_v44, %v3792_v55  ;;  %v3414_v50 = vshrl.u32 %v9088_v52, 16  ;;  %v3421_v4 = vshll.u32 %v9090_v56, 16  ;;  %v10346_v55 = vld [vmem:[#allocation9_spill] sm:$0xff] }
 0x2d7   :  { %2961 = vst.msk [vmem:[#allocation3 + $0x259] sm:$0xff] %vm21_vm0, %v2788_v18  ;;  %v2789_v25 = vmax.f32 %v2669_v24, 0.0  ;;  %3937 = vrot.lane.b32.xlu1 %v8980_v2, %s6162_s28  ;;  %v3675_v37 = vrot.slane %v9131_v41, 1  ;;  %v3676_v38 = vrot.slane %v9133_v13, 1  ;;  %v4410_v58 = vsel %vm21_vm0, %v8626_v14, %v3984_v11 }
 0x2d8   :  { %4129 = vrot.lane.b32.xlu0 %v9136_v62, %s6162_s28  ;;  %v3419_v24 = vor.u32 %v3418_v60, %v3414_v50  ;;  %v3423_v11 = vrot.slane %v3421_v4, 1  ;;  %v10347_v60 = vld [vmem:[#allocation7_spill] sm:$0xff] }
 0x2d9   :  { %2962 = vst.msk [vmem:[#allocation3 + $0x261] sm:$0xff] %vm21_vm0, %v2789_v25  ;;  %v9148_v57 = vsel %vm888_vm1, %v3675_v37, %v3676_v38  ;;  %v3856_v5 = vpop.permute.xlu1 %3855 }
 0x2da   :  { %6084 = vmatprep.mubr.msk.bf16.mxu0 %vm21_vm0, %v9148_v57  ;;  %v4048_v61 = vpop.permute.xlu0 %4047  ;;  %v4240_v29 = vsel %vm1501_vm3, %v4176_v1, %v3856_v5 }
 0x2db   :  { %3811 = vrot.lane.b32.xlu1 %v9093_v17, %s6163_s6  ;;  %v4496_v27 = vsel %vm1501_vm3, %v4410_v58, %v4048_v61 }
 0x2dc   :  { %4003 = vrot.lane.b32.xlu0 %v9059_v47, %s6163_s6  ;;  %v2384_v59 = vpop.f32.mrb[92].mxu0 }
 0x2dd   :  { %v2385_v39 = vadd.f32 %v9028_v46, %v2384_v59  ;;  %v2386_v20 = vpop.f32.mrb[93].mxu0  ;;  %v3920_v33 = vpop.permute.xlu1 %3919 }
 0x2de   :  { %v2387_v18 = vpop.f32.mrb[94].mxu0  ;;  %v4112_v3 = vpop.permute.xlu0 %4111  ;;  %v4313_v44 = vsel %vm1566_vm4, %v4240_v29, %v3920_v33  ;;  %v3056_v37 = vld [vmem:[#allocation3 + $0x258] sm:$0xff] }
 0x2df   :  { %v2674_v7 = vadd.f32 %v10346_v55, %v2385_v39  ;;  %v2388_v56 = vadd.f32 %v9028_v46, %v2387_v18  ;;  %v2389_v25 = vpop.f32.mrb[95].mxu0  ;;  %3875 = vrot.lane.b32.xlu1 %v9002_v32, %s6161_s27  ;;  %v4569_v14 = vsel %vm1566_vm4, %v4496_v27, %v4112_v3  ;;  %v9179_v39 = vsel %vm439_vm2, %v3419_v24, %v3423_v11 }
 0x2e0   :  { %4067 = vrot.lane.b32.xlu0 %v9088_v52, %s6161_s27  ;;  %4988 = vmatprep.mubr.bf16.mxu1 %v4569_v14  ;;  %v3057_v38 = vld [vmem:[#allocation3 + $0x260] sm:$0xff]  ;;  %v3058_v5 = vld [vmem:[#allocation3 + $0x268] sm:$0xff]  ;;  %v3428_v32 = vshll.u32 %v9131_v41, 16 }
 0x2e1   :  { %v2790_v61 = vmax.f32 %v2674_v7, 0.0  ;;  %v2677_v1 = vadd.f32 %v10347_v60, %v2388_v56  ;;  %4989 = vmatmul.mubr.bf16.gmra.mrb[100].mxu1 %v4313_v44  ;;  %v3794_v59 = vpop.permute.xlu1 %3793  ;;  %v9174_v50 = vpack.c.bf16 %v3057_v38, %v3056_v37  ;;  %v9176_v58 = vpack.c.bf16 %v3058_v5, %v3058_v5 }
 0x2e2   :  { %v3986_v29 = vpop.permute.xlu0 %3985  ;;  %v3430_v44 = vrot.slane %v3428_v32, 1  ;;  %v4178_v24 = vsel %vm21_vm0, %v8570_v9, %v3794_v59  ;;  %v3426_v7 = vshrl.u32 %v9131_v41, 16  ;;  %v3433_v56 = vshll.u32 %v9133_v13, 16 }
 0x2e3   :  { %2963 = vst.msk [vmem:[#allocation3 + $0x271] sm:$0xff] %vm21_vm0, %v2790_v61  ;;  %v2791_v4 = vmax.f32 %v2677_v1, 0.0  ;;  %3939 = vrot.lane.b32.xlu1 %v9042_v16, %s6162_s28  ;;  %v3678_v20 = vrot.slane %v9174_v50, 1  ;;  %v3679_v33 = vrot.slane %v9176_v58, 1  ;;  %v4413_v25 = vsel %vm21_vm0, %v8667_v36, %v3986_v29 }
 0x2e4   :  { %4131 = vrot.lane.b32.xlu0 %v9179_v39, %s6162_s28  ;;  %v3431_v1 = vor.u32 %v3430_v44, %v3426_v7  ;;  %v3435_v29 = vrot.slane %v3433_v56, 1 }
 0x2e5   :  { %2964 = vst.msk [vmem:[#allocation3 + $0x279] sm:$0xff] %vm21_vm0, %v2791_v4  ;;  %v9191_v27 = vsel %vm888_vm1, %v3678_v20, %v3679_v33  ;;  %v3858_v18 = vpop.permute.xlu1 %3857 }
 0x2e6   :  { %6085 = vmatmul.mubr.msk.bf16.gmra.mrb[168].mxu0 %vm21_vm0, %v9191_v27  ;;  %v4050_v3 = vpop.permute.xlu0 %4049  ;;  %v4242_v14 = vsel %vm1501_vm3, %v4178_v24, %v3858_v18  ;;  %v9222_v7 = vsel %vm439_vm2, %v3431_v1, %v3435_v29 }
 0x2e7   :  { %3813 = vrot.lane.b32.xlu1 %v9136_v62, %s6163_s6  ;;  %v4498_v5 = vsel %vm1501_vm3, %v4413_v25, %v4050_v3 }
 0x2e8   :  { %4005 = vrot.lane.b32.xlu0 %v9105_v43, %s6163_s6  ;;  %v2392_v55 = vpop.f32.mrb[96].mxu0 }
 0x2e9   :  { %v2393_v11 = vadd.f32 %v9028_v46, %v2392_v55  ;;  %v2394_v37 = vpop.f32.mrb[97].mxu0  ;;  %v3922_v38 = vpop.permute.xlu1 %3921 }
 0x2ea   :  { %v2395_v61 = vpop.f32.mrb[98].mxu0  ;;  %v4114_v60 = vpop.permute.xlu0 %4113  ;;  %v4316_v9 = vsel %vm1566_vm4, %v4242_v14, %v3922_v38  ;;  %v3059_v4 = vld [vmem:[#allocation3 + $0x270] sm:$0xff] }
 0x2eb   :  { %v2396_v59 = vadd.f32 %v9028_v46, %v2395_v61  ;;  %v2682_v13 = vadd.f32 %v8676_v19, %v2393_v11  ;;  %v2397_v32 = vpop.f32.mrb[99].mxu0  ;;  %3877 = vrot.lane.b32.xlu1 %v9059_v47, %s6161_s27  ;;  %v4572_v36 = vsel %vm1566_vm4, %v4498_v5, %v4114_v60  ;;  %v3440_v47 = vshll.u32 %v9174_v50, 16 }
 0x2ec   :  { %4069 = vrot.lane.b32.xlu0 %v9131_v41, %s6161_s27  ;;  %4996 = vmatprep.mubr.bf16.mxu1 %v4572_v36  ;;  %v3060_v20 = vld [vmem:[#allocation3 + $0x278] sm:$0xff]  ;;  %v3061_v33 = vld [vmem:[#allocation3 + $0x280] sm:$0xff]  ;;  %v3438_v60 = vshrl.u32 %v9174_v50, 16 }
 0x2ed   :  { %v2792_v18 = vmax.f32 %v2682_v13, 0.0  ;;  %v2685_v3 = vadd.f32 %v8683_v22, %v2396_v59  ;;  %4997 = vmatmul.mubr.bf16.gmra.mrb[104].mxu1 %v4316_v9  ;;  %v3796_v44 = vpop.permute.xlu1 %3795  ;;  %v9217_v19 = vpack.c.bf16 %v3060_v20, %v3059_v4  ;;  %v9219_v24 = vpack.c.bf16 %v3061_v33, %v3061_v33 }
 0x2ee   :  { %v3988_v55 = vpop.permute.xlu0 %3987  ;;  %v3442_v38 = vrot.slane %v3440_v47, 1  ;;  %v4180_v5 = vsel %vm21_vm0, %v8615_v8, %v3796_v44  ;;  %v3445_v9 = vshll.u32 %v9176_v58, 16 }
 0x2ef   :  { %2965 = vst.msk [vmem:[#allocation3 + $0x289] sm:$0xff] %vm21_vm0, %v2792_v18  ;;  %v2793_v56 = vmax.f32 %v2685_v3, 0.0  ;;  %3941 = vrot.lane.b32.xlu1 %v9088_v52, %s6162_s28  ;;  %v3681_v22 = vrot.slane %v9217_v19, 1  ;;  %v3682_v25 = vrot.slane %v9219_v24, 1  ;;  %v4416_v1 = vsel %vm21_vm0, %v8717_v30, %v3988_v55 }
 0x2f0   :  { %4133 = vrot.lane.b32.xlu0 %v9222_v7, %s6162_s28  ;;  %v3443_v33 = vor.u32 %v3442_v38, %v3438_v60  ;;  %v3447_v44 = vrot.slane %v3445_v9, 1 }
 0x2f1   :  { %2966 = vst.msk [vmem:[#allocation3 + $0x291] sm:$0xff] %vm21_vm0, %v2793_v56  ;;  %v9234_v14 = vsel %vm888_vm1, %v3681_v22, %v3682_v25  ;;  %v3860_v11 = vpop.permute.xlu1 %3859 }
 0x2f2   :  { %6088 = vmatprep.mubr.msk.bf16.mxu0 %vm21_vm0, %v9234_v14  ;;  %v4052_v37 = vpop.permute.xlu0 %4051  ;;  %v4244_v59 = vsel %vm1501_vm3, %v4180_v5, %v3860_v11  ;;  %v9265_v5 = vsel %vm439_vm2, %v3443_v33, %v3447_v44 }
 0x2f3   :  { %3815 = vrot.lane.b32.xlu1 %v9179_v39, %s6163_s6  ;;  %v4500_v29 = vsel %vm1501_vm3, %v4416_v1, %v4052_v37 }
 0x2f4   :  { %4007 = vrot.lane.b32.xlu0 %v9148_v57, %s6163_s6  ;;  %v2400_v61 = vpop.f32.mrb[100].mxu0 }
 0x2f5   :  { %v2401_v13 = vadd.f32 %v9028_v46, %v2400_v61  ;;  %v2402_v32 = vpop.f32.mrb[101].mxu0  ;;  %v3924_v36 = vpop.permute.xlu1 %3923 }
 0x2f6   :  { %v2403_v4 = vpop.f32.mrb[102].mxu0  ;;  %v4116_v20 = vpop.permute.xlu0 %4115  ;;  %v4319_v8 = vsel %vm1566_vm4, %v4244_v59, %v3924_v36  ;;  %v3062_v55 = vld [vmem:[#allocation3 + $0x288] sm:$0xff] }
 0x2f7   :  { %v2690_v18 = vadd.f32 %v8662_v34, %v2401_v13  ;;  %v2404_v58 = vadd.f32 %v9028_v46, %v2403_v4  ;;  %v2405_v3 = vpop.f32.mrb[103].mxu0  ;;  %3879 = vrot.lane.b32.xlu1 %v9105_v43, %s6161_s27  ;;  %v4575_v30 = vsel %vm1566_vm4, %v4500_v29, %v4116_v20  ;;  %v3452_v43 = vshll.u32 %v9217_v19, 16 }
 0x2f8   :  { %4071 = vrot.lane.b32.xlu0 %v9174_v50, %s6161_s27  ;;  %5004 = vmatprep.mubr.bf16.mxu1 %v4575_v30  ;;  %v3063_v47 = vld [vmem:[#allocation3 + $0x290] sm:$0xff]  ;;  %v3064_v56 = vld [vmem:[#allocation3 + $0x298] sm:$0xff]  ;;  %v3450_v29 = vshrl.u32 %v9217_v19, 16  ;;  %v3457_v4 = vshll.u32 %v9219_v24, 16 }
 0x2f9   :  { %v2794_v22 = vmax.f32 %v2690_v18, 0.0  ;;  %v2693_v25 = vadd.f32 %v8680_v53, %v2404_v58  ;;  %5005 = vmatmul.mubr.bf16.gmra.mrb[108].mxu1 %v4319_v8  ;;  %v3798_v34 = vpop.permute.xlu1 %3797  ;;  %v9260_v11 = vpack.c.bf16 %v3063_v47, %v3062_v55  ;;  %v9262_v37 = vpack.c.bf16 %v3064_v56, %v3064_v56 }
 0x2fa   :  { %v3990_v38 = vpop.permute.xlu0 %3989  ;;  %v3454_v13 = vrot.slane %v3452_v43, 1  ;;  %v4182_v32 = vsel %vm21_vm0, %v8652_v40, %v3798_v34 }
 0x2fb   :  { %2967 = vst.msk [vmem:[#allocation3 + $0x2a1] sm:$0xff] %vm21_vm0, %v2794_v22  ;;  %v2795_v61 = vmax.f32 %v2693_v25, 0.0  ;;  %3943 = vrot.lane.b32.xlu1 %v9131_v41, %s6162_s28  ;;  %v3684_v53 = vrot.slane %v9260_v11, 1  ;;  %v3685_v60 = vrot.slane %v9262_v37, 1  ;;  %v4419_v20 = vsel %vm21_vm0, %v8774_v23, %v3990_v38 }
 0x2fc   :  { %4135 = vrot.lane.b32.xlu0 %v9265_v5, %s6162_s28  ;;  %v3455_v55 = vor.u32 %v3454_v13, %v3450_v29  ;;  %v3459_v22 = vrot.slane %v3457_v4, 1 }
 0x2fd   :  { %2968 = vst.msk [vmem:[#allocation3 + $0x2a9] sm:$0xff] %vm21_vm0, %v2795_v61  ;;  %v9277_v9 = vsel %vm888_vm1, %v3684_v53, %v3685_v60  ;;  %v3862_v1 = vpop.permute.xlu1 %3861 }
 0x2fe   :  { %6089 = vmatmul.mubr.msk.bf16.gmra.mrb[172].mxu0 %vm21_vm0, %v9277_v9  ;;  %v4054_v59 = vpop.permute.xlu0 %4053  ;;  %v4246_v8 = vsel %vm1501_vm3, %v4182_v32, %v3862_v1 }
 0x2ff   :  { %3817 = vrot.lane.b32.xlu1 %v9222_v7, %s6163_s6  ;;  %v4502_v3 = vsel %vm1501_vm3, %v4419_v20, %v4054_v59  ;;  %v9308_v59 = vsel %vm439_vm2, %v3455_v55, %v3459_v22 }
 0x300   :  { %4009 = vrot.lane.b32.xlu0 %v9191_v27, %s6163_s6  ;;  %v2408_v36 = vpop.f32.mrb[104].mxu0 }
 0x301   :  { %v2409_v33 = vadd.f32 %v9028_v46, %v2408_v36  ;;  %v2410_v18 = vpop.f32.mrb[105].mxu0  ;;  %v3926_v58 = vpop.permute.xlu1 %3925 }
 0x302   :  { %v2411_v30 = vpop.f32.mrb[106].mxu0  ;;  %v4118_v44 = vpop.permute.xlu0 %4117  ;;  %v4322_v40 = vsel %vm1566_vm4, %v4246_v8, %v3926_v58  ;;  %v3065_v25 = vld [vmem:[#allocation3 + $0x2a0] sm:$0xff]  ;;  %v3462_v18 = vshrl.u32 %v9260_v11, 16  ;;  %v3469_v58 = vshll.u32 %v9262_v37, 16 }
 0x303   :  { %v2412_v47 = vadd.f32 %v9028_v46, %v2411_v30  ;;  %v2698_v24 = vadd.f32 %v8784_v15, %v2409_v33  ;;  %v2413_v56 = vpop.f32.mrb[107].mxu0  ;;  %3881 = vrot.lane.b32.xlu1 %v9148_v57, %s6161_s27  ;;  %v4578_v23 = vsel %vm1566_vm4, %v4502_v3, %v4118_v44  ;;  %v3464_v57 = vshll.u32 %v9260_v11, 16 }
 0x304   :  { %4073 = vrot.lane.b32.xlu0 %v9217_v19, %s6161_s27  ;;  %5012 = vmatprep.mubr.bf16.mxu1 %v4578_v23  ;;  %v3066_v34 = vld [vmem:[#allocation3 + $0x2a8] sm:$0xff]  ;;  %v3067_v38 = vld [vmem:[#allocation3 + $0x2b0] sm:$0xff] }
 0x305   :  { %v2796_v43 = vmax.f32 %v2698_v24, 0.0  ;;  %v2701_v61 = vadd.f32 %v8789_v0, %v2412_v47  ;;  %5013 = vmatmul.mubr.bf16.gmra.mrb[112].mxu1 %v4322_v40  ;;  %v3800_v53 = vpop.permute.xlu1 %3799  ;;  %v9303_v15 = vpack.c.bf16 %v3066_v34, %v3065_v25  ;;  %v9305_v60 = vpack.c.bf16 %v3067_v38, %v3067_v38 }
 0x306   :  { %v3992_v1 = vpop.permute.xlu0 %3991  ;;  %v3466_v20 = vrot.slane %v3464_v57, 1  ;;  %v4184_v8 = vsel %vm21_vm0, %v8706_v49, %v3800_v53  ;;  %v3471_v34 = vrot.slane %v3469_v58, 1 }
 0x307   :  { %2969 = vst.msk [vmem:[#allocation3 + $0x2b9] sm:$0xff] %vm21_vm0, %v2796_v43  ;;  %v2797_v13 = vmax.f32 %v2701_v61, 0.0  ;;  %3945 = vrot.lane.b32.xlu1 %v9174_v50, %s6162_s28  ;;  %v3687_v0 = vrot.slane %v9303_v15, 1  ;;  %v3688_v32 = vrot.slane %v9305_v60, 1  ;;  %v4422_v3 = vsel %vm21_vm0, %v8822_v48, %v3992_v1 }
 0x308   :  { %4137 = vrot.lane.b32.xlu0 %v9308_v59, %s6162_s28  ;;  %v3467_v23 = vor.u32 %v3466_v20, %v3462_v18 }
 0x309   :  { %2970 = vst.msk [vmem:[#allocation3 + $0x2c1] sm:$0xff] %vm21_vm0, %v2797_v13  ;;  %v9320_v36 = vsel %vm888_vm1, %v3687_v0, %v3688_v32  ;;  %v3864_v29 = vpop.permute.xlu1 %3863 }
 0x30a   :  { %6092 = vmatprep.mubr.msk.bf16.mxu0 %vm21_vm0, %v9320_v36  ;;  %v4056_v4 = vpop.permute.xlu0 %4055  ;;  %v4248_v30 = vsel %vm1501_vm3, %v4184_v8, %v3864_v29  ;;  %v9351_v32 = vsel %vm439_vm2, %v3467_v23, %v3471_v34 }
 0x30b   :  { %3819 = vrot.lane.b32.xlu1 %v9265_v5, %s6163_s6  ;;  %v4504_v47 = vsel %vm1501_vm3, %v4422_v3, %v4056_v4 }
 0x30c   :  { %4011 = vrot.lane.b32.xlu0 %v9234_v14, %s6163_s6  ;;  %v2416_v33 = vpop.f32.mrb[108].mxu0 }
 0x30d   :  { %v2417_v44 = vadd.f32 %v9028_v46, %v2416_v33  ;;  %v2418_v40 = vpop.f32.mrb[109].mxu0  ;;  %v3928_v55 = vpop.permute.xlu1 %3927 }
 0x30e   :  { %v2419_v24 = vpop.f32.mrb[110].mxu0  ;;  %v4120_v56 = vpop.permute.xlu0 %4119  ;;  %v4325_v49 = vsel %vm1566_vm4, %v4248_v30, %v3928_v55  ;;  %v3068_v38 = vld [vmem:[#allocation3 + $0x2b8] sm:$0xff]  ;;  %v3474_v30 = vshrl.u32 %v9303_v15, 16 }
 0x30f   :  { %v2706_v22 = vadd.f32 %v8769_v21, %v2417_v44  ;;  %v2420_v37 = vadd.f32 %v9028_v46, %v2419_v24  ;;  %v2421_v25 = vpop.f32.mrb[111].mxu0  ;;  %3883 = vrot.lane.b32.xlu1 %v9191_v27, %s6161_s27  ;;  %v4581_v48 = vsel %vm1566_vm4, %v4504_v47, %v4120_v56  ;;  %v3476_v27 = vshll.u32 %v9303_v15, 16 }
 0x310   :  { %4075 = vrot.lane.b32.xlu0 %v9260_v11, %s6161_s27  ;;  %5020 = vmatprep.mubr.bf16.mxu1 %v4581_v48  ;;  %v3069_v43 = vld [vmem:[#allocation3 + $0x2c0] sm:$0xff]  ;;  %v3070_v61 = vld [vmem:[#allocation3 + $0x2c8] sm:$0xff]  ;;  %v3481_v44 = vshll.u32 %v9305_v60, 16 }
 0x311   :  { %v2798_v53 = vmax.f32 %v2706_v22, 0.0  ;;  %v2709_v1 = vadd.f32 %v8786_v10, %v2420_v37  ;;  %5021 = vmatmul.mubr.bf16.gmra.mrb[116].mxu1 %v4325_v49  ;;  %v3802_v21 = vpop.permute.xlu1 %3801  ;;  %v9346_v57 = vpack.c.bf16 %v3069_v43, %v3068_v38  ;;  %v9348_v13 = vpack.c.bf16 %v3070_v61, %v3070_v61  ;;  %v10348_v48 = vld [vmem:[#allocation17_spill] sm:$0xff]  ;;  %v10349_v61 = vld [vmem:[#allocation16_spill] sm:$0xff] }
 0x312   :  { %v3994_v0 = vpop.permute.xlu0 %3993  ;;  %v3478_v18 = vrot.slane %v3476_v27, 1  ;;  %v4186_v58 = vsel %vm21_vm0, %v8757_v6, %v3802_v21  ;;  %v3483_v38 = vrot.slane %v3481_v44, 1  ;;  %v10351_v44 = vld [vmem:[#allocation13_spill] sm:$0xff] }
 0x313   :  { %2971 = vst.msk [vmem:[#allocation3 + $0x2d1] sm:$0xff] %vm21_vm0, %v2798_v53  ;;  %v2799_v29 = vmax.f32 %v2709_v1, 0.0  ;;  %3947 = vrot.lane.b32.xlu1 %v9217_v19, %s6162_s28  ;;  %v3690_v10 = vrot.slane %v9346_v57, 1  ;;  %v3691_v4 = vrot.slane %v9348_v13, 1  ;;  %v4425_v40 = vsel %vm21_vm0, %v8872_v12, %v3994_v0 }
 0x314   :  { %4139 = vrot.lane.b32.xlu0 %v9351_v32, %s6162_s28  ;;  %v3479_v37 = vor.u32 %v3478_v18, %v3474_v30  ;;  %v3488_v27 = vshll.u32 %v9346_v57, 16  ;;  %v3493_v30 = vshll.u32 %v9348_v13, 16  ;;  %v10352_v13 = vld [vmem:[#allocation12_spill] sm:$0xff] }
 0x315   :  { %2972 = vst.msk [vmem:[#allocation3 + $0x2d9] sm:$0xff] %vm21_vm0, %v2799_v29  ;;  %v9363_v20 = vsel %vm888_vm1, %v3690_v10, %v3691_v4  ;;  %v3866_v8 = vpop.permute.xlu1 %3865 }
 0x316   :  { %6093 = vmatmul.mubr.msk.bf16.gmra.mrb[176].mxu0 %vm21_vm0, %v9363_v20  ;;  %v4058_v33 = vpop.permute.xlu0 %4057  ;;  %v4250_v55 = vsel %vm1501_vm3, %v4186_v58, %v3866_v8  ;;  %v9390_v0 = vsel %vm439_vm2, %v3479_v37, %v3483_v38  ;;  %v3490_v4 = vrot.slane %v3488_v27, 1 }
 0x317   :  { %3821 = vrot.lane.b32.xlu1 %v9308_v59, %s6163_s6  ;;  %v4506_v49 = vsel %vm1501_vm3, %v4425_v40, %v4058_v33  ;;  %v10350_v33 = vld [vmem:[#allocation10_spill] sm:$0xff] }
 0x318   :  { %4013 = vrot.lane.b32.xlu0 %v9277_v9, %s6163_s6  ;;  %v2424_v3 = vpop.f32.mrb[112].mxu0 }
 0x319   :  { %v2425_v47 = vadd.f32 %v9028_v46, %v2424_v3  ;;  %v2426_v24 = vpop.f32.mrb[113].mxu0  ;;  %v3930_v56 = vpop.permute.xlu1 %3929  ;;  %v3486_v3 = vshrl.u32 %v9346_v57, 16 }
 0x31a   :  { %v2427_v23 = vpop.f32.mrb[114].mxu0  ;;  %v4122_v22 = vpop.permute.xlu0 %4121  ;;  %v4328_v6 = vsel %vm1566_vm4, %v4250_v55, %v3930_v56 }
 0x31b   :  { %v2428_v25 = vadd.f32 %v9028_v46, %v2427_v23  ;;  %v2714_v60 = vadd.f32 %v10348_v48, %v2425_v47  ;;  %v2429_v34 = vpop.f32.mrb[115].mxu0  ;;  %3885 = vrot.lane.b32.xlu1 %v9234_v14, %s6161_s27  ;;  %v4584_v12 = vsel %vm1566_vm4, %v4506_v49, %v4122_v22  ;;  %v3071_v49 = vld [vmem:[#allocation3 + $0x2d0] sm:$0xff] }
 0x31c   :  { %4077 = vrot.lane.b32.xlu0 %v9303_v15, %s6161_s27  ;;  %5028 = vmatprep.mubr.bf16.mxu1 %v4584_v12  ;;  %v3072_v8 = vld [vmem:[#allocation3 + $0x2d8] sm:$0xff]  ;;  %v3073_v27 = vld [vmem:[#allocation3 + $0x2e0] sm:$0xff] }
 0x31d   :  { %v2800_v43 = vmax.f32 %v2714_v60, 0.0  ;;  %v2717_v53 = vadd.f32 %v10349_v61, %v2428_v25  ;;  %5029 = vmatmul.mubr.bf16.gmra.mrb[120].mxu1 %v4328_v6  ;;  %v3804_v1 = vpop.permute.xlu1 %3803  ;;  %v3491_v25 = vor.u32 %v3490_v4, %v3486_v3  ;;  %v9413_v48 = vpack.c.bf16 %v3072_v8, %v3071_v49 }
 0x31e   :  { %v3996_v21 = vpop.permute.xlu0 %3995  ;;  %v4188_v18 = vsel %vm21_vm0, %v10350_v33, %v3804_v1 }
 0x31f   :  { %2973 = vst.msk [vmem:[#allocation3 + $0x2e9] sm:$0xff] %vm21_vm0, %v2800_v43  ;;  %v2801_v29 = vmax.f32 %v2717_v53, 0.0  ;;  %3949 = vrot.lane.b32.xlu1 %v9260_v11, %s6162_s28  ;;  %v4428_v40 = vsel %vm21_vm0, %v10351_v44, %v3996_v21  ;;  %v3495_v43 = vrot.slane %v3493_v30, 1  ;;  %v10353_v53 = vld [vmem:[#allocation11_spill] sm:$0xff]  ;;  %v3498_v44 = vshrl.u32 %v9413_v48, 16 }
 0x320   :  { %4141 = vrot.lane.b32.xlu0 %v9390_v0, %s6162_s28 }
 0x321   :  { %2974 = vst.msk [vmem:[#allocation3 + $0x2f1] sm:$0xff] %vm21_vm0, %v2801_v29  ;;  %v3868_v14 = vpop.permute.xlu1 %3867 }
 0x322   :  { %v4060_v10 = vpop.permute.xlu0 %4059  ;;  %v4252_v55 = vsel %vm1501_vm3, %v4188_v18, %v3868_v14  ;;  %v9424_v14 = vsel %vm439_vm2, %v3491_v25, %v3495_v43 }
 0x323   :  { %3823 = vrot.lane.b32.xlu1 %v9351_v32, %s6163_s6  ;;  %v4508_v23 = vsel %vm1501_vm3, %v4428_v40, %v4060_v10  ;;  %v3500_v10 = vshll.u32 %v9413_v48, 16 }
 0x324   :  { %4015 = vrot.lane.b32.xlu0 %v9320_v36, %s6163_s6  ;;  %v2432_v58 = vpop.f32.mrb[116].mxu0 }
 0x325   :  { %v2433_v47 = vadd.f32 %v9028_v46, %v2432_v58  ;;  %v2434_v24 = vpop.f32.mrb[117].mxu0  ;;  %v3932_v56 = vpop.permute.xlu1 %3931  ;;  %v3502_v18 = vrot.slane %v3500_v10, 1 }
 0x326   :  { %v2435_v22 = vpop.f32.mrb[118].mxu0  ;;  %v4124_v6 = vpop.permute.xlu0 %4123  ;;  %v4331_v37 = vsel %vm1566_vm4, %v4252_v55, %v3932_v56 }
 0x327   :  { %v2722_v60 = vadd.f32 %v10352_v13, %v2433_v47  ;;  %v2436_v34 = vadd.f32 %v9028_v46, %v2435_v22  ;;  %v2437_v12 = vpop.f32.mrb[119].mxu0  ;;  %3887 = vrot.lane.b32.xlu1 %v9277_v9, %s6161_s27  ;;  %v4587_v38 = vsel %vm1566_vm4, %v4508_v23, %v4124_v6  ;;  %v3150_v9 = vpack.c.bf16 %v3073_v27, %v3073_v27  ;;  %v3074_v23 = vld [vmem:[#allocation3 + $0x2e8] sm:$0xff] }
 0x328   :  { %4079 = vrot.lane.b32.xlu0 %v9346_v57, %s6161_s27  ;;  %5036 = vmatprep.mubr.bf16.mxu1 %v4587_v38  ;;  %v3075_v58 = vld [vmem:[#allocation3 + $0x2f0] sm:$0xff]  ;;  %v3503_v25 = vor.u32 %v3502_v18, %v3498_v44 }
 0x329   :  { %v2802_v61 = vmax.f32 %v2722_v60, 0.0  ;;  %v2725_v1 = vadd.f32 %v10353_v53, %v2436_v34  ;;  %5037 = vmatmul.mubr.bf16.gmra.mrb[124].mxu1 %v4331_v37  ;;  %v3806_v21 = vpop.permute.xlu1 %3805  ;;  %v3505_v40 = vshll.u32 %v3150_v9, 16  ;;  %v9446_v13 = vpack.c.bf16 %v3075_v58, %v3074_v23 }
 0x32a   :  { %v3998_v29 = vpop.permute.xlu0 %3997  ;;  %v4190_v3 = vsel %vm21_vm0, %v8924_v54, %v3806_v21  ;;  %v3693_v21 = vrot.slane %v9413_v48, 1  ;;  %v3694_v27 = vrot.slane %v3150_v9, 1 }
 0x32b   :  { %2975 = vst.msk [vmem:[#allocation3 + $0x301] sm:$0xff] %vm21_vm0, %v2802_v61  ;;  %v2803_v4 = vmax.f32 %v2725_v1, 0.0  ;;  %3951 = vrot.lane.b32.xlu1 %v9303_v15, %s6162_s28  ;;  %v4431_v55 = vsel %vm21_vm0, %v9064_v28, %v3998_v29  ;;  %v3507_v38 = vrot.slane %v3505_v40, 1  ;;  %v3076_v1 = vld [vmem:[#allocation3 + $0x2f8] sm:$0xff]  ;;  %v3512_v29 = vshll.u32 %v9446_v13, 16 }
 0x32c   :  { %4143 = vrot.lane.b32.xlu0 %v9424_v14, %s6162_s28 }
 0x32d   :  { %2976 = vst.msk [vmem:[#allocation3 + $0x309] sm:$0xff] %vm21_vm0, %v2803_v4  ;;  %v3870_v8 = vpop.permute.xlu1 %3869  ;;  %v3514_v9 = vrot.slane %v3512_v29, 1 }
 0x32e   :  { %v4062_v33 = vpop.permute.xlu0 %4061  ;;  %v4254_v47 = vsel %vm1501_vm3, %v4190_v3, %v3870_v8  ;;  %v9468_v8 = vsel %vm888_vm1, %v3693_v21, %v3694_v27  ;;  %v3510_v3 = vshrl.u32 %v9446_v13, 16 }
 0x32f   :  { %3825 = vrot.lane.b32.xlu1 %v9390_v0, %s6163_s6  ;;  %v4510_v22 = vsel %vm1501_vm3, %v4431_v55, %v4062_v33  ;;  %10354 = vst [vmem:[#allocation4_spill] sm:$0xff] %v9468_v8  ;;  %v6157_v55 = vld [vmem:[%s10234_s2] ss:$0 sm:$0xff] }
 0x330   :  { %4017 = vrot.lane.b32.xlu0 %v9363_v20, %s6163_s6  ;;  %v2440_v30 = vpop.f32.mrb[120].mxu0 }
 0x331   :  { %v2441_v24 = vadd.f32 %v9028_v46, %v2440_v30  ;;  %v2442_v56 = vpop.f32.mrb[121].mxu0  ;;  %v3934_v49 = vpop.permute.xlu1 %3933 }
 0x332   :  { %v2443_v6 = vpop.f32.mrb[122].mxu0  ;;  %v4126_v37 = vpop.permute.xlu0 %4125  ;;  %v4334_v54 = vsel %vm1566_vm4, %v4254_v47, %v3934_v49  ;;  %v3077_v49 = vld [vmem:[#allocation3 + $0x300] sm:$0xff] }
 0x333   :  { %v2444_v60 = vadd.f32 %v9028_v46, %v2443_v6  ;;  %v2730_v28 = vadd.f32 %v8998_v51, %v2441_v24  ;;  %v2445_v34 = vpop.f32.mrb[123].mxu0  ;;  %3889 = vrot.lane.b32.xlu1 %v9320_v36, %s6161_s27  ;;  %v4590_v12 = vsel %vm1566_vm4, %v4510_v22, %v4126_v37  ;;  %v9457_v51 = vsel %vm439_vm2, %v3503_v25, %v3507_v38 }
 0x334   :  { %4081 = vrot.lane.b32.xlu0 %v9413_v48, %s6161_s27  ;;  %5044 = vmatprep.mubr.bf16.mxu1 %v4590_v12  ;;  %v3078_v33 = vld [vmem:[#allocation3 + $0x308] sm:$0xff]  ;;  %v3515_v37 = vor.u32 %v3514_v9, %v3510_v3  ;;  %v9515_v9 = vld [vmem:[%s10235_s4] ss:$0 sm:$0xff] }
 0x335   :  { %v2804_v43 = vmax.f32 %v2730_v28, 0.0  ;;  %v2733_v61 = vadd.f32 %v9012_v42, %v2444_v60  ;;  %5045 = vmatmul.mubr.bf16.gmra.mrb[128].mxu1 %v4334_v54  ;;  %v3808_v53 = vpop.permute.xlu1 %3807  ;;  %v3152_v42 = vpack.c.bf16 %v3076_v1, %v3076_v1  ;;  %v9485_v54 = vpack.c.bf16 %v3078_v33, %v3077_v49 }
 0x336   :  { %v4000_v46 = vpop.permute.xlu0 %3999  ;;  %v4192_v18 = vsel %vm21_vm0, %v8967_v26, %v3808_v53  ;;  %v3696_v1 = vrot.slane %v9446_v13, 1 }
 0x337   :  { %2977 = vst.msk [vmem:[#allocation3 + $0x319] sm:$0xff] %vm21_vm0, %v2804_v43  ;;  %v2805_v36 = vmax.f32 %v2733_v61, 0.0  ;;  %3953 = vrot.lane.b32.xlu1 %v9346_v57, %s6162_s28  ;;  %v3517_v30 = vshll.u32 %v3152_v42, 16  ;;  %v4434_v44 = vsel %vm21_vm0, %v9047_v45, %v4000_v46  ;;  %10355 = vst [vmem:[#allocation14_spill] sm:$0xff] %v9485_v54  ;;  %v3079_v61 = vld [vmem:[#allocation3 + $0x310] sm:$0xff]  ;;  %v3697_v46 = vrot.slane %v3152_v42, 1 }
 0x338   :  { %4145 = vrot.lane.b32.xlu0 %v9457_v51, %s6162_s28  ;;  %v3524_v21 = vshll.u32 %v9485_v54, 16  ;;  %v3154_v27 = vpack.c.bf16 %v3079_v61, %v3079_v61 }
 0x339   :  { %2978 = vst.msk [vmem:[#allocation3 + $0x321] sm:$0xff] %vm21_vm0, %v2805_v36  ;;  %v3872_v10 = vpop.permute.xlu1 %3871  ;;  %v3519_v34 = vrot.slane %v3517_v30, 1 }
 0x33a   :  { %v4064_v4 = vpop.permute.xlu0 %4063  ;;  %v4256_v40 = vsel %vm1501_vm3, %v4192_v18, %v3872_v10  ;;  %v3526_v33 = vrot.slane %v3524_v21, 1 }
 0x33b   :  { %3827 = vrot.lane.b32.xlu1 %v9424_v14, %s6163_s6  ;;  %v4512_v23 = vsel %vm1501_vm3, %v4434_v44, %v4064_v4  ;;  %v9510_v4 = vsel %vm888_vm1, %v3696_v1, %v3697_v46  ;;  %v3522_v44 = vshrl.u32 %v9485_v54, 16 }
 0x33c   :  { %4019 = vrot.lane.b32.xlu0 %v9468_v8, %s6163_s6  ;;  %v2448_v58 = vpop.f32.mrb[124].mxu0  ;;  %10356 = vst [vmem:[#allocation18_spill] sm:$0xff] %v9510_v4 }
 0x33d   :  { %v2449_v47 = vadd.f32 %v6157_v55, %v2448_v58  ;;  %v2450_v24 = vpop.f32.mrb[125].mxu0  ;;  %v3936_v56 = vpop.permute.xlu1 %3935 }
 0x33e   :  { %v2451_v26 = vpop.f32.mrb[126].mxu0  ;;  %v4128_v22 = vpop.permute.xlu0 %4127  ;;  %v4337_v6 = vsel %vm1566_vm4, %v4256_v40, %v3936_v56  ;;  %v3529_v40 = vshll.u32 %v3154_v27, 16 }
 0x33f   :  { %v2738_v45 = vadd.f32 %v8993_v31, %v2449_v47  ;;  %v2452_v25 = vadd.f32 %v6157_v55, %v2451_v26  ;;  %v2453_v60 = vpop.f32.mrb[127].mxu0  ;;  %3891 = vrot.lane.b32.xlu1 %v9363_v20, %s6161_s27  ;;  %v4593_v28 = vsel %vm1566_vm4, %v4512_v23, %v4128_v22  ;;  %v9495_v31 = vsel %vm439_vm2, %v3515_v37, %v3519_v34  ;;  %v3080_v23 = vld [vmem:[#allocation3 + $0x318] sm:$0xff] }
 0x340   :  { %4083 = vrot.lane.b32.xlu0 %v9446_v13, %s6161_s27  ;;  %5052 = vmatprep.mubr.bf16.mxu1 %v4593_v28  ;;  %v3081_v58 = vld [vmem:[#allocation3 + $0x320] sm:$0xff]  ;;  %v3527_v37 = vor.u32 %v3526_v33, %v3522_v44 }
 0x341   :  { %v2806_v12 = vmax.f32 %v2738_v45, 0.0  ;;  %v2741_v38 = vadd.f32 %v9004_v63, %v2452_v25  ;;  %5053 = vmatmul.mubr.bf16.gmra.mrb[132].mxu1 %v4337_v6  ;;  %v3810_v43 = vpop.permute.xlu1 %3809  ;;  %v9530_v45 = vpack.c.bf16 %v3081_v58, %v3080_v23 }
 0x342   :  { %v4002_v53 = vpop.permute.xlu0 %4001  ;;  %v4194_v3 = vsel %vm21_vm0, %v8927_v35, %v3810_v43 }
 0x343   :  { %2979 = vst.msk [vmem:[#allocation3 + $0x331] sm:$0xff] %vm21_vm0, %v2806_v12  ;;  %v2807_v20 = vmax.f32 %v2741_v38, 0.0  ;;  %3955 = vrot.lane.b32.xlu1 %v9413_v48, %s6162_s28  ;;  %v4437_v55 = vsel %vm21_vm0, %v9093_v17, %v4002_v53  ;;  %10357 = vst [vmem:[#allocation15_spill] sm:$0xff] %v9530_v45  ;;  %v3531_v12 = vrot.slane %v3529_v40, 1  ;;  %v3082_v53 = vld [vmem:[#allocation3 + $0x328] sm:$0xff] }
 0x344   :  { %4147 = vrot.lane.b32.xlu0 %v9495_v31, %s6162_s28  ;;  %v9504_v63 = vpop.f32.mrb[128].mxu0  ;;  %v3156_v33 = vpack.c.bf16 %v3082_v53, %v3082_v53 }
 0x345   :  { %2980 = vst.msk [vmem:[#allocation3 + $0x339] sm:$0xff] %vm21_vm0, %v2807_v20  ;;  %v5207_v29 = vpop.f32.mrb[129].mxu0  ;;  %v3874_v36 = vpop.permute.xlu1 %3873  ;;  %v9549_v21 = vsel %vm439_vm2, %v3527_v37, %v3531_v12  ;;  %v3699_v20 = vrot.slane %v9485_v54, 1 }
 0x346   :  { %v9507_v10 = vpop.f32.mrb[130].mxu0  ;;  %v4066_v42 = vpop.permute.xlu0 %4065  ;;  %v4258_v47 = vsel %vm1501_vm3, %v4194_v3, %v3874_v36  ;;  %v3536_v36 = vshll.u32 %v9530_v45, 16 }
 0x347   :  { %v5210_v18 = vpop.f32.mrb[131].mxu0  ;;  %3829 = vrot.lane.b32.xlu1 %v9457_v51, %s6163_s6  ;;  %v4514_v26 = vsel %vm1501_vm3, %v4437_v55, %v4066_v42  ;;  %v3534_v55 = vshrl.u32 %v9530_v45, 16 }
 0x348   :  { %4021 = vrot.lane.b32.xlu0 %v9510_v4, %s6163_s6  ;;  %v4918_v30 = vpop.f32.mrb[64].mxu1 }
 0x349   :  { %v4919_v24 = vadd.f32 %v9515_v9, %v4918_v30  ;;  %v4920_v56 = vpop.f32.mrb[65].mxu1  ;;  %v3938_v49 = vpop.permute.xlu1 %3937  ;;  %v3538_v30 = vrot.slane %v3536_v36, 1  ;;  %v3702_v36 = vrot.slane %v9530_v45, 1 }
 0x34a   :  { %v4130_v22 = vpop.permute.xlu0 %4129  ;;  %v4921_v6 = vpop.f32.mrb[66].mxu1  ;;  %v4340_v35 = vsel %vm1566_vm4, %v4258_v47, %v3938_v49  ;;  %v3541_v47 = vshll.u32 %v3156_v33, 16 }
 0x34b   :  { %v9532_v25 = vadd.f32 %v5207_v29, %v4919_v24  ;;  %v4922_v17 = vadd.f32 %v9515_v9, %v4921_v6  ;;  %v4923_v60 = vpop.f32.mrb[67].mxu1  ;;  %3893 = vrot.lane.b32.xlu1 %v9468_v8, %s6161_s27  ;;  %v4596_v28 = vsel %vm1566_vm4, %v4514_v26, %v4130_v22  ;;  %v3700_v29 = vrot.slane %v3154_v27, 1  ;;  %v3083_v26 = vld [vmem:[#allocation3 + $0x330] sm:$0xff] }
 0x34c   :  { %4085 = vrot.lane.b32.xlu0 %v9485_v54, %s6161_s27  ;;  %v9540_v34 = vpop.f32.mrb[132].mxu0  ;;  %5060 = vmatprep.mubr.bf16.mxu1 %v4596_v28  ;;  %v3084_v27 = vld [vmem:[#allocation3 + $0x338] sm:$0xff] }
 0x34d   :  { %v9542_v38 = vadd.f32 %v5210_v18, %v4922_v17  ;;  %5061 = vmatmul.mubr.bf16.gmra.mrb[136].mxu1 %v4340_v35  ;;  %v9544_v43 = vpop.f32.mrb[133].mxu0  ;;  %v3812_v61 = vpop.permute.xlu1 %3811  ;;  %v9560_v3 = vsel %vm888_vm1, %v3699_v20, %v3700_v29  ;;  %v3539_v17 = vor.u32 %v3538_v30, %v3534_v55  ;;  %v9579_v60 = vpack.c.bf16 %v3084_v27, %v3083_v26  ;;  %v3087_v26 = vld [vmem:[#allocation3 + $0x350] sm:$0xff] }
 0x34e   :  { %v9546_v1 = vpop.f32.mrb[134].mxu0  ;;  %v4004_v46 = vpop.permute.xlu0 %4003  ;;  %10358 = vst [vmem:[#allocation5_spill] sm:$0xff] %v9560_v3  ;;  %v4196_v22 = vsel %vm21_vm0, %v8980_v2, %v3812_v61 }
 0x34f   :  { %v9553_v42 = vpop.f32.mrb[135].mxu0  ;;  %3957 = vrot.lane.b32.xlu1 %v9446_v13, %s6162_s28  ;;  %v4440_v24 = vsel %vm21_vm0, %v9136_v62, %v4004_v46  ;;  %v3720_v55 = vshll.u32 %v9579_v60, 16 }
 0x350   :  { %4149 = vrot.lane.b32.xlu0 %v9549_v21, %s6162_s28 }
 0x351   :  { %v3876_v18 = vpop.permute.xlu1 %3875 }
 0x352   :  { %v4068_v58 = vpop.permute.xlu0 %4067  ;;  %v4260_v28 = vsel %vm1501_vm3, %v4196_v22, %v3876_v18  ;;  %v3085_v18 = vld [vmem:[#allocation3 + $0x340] sm:$0xff] }
 0x353   :  { %3831 = vrot.lane.b32.xlu1 %v9495_v31, %s6163_s6  ;;  %v4516_v6 = vsel %vm1501_vm3, %v4440_v24, %v4068_v58 }
 0x354   :  { %4023 = vrot.lane.b32.xlu0 %v9560_v3, %s6163_s6  ;;  %v9566_v44 = vpop.f32.mrb[136].mxu0  ;;  %v4926_v40 = vpop.f32.mrb[68].mxu1 }
 0x355   :  { %v4927_v56 = vadd.f32 %v9515_v9, %v4926_v40  ;;  %v4928_v49 = vpop.f32.mrb[69].mxu1  ;;  %v9572_v23 = vpop.f32.mrb[137].mxu0  ;;  %v3703_v40 = vrot.slane %v3156_v33, 1 }
 0x356   :  { %v9577_v35 = vpop.f32.mrb[138].mxu0  ;;  %v4132_v37 = vpop.permute.xlu0 %4131 }
 0x357   :  { %v9583_v62 = vadd.f32 %v9504_v63, %v4927_v56  ;;  %v3940_v12 = vpop.permute.xlu1 %3939  ;;  %v4929_v53 = vpop.f32.mrb[70].mxu1  ;;  %3895 = vrot.lane.b32.xlu1 %v9510_v4, %s6161_s27  ;;  %v4599_v2 = vsel %vm1566_vm4, %v4516_v6, %v4132_v37  ;;  %v3543_v63 = vrot.slane %v3541_v47, 1  ;;  %v3158_v56 = vpack.c.bf16 %v3085_v18, %v3085_v18  ;;  %v3088_v18 = vld [vmem:[#allocation3 + $0x358] sm:$0xff] }
 0x358   :  { %4087 = vrot.lane.b32.xlu0 %v9530_v45, %s6161_s27  ;;  %v4930_v61 = vadd.f32 %v9515_v9, %v4929_v53  ;;  %v4931_v46 = vpop.f32.mrb[71].mxu1  ;;  %v9591_v20 = vpop.f32.mrb[139].mxu0  ;;  %5068 = vmatprep.mubr.bf16.mxu1 %v4599_v2  ;;  %v4343_v29 = vsel %vm1566_vm4, %v4260_v28, %v3940_v12  ;;  %v9613_v33 = vsel %vm888_vm1, %v3702_v36, %v3703_v40  ;;  %v3722_v37 = vrot.slane %v3720_v55, 1 }
 0x359   :  { %5069 = vmatmul.mubr.bf16.gmra.mrb[140].mxu1 %v4343_v29  ;;  %v9599_v27 = vsel %vm439_vm2, %v3539_v17, %v3543_v63  ;;  %10359 = vst [vmem:[#allocation8_spill] sm:$0xff] %v9613_v33  ;;  %v3718_v53 = vshrl.u32 %v9579_v60, 16  ;;  %v3725_v2 = vshll.u32 %v3158_v56, 16 }
 0x35a   :  { %v9596_v58 = vadd.f32 %v9507_v10, %v4930_v61  ;;  %v4006_v30 = vpop.permute.xlu0 %4005  ;;  %v3086_v10 = vld [vmem:[#allocation3 + $0x348] sm:$0xff] }
 0x35b   :  { %v3814_v24 = vpop.permute.xlu1 %3813  ;;  %3959 = vrot.lane.b32.xlu1 %v9485_v54, %s6162_s28  ;;  %v9622_v61 = vpack.c.bf16 %v3087_v26, %v3086_v10  ;;  %v4443_v46 = vsel %vm21_vm0, %v9179_v39, %v4006_v30  ;;  %v3723_v54 = vor.u32 %v3722_v37, %v3718_v53  ;;  %v3727_v37 = vrot.slane %v3725_v2, 1 }
 0x35c   :  { %4151 = vrot.lane.b32.xlu0 %v9599_v27, %s6162_s28  ;;  %v9606_v47 = vpop.f32.mrb[140].mxu0  ;;  %v4198_v29 = vsel %vm21_vm0, %v9042_v16, %v3814_v24 }
 0x35d   :  { %v9608_v49 = vpop.f32.mrb[141].mxu0  ;;  %10360 = vst [vmem:[#allocation19_spill] sm:$0xff] %v9622_v61 }
 0x35e   :  { %v9610_v22 = vpop.f32.mrb[142].mxu0  ;;  %v4070_v6 = vpop.permute.xlu0 %4069 }
 0x35f   :  { %v3878_v17 = vpop.permute.xlu1 %3877  ;;  %v9615_v28 = vpop.f32.mrb[143].mxu0  ;;  %3833 = vrot.lane.b32.xlu1 %v9549_v21, %s6163_s6  ;;  %v4518_v40 = vsel %vm1501_vm3, %v4443_v46, %v4070_v6 }
 0x360   :  { %4025 = vrot.lane.b32.xlu0 %v9613_v33, %s6163_s6  ;;  %v4934_v12 = vpop.f32.mrb[72].mxu1  ;;  %v4262_v55 = vsel %vm1501_vm3, %v4198_v29, %v3878_v17  ;;  %v3754_v17 = vshll.u32 %v9622_v61, 16  ;;  %v3736_v29 = vrot.slane %v9579_v60, 1 }
 0x361   :  { %v4935_v63 = vadd.f32 %v9515_v9, %v4934_v12  ;;  %v4936_v36 = vpop.f32.mrb[73].mxu1 }
 0x362   :  { %v4134_v4 = vpop.permute.xlu0 %4133  ;;  %v4937_v8 = vpop.f32.mrb[74].mxu1 }
 0x363   :  { %v9632_v10 = vadd.f32 %v9544_v43, %v4935_v63  ;;  %v3942_v26 = vpop.permute.xlu1 %3941  ;;  %v4938_v39 = vadd.f32 %v9515_v9, %v4937_v8  ;;  %v4939_v30 = vpop.f32.mrb[75].mxu1  ;;  %3897 = vrot.lane.b32.xlu1 %v9560_v3, %s6161_s27  ;;  %v4602_v16 = vsel %vm1566_vm4, %v4518_v40, %v4134_v4  ;;  %v9643_v43 = vpack.c.bf16 %v3088_v18, %v3088_v18 }
 0x364   :  { %4089 = vrot.lane.b32.xlu0 %v9579_v60, %s6161_s27  ;;  %v9640_v24 = vpop.f32.mrb[144].mxu0  ;;  %5076 = vmatprep.mubr.bf16.mxu1 %v4602_v16  ;;  %v4346_v6 = vsel %vm1566_vm4, %v4262_v55, %v3942_v26  ;;  %v9654_v4 = vsel %vm439_vm2, %v3723_v54, %v3727_v37  ;;  %v3737_v63 = vrot.slane %v3158_v56, 1  ;;  %v3756_v18 = vrot.slane %v3754_v17, 1 }
 0x365   :  { %10361 = vst [vmem:[#allocation6_spill] sm:$0xff] %v9643_v43  ;;  %v9647_v8 = vadd.f32 %v9553_v42, %v4938_v39  ;;  %5077 = vmatmul.mubr.bf16.gmra.mrb[144].mxu1 %v4346_v6  ;;  %v9649_v12 = vpop.f32.mrb[145].mxu0  ;;  %v3752_v42 = vshrl.u32 %v9622_v61, 16  ;;  %v3759_v40 = vshll.u32 %v9643_v43, 16 }
 0x366   :  { %v9651_v53 = vpop.f32.mrb[146].mxu0  ;;  %v4008_v46 = vpop.permute.xlu0 %4007  ;;  %v9666_v54 = vsel %vm888_vm1, %v3736_v29, %v3737_v63 }
 0x367   :  { %v3816_v2 = vpop.permute.xlu1 %3815  ;;  %v9657_v36 = vpop.f32.mrb[147].mxu0  ;;  %3961 = vrot.lane.b32.xlu1 %v9530_v45, %s6162_s28  ;;  %10362 = vst [vmem:[#allocation9_spill] sm:$0xff] %v9666_v54  ;;  %v3757_v30 = vor.u32 %v3756_v18, %v3752_v42  ;;  %v3761_v16 = vrot.slane %v3759_v40, 1  ;;  %v4446_v6 = vsel %vm21_vm0, %v9222_v7, %v4008_v46 }
 0x368   :  { %4153 = vrot.lane.b32.xlu0 %v9654_v4, %s6162_s28  ;;  %v4200_v63 = vsel %vm21_vm0, %v9088_v52, %v3816_v2 }
 0x36a   :  { %v4072_v55 = vpop.permute.xlu0 %4071 }
 0x36b   :  { %v3880_v26 = vpop.permute.xlu1 %3879  ;;  %3835 = vrot.lane.b32.xlu1 %v9599_v27, %s6163_s6  ;;  %v4520_v43 = vsel %vm1501_vm3, %v4446_v6, %v4072_v55 }
 0x36c   :  { %4027 = vrot.lane.b32.xlu0 %v9666_v54, %s6163_s6  ;;  %v9672_v56 = vpop.f32.mrb[148].mxu0  ;;  %v4942_v39 = vpop.f32.mrb[76].mxu1  ;;  %v4264_v45 = vsel %vm1501_vm3, %v4200_v63, %v3880_v26 }
 0x36d   :  { %v4943_v37 = vadd.f32 %v9515_v9, %v4942_v39  ;;  %v4944_v17 = vpop.f32.mrb[77].mxu1  ;;  %v9677_v29 = vpop.f32.mrb[149].mxu0 }
 0x36e   :  { %v9682_v54 = vpop.f32.mrb[150].mxu0  ;;  %v4136_v3 = vpop.permute.xlu0 %4135 }
 0x36f   :  { %v9686_v42 = vadd.f32 %v9540_v34, %v4943_v37  ;;  %v3944_v18 = vpop.permute.xlu1 %3943  ;;  %v4945_v7 = vpop.f32.mrb[78].mxu1  ;;  %3899 = vrot.lane.b32.xlu1 %v9613_v33, %s6161_s27  ;;  %v4605_v52 = vsel %vm1566_vm4, %v4520_v43, %v4136_v3  ;;  %v3762_v34 = vsel %vm439_vm2, %v3757_v30, %v3761_v16 }
 0x370   :  { %4091 = vrot.lane.b32.xlu0 %v9622_v61, %s6161_s27  ;;  %v4946_v46 = vadd.f32 %v9515_v9, %v4945_v7  ;;  %v4947_v2 = vpop.f32.mrb[79].mxu1  ;;  %v9694_v40 = vpop.f32.mrb[151].mxu0  ;;  %5084 = vmatprep.mubr.bf16.mxu1 %v4605_v52  ;;  %v4349_v55 = vsel %vm1566_vm4, %v4264_v45, %v3944_v18 }
 0x371   :  { %5085 = vmatmul.mubr.bf16.gmra.mrb[148].mxu1 %v4349_v55 }
 0x372   :  { %v9699_v26 = vadd.f32 %v9546_v1, %v4946_v46  ;;  %v4010_v39 = vpop.permute.xlu0 %4009 }
 0x373   :  { %v3818_v6 = vpop.permute.xlu1 %3817  ;;  %3963 = vrot.lane.b32.xlu1 %v9579_v60, %s6162_s28  ;;  %v4449_v1 = vsel %vm21_vm0, %v9265_v5, %v4010_v39 }
 0x374   :  { %4155 = vrot.lane.b32.xlu0 %v3762_v34, %s6162_s28  ;;  %v9704_v3 = vpop.f32.mrb[152].mxu0  ;;  %v4202_v60 = vsel %vm21_vm0, %v9131_v41, %v3818_v6 }
 0x375   :  { %v9706_v43 = vpop.f32.mrb[153].mxu0 }
 0x376   :  { %v9708_v37 = vpop.f32.mrb[154].mxu0  ;;  %v4074_v45 = vpop.permute.xlu0 %4073 }
 0x377   :  { %v3882_v17 = vpop.permute.xlu1 %3881  ;;  %v9710_v30 = vpop.f32.mrb[155].mxu0  ;;  %v4522_v7 = vsel %vm1501_vm3, %v4449_v1, %v4074_v45 }
 0x378   :  { %v4950_v16 = vpop.f32.mrb[80].mxu1  ;;  %v4266_v2 = vsel %vm1501_vm3, %v4202_v60, %v3882_v17 }
 0x379   :  { %v4951_v63 = vadd.f32 %v9515_v9, %v4950_v16  ;;  %v4952_v18 = vpop.f32.mrb[81].mxu1 }
 0x37a   :  { %v4138_v52 = vpop.permute.xlu0 %4137  ;;  %v4953_v46 = vpop.f32.mrb[82].mxu1 }
 0x37b   :  { %v9720_v55 = vadd.f32 %v9572_v23, %v4951_v63  ;;  %v3946_v34 = vpop.permute.xlu1 %3945  ;;  %v4954_v61 = vadd.f32 %v9515_v9, %v4953_v46  ;;  %v4955_v33 = vpop.f32.mrb[83].mxu1  ;;  %v4608_v5 = vsel %vm1566_vm4, %v4522_v7, %v4138_v52 }
 0x37c   :  { %5092 = vmatprep.mubr.bf16.mxu1 %v4608_v5  ;;  %v4352_v39 = vsel %vm1566_vm4, %v4266_v2, %v3946_v34  ;;  %v9725_v16 = vpop.f32.mrb[156].mxu0 }
 0x37d   :  { %10363 = vst [vmem:[#allocation7_spill] sm:$0xff] %v9725_v16  ;;  %v9728_v41 = vadd.f32 %v9591_v20, %v4954_v61  ;;  %5093 = vmatmul.mubr.bf16.gmra.mrb[152].mxu1 %v4352_v39  ;;  %v9730_v6 = vpop.f32.mrb[157].mxu0 }
 0x37e   :  { %v4012_v45 = vpop.permute.xlu0 %4011  ;;  %v9732_v23 = vpop.f32.mrb[158].mxu0 }
 0x37f   :  { %10364 = vst [vmem:[#allocation17_spill] sm:$0xff] %v9732_v23  ;;  %v3820_v17 = vpop.permute.xlu1 %3819  ;;  %v9734_v1 = vpop.f32.mrb[159].mxu0  ;;  %v4452_v60 = vsel %vm21_vm0, %v9308_v59, %v4012_v45 }
 0x380   :  { %v4204_v20 = vsel %vm21_vm0, %v9174_v50, %v3820_v17  ;;  %v5462_v50 = vld [vmem:[%s10231_s0] sm:$0xff] }
 0x382   :  { %v4076_v33 = vpop.permute.xlu0 %4075 }
 0x383   :  { %v3884_v63 = vpop.permute.xlu1 %3883  ;;  %v4524_v61 = vsel %vm1501_vm3, %v4452_v60, %v4076_v33  ;;  %v5526_v60 = vadd.f32 %v5462_v50, %v9532_v25 }
 0x384   :  { %v4958_v18 = vpop.f32.mrb[84].mxu1  ;;  %v4268_v34 = vsel %vm1501_vm3, %v4204_v20, %v3884_v63 }
 0x385   :  { %v4959_v7 = vadd.f32 %v9515_v9, %v4958_v18  ;;  %v4960_v52 = vpop.f32.mrb[85].mxu1 }
 0x386   :  { %v4140_v46 = vpop.permute.xlu0 %4139  ;;  %v4961_v2 = vpop.f32.mrb[86].mxu1 }
 0x387   :  { %v9744_v5 = vadd.f32 %v9566_v44, %v4959_v7  ;;  %v3948_v39 = vpop.permute.xlu1 %3947  ;;  %v4962_v23 = vadd.f32 %v9515_v9, %v4961_v2  ;;  %v4963_v16 = vpop.f32.mrb[87].mxu1  ;;  %v4611_v59 = vsel %vm1566_vm4, %v4524_v61, %v4140_v46  ;;  %v5463_v7 = vld [vmem:[%s10231_s0 + $0x8] sm:$0xff]  ;;  %v5590_v61 = vmax.f32 %v5526_v60, 0.0  ;;  %v5464_v46 = vld [vmem:[%s10231_s0 + $0x10] sm:$0xff] }
 0x388   :  { %5100 = vmatprep.mubr.bf16.mxu1 %v4611_v59  ;;  %v4355_v45 = vsel %vm1566_vm4, %v4268_v34, %v3948_v39 }
 0x389   :  { %v9753_v17 = vadd.f32 %v9577_v35, %v4962_v23  ;;  %5101 = vmatmul.mubr.bf16.gmra.mrb[156].mxu1 %v4355_v45  ;;  %v9755_v33 = vpop.f32.mrb[160].mxu0  ;;  %v5527_v35 = vadd.f32 %v5463_v7, %v9542_v38  ;;  %v5528_v7 = vadd.f32 %v5464_v46, %v9583_v62  ;;  %v5466_v46 = vld [vmem:[%s10231_s0 + $0x20] sm:$0xff] }
 0x38a   :  { %10365 = vst [vmem:[#allocation16_spill] sm:$0xff] %v9755_v33  ;;  %v9757_v44 = vpop.f32.mrb[161].mxu0  ;;  %v4014_v63 = vpop.permute.xlu0 %4013 }
 0x38b   :  { %v3822_v18 = vpop.permute.xlu1 %3821  ;;  %v9759_v16 = vpop.f32.mrb[162].mxu0  ;;  %v4455_v34 = vsel %vm21_vm0, %v9351_v32, %v4014_v63  ;;  %v5591_v60 = vmax.f32 %v5527_v35, 0.0  ;;  %v5592_v35 = vmax.f32 %v5528_v7, 0.0 }
 0x38c   :  { %10366 = vst [vmem:[#allocation10_spill] sm:$0xff] %v9759_v16  ;;  %v9765_v52 = vpop.f32.mrb[163].mxu0  ;;  %v4206_v59 = vsel %vm21_vm0, %v9217_v19, %v3822_v18  ;;  %v5465_v18 = vld [vmem:[%s10231_s0 + $0x18] sm:$0xff] }
 0x38e   :  { %v4078_v20 = vpop.permute.xlu0 %4077 }
 0x38f   :  { %v3886_v23 = vpop.permute.xlu1 %3885  ;;  %v4526_v45 = vsel %vm1501_vm3, %v4455_v34, %v4078_v20  ;;  %v5530_v34 = vadd.f32 %v5466_v46, %v9632_v10 }
 0x390   :  { %v4966_v2 = vpop.f32.mrb[88].mxu1  ;;  %v4270_v16 = vsel %vm1501_vm3, %v4206_v59, %v3886_v23  ;;  %v5529_v23 = vadd.f32 %v5465_v18, %v9596_v58 }
 0x391   :  { %v4967_v25 = vadd.f32 %v9515_v9, %v4966_v2  ;;  %v4968_v39 = vpop.f32.mrb[89].mxu1 }
 0x392   :  { %5654 = vxpose.xlu0.b32.start [1/16] (narrow) %v5590_v61, 32  ;;  %v4142_v38 = vpop.permute.xlu0 %4141  ;;  %v4969_v50 = vpop.f32.mrb[90].mxu1  ;;  %v5593_v39 = vmax.f32 %v5529_v23, 0.0 }
 0x393   :  { %v9780_v33 = vadd.f32 %v9608_v49, %v4967_v25  ;;  %v3950_v32 = vpop.permute.xlu1 %3949  ;;  %v4970_v63 = vadd.f32 %v9515_v9, %v4969_v50  ;;  %v4971_v2 = vpop.f32.mrb[91].mxu1  ;;  %v4614_v61 = vsel %vm1566_vm4, %v4526_v45, %v4142_v38 }
 0x394   :  { %5108 = vmatprep.mubr.bf16.mxu1 %v4614_v61  ;;  %v4358_v19 = vsel %vm1566_vm4, %v4270_v16, %v3950_v32  ;;  %v5594_v32 = vmax.f32 %v5530_v34, 0.0 }
 0x395   :  { %v9789_v62 = vadd.f32 %v9615_v28, %v4970_v63  ;;  %5109 = vmatmul.mubr.bf16.gmra.mrb[160].mxu1 %v4358_v19  ;;  %v5467_v28 = vld [vmem:[%s10231_s0 + $0x28] sm:$0xff] }
 0x396   :  { %5655 = vxpose.xlu0.b32.cont [2/16] (narrow) %v5591_v60, 32  ;;  %v4016_v49 = vpop.permute.xlu0 %4015  ;;  %v5531_v63 = vadd.f32 %v5467_v28, %v9647_v8 }
 0x397   :  { %v3824_v20 = vpop.permute.xlu1 %3823  ;;  %v4458_v45 = vsel %vm21_vm0, %v9390_v0, %v4016_v49 }
 0x398   :  { %v4208_v50 = vsel %vm21_vm0, %v9260_v11, %v3824_v20  ;;  %v5468_v20 = vld [vmem:[%s10231_s0 + $0x30] sm:$0xff]  ;;  %v5595_v34 = vmax.f32 %v5531_v63, 0.0 }
 0x39a   :  { %5656 = vxpose.xlu0.b32.cont [3/16] (narrow) %v5592_v35, 32  ;;  %v4080_v16 = vpop.permute.xlu0 %4079 }
 0x39b   :  { %v3888_v25 = vpop.permute.xlu1 %3887  ;;  %v4528_v60 = vsel %vm1501_vm3, %v4458_v45, %v4080_v16 }
 0x39c   :  { %v4974_v59 = vpop.f32.mrb[92].mxu1  ;;  %v4272_v2 = vsel %vm1501_vm3, %v4208_v50, %v3888_v25  ;;  %v5532_v25 = vadd.f32 %v5468_v20, %v9686_v42 }
 0x39d   :  { %v4975_v58 = vadd.f32 %v9515_v9, %v4974_v59  ;;  %v4976_v38 = vpop.f32.mrb[93].mxu1 }
 0x39e   :  { %5657 = vxpose.xlu0.b32.cont [4/16] (narrow) %v5593_v39, 32  ;;  %v4144_v10 = vpop.permute.xlu0 %4143  ;;  %v4977_v7 = vpop.f32.mrb[94].mxu1  ;;  %v5469_v39 = vld [vmem:[%s10231_s0 + $0x38] sm:$0xff]  ;;  %v5470_v38 = vld [vmem:[%s10231_s0 + $0x40] sm:$0xff] }
 0x39f   :  { %v9808_v61 = vadd.f32 %v9606_v47, %v4975_v58  ;;  %v3952_v0 = vpop.permute.xlu1 %3951  ;;  %v4978_v19 = vadd.f32 %v9515_v9, %v4977_v7  ;;  %v4979_v18 = vpop.f32.mrb[95].mxu1  ;;  %v4617_v49 = vsel %vm1566_vm4, %v4528_v60, %v4144_v10  ;;  %v5533_v59 = vadd.f32 %v5469_v39, %v9699_v26 }
 0x3a0   :  { %5116 = vmatprep.mubr.bf16.mxu1 %v4617_v49  ;;  %v4361_v11 = vsel %vm1566_vm4, %v4272_v2, %v3952_v0  ;;  %v5596_v58 = vmax.f32 %v5532_v25, 0.0  ;;  %v5478_v0 = vld [vmem:[%s10231_s0 + $0x80] sm:$0xff] }
 0x3a1   :  { %v9817_v8 = vadd.f32 %v9610_v22, %v4978_v19  ;;  %5117 = vmatmul.mubr.bf16.gmra.mrb[164].mxu1 %v4361_v11  ;;  %v9819_v35 = vpop.f32.mrb[164].mxu0  ;;  %v5597_v2 = vmax.f32 %v5533_v59, 0.0  ;;  %v5534_v19 = vadd.f32 %v5470_v38, %v9720_v55  ;;  %v5471_v55 = vld [vmem:[%s10231_s0 + $0x48] sm:$0xff]  ;;  %v5472_v38 = vld [vmem:[%s10231_s0 + $0x50] sm:$0xff] }
 0x3a2   :  { %5658 = vxpose.xlu0.b32.cont [5/16] (narrow) %v5594_v32, 32  ;;  %v9821_v47 = vpop.f32.mrb[165].mxu0  ;;  %v4018_v23 = vpop.permute.xlu0 %4017 }
 0x3a3   :  { %v3826_v46 = vpop.permute.xlu1 %3825  ;;  %v9823_v16 = vpop.f32.mrb[166].mxu0  ;;  %v4461_v42 = vsel %vm21_vm0, %v9424_v14, %v4018_v23  ;;  %v5598_v59 = vmax.f32 %v5534_v19, 0.0 }
 0x3a4   :  { %v9829_v28 = vpop.f32.mrb[167].mxu0  ;;  %v4210_v7 = vsel %vm21_vm0, %v9303_v15, %v3826_v46  ;;  %v5479_v46 = vld [vmem:[%s10231_s0 + $0x88] sm:$0xff] }
 0x3a6   :  { %5659 = vxpose.xlu0.b32.cont [6/16] (narrow) %v5595_v34, 32  ;;  %v4082_v22 = vpop.permute.xlu0 %4081 }
 0x3a7   :  { %v3890_v45 = vpop.permute.xlu1 %3889  ;;  %v4530_v32 = vsel %vm1501_vm3, %v4461_v42, %v4082_v22  ;;  %v5536_v42 = vadd.f32 %v5472_v38, %v9744_v5 }
 0x3a8   :  { %v4982_v50 = vpop.f32.mrb[96].mxu1  ;;  %v4274_v14 = vsel %vm1501_vm3, %v4210_v7, %v3890_v45  ;;  %v5473_v7 = vld [vmem:[%s10231_s0 + $0x58] sm:$0xff] }
 0x3a9   :  { %v4983_v60 = vadd.f32 %v9515_v9, %v4982_v50  ;;  %v4984_v10 = vpop.f32.mrb[97].mxu1 }
 0x3aa   :  { %5660 = vxpose.xlu0.b32.cont [7/16] (narrow) %v5596_v58, 32  ;;  %v4146_v26 = vpop.permute.xlu0 %4145  ;;  %v4985_v63 = vpop.f32.mrb[98].mxu1  ;;  %v5535_v58 = vadd.f32 %v5471_v55, %v9728_v41  ;;  %v5481_v55 = vld [vmem:[%s10231_s0 + $0x98] sm:$0xff] }
 0x3ab   :  { %v5272_v18 = vadd.f32 %v9649_v12, %v4983_v60  ;;  %v3954_v49 = vpop.permute.xlu1 %3953  ;;  %v4986_v11 = vadd.f32 %v9515_v9, %v4985_v63  ;;  %v4987_v20 = vpop.f32.mrb[99].mxu1  ;;  %v4620_v15 = vsel %vm1566_vm4, %v4530_v32, %v4146_v26 }
 0x3ac   :  { %5124 = vmatprep.mubr.bf16.mxu1 %v4620_v15  ;;  %v4364_v23 = vsel %vm1566_vm4, %v4274_v14, %v3954_v49  ;;  %v5599_v10 = vmax.f32 %v5535_v58, 0.0  ;;  %v5600_v14 = vmax.f32 %v5536_v42, 0.0  ;;  %v5537_v49 = vadd.f32 %v5473_v7, %v9753_v17  ;;  %v5474_v17 = vld [vmem:[%s10231_s0 + $0x60] sm:$0xff] }
 0x3ad   :  { %v5275_v34 = vadd.f32 %v9657_v36, %v4986_v11  ;;  %5125 = vmatmul.mubr.bf16.gmra.mrb[168].mxu1 %v4364_v23  ;;  %v5542_v12 = vadd.f32 %v5478_v0, %v5272_v18  ;;  %v5480_v18 = vld [vmem:[%s10231_s0 + $0x90] sm:$0xff] }
 0x3ae   :  { %5661 = vxpose.xlu0.b32.cont [8/16] (narrow) %v5597_v2, 32  ;;  %v4020_v25 = vpop.permute.xlu0 %4019  ;;  %v5601_v58 = vmax.f32 %v5537_v49, 0.0 }
 0x3af   :  { %v3828_v39 = vpop.permute.xlu1 %3827  ;;  %v5606_v22 = vmax.f32 %v5542_v12, 0.0  ;;  %v5543_v45 = vadd.f32 %v5479_v46, %v5275_v34  ;;  %v4464_v41 = vsel %vm21_vm0, %v9457_v51, %v4020_v25 }
 0x3b0   :  { %v4212_v2 = vsel %vm21_vm0, %v9346_v57, %v3828_v39 }
 0x3b1   :  { %5686 = vxpose.xlu1.b32.start [1/16] (narrow) %v5606_v22, 32  ;;  %v5607_v60 = vmax.f32 %v5543_v45, 0.0 }
 0x3b2   :  { %5662 = vxpose.xlu0.b32.cont [9/16] (narrow) %v5598_v59, 32  ;;  %v4084_v50 = vpop.permute.xlu0 %4083 }
 0x3b3   :  { %v3892_v36 = vpop.permute.xlu1 %3891  ;;  %v4532_v5 = vsel %vm1501_vm3, %v4464_v41, %v4084_v50  ;;  %v5538_v50 = vadd.f32 %v5474_v17, %v9780_v33  ;;  %v5476_v41 = vld [vmem:[%s10231_s0 + $0x70] sm:$0xff] }
 0x3b4   :  { %v4990_v32 = vpop.f32.mrb[100].mxu1  ;;  %v4276_v51 = vsel %vm1501_vm3, %v4212_v2, %v3892_v36  ;;  %v5540_v49 = vadd.f32 %v5476_v41, %v9808_v61  ;;  %v5477_v61 = vld [vmem:[%s10231_s0 + $0x78] sm:$0xff]  ;;  %v5484_v41 = vld [vmem:[%s10231_s0 + $0xb0] sm:$0xff] }
 0x3b5   :  { %v4991_v26 = vadd.f32 %v9515_v9, %v4990_v32  ;;  %v4992_v63 = vpop.f32.mrb[101].mxu1  ;;  %5687 = vxpose.xlu1.b32.cont [2/16] (narrow) %v5607_v60, 32  ;;  %v5602_v32 = vmax.f32 %v5538_v50, 0.0 }
 0x3b6   :  { %5663 = vxpose.xlu0.b32.cont [10/16] (narrow) %v5599_v10, 32  ;;  %v4148_v0 = vpop.permute.xlu0 %4147  ;;  %v4993_v19 = vpop.f32.mrb[102].mxu1 }
 0x3b7   :  { %v5280_v11 = vadd.f32 %v9640_v24, %v4991_v26  ;;  %v3956_v20 = vpop.permute.xlu1 %3955  ;;  %v4994_v15 = vadd.f32 %v9515_v9, %v4993_v19  ;;  %v4995_v23 = vpop.f32.mrb[103].mxu1  ;;  %v4623_v57 = vsel %vm1566_vm4, %v4532_v5, %v4148_v0 }
 0x3b8   :  { %5132 = vmatprep.mubr.bf16.mxu1 %v4623_v57  ;;  %v4367_v46 = vsel %vm1566_vm4, %v4276_v51, %v3956_v20  ;;  %v5483_v57 = vld [vmem:[%s10231_s0 + $0xa8] sm:$0xff] }
 0x3b9   :  { %v5283_v34 = vadd.f32 %v9651_v53, %v4994_v15  ;;  %5133 = vmatmul.mubr.bf16.gmra.mrb[172].mxu1 %v4367_v46  ;;  %v9887_v24 = vpop.f32.mrb[168].mxu0  ;;  %v5544_v12 = vadd.f32 %v5480_v18, %v5280_v11  ;;  %v5475_v53 = vld [vmem:[%s10231_s0 + $0x68] sm:$0xff]  ;;  %v5482_v18 = vld [vmem:[%s10231_s0 + $0xa0] sm:$0xff] }
 0x3ba   :  { %5664 = vxpose.xlu0.b32.cont [11/16] (narrow) %v5600_v14, 32  ;;  %v9889_v25 = vpop.f32.mrb[169].mxu0  ;;  %v4022_v39 = vpop.permute.xlu0 %4021  ;;  %v5539_v60 = vadd.f32 %v5475_v53, %v9789_v62 }
 0x3bb   :  { %v3830_v22 = vpop.permute.xlu1 %3829  ;;  %v9891_v59 = vpop.f32.mrb[170].mxu0  ;;  %v5608_v45 = vmax.f32 %v5544_v12, 0.0  ;;  %v5545_v38 = vadd.f32 %v5481_v55, %v5283_v34  ;;  %v4467_v33 = vsel %vm21_vm0, %v9495_v31, %v4022_v39  ;;  %v5604_v12 = vmax.f32 %v5540_v49, 0.0 }
 0x3bc   :  { %v9897_v42 = vpop.f32.mrb[171].mxu0  ;;  %v4214_v5 = vsel %vm21_vm0, %v9413_v48, %v3830_v22  ;;  %v5603_v14 = vmax.f32 %v5539_v60, 0.0  ;;  %v5541_v22 = vadd.f32 %v5477_v61, %v9817_v8 }
 0x3bd   :  { %5688 = vxpose.xlu1.b32.cont [3/16] (narrow) %v5608_v45, 32  ;;  %v5609_v7 = vmax.f32 %v5545_v38, 0.0 }
 0x3be   :  { %5665 = vxpose.xlu0.b32.cont [12/16] (narrow) %v5601_v58, 32  ;;  %v4086_v36 = vpop.permute.xlu0 %4085  ;;  %v5605_v50 = vmax.f32 %v5541_v22, 0.0 }
 0x3bf   :  { %v3894_v10 = vpop.permute.xlu1 %3893  ;;  %v4534_v62 = vsel %vm1501_vm3, %v4467_v33, %v4086_v36 }
 0x3c0   :  { %v4998_v26 = vpop.f32.mrb[104].mxu1  ;;  %v4278_v31 = vsel %vm1501_vm3, %v4214_v5, %v3894_v10 }
 0x3c1   :  { %v4999_v63 = vadd.f32 %v9515_v9, %v4998_v26  ;;  %v5000_v2 = vpop.f32.mrb[105].mxu1  ;;  %5689 = vxpose.xlu1.b32.cont [4/16] (narrow) %v5609_v7, 32 }
 0x3c2   :  { %5666 = vxpose.xlu0.b32.cont [13/16] (narrow) %v5602_v32, 32  ;;  %v4150_v0 = vpop.permute.xlu0 %4149  ;;  %v5001_v19 = vpop.f32.mrb[106].mxu1 }
 0x3c3   :  { %v5288_v51 = vadd.f32 %v9677_v29, %v4999_v63  ;;  %v3958_v11 = vpop.permute.xlu1 %3957  ;;  %v5002_v20 = vadd.f32 %v9515_v9, %v5001_v19  ;;  %v5003_v15 = vpop.f32.mrb[107].mxu1  ;;  %v4626_v48 = vsel %vm1566_vm4, %v4534_v62, %v4150_v0  ;;  %v5485_v62 = vld [vmem:[%s10231_s0 + $0xb8] sm:$0xff] }
 0x3c4   :  { %5140 = vmatprep.mubr.bf16.mxu1 %v4626_v48  ;;  %v4370_v23 = vsel %vm1566_vm4, %v4278_v31, %v3958_v11 }
 0x3c5   :  { %v5291_v46 = vadd.f32 %v9694_v40, %v5002_v20  ;;  %5141 = vmatmul.mubr.bf16.gmra.mrb[176].mxu1 %v4370_v23  ;;  %v5546_v29 = vadd.f32 %v5482_v18, %v5288_v51 }
 0x3c6   :  { %5667 = vxpose.xlu0.b32.cont [14/16] (narrow) %v5603_v14, 32  ;;  %v4024_v55 = vpop.permute.xlu0 %4023 }
 0x3c7   :  { %v3832_v17 = vpop.permute.xlu1 %3831  ;;  %v5610_v34 = vmax.f32 %v5546_v29, 0.0  ;;  %v5547_v39 = vadd.f32 %v5483_v57, %v5291_v46  ;;  %v4470_v40 = vsel %vm21_vm0, %v9549_v21, %v4024_v55  ;;  %v10367_v29 = vld [vmem:[#allocation14_spill] sm:$0xff] }
 0x3c8   :  { %v4216_v10 = vsel %vm21_vm0, %v9446_v13, %v3832_v17 }
 0x3c9   :  { %5690 = vxpose.xlu1.b32.cont [5/16] (narrow) %v5610_v34, 32  ;;  %v5611_v38 = vmax.f32 %v5547_v39, 0.0  ;;  %v5486_v39 = vld [vmem:[%s10231_s0 + $0xc0] sm:$0xff] }
 0x3ca   :  { %5668 = vxpose.xlu0.b32.cont [15/16] (narrow) %v5604_v12, 32  ;;  %v4088_v45 = vpop.permute.xlu0 %4087 }
 0x3cb   :  { %v3896_v58 = vpop.permute.xlu1 %3895  ;;  %v4536_v8 = vsel %vm1501_vm3, %v4470_v40, %v4088_v45  ;;  %v5487_v40 = vld [vmem:[%s10231_s0 + $0xc8] sm:$0xff] }
 0x3cc   :  { %v5006_v53 = vpop.f32.mrb[108].mxu1  ;;  %v4280_v26 = vsel %vm1501_vm3, %v4216_v10, %v3896_v58 }
 0x3cd   :  { %v5007_v36 = vadd.f32 %v9515_v9, %v5006_v53  ;;  %v5008_v60 = vpop.f32.mrb[109].mxu1  ;;  %5691 = vxpose.xlu1.b32.cont [6/16] (narrow) %v5611_v38, 32 }
 0x3ce   :  { %5669 = vxpose.xlu0.b32.end [16/16] (narrow) %v5605_v50, 32  ;;  %v4152_v7 = vpop.permute.xlu0 %4151  ;;  %v5009_v32 = vpop.f32.mrb[110].mxu1 }
 0x3cf   :  { %v5296_v21 = vadd.f32 %v9672_v56, %v5007_v36  ;;  %v3960_v33 = vpop.permute.xlu1 %3959  ;;  %v5010_v63 = vadd.f32 %v9515_v9, %v5009_v32  ;;  %v5011_v2 = vpop.f32.mrb[111].mxu1  ;;  %v4629_v5 = vsel %vm1566_vm4, %v4536_v8, %v4152_v7 }
 0x3d0   :  { %5148 = vmatprep.mubr.bf16.mxu1 %v4629_v5  ;;  %v4373_v13 = vsel %vm1566_vm4, %v4280_v26, %v3960_v33  ;;  %v9975_v33 = vld [vmem:[%s10235_s4] ss:$0 sm:$0xff]  ;;  %v10368_v2 = vld [vmem:[#allocation15_spill] sm:$0xff] }
 0x3d1   :  { %v5299_v0 = vadd.f32 %v9682_v54, %v5010_v63  ;;  %5149 = vmatmul.mubr.bf16.gmra.mrb[180].mxu1 %v4373_v13  ;;  %v9944_v19 = vpop.f32.mrb[172].mxu0  ;;  %v5548_v14 = vadd.f32 %v5484_v41, %v5296_v21 }
 0x3d2   :  { %v9946_v56 = vpop.f32.mrb[173].mxu0  ;;  %v4026_v18 = vpop.permute.xlu0 %4025 }
 0x3d3   :  { %v3834_v49 = vpop.permute.xlu1 %3833  ;;  %v9948_v31 = vpop.f32.mrb[174].mxu0  ;;  %v5612_v51 = vmax.f32 %v5548_v14, 0.0  ;;  %v5549_v11 = vadd.f32 %v5485_v62, %v5299_v0  ;;  %v4473_v54 = vsel %vm21_vm0, %v9599_v27, %v4026_v18 }
 0x3d4   :  { %v9950_v20 = vpop.f32.mrb[175].mxu0  ;;  %v4218_v55 = vsel %vm21_vm0, %v10367_v29, %v3834_v49 }
 0x3d5   :  { %5692 = vxpose.xlu1.b32.cont [7/16] (narrow) %v5612_v51, 32  ;;  %v5613_v23 = vmax.f32 %v5549_v11, 0.0 }
 0x3d6   :  { %v4090_v15 = vpop.permute.xlu0 %4089 }
 0x3d7   :  { %v3898_v48 = vpop.permute.xlu1 %3897  ;;  %v4538_v17 = vsel %vm1501_vm3, %v4473_v54, %v4090_v15 }
 0x3d8   :  { %v5014_v57 = vpop.f32.mrb[112].mxu1  ;;  %v4282_v22 = vsel %vm1501_vm3, %v4218_v55, %v3898_v48 }
 0x3d9   :  { %v5015_v61 = vadd.f32 %v9515_v9, %v5014_v57  ;;  %v5016_v46 = vpop.f32.mrb[113].mxu1  ;;  %5693 = vxpose.xlu1.b32.cont [8/16] (narrow) %v5613_v23, 32  ;;  %v5489_v23 = vld [vmem:[%s10231_s0 + $0xd8] sm:$0xff] }
 0x3da   :  { %v4154_v34 = vpop.permute.xlu0 %4153  ;;  %v5017_v12 = vpop.f32.mrb[114].mxu1  ;;  %v10369_v46 = vld [vmem:[#allocation4_spill] sm:$0xff] }
 0x3db   :  { %v5304_v45 = vadd.f32 %v9706_v43, %v5015_v61  ;;  %v3962_v27 = vpop.permute.xlu1 %3961  ;;  %v5018_v58 = vadd.f32 %v9515_v9, %v5017_v12  ;;  %v5019_v38 = vpop.f32.mrb[115].mxu1  ;;  %v4632_v50 = vsel %vm1566_vm4, %v4538_v17, %v4154_v34 }
 0x3dc   :  { %5156 = vmatprep.mubr.bf16.mxu1 %v4632_v50  ;;  %v4376_v53 = vsel %vm1566_vm4, %v4282_v22, %v3962_v27  ;;  %v5490_v38 = vld [vmem:[%s10231_s0 + $0xe0] sm:$0xff] }
 0x3dd   :  { %v5307_v36 = vadd.f32 %v9710_v30, %v5018_v58  ;;  %5157 = vmatmul.mubr.bf16.gmra.mrb[184].mxu1 %v4376_v53  ;;  %v5550_v60 = vadd.f32 %v5486_v39, %v5304_v45  ;;  %v10370_v45 = vld [vmem:[#allocation18_spill] sm:$0xff]  ;;  %v10371_v58 = vld [vmem:[#allocation5_spill] sm:$0xff] }
 0x3de   :  { %v4028_v10 = vpop.permute.xlu0 %4027 }
 0x3df   :  { %v3836_v8 = vpop.permute.xlu1 %3835  ;;  %v5614_v43 = vmax.f32 %v5550_v60, 0.0  ;;  %v5551_v7 = vadd.f32 %v5487_v40, %v5307_v36  ;;  %v4476_v21 = vsel %vm21_vm0, %v9654_v4, %v4028_v10  ;;  %v5488_v4 = vld [vmem:[%s10231_s0 + $0xd0] sm:$0xff]  ;;  %v5491_v36 = vld [vmem:[%s10231_s0 + $0xe8] sm:$0xff] }
 0x3e0   :  { %v4220_v5 = vsel %vm21_vm0, %v10368_v2, %v3836_v8 }
 0x3e1   :  { %5694 = vxpose.xlu1.b32.cont [9/16] (narrow) %v5614_v43, 32  ;;  %v5615_v41 = vmax.f32 %v5551_v7, 0.0  ;;  %v10372_v7 = vld [vmem:[#allocation8_spill] sm:$0xff] }
 0x3e2   :  { %v4092_v9 = vpop.permute.xlu0 %4091 }
 0x3e3   :  { %v3900_v32 = vpop.permute.xlu1 %3899  ;;  %v4540_v13 = vsel %vm1501_vm3, %v4476_v21, %v4092_v9  ;;  %v10373_v9 = vld [vmem:[#allocation9_spill] sm:$0xff] }
 0x3e4   :  { %v5022_v26 = vpop.f32.mrb[116].mxu1  ;;  %v4284_v14 = vsel %vm1501_vm3, %v4220_v5, %v3900_v32 }
 0x3e5   :  { %v5023_v30 = vadd.f32 %v9975_v33, %v5022_v26  ;;  %v5024_v63 = vpop.f32.mrb[117].mxu1  ;;  %5695 = vxpose.xlu1.b32.cont [10/16] (narrow) %v5615_v41, 32  ;;  %v10375_v41 = vld [vmem:[#allocation6_spill] sm:$0xff] }
 0x3e6   :  { %v4156_v62 = vpop.permute.xlu0 %4155  ;;  %v5025_v0 = vpop.f32.mrb[118].mxu1  ;;  %v3771_v26 = vrot.slane %v10375_v41, 1 }
 0x3e7   :  { %v5312_v18 = vadd.f32 %v9704_v3, %v5023_v30  ;;  %v3964_v49 = vpop.permute.xlu1 %3963  ;;  %v5026_v51 = vadd.f32 %v9975_v33, %v5025_v0  ;;  %v5027_v11 = vpop.f32.mrb[119].mxu1  ;;  %v4635_v15 = vsel %vm1566_vm4, %v4540_v13, %v4156_v62  ;;  %v5492_v13 = vld [vmem:[%s10231_s0 + $0xf0] sm:$0xff]  ;;  %v10376_v62 = vld [vmem:[#allocation7_spill] sm:$0xff] }
 0x3e8   :  { %5164 = vmatprep.mubr.bf16.mxu1 %v4635_v15  ;;  %v4379_v48 = vsel %vm1566_vm4, %v4284_v14, %v3964_v49  ;;  %v10377_v49 = vld [vmem:[#allocation17_spill] sm:$0xff] }
 0x3e9   :  { %v5315_v57 = vadd.f32 %v9708_v37, %v5026_v51  ;;  %5165 = vmatmul.mubr.bf16.gmra.mrb[188].mxu1 %v4379_v48  ;;  %v9993_v54 = vpop.f32.mrb[176].mxu0  ;;  %v5552_v61 = vadd.f32 %v5488_v4, %v5312_v18  ;;  %v5493_v18 = vld [vmem:[%s10231_s0 + $0xf8] sm:$0xff] }
 0x3ea   :  { %v9995_v3 = vpop.f32.mrb[177].mxu0  ;;  %6096 = vmatprep.mubr.msk.bf16.mxu1 %vm21_vm0, %v10369_v46 }
 0x3eb   :  { %v9999_v29 = vpop.f32.mrb[178].mxu0  ;;  %v5616_v55 = vmax.f32 %v5552_v61, 0.0  ;;  %v5553_v17 = vadd.f32 %v5489_v23, %v5315_v57 }
 0x3ec   :  { %v10001_v34 = vpop.f32.mrb[179].mxu0 }
 0x3ed   :  { %5696 = vxpose.xlu1.b32.cont [11/16] (narrow) %v5616_v55, 32  ;;  %v5617_v12 = vmax.f32 %v5553_v17, 0.0  ;;  %v5494_v17 = vld [vmem:[%s10231_s0 + $0x100] sm:$0xff] }
 0x3f0   :  { %v5030_v39 = vpop.f32.mrb[120].mxu1 }
 0x3f1   :  { %v5031_v37 = vadd.f32 %v9975_v33, %v5030_v39  ;;  %v5032_v22 = vpop.f32.mrb[121].mxu1  ;;  %6097 = vmatmul.mubr.msk.bf16.vlgmr.msra.gmra.mrb[192].mxu1 %vm21_vm0, %v10370_v45  ;;  %5697 = vxpose.xlu1.b32.cont [12/16] (narrow) %v5617_v12, 32 }
 0x3f2   :  { %v5033_v27 = vpop.f32.mrb[122].mxu1  ;;  %6100 = vmatprep.mubr.msk.bf16.mxu1 %vm21_vm0, %v10371_v58  ;;  %v5495_v22 = vld [vmem:[%s10231_s0 + $0x108] sm:$0xff] }
 0x3f3   :  { %v5320_v50 = vadd.f32 %v9730_v6, %v5031_v37  ;;  %v5034_v53 = vadd.f32 %v9975_v33, %v5033_v27  ;;  %v5035_v40 = vpop.f32.mrb[123].mxu1  ;;  %v10374_v6 = vld [vmem:[#allocation19_spill] sm:$0xff] }
 0x3f4   :  { %v3770_v32 = vrot.slane %v10374_v6, 1 }
 0x3f5   :  { %v5323_v60 = vadd.f32 %v9734_v1, %v5034_v53  ;;  %v5554_v10 = vadd.f32 %v5490_v38, %v5320_v50 }
 0x3f6   :  { %v3772_v5 = vsel %vm888_vm1, %v3770_v32, %v3771_v26 }
 0x3f7   :  { %v5618_v8 = vmax.f32 %v5554_v10, 0.0  ;;  %v5555_v43 = vadd.f32 %v5491_v36, %v5323_v60  ;;  %v5496_v60 = vld [vmem:[%s10231_s0 + $0x110] sm:$0xff]  ;;  %v10378_v10 = vld [vmem:[#allocation16_spill] sm:$0xff] }
 0x3f9   :  { %6101 = vmatmul.mubr.msk.bf16.gmra.mrb[196].mxu1 %vm21_vm0, %v10372_v7  ;;  %5698 = vxpose.xlu1.b32.cont [13/16] (narrow) %v5618_v8, 32  ;;  %v5619_v21 = vmax.f32 %v5555_v43, 0.0  ;;  %v5497_v7 = vld [vmem:[%s10231_s0 + $0x118] sm:$0xff] }
 0x3fa   :  { %6104 = vmatprep.mubr.msk.bf16.mxu1 %vm21_vm0, %v10373_v9  ;;  %v10379_v9 = vld [vmem:[#allocation10_spill] sm:$0xff] }
 0x3fc   :  { %v5038_v30 = vpop.f32.mrb[124].mxu1 }
 0x3fd   :  { %v5039_v63 = vadd.f32 %v9975_v33, %v5038_v30  ;;  %v5040_v2 = vpop.f32.mrb[125].mxu1  ;;  %5699 = vxpose.xlu1.b32.cont [14/16] (narrow) %v5619_v21, 32 }
 0x3fe   :  { %v5041_v1 = vpop.f32.mrb[126].mxu1 }
 0x3ff   :  { %v5328_v0 = vadd.f32 %v10376_v62, %v5039_v63  ;;  %v5042_v4 = vadd.f32 %v9975_v33, %v5041_v1  ;;  %v5043_v14 = vpop.f32.mrb[127].mxu1 }
 0x401   :  { %v5331_v51 = vadd.f32 %v10377_v49, %v5042_v4  ;;  %6105 = vmatmul.mubr.msk.bf16.gmra.mrb[200].mxu1 %vm21_vm0, %v3772_v5  ;;  %v5556_v11 = vadd.f32 %v5492_v13, %v5328_v0  ;;  %v5498_v5 = vld [vmem:[%s10231_s0 + $0x120] sm:$0xff]  ;;  %v5499_v4 = vld [vmem:[%s10231_s0 + $0x128] sm:$0xff] }
 0x403   :  { %v5620_v15 = vmax.f32 %v5556_v11, 0.0  ;;  %v5557_v48 = vadd.f32 %v5493_v18, %v5331_v51 }
 0x405   :  { %5700 = vxpose.xlu1.b32.cont [15/16] (narrow) %v5620_v15, 32  ;;  %v5621_v23 = vmax.f32 %v5557_v48, 0.0 }
 0x408   :  { %v5046_v57 = vpop.f32.mrb[128].mxu1 }
 0x409   :  { %v5047_v61 = vadd.f32 %v9975_v33, %v5046_v57  ;;  %v5048_v46 = vpop.f32.mrb[129].mxu1  ;;  %5701 = vxpose.xlu1.b32.end [16/16] (narrow) %v5621_v23, 32  ;;  %v5500_v57 = vld [vmem:[%s10231_s0 + $0x130] sm:$0xff] }
 0x40a   :  { %v5049_v55 = vpop.f32.mrb[130].mxu1 }
 0x40b   :  { %v5336_v12 = vadd.f32 %v9757_v44, %v5047_v61  ;;  %v5050_v39 = vadd.f32 %v9975_v33, %v5049_v55  ;;  %v5051_v37 = vpop.f32.mrb[131].mxu1  ;;  %v5501_v55 = vld [vmem:[%s10231_s0 + $0x138] sm:$0xff] }
 0x40d   :  { %v5339_v45 = vadd.f32 %v9765_v52, %v5050_v39  ;;  %v5558_v27 = vadd.f32 %v5494_v17, %v5336_v12 }
 0x40f   :  { %v5622_v58 = vmax.f32 %v5558_v27, 0.0  ;;  %v5559_v38 = vadd.f32 %v5495_v22, %v5339_v45 }
 0x411   :  { %5718 = vxpose.xlu0.b32.start [1/16] (narrow) %v5622_v58, 32  ;;  %v5623_v50 = vmax.f32 %v5559_v38, 0.0  ;;  %v5502_v38 = vld [vmem:[%s10231_s0 + $0x140] sm:$0xff] }
 0x414   :  { %v5054_v53 = vpop.f32.mrb[132].mxu1 }
 0x415   :  { %v5055_v40 = vadd.f32 %v9975_v33, %v5054_v53  ;;  %v5056_v36 = vpop.f32.mrb[133].mxu1  ;;  %5719 = vxpose.xlu0.b32.cont [2/16] (narrow) %v5623_v50, 32 }
 0x416   :  { %v5057_v44 = vpop.f32.mrb[134].mxu1 }
 0x417   :  { %v5344_v8 = vadd.f32 %v10378_v10, %v5055_v40  ;;  %v5058_v43 = vadd.f32 %v9975_v33, %v5057_v44  ;;  %v5059_v52 = vpop.f32.mrb[135].mxu1  ;;  %v5503_v40 = vld [vmem:[%s10231_s0 + $0x148] sm:$0xff] }
 0x419   :  { %v5347_v6 = vadd.f32 %v10379_v9, %v5058_v43  ;;  %v5560_v32 = vadd.f32 %v5496_v60, %v5344_v8  ;;  %v5504_v9 = vld [vmem:[%s10231_s0 + $0x150] sm:$0xff] }
 0x41b   :  { %v5624_v41 = vmax.f32 %v5560_v32, 0.0  ;;  %v5561_v26 = vadd.f32 %v5497_v7, %v5347_v6 }
 0x41d   :  { %5720 = vxpose.xlu0.b32.cont [3/16] (narrow) %v5624_v41, 32  ;;  %v5625_v21 = vmax.f32 %v5561_v26, 0.0  ;;  %v5505_v41 = vld [vmem:[%s10231_s0 + $0x158] sm:$0xff] }
 0x420   :  { %v5062_v30 = vpop.f32.mrb[136].mxu1 }
 0x421   :  { %v5063_v63 = vadd.f32 %v9975_v33, %v5062_v30  ;;  %v5064_v2 = vpop.f32.mrb[137].mxu1  ;;  %5721 = vxpose.xlu0.b32.cont [4/16] (narrow) %v5625_v21, 32 }
 0x422   :  { %v5065_v1 = vpop.f32.mrb[138].mxu1 }
 0x423   :  { %v5352_v13 = vadd.f32 %v9821_v47, %v5063_v63  ;;  %v5066_v62 = vadd.f32 %v9975_v33, %v5065_v1  ;;  %v5067_v0 = vpop.f32.mrb[139].mxu1 }
 0x425   :  { %v5355_v14 = vadd.f32 %v9829_v28, %v5066_v62  ;;  %v5562_v18 = vadd.f32 %v5498_v5, %v5352_v13  ;;  %v5506_v62 = vld [vmem:[%s10231_s0 + $0x160] sm:$0xff] }
 0x427   :  { %v5626_v49 = vmax.f32 %v5562_v18, 0.0  ;;  %v5563_v51 = vadd.f32 %v5499_v4, %v5355_v14  ;;  %v5507_v14 = vld [vmem:[%s10231_s0 + $0x168] sm:$0xff] }
 0x429   :  { %5722 = vxpose.xlu0.b32.cont [5/16] (narrow) %v5626_v49, 32  ;;  %v5627_v11 = vmax.f32 %v5563_v51, 0.0 }
 0x42c   :  { %v5070_v15 = vpop.f32.mrb[140].mxu1 }
 0x42d   :  { %v5071_v48 = vadd.f32 %v9975_v33, %v5070_v15  ;;  %v5072_v23 = vpop.f32.mrb[141].mxu1  ;;  %5723 = vxpose.xlu0.b32.cont [6/16] (narrow) %v5627_v11, 32 }
 0x42e   :  { %v5073_v47 = vpop.f32.mrb[142].mxu1 }
 0x42f   :  { %v5360_v61 = vadd.f32 %v9819_v35, %v5071_v48  ;;  %v5074_v46 = vadd.f32 %v9975_v33, %v5073_v47  ;;  %v5075_v28 = vpop.f32.mrb[143].mxu1 }
 0x430   :  { %v5509_v28 = vld [vmem:[%s10231_s0 + $0x178] sm:$0xff] }
 0x431   :  { %v5363_v17 = vadd.f32 %v9823_v16, %v5074_v46  ;;  %v5564_v12 = vadd.f32 %v5500_v57, %v5360_v61  ;;  %v5508_v57 = vld [vmem:[%s10231_s0 + $0x170] sm:$0xff] }
 0x433   :  { %v5628_v39 = vmax.f32 %v5564_v12, 0.0  ;;  %v5565_v37 = vadd.f32 %v5501_v55, %v5363_v17 }
 0x435   :  { %5724 = vxpose.xlu0.b32.cont [7/16] (narrow) %v5628_v39, 32  ;;  %v5629_v22 = vmax.f32 %v5565_v37, 0.0 }
 0x438   :  { %v5078_v45 = vpop.f32.mrb[144].mxu1 }
 0x439   :  { %v5079_v27 = vadd.f32 %v9975_v33, %v5078_v45  ;;  %v5080_v58 = vpop.f32.mrb[145].mxu1  ;;  %5725 = vxpose.xlu0.b32.cont [8/16] (narrow) %v5629_v22, 32 }
 0x43a   :  { %v5081_v35 = vpop.f32.mrb[146].mxu1  ;;  %v5510_v58 = vld [vmem:[%s10231_s0 + $0x180] sm:$0xff] }
 0x43b   :  { %v5368_v50 = vadd.f32 %v9889_v25, %v5079_v27  ;;  %v5082_v53 = vadd.f32 %v9975_v33, %v5081_v35  ;;  %v5083_v16 = vpop.f32.mrb[147].mxu1 }
 0x43d   :  { %v5371_v36 = vadd.f32 %v9897_v42, %v5082_v53  ;;  %v5566_v44 = vadd.f32 %v5502_v38, %v5368_v50  ;;  %v5511_v50 = vld [vmem:[%s10231_s0 + $0x188] sm:$0xff] }
 0x43f   :  { %v5630_v60 = vmax.f32 %v5566_v44, 0.0  ;;  %v5567_v10 = vadd.f32 %v5503_v40, %v5371_v36 }
 0x441   :  { %5726 = vxpose.xlu0.b32.cont [9/16] (narrow) %v5630_v60, 32  ;;  %v5631_v8 = vmax.f32 %v5567_v10, 0.0 }
 0x444   :  { %v5086_v43 = vpop.f32.mrb[148].mxu1 }
 0x445   :  { %v5087_v52 = vadd.f32 %v9975_v33, %v5086_v43  ;;  %v5088_v7 = vpop.f32.mrb[149].mxu1  ;;  %5727 = vxpose.xlu0.b32.cont [10/16] (narrow) %v5631_v8, 32  ;;  %v5512_v43 = vld [vmem:[%s10231_s0 + $0x190] sm:$0xff] }
 0x446   :  { %v5089_v25 = vpop.f32.mrb[150].mxu1 }
 0x447   :  { %v5376_v6 = vadd.f32 %v9887_v24, %v5087_v52  ;;  %v5090_v32 = vadd.f32 %v9975_v33, %v5089_v25  ;;  %v5091_v42 = vpop.f32.mrb[151].mxu1  ;;  %v5513_v25 = vld [vmem:[%s10231_s0 + $0x198] sm:$0xff] }
 0x449   :  { %v5379_v26 = vadd.f32 %v9891_v59, %v5090_v32  ;;  %v5568_v21 = vadd.f32 %v5504_v9, %v5376_v6  ;;  %v5670_v6 = vpop.trf.xlu0 }
 0x44a   :  { %5782 = vst [vmem:[%s10236_s5] sm:$0xff] %v5670_v6 }
 0x44b   :  { %v5632_v30 = vmax.f32 %v5568_v21, 0.0  ;;  %v5569_v63 = vadd.f32 %v5505_v41, %v5379_v26 }
 0x44d   :  { %5728 = vxpose.xlu0.b32.cont [11/16] (narrow) %v5632_v30, 32  ;;  %v5633_v2 = vmax.f32 %v5569_v63, 0.0  ;;  %v5702_v9 = vpop.trf.xlu1  ;;  %v5671_v21 = vpop.trf.xlu0 }
 0x44e   :  { %5783 = vst [vmem:[%s10236_s5 + $0x8] sm:$0xff] %v5702_v9  ;;  %5786 = vst [vmem:[%s10236_s5 + $0x20] sm:$0xff] %v5671_v21  ;;  %v5517_v21 = vld [vmem:[%s10231_s0 + $0x1b8] sm:$0xff] }
 0x450   :  { %v5094_v1 = vpop.f32.mrb[152].mxu1 }
 0x451   :  { %v5095_v5 = vadd.f32 %v9975_v33, %v5094_v1  ;;  %v5096_v13 = vpop.f32.mrb[153].mxu1  ;;  %5729 = vxpose.xlu0.b32.cont [12/16] (narrow) %v5633_v2, 32  ;;  %v5703_v26 = vpop.trf.xlu1 }
 0x452   :  { %v5097_v24 = vpop.f32.mrb[154].mxu1  ;;  %5787 = vst [vmem:[%s10236_s5 + $0x28] sm:$0xff] %v5703_v26  ;;  %v5672_v1 = vpop.trf.xlu0 }
 0x453   :  { %v5384_v0 = vadd.f32 %v9946_v56, %v5095_v5  ;;  %v5098_v4 = vadd.f32 %v9975_v33, %v5097_v24  ;;  %v5099_v59 = vpop.f32.mrb[155].mxu1  ;;  %5790 = vst [vmem:[%s10236_s5 + $0x40] sm:$0xff] %v5672_v1 }
 0x455   :  { %v5387_v18 = vadd.f32 %v9950_v20, %v5098_v4  ;;  %v5570_v49 = vadd.f32 %v5506_v62, %v5384_v0  ;;  %v5704_v63 = vpop.trf.xlu1 }
 0x456   :  { %5791 = vst [vmem:[%s10236_s5 + $0x48] sm:$0xff] %v5704_v63  ;;  %v5673_v62 = vpop.trf.xlu0 }
 0x457   :  { %v5634_v51 = vmax.f32 %v5570_v49, 0.0  ;;  %v5571_v11 = vadd.f32 %v5507_v14, %v5387_v18  ;;  %5794 = vst [vmem:[%s10236_s5 + $0x60] sm:$0xff] %v5673_v62 }
 0x459   :  { %5730 = vxpose.xlu0.b32.cont [13/16] (narrow) %v5634_v51, 32  ;;  %v5635_v15 = vmax.f32 %v5571_v11, 0.0  ;;  %v5705_v24 = vpop.trf.xlu1 }
 0x45a   :  { %5795 = vst [vmem:[%s10236_s5 + $0x68] sm:$0xff] %v5705_v24 }
 0x45c   :  { %v5102_v48 = vpop.f32.mrb[156].mxu1 }
 0x45d   :  { %v5103_v23 = vadd.f32 %v9975_v33, %v5102_v48  ;;  %v5104_v47 = vpop.f32.mrb[157].mxu1  ;;  %5731 = vxpose.xlu0.b32.cont [14/16] (narrow) %v5635_v15, 32 }
 0x45e   :  { %v5105_v56 = vpop.f32.mrb[158].mxu1 }
 0x45f   :  { %v5392_v61 = vadd.f32 %v9944_v19, %v5103_v23  ;;  %v5106_v46 = vadd.f32 %v9975_v33, %v5105_v56  ;;  %v5107_v20 = vpop.f32.mrb[159].mxu1 }
 0x461   :  { %v5395_v55 = vadd.f32 %v9948_v31, %v5106_v46  ;;  %v5572_v17 = vadd.f32 %v5508_v57, %v5392_v61 }
 0x463   :  { %v5636_v12 = vmax.f32 %v5572_v17, 0.0  ;;  %v5573_v39 = vadd.f32 %v5509_v28, %v5395_v55 }
 0x465   :  { %5732 = vxpose.xlu0.b32.cont [15/16] (narrow) %v5636_v12, 32  ;;  %v5637_v37 = vmax.f32 %v5573_v39, 0.0 }
 0x468   :  { %v5110_v22 = vpop.f32.mrb[160].mxu1 }
 0x469   :  { %v5111_v45 = vadd.f32 %v9975_v33, %v5110_v22  ;;  %v5112_v27 = vpop.f32.mrb[161].mxu1  ;;  %5733 = vxpose.xlu0.b32.end [16/16] (narrow) %v5637_v37, 32 }
 0x46a   :  { %v5113_v19 = vpop.f32.mrb[162].mxu1 }
 0x46b   :  { %v5400_v35 = vadd.f32 %v9995_v3, %v5111_v45  ;;  %v5114_v38 = vadd.f32 %v9975_v33, %v5113_v19  ;;  %v5115_v31 = vpop.f32.mrb[163].mxu1 }
 0x46d   :  { %v5403_v53 = vadd.f32 %v10001_v34, %v5114_v38  ;;  %v5574_v16 = vadd.f32 %v5510_v58, %v5400_v35  ;;  %v5514_v35 = vld [vmem:[%s10231_s0 + $0x1a0] sm:$0xff] }
 0x46f   :  { %v5638_v40 = vmax.f32 %v5574_v16, 0.0  ;;  %v5575_v36 = vadd.f32 %v5511_v50, %v5403_v53 }
 0x471   :  { %5750 = vxpose.xlu1.b32.start [1/16] (narrow) %v5638_v40, 32  ;;  %v5639_v44 = vmax.f32 %v5575_v36, 0.0  ;;  %v5515_v36 = vld [vmem:[%s10231_s0 + $0x1a8] sm:$0xff] }
 0x474   :  { %v5118_v60 = vpop.f32.mrb[164].mxu1 }
 0x475   :  { %v5119_v10 = vadd.f32 %v9975_v33, %v5118_v60  ;;  %v5120_v8 = vpop.f32.mrb[165].mxu1  ;;  %5751 = vxpose.xlu1.b32.cont [2/16] (narrow) %v5639_v44, 32 }
 0x476   :  { %v5121_v3 = vpop.f32.mrb[166].mxu1 }
 0x477   :  { %v5408_v52 = vadd.f32 %v9993_v54, %v5119_v10  ;;  %v5122_v7 = vadd.f32 %v9975_v33, %v5121_v3  ;;  %v5123_v34 = vpop.f32.mrb[167].mxu1 }
 0x479   :  { %v5411_v32 = vadd.f32 %v9999_v29, %v5122_v7  ;;  %v5576_v42 = vadd.f32 %v5512_v43, %v5408_v52  ;;  %v5516_v52 = vld [vmem:[%s10231_s0 + $0x1b0] sm:$0xff] }
 0x47b   :  { %v5640_v54 = vmax.f32 %v5576_v42, 0.0  ;;  %v5577_v41 = vadd.f32 %v5513_v25, %v5411_v32 }
 0x47d   :  { %5752 = vxpose.xlu1.b32.cont [3/16] (narrow) %v5640_v54, 32  ;;  %v5641_v29 = vmax.f32 %v5577_v41, 0.0 }
 0x480   :  { %v5126_v30 = vpop.f32.mrb[168].mxu1 }
 0x481   :  { %v5128_v2 = vpop.f32.mrb[169].mxu1  ;;  %5753 = vxpose.xlu1.b32.cont [4/16] (narrow) %v5641_v29, 32  ;;  %v5127_v22 = vadd.f32 %v9975_v33, %v5126_v30 }
 0x482   :  { %v5129_v5 = vpop.f32.mrb[170].mxu1 }
 0x483   :  { %v5131_v13 = vpop.f32.mrb[171].mxu1  ;;  %v5130_v31 = vadd.f32 %v9975_v33, %v5129_v5 }
 0x484   :  { %v5518_v13 = vld [vmem:[%s10231_s0 + $0x1c0] sm:$0xff] }
 0x48c   :  { %v5134_v0 = vpop.f32.mrb[172].mxu1 }
 0x48d   :  { %v5136_v4 = vpop.f32.mrb[173].mxu1  ;;  %v5135_v37 = vadd.f32 %v9975_v33, %v5134_v0 }
 0x48e   :  { %v5137_v59 = vpop.f32.mrb[174].mxu1 }
 0x48f   :  { %v5139_v14 = vpop.f32.mrb[175].mxu1  ;;  %v5138_v27 = vadd.f32 %v9975_v33, %v5137_v59 }
 0x498   :  { %v5142_v18 = vpop.f32.mrb[176].mxu1 }
 0x499   :  { %v5144_v49 = vpop.f32.mrb[177].mxu1  ;;  %v5143_v7 = vadd.f32 %v9975_v33, %v5142_v18 }
 0x49a   :  { %v5145_v51 = vpop.f32.mrb[178].mxu1 }
 0x49b   :  { %v5147_v11 = vpop.f32.mrb[179].mxu1  ;;  %v5146_v32 = vadd.f32 %v9975_v33, %v5145_v51 }
 0x4a4   :  { %v5150_v15 = vpop.f32.mrb[180].mxu1 }
 0x4a5   :  { %v5152_v48 = vpop.f32.mrb[181].mxu1  ;;  %v5151_v43 = vadd.f32 %v9975_v33, %v5150_v15  ;;  %v5519_v15 = vld [vmem:[%s10231_s0 + $0x1c8] sm:$0xff] }
 0x4a6   :  { %v5153_v23 = vpop.f32.mrb[182].mxu1 }
 0x4a7   :  { %v5155_v47 = vpop.f32.mrb[183].mxu1  ;;  %v5154_v25 = vadd.f32 %v9975_v33, %v5153_v23 }
 0x4ad   :  { %v5734_v55 = vpop.trf.xlu0 }
 0x4ae   :  { %5784 = vst [vmem:[%s10236_s5 + $0x10] sm:$0xff] %v5734_v55 }
 0x4b0   :  { %v5158_v56 = vpop.f32.mrb[184].mxu1 }
 0x4b1   :  { %v5160_v57 = vpop.f32.mrb[185].mxu1  ;;  %v5735_v39 = vpop.trf.xlu0  ;;  %v5159_v24 = vadd.f32 %v9975_v33, %v5158_v56 }
 0x4b2   :  { %v5161_v61 = vpop.f32.mrb[186].mxu1  ;;  %5788 = vst [vmem:[%s10236_s5 + $0x30] sm:$0xff] %v5735_v39 }
 0x4b3   :  { %v5163_v46 = vpop.f32.mrb[187].mxu1  ;;  %v5162_v14 = vadd.f32 %v9975_v33, %v5161_v61 }
 0x4b4   :  { %v5520_v46 = vld [vmem:[%s10231_s0 + $0x1d0] sm:$0xff] }
 0x4b5   :  { %v5736_v38 = vpop.trf.xlu0 }
 0x4b6   :  { %5792 = vst [vmem:[%s10236_s5 + $0x50] sm:$0xff] %v5736_v38 }
 0x4b9   :  { %v5737_v10 = vpop.trf.xlu0 }
 0x4ba   :  { %5796 = vst [vmem:[%s10236_s5 + $0x70] sm:$0xff] %v5737_v10 }
 0x4bc   :  { %v5166_v20 = vpop.f32.mrb[188].mxu1 }
 0x4bd   :  { %v5168_v28 = vpop.f32.mrb[189].mxu1  ;;  %v5167_v5 = vadd.f32 %v9975_v33, %v5166_v20  ;;  %v5521_v20 = vld [vmem:[%s10231_s0 + $0x1d8] sm:$0xff] }
 0x4be   :  { %v5169_v17 = vpop.f32.mrb[190].mxu1 }
 0x4bf   :  { %v5171_v12 = vpop.f32.mrb[191].mxu1  ;;  %v5170_v0 = vadd.f32 %v9975_v33, %v5169_v17  ;;  %v5522_v17 = vld [vmem:[%s10231_s0 + $0x1e0] sm:$0xff] }
 0x4c4   :  { %v6098_v45 = vpop.f32.mrb[192].mxu1 }
 0x4c5   :  { %v5424_v19 = vadd.f32 %v6098_v45, %v5135_v37  ;;  %v5415_v58 = vpop.f32.mrb[193].mxu1  ;;  %v5523_v37 = vld [vmem:[%s10231_s0 + $0x1e8] sm:$0xff] }
 0x4c6   :  { %v5416_v50 = vadd.f32 %v5415_v58, %v5127_v22  ;;  %v6099_v53 = vpop.f32.mrb[194].mxu1 }
 0x4c7   :  { %v5427_v16 = vadd.f32 %v6099_v53, %v5138_v27  ;;  %v5418_v40 = vpop.f32.mrb[195].mxu1  ;;  %v5580_v42 = vadd.f32 %v5516_v52, %v5424_v19  ;;  %v5524_v27 = vld [vmem:[%s10231_s0 + $0x1f0] sm:$0xff] }
 0x4c8   :  { %v5578_v44 = vadd.f32 %v5514_v35, %v5416_v50  ;;  %v5419_v60 = vadd.f32 %v5418_v40, %v5130_v31  ;;  %v5525_v35 = vld [vmem:[%s10231_s0 + $0x1f8] sm:$0xff] }
 0x4c9   :  { %v5644_v2 = vmax.f32 %v5580_v42, 0.0  ;;  %v5581_v1 = vadd.f32 %v5517_v21, %v5427_v16 }
 0x4ca   :  { %v5642_v8 = vmax.f32 %v5578_v44, 0.0  ;;  %v5579_v3 = vadd.f32 %v5515_v36, %v5419_v60 }
 0x4cb   :  { %v5645_v18 = vmax.f32 %v5581_v1, 0.0 }
 0x4cc   :  { %v6102_v34 = vpop.f32.mrb[196].mxu1  ;;  %5754 = vxpose.xlu1.b32.cont [5/16] (narrow) %v5642_v8, 32  ;;  %v5643_v54 = vmax.f32 %v5579_v3, 0.0 }
 0x4cd   :  { %v5440_v9 = vadd.f32 %v6102_v34, %v5151_v43  ;;  %v5431_v6 = vpop.f32.mrb[197].mxu1 }
 0x4ce   :  { %v5432_v41 = vadd.f32 %v5431_v6, %v5143_v7  ;;  %v6103_v26 = vpop.f32.mrb[198].mxu1 }
 0x4cf   :  { %v5443_v29 = vadd.f32 %v6103_v26, %v5154_v25  ;;  %v5434_v30 = vpop.f32.mrb[199].mxu1  ;;  %v5584_v33 = vadd.f32 %v5520_v46, %v5440_v9 }
 0x4d0   :  { %v5435_v63 = vadd.f32 %v5434_v30, %v5146_v32  ;;  %5755 = vxpose.xlu1.b32.cont [6/16] (narrow) %v5643_v54, 32  ;;  %v5582_v49 = vadd.f32 %v5518_v13, %v5432_v41 }
 0x4d1   :  { %v5648_v28 = vmax.f32 %v5584_v33, 0.0  ;;  %v5585_v55 = vadd.f32 %v5521_v20, %v5443_v29 }
 0x4d2   :  { %v5646_v56 = vmax.f32 %v5582_v49, 0.0  ;;  %v5583_v57 = vadd.f32 %v5519_v15, %v5435_v63 }
 0x4d3   :  { %v5649_v12 = vmax.f32 %v5585_v55, 0.0 }
 0x4d4   :  { %v6106_v62 = vpop.f32.mrb[200].mxu1  ;;  %5756 = vxpose.xlu1.b32.cont [7/16] (narrow) %v5644_v2, 32  ;;  %v5647_v61 = vmax.f32 %v5583_v57, 0.0 }
 0x4d5   :  { %v5456_v4 = vadd.f32 %v6106_v62, %v5167_v5  ;;  %v5447_v59 = vpop.f32.mrb[201].mxu1 }
 0x4d6   :  { %v5448_v51 = vadd.f32 %v5447_v59, %v5159_v24  ;;  %v6107_v11 = vpop.f32.mrb[202].mxu1 }
 0x4d7   :  { %v5459_v48 = vadd.f32 %v6107_v11, %v5170_v0  ;;  %v5450_v23 = vpop.f32.mrb[203].mxu1  ;;  %v5588_v19 = vadd.f32 %v5524_v27, %v5456_v4 }
 0x4d8   :  { %v5451_v47 = vadd.f32 %v5450_v23, %v5162_v14  ;;  %5757 = vxpose.xlu1.b32.cont [8/16] (narrow) %v5645_v18, 32  ;;  %v5586_v39 = vadd.f32 %v5522_v17, %v5448_v51 }
 0x4d9   :  { %v5652_v38 = vmax.f32 %v5588_v19, 0.0  ;;  %v5589_v31 = vadd.f32 %v5525_v35, %v5459_v48 }
 0x4da   :  { %v5650_v22 = vmax.f32 %v5586_v39, 0.0  ;;  %v5587_v45 = vadd.f32 %v5523_v37, %v5451_v47 }
 0x4db   :  { %v5653_v50 = vmax.f32 %v5589_v31, 0.0 }
 0x4dc   :  { %5758 = vxpose.xlu1.b32.cont [9/16] (narrow) %v5646_v56, 32  ;;  %v5651_v58 = vmax.f32 %v5587_v45, 0.0 }
 0x4e0   :  { %5759 = vxpose.xlu1.b32.cont [10/16] (narrow) %v5647_v61, 32 }
 0x4e4   :  { %5760 = vxpose.xlu1.b32.cont [11/16] (narrow) %v5648_v28, 32 }
 0x4e8   :  { %5761 = vxpose.xlu1.b32.cont [12/16] (narrow) %v5649_v12, 32 }
 0x4ec   :  { %5762 = vxpose.xlu1.b32.cont [13/16] (narrow) %v5650_v22, 32 }
 0x4f0   :  { %5763 = vxpose.xlu1.b32.cont [14/16] (narrow) %v5651_v58, 32 }
 0x4f4   :  { %5764 = vxpose.xlu1.b32.cont [15/16] (narrow) %v5652_v38, 32 }
 0x4f8   :  { %5765 = vxpose.xlu1.b32.end [16/16] (narrow) %v5653_v50, 32 }
 0x53c   :  { %v5766_v53 = vpop.trf.xlu1 }
 0x53d   :  { %5785 = vst [vmem:[%s10236_s5 + $0x18] sm:$0xff] %v5766_v53 }
 0x540   :  { %v5767_v16 = vpop.trf.xlu1 }
 0x541   :  { %5789 = vst [vmem:[%s10236_s5 + $0x38] sm:$0xff] %v5767_v16 }
 0x544   :  { %v5768_v40 = vpop.trf.xlu1 }
 0x545   :  { %5793 = vst [vmem:[%s10236_s5 + $0x58] sm:$0xff] %v5768_v40 }
 0x548   :  { %v5769_v36 = vpop.trf.xlu1 }
 0x549   :  { %5797 = vst [vmem:[%s10236_s5 + $0x78] sm:$0xff] %v5769_v36 }

</bundles_post_ra>
